<compile_context>
chip_gen: v6e
topology: v6e:2x2x1
jax: 0.10.0
libtpu: 0.0.40
codegen_flags: <defaults>
</compile_context>

<pallas_src>
import jax
import jax.numpy as jnp
from jax.experimental import pallas as pl
from jax.experimental.pallas import tpu as pltpu

LANE = 128   # padded width of each pooled-column half (valid cols: Wo*Cout = 80 for every layer)
TB = 32      # samples per grid step (multiple of 8; review: 16-32 v5e, 32-64 v6e/v7x)


# ----------------------------- in-kernel helpers -----------------------------

def _conv_pool_relu(act, m_ref, bt_ref, *, cin, ho):
    """One conv5x5('same') -> maxpool2x2 -> +bias -> relu stage for a TB-sample block.

    act   : (2*ho, TB, W*cin) activations, layout (input row, sample, w*cin), any float dtype.
    m_ref : (5, (W+4)*cin, 256) bf16 banded ("Toeplitz") weights; output cols are
            [even conv col | odd conv col], each half padded to 128 lanes (valid :Wo*Cout).
    bt_ref: (1, 128) f32 bias tiled over pooled output cols (valid :Wo*Cout, rest 0).
    Returns (ho, TB, 128) f32 pooled activations; cols >= Wo*Cout are exactly 0.
    """
    h, tb, wc = act.shape                        # h = 2*ho, wc = W*cin
    kdim = m_ref.shape[1]                        # (W+4)*cin
    c0 = 2 * cin                                 # left zero-pad width (in lanes)
    a = act.astype(jnp.bfloat16)

    # Build the zero-padded input as a value (borders are jnp.zeros); stays VMEM-resident.
    zl = jnp.zeros((h, tb, c0), jnp.bfloat16)
    zr = jnp.zeros((h, tb, kdim - c0 - wc), jnp.bfloat16)
    zrow = jnp.zeros((2, tb, kdim), jnp.bfloat16)
    pad = jnp.concatenate(
        [zrow, jnp.concatenate([zl, a, zr], axis=2), zrow], axis=0)   # (h+4, TB, kdim)

    # Conv output row c uses padded rows c+kh, kh=0..4: one matmul per kh, f32 accumulate.
    acc = None
    for kh in range(5):                          # static unroll -> static slices
        slab = pad[kh:kh + h].reshape(h * tb, kdim)
        d = jnp.dot(slab, m_ref[kh], preferred_element_type=jnp.float32)
        acc = d if acc is None else acc + d      # (h*TB, 256) f32

    # 2x2 max-pool: W-pool = aligned lane-half max; bias after pool (commutes with max).
    ymw = jnp.maximum(acc[:, :LANE], acc[:, LANE:]) + bt_ref[...]     # (h*TB, 128)
    # H-pool: row (2i+d)*TB + s  ->  [i, d*TB + s]; max over d.
    t = ymw.reshape(ho, 2 * tb, LANE)
    pooled = jnp.maximum(t[:, :tb, :], t[:, tb:, :])                  # (ho, TB, 128)
    return jnp.maximum(pooled, 0.0)                                   # ReLU


# ----------------------------- fused kernel ----------------------------------

def _net4_kernel(x_ref, m1_ref, m2_ref, m3_ref, m4_ref,
                 bt1_ref, bt2_ref, bt3_ref, bt4_ref,
                 fw1_ref, fb1_ref, fw2_ref, fb2_ref,
                 conv_ref, x5_ref, logp_ref):
    tb = x_ref.shape[1]

    # conv tower: 16x16x1 -> 8x8x10 -> 4x4x20 -> 2x2x40 -> 1x1x80, all VMEM-resident
    p1 = _conv_pool_relu(x_ref[...], m1_ref, bt1_ref, cin=1, ho=8)      # (8, TB, 128)
    conv_ref[0:8, :, :] = p1
    p2 = _conv_pool_relu(p1[:, :, :80], m2_ref, bt2_ref, cin=10, ho=4)  # (4, TB, 128)
    conv_ref[8:12, :, :] = p2
    p3 = _conv_pool_relu(p2[:, :, :80], m3_ref, bt3_ref, cin=20, ho=2)  # (2, TB, 128)
    conv_ref[12:14, :, :] = p3
    p4 = _conv_pool_relu(p3[:, :, :80], m4_ref, bt4_ref, cin=40, ho=1)  # (1, TB, 128)
    conv_ref[14:15, :, :] = p4

    # FC head (f32), once per TB-block: fc1 -> relu -> dropout(eval) -> fc2 -> log_softmax
    flat = p4.reshape(tb, LANE)                                         # cols 80: are exactly 0
    hfc = jnp.maximum(
        jnp.dot(flat, fw1_ref[...], preferred_element_type=jnp.float32) + fb1_ref[...], 0.0)
    x5_ref[...] = hfc                                                   # (TB, 128), valid :50
    # TODO(synk): F.dropout is identity here (eval mode); training-mode dropout would need
    #             pltpu.prng_seed / prng_random_bits and is omitted.
    logits = jnp.dot(hfc, fw2_ref[...], preferred_element_type=jnp.float32) + fb2_ref[...]
    m = jnp.max(logits, axis=-1, keepdims=True)                         # padded cols hold -1e9
    s = logits - m
    logp_ref[...] = s - jnp.log(jnp.sum(jnp.exp(s), axis=-1, keepdims=True))


# ----------------------------- wrapper ---------------------------------------

def _toeplitz_rhs(w_hwio, width, half=LANE):
    """Banded conv RHS: M[kh] has K rows = (padded col q, cin) and 256 output cols =
    [even conv cols | odd conv cols], each half (W/2)*Cout wide and zero-padded to 128 lanes
    so the in-kernel W-pool is an aligned lane-half max.  (Runs once per call, outside kernel.)"""
    kh_, kw_, cin, cout = w_hwio.shape
    wp = width + kw_ - 1
    q = jnp.arange(wp)
    c = jnp.arange(width)
    kw = q[:, None] - c[None, :]                       # padded col q feeds out col c via tap kw
    valid = (kw >= 0) & (kw < kw_)
    t = w_hwio[:, jnp.clip(kw, 0, kw_ - 1), :, :]      # (KH, Wp, W, Cin, Cout)
    t = t * valid[None, :, :, None, None].astype(w_hwio.dtype)
    t = t.transpose(0, 1, 3, 2, 4).reshape(kh_, wp * cin, width, cout)
    nv = (width // 2) * cout                           # valid cols per half (= 80)
    even = t[:, :, 0::2, :].reshape(kh_, wp * cin, nv)
    odd = t[:, :, 1::2, :].reshape(kh_, wp * cin, nv)
    z = jnp.zeros((kh_, wp * cin, half - nv), t.dtype)
    return jnp.concatenate([even, z, odd, z], axis=-1)  # (KH, Wp*Cin, 2*half)


def _resident(shape):
    """Full-array, grid-invariant BlockSpec (weights stay VMEM-resident across grid steps)."""
    if len(shape) == 3:
        return pl.BlockSpec(shape, lambda b: (0, 0, 0))
    return pl.BlockSpec(shape, lambda b: (0, 0))


def net4_forward(x_nchw, params, block_b=TB):
    n, c, hh, ww = x_nchw.shape
    assert (c, hh, ww) == (1, 16, 16), "Net4 expects (N, 1, 16, 16) input"
    assert block_b % 8 == 0
    npad = -(-n // block_b) * block_b                  # batch padded to a multiple of TB

    # ---- weight preprocessing (XLA, outside the kernel) ----
    widths = (16, 8, 4, 2)
    ms = [_toeplitz_rhs(params[f"cw{i + 1}"], widths[i]).astype(jnp.bfloat16) for i in range(4)]
    bts = []
    for i in range(4):
        cb = params[f"cb{i + 1}"].astype(jnp.float32)
        valid = (widths[i] // 2) * cb.shape[0]         # = 80
        bts.append(jnp.pad(jnp.tile(cb, widths[i] // 2), (0, LANE - valid)).reshape(1, LANE))
    fw1p = jnp.pad(params["fw1"].astype(jnp.float32), ((0, LANE - 80), (0, LANE - 50)))
    fb1p = jnp.pad(params["fb1"].astype(jnp.float32), (0, LANE - 50)).reshape(1, LANE)
    fw2p = jnp.pad(params["fw2"].astype(jnp.float32), ((0, LANE - 50), (0, LANE - 10)))
    fb2p = jnp.pad(params["fb2"].astype(jnp.float32), (0, LANE - 10),
                   constant_values=-1e9).reshape(1, LANE)

    # input -> (row, sample, col) so the per-block batch sits on the sublane axis
    xt = jnp.transpose(
        jnp.pad(x_nchw.reshape(n, 16, 16).astype(jnp.float32),
                ((0, npad - n), (0, 0), (0, 0))),
        (1, 0, 2))                                     # (16, npad, 16)

    in_specs = [pl.BlockSpec((16, block_b, 16), lambda b: (0, b, 0))]
    in_specs += [_resident(a.shape) for a in ms]
    in_specs += [_resident(a.shape) for a in bts]
    in_specs += [_resident(a.shape) for a in (fw1p, fb1p, fw2p, fb2p)]

    out_shape = (
        jax.ShapeDtypeStruct((15, npad, LANE), jnp.float32),  # rows 0:8 x1, 8:12 x2, 12:14 x3, 14 x4
        jax.ShapeDtypeStruct((npad, LANE), jnp.float32),      # x5  (valid :50)
        jax.ShapeDtypeStruct((npad, LANE), jnp.float32),      # logp (valid :10)
    )
    out_specs = (
        pl.BlockSpec((15, block_b, LANE), lambda b: (0, b, 0)),
        pl.BlockSpec((block_b, LANE), lambda b: (b, 0)),
        pl.BlockSpec((block_b, LANE), lambda b: (b, 0)),
    )

    conv, x5p, logpp = pl.pallas_call(
        _net4_kernel,
        out_shape=out_shape,
        grid=(npad // block_b,),
        in_specs=in_specs,
        out_specs=out_specs,
        compiler_params=pltpu.CompilerParams(dimension_semantics=("parallel",)),
    )(xt, *ms, *bts, fw1p, fb1p, fw2p, fb2p)

    logp = logpp[:n, :10]
    x5 = x5p[:n, :50]
    x1 = jnp.transpose(conv[0:8, :n, :80], (1, 0, 2)).reshape(n, 8, 8, 10)    # NHWC
    x2 = jnp.transpose(conv[8:12, :n, :80], (1, 0, 2)).reshape(n, 4, 4, 20)
    x3 = jnp.transpose(conv[12:14, :n, :80], (1, 0, 2)).reshape(n, 2, 2, 40)
    x4 = jnp.transpose(conv[14:15, :n, :80], (1, 0, 2)).reshape(n, 1, 1, 80)
    return logp, x1, x2, x3, x4, x5


# ----------------------------- reference (pure JAX, sanity check) ------------

def _ref_conv_pool_relu(x, w_hwio, b):
    y = jax.lax.conv_general_dilated(
        x, w_hwio, window_strides=(1, 1), padding=((2, 2), (2, 2)),
        dimension_numbers=("NHWC", "HWIO", "NHWC"))
    y = y + b.reshape(1, 1, 1, -1)
    y = jax.lax.reduce_window(y, -jnp.inf, jax.lax.max, (1, 2, 2, 1), (1, 2, 2, 1), "VALID")
    return jnp.maximum(y, 0.0)


def _ref_forward(x_nchw, params):
    x = jnp.transpose(x_nchw, (0, 2, 3, 1))
    x1 = _ref_conv_pool_relu(x, params["cw1"], params["cb1"])
    x2 = _ref_conv_pool_relu(x1, params["cw2"], params["cb2"])
    x3 = _ref_conv_pool_relu(x2, params["cw3"], params["cb3"])
    x4 = _ref_conv_pool_relu(x3, params["cw4"], params["cb4"])
    flat = x4.reshape(x4.shape[0], -1)
    h = jnp.maximum(flat @ params["fw1"] + params["fb1"], 0.0)
    logits = h @ params["fw2"] + params["fb2"]
    return jax.nn.log_softmax(logits, axis=1), x1, x2, x3, x4, h


# ----------------------------- params / main ---------------------------------

def init_params(key, n_filters=10, filter_size=5, fc_units=50):
    ks = jax.random.split(key, 12)
    chans = [1, n_filters, 2 * n_filters, 4 * n_filters, 8 * n_filters]
    p = {}
    for li in range(4):
        cin, cout = chans[li], chans[li + 1]
        p[f"cw{li + 1}"] = 0.1 * jax.random.normal(
            ks[2 * li], (filter_size, filter_size, cin, cout), jnp.float32)
        p[f"cb{li + 1}"] = 0.1 * jax.random.normal(ks[2 * li + 1], (cout,), jnp.float32)
    p["fw1"] = 0.1 * jax.random.normal(ks[8], (8 * n_filters, fc_units), jnp.float32)
    p["fb1"] = 0.1 * jax.random.normal(ks[9], (fc_units,), jnp.float32)
    p["fw2"] = 0.1 * jax.random.normal(ks[10], (fc_units, 10), jnp.float32)
    p["fb2"] = 0.1 * jax.random.normal(ks[11], (10,), jnp.float32)
    return p


if __name__ == "__main__":
    key = jax.random.PRNGKey(0)
    k_in, k_par = jax.random.split(key)
    # input: (batch=2, channels=1, 16, 16) NCHW — 16x16 so four pool-by-2 stages reach 1x1
    x = jax.random.normal(k_in, (2, 1, 16, 16), jnp.float32)
    params = init_params(k_par)

    fwd = jax.jit(net4_forward)
    logp, x1, x2, x3, x4, x5 = jax.block_until_ready(fwd(x, params))

    assert logp.shape == (2, 10) and x5.shape == (2, 50)
    assert x1.shape == (2, 8, 8, 10) and x2.shape == (2, 4, 4, 20)
    assert x3.shape == (2, 2, 2, 40) and x4.shape == (2, 1, 1, 80)

    # sanity check vs pure-JAX reference (tolerance covers bf16 MXU inputs w/ f32 accumulation)
    r_logp, r_x1, r_x2, r_x3, r_x4, r_x5 = _ref_forward(x, params)
    assert jnp.allclose(logp, r_logp, rtol=3e-2, atol=3e-2)
    assert jnp.allclose(x5, r_x5, rtol=3e-2, atol=3e-2)
    for got, ref in ((x1, r_x1), (x2, r_x2), (x3, r_x3), (x4, r_x4)):
        assert jnp.allclose(got, ref, rtol=6e-2, atol=6e-2)

    print("KERNEL_OK")
</pallas_src>

<mosaic_0001>
module attributes {stable_mosaic.version = 11 : i64} {
  func.func @_net4_kernel(%arg0: i32, %arg1: memref<16x32x16xf32, #tpu.memory_space<vmem>>, %arg2: memref<5x20x256xbf16, #tpu.memory_space<vmem>>, %arg3: memref<5x120x256xbf16, #tpu.memory_space<vmem>>, %arg4: memref<5x160x256xbf16, #tpu.memory_space<vmem>>, %arg5: memref<5x240x256xbf16, #tpu.memory_space<vmem>>, %arg6: memref<1x128xf32, #tpu.memory_space<vmem>>, %arg7: memref<1x128xf32, #tpu.memory_space<vmem>>, %arg8: memref<1x128xf32, #tpu.memory_space<vmem>>, %arg9: memref<1x128xf32, #tpu.memory_space<vmem>>, %arg10: memref<128x128xf32, #tpu.memory_space<vmem>>, %arg11: memref<1x128xf32, #tpu.memory_space<vmem>>, %arg12: memref<128x128xf32, #tpu.memory_space<vmem>>, %arg13: memref<1x128xf32, #tpu.memory_space<vmem>>, %arg14: memref<15x32x128xf32, #tpu.memory_space<vmem>>, %arg15: memref<32x128xf32, #tpu.memory_space<vmem>>, %arg16: memref<32x128xf32, #tpu.memory_space<vmem>>) attributes {dimension_semantics = [#tpu.dimension_semantics<parallel>], iteration_bounds = array<i64: 1>, scalar_prefetch = 0 : i64, scratch_operands = 0 : i64, tpu.core_type = #tpu.core_type<tc>, window_params = [{transform_indices = @transform_0, window_bounds = array<i64: 16, 32, 16>}, {pipeline_mode = #tpu.pipeline_mode<synchronous>, transform_indices = @transform_1, window_bounds = array<i64: 5, 20, 256>}, {pipeline_mode = #tpu.pipeline_mode<synchronous>, transform_indices = @transform_2, window_bounds = array<i64: 5, 120, 256>}, {pipeline_mode = #tpu.pipeline_mode<synchronous>, transform_indices = @transform_3, window_bounds = array<i64: 5, 160, 256>}, {pipeline_mode = #tpu.pipeline_mode<synchronous>, transform_indices = @transform_4, window_bounds = array<i64: 5, 240, 256>}, {pipeline_mode = #tpu.pipeline_mode<synchronous>, transform_indices = @transform_5, window_bounds = array<i64: 1, 128>}, {pipeline_mode = #tpu.pipeline_mode<synchronous>, transform_indices = @transform_6, window_bounds = array<i64: 1, 128>}, {pipeline_mode = #tpu.pipeline_mode<synchronous>, transform_indices = @transform_7, window_bounds = array<i64: 1, 128>}, {pipeline_mode = #tpu.pipeline_mode<synchronous>, transform_indices = @transform_8, window_bounds = array<i64: 1, 128>}, {pipeline_mode = #tpu.pipeline_mode<synchronous>, transform_indices = @transform_9, window_bounds = array<i64: 128, 128>}, {pipeline_mode = #tpu.pipeline_mode<synchronous>, transform_indices = @transform_10, window_bounds = array<i64: 1, 128>}, {pipeline_mode = #tpu.pipeline_mode<synchronous>, transform_indices = @transform_11, window_bounds = array<i64: 128, 128>}, {pipeline_mode = #tpu.pipeline_mode<synchronous>, transform_indices = @transform_12, window_bounds = array<i64: 1, 128>}, {transform_indices = @transform_13, window_bounds = array<i64: 15, 32, 128>}, {transform_indices = @transform_14, window_bounds = array<i64: 32, 128>}, {transform_indices = @transform_15, window_bounds = array<i64: 32, 128>}]} {
    %c0 = arith.constant 0 : index
    %c0_0 = arith.constant 0 : index
    %c0_1 = arith.constant 0 : index
    %0 = vector.load %arg1[%c0, %c0_0, %c0_1] : memref<16x32x16xf32, #tpu.memory_space<vmem>>, vector<16x32x16xf32>
    %1 = arith.truncf %0 : vector<16x32x16xf32> to vector<16x32x16xbf16>
    %cst = arith.constant 0.000000e+00 : bf16
    %2 = vector.broadcast %cst : bf16 to vector<16x32x2xbf16>
    %cst_2 = arith.constant 0.000000e+00 : bf16
    %3 = vector.broadcast %cst_2 : bf16 to vector<16x32x2xbf16>
    %cst_3 = arith.constant 0.000000e+00 : bf16
    %4 = vector.broadcast %cst_3 : bf16 to vector<2x32x20xbf16>
    %5 = tpu.concatenate %2, %1, %3 in 2 : vector<16x32x2xbf16>, vector<16x32x16xbf16>, vector<16x32x2xbf16> -> vector<16x32x20xbf16>
    %6 = tpu.concatenate %4, %5, %4 in 0 : vector<2x32x20xbf16>, vector<16x32x20xbf16>, vector<2x32x20xbf16> -> vector<20x32x20xbf16>
    %7 = vector.extract_strided_slice %6 {offsets = [0, 0, 0], sizes = [16, 32, 20], strides = [1, 1, 1]} : vector<20x32x20xbf16> to vector<16x32x20xbf16>
    %8 = vector.shape_cast %7 : vector<16x32x20xbf16> to vector<512x20xbf16>
    %c0_4 = arith.constant 0 : index
    %c0_5 = arith.constant 0 : index
    %c0_6 = arith.constant 0 : index
    %9 = vector.load %arg2[%c0_4, %c0_5, %c0_6] : memref<5x20x256xbf16, #tpu.memory_space<vmem>>, vector<1x20x256xbf16>
    %10 = vector.shape_cast %9 : vector<1x20x256xbf16> to vector<20x256xbf16>
    %cst_7 = arith.constant dense<0.000000e+00> : vector<512x256xf32>
    %11 = tpu.matmul %8, %10, %cst_7 {dimension_numbers = #tpu.dot_dimension_numbers<[1], [0], [0], [1], [0, 0, 1, 1], [], []>} : vector<512x20xbf16>, vector<20x256xbf16>, vector<512x256xf32> -> vector<512x256xf32>
    %12 = vector.extract_strided_slice %6 {offsets = [1, 0, 0], sizes = [16, 32, 20], strides = [1, 1, 1]} : vector<20x32x20xbf16> to vector<16x32x20xbf16>
    %13 = vector.shape_cast %12 : vector<16x32x20xbf16> to vector<512x20xbf16>
    %c1 = arith.constant 1 : index
    %c0_8 = arith.constant 0 : index
    %c0_9 = arith.constant 0 : index
    %14 = vector.load %arg2[%c1, %c0_8, %c0_9] : memref<5x20x256xbf16, #tpu.memory_space<vmem>>, vector<1x20x256xbf16>
    %15 = vector.shape_cast %14 : vector<1x20x256xbf16> to vector<20x256xbf16>
    %cst_10 = arith.constant dense<0.000000e+00> : vector<512x256xf32>
    %16 = tpu.matmul %13, %15, %cst_10 {dimension_numbers = #tpu.dot_dimension_numbers<[1], [0], [0], [1], [0, 0, 1, 1], [], []>} : vector<512x20xbf16>, vector<20x256xbf16>, vector<512x256xf32> -> vector<512x256xf32>
    %17 = arith.addf %11, %16 : vector<512x256xf32>
    %18 = vector.extract_strided_slice %6 {offsets = [2, 0, 0], sizes = [16, 32, 20], strides = [1, 1, 1]} : vector<20x32x20xbf16> to vector<16x32x20xbf16>
    %19 = vector.shape_cast %18 : vector<16x32x20xbf16> to vector<512x20xbf16>
    %c2 = arith.constant 2 : index
    %c0_11 = arith.constant 0 : index
    %c0_12 = arith.constant 0 : index
    %20 = vector.load %arg2[%c2, %c0_11, %c0_12] : memref<5x20x256xbf16, #tpu.memory_space<vmem>>, vector<1x20x256xbf16>
    %21 = vector.shape_cast %20 : vector<1x20x256xbf16> to vector<20x256xbf16>
    %cst_13 = arith.constant dense<0.000000e+00> : vector<512x256xf32>
    %22 = tpu.matmul %19, %21, %cst_13 {dimension_numbers = #tpu.dot_dimension_numbers<[1], [0], [0], [1], [0, 0, 1, 1], [], []>} : vector<512x20xbf16>, vector<20x256xbf16>, vector<512x256xf32> -> vector<512x256xf32>
    %23 = arith.addf %17, %22 : vector<512x256xf32>
    %24 = vector.extract_strided_slice %6 {offsets = [3, 0, 0], sizes = [16, 32, 20], strides = [1, 1, 1]} : vector<20x32x20xbf16> to vector<16x32x20xbf16>
    %25 = vector.shape_cast %24 : vector<16x32x20xbf16> to vector<512x20xbf16>
    %c3 = arith.constant 3 : index
    %c0_14 = arith.constant 0 : index
    %c0_15 = arith.constant 0 : index
    %26 = vector.load %arg2[%c3, %c0_14, %c0_15] : memref<5x20x256xbf16, #tpu.memory_space<vmem>>, vector<1x20x256xbf16>
    %27 = vector.shape_cast %26 : vector<1x20x256xbf16> to vector<20x256xbf16>
    %cst_16 = arith.constant dense<0.000000e+00> : vector<512x256xf32>
    %28 = tpu.matmul %25, %27, %cst_16 {dimension_numbers = #tpu.dot_dimension_numbers<[1], [0], [0], [1], [0, 0, 1, 1], [], []>} : vector<512x20xbf16>, vector<20x256xbf16>, vector<512x256xf32> -> vector<512x256xf32>
    %29 = arith.addf %23, %28 : vector<512x256xf32>
    %30 = vector.extract_strided_slice %6 {offsets = [4, 0, 0], sizes = [16, 32, 20], strides = [1, 1, 1]} : vector<20x32x20xbf16> to vector<16x32x20xbf16>
    %31 = vector.shape_cast %30 : vector<16x32x20xbf16> to vector<512x20xbf16>
    %c4 = arith.constant 4 : index
    %c0_17 = arith.constant 0 : index
    %c0_18 = arith.constant 0 : index
    %32 = vector.load %arg2[%c4, %c0_17, %c0_18] : memref<5x20x256xbf16, #tpu.memory_space<vmem>>, vector<1x20x256xbf16>
    %33 = vector.shape_cast %32 : vector<1x20x256xbf16> to vector<20x256xbf16>
    %cst_19 = arith.constant dense<0.000000e+00> : vector<512x256xf32>
    %34 = tpu.matmul %31, %33, %cst_19 {dimension_numbers = #tpu.dot_dimension_numbers<[1], [0], [0], [1], [0, 0, 1, 1], [], []>} : vector<512x20xbf16>, vector<20x256xbf16>, vector<512x256xf32> -> vector<512x256xf32>
    %35 = arith.addf %29, %34 : vector<512x256xf32>
    %36 = vector.extract_strided_slice %35 {offsets = [0, 0], sizes = [512, 128], strides = [1, 1]} : vector<512x256xf32> to vector<512x128xf32>
    %37 = vector.extract_strided_slice %35 {offsets = [0, 128], sizes = [512, 128], strides = [1, 1]} : vector<512x256xf32> to vector<512x128xf32>
    %38 = arith.maximumf %36, %37 : vector<512x128xf32>
    %c0_20 = arith.constant 0 : index
    %c0_21 = arith.constant 0 : index
    %39 = vector.load %arg6[%c0_20, %c0_21] : memref<1x128xf32, #tpu.memory_space<vmem>>, vector<1x128xf32>
    %40 = vector.broadcast %39 : vector<1x128xf32> to vector<512x128xf32>
    %41 = arith.addf %38, %40 : vector<512x128xf32>
    %42 = vector.shape_cast %41 : vector<512x128xf32> to vector<8x64x128xf32>
    %43 = vector.extract_strided_slice %42 {offsets = [0, 0, 0], sizes = [8, 32, 128], strides = [1, 1, 1]} : vector<8x64x128xf32> to vector<8x32x128xf32>
    %44 = vector.extract_strided_slice %42 {offsets = [0, 32, 0], sizes = [8, 32, 128], strides = [1, 1, 1]} : vector<8x64x128xf32> to vector<8x32x128xf32>
    %45 = arith.maximumf %43, %44 : vector<8x32x128xf32>
    %cst_22 = arith.constant 0.000000e+00 : f32
    %46 = vector.broadcast %cst_22 : f32 to vector<8x32x128xf32>
    %47 = arith.maximumf %45, %46 : vector<8x32x128xf32>
    %c0_23 = arith.constant 0 : index
    %c0_24 = arith.constant 0 : index
    %c0_25 = arith.constant 0 : index
    %48 = vector.load %arg14[%c0_23, %c0_24, %c0_25] : memref<15x32x128xf32, #tpu.memory_space<vmem>>, vector<8x32x128xf32>
    tpu.vector_store %arg14[%c0_23, %c0_24, %c0_25], %47 {strides = array<i32>} : memref<15x32x128xf32, #tpu.memory_space<vmem>>, vector<8x32x128xf32>,
    %49 = vector.extract_strided_slice %47 {offsets = [0, 0, 0], sizes = [8, 32, 80], strides = [1, 1, 1]} : vector<8x32x128xf32> to vector<8x32x80xf32>
    %50 = arith.truncf %49 : vector<8x32x80xf32> to vector<8x32x80xbf16>
    %cst_26 = arith.constant 0.000000e+00 : bf16
    %51 = vector.broadcast %cst_26 : bf16 to vector<8x32x20xbf16>
    %cst_27 = arith.constant 0.000000e+00 : bf16
    %52 = vector.broadcast %cst_27 : bf16 to vector<8x32x20xbf16>
    %cst_28 = arith.constant 0.000000e+00 : bf16
    %53 = vector.broadcast %cst_28 : bf16 to vector<2x32x120xbf16>
    %54 = tpu.concatenate %51, %50, %52 in 2 : vector<8x32x20xbf16>, vector<8x32x80xbf16>, vector<8x32x20xbf16> -> vector<8x32x120xbf16>
    %55 = tpu.concatenate %53, %54, %53 in 0 : vector<2x32x120xbf16>, vector<8x32x120xbf16>, vector<2x32x120xbf16> -> vector<12x32x120xbf16>
    %56 = vector.extract_strided_slice %55 {offsets = [0, 0, 0], sizes = [8, 32, 120], strides = [1, 1, 1]} : vector<12x32x120xbf16> to vector<8x32x120xbf16>
    %57 = vector.shape_cast %56 : vector<8x32x120xbf16> to vector<256x120xbf16>
    %c0_29 = arith.constant 0 : index
    %c0_30 = arith.constant 0 : index
    %c0_31 = arith.constant 0 : index
    %58 = vector.load %arg3[%c0_29, %c0_30, %c0_31] : memref<5x120x256xbf16, #tpu.memory_space<vmem>>, vector<1x120x256xbf16>
    %59 = vector.shape_cast %58 : vector<1x120x256xbf16> to vector<120x256xbf16>
    %cst_32 = arith.constant dense<0.000000e+00> : vector<256x256xf32>
    %60 = tpu.matmul %57, %59, %cst_32 {dimension_numbers = #tpu.dot_dimension_numbers<[1], [0], [0], [1], [0, 0, 1, 1], [], []>} : vector<256x120xbf16>, vector<120x256xbf16>, vector<256x256xf32> -> vector<256x256xf32>
    %61 = vector.extract_strided_slice %55 {offsets = [1, 0, 0], sizes = [8, 32, 120], strides = [1, 1, 1]} : vector<12x32x120xbf16> to vector<8x32x120xbf16>
    %62 = vector.shape_cast %61 : vector<8x32x120xbf16> to vector<256x120xbf16>
    %c1_33 = arith.constant 1 : index
    %c0_34 = arith.constant 0 : index
    %c0_35 = arith.constant 0 : index
    %63 = vector.load %arg3[%c1_33, %c0_34, %c0_35] : memref<5x120x256xbf16, #tpu.memory_space<vmem>>, vector<1x120x256xbf16>
    %64 = vector.shape_cast %63 : vector<1x120x256xbf16> to vector<120x256xbf16>
    %cst_36 = arith.constant dense<0.000000e+00> : vector<256x256xf32>
    %65 = tpu.matmul %62, %64, %cst_36 {dimension_numbers = #tpu.dot_dimension_numbers<[1], [0], [0], [1], [0, 0, 1, 1], [], []>} : vector<256x120xbf16>, vector<120x256xbf16>, vector<256x256xf32> -> vector<256x256xf32>
    %66 = arith.addf %60, %65 : vector<256x256xf32>
    %67 = vector.extract_strided_slice %55 {offsets = [2, 0, 0], sizes = [8, 32, 120], strides = [1, 1, 1]} : vector<12x32x120xbf16> to vector<8x32x120xbf16>
    %68 = vector.shape_cast %67 : vector<8x32x120xbf16> to vector<256x120xbf16>
    %c2_37 = arith.constant 2 : index
    %c0_38 = arith.constant 0 : index
    %c0_39 = arith.constant 0 : index
    %69 = vector.load %arg3[%c2_37, %c0_38, %c0_39] : memref<5x120x256xbf16, #tpu.memory_space<vmem>>, vector<1x120x256xbf16>
    %70 = vector.shape_cast %69 : vector<1x120x256xbf16> to vector<120x256xbf16>
    %cst_40 = arith.constant dense<0.000000e+00> : vector<256x256xf32>
    %71 = tpu.matmul %68, %70, %cst_40 {dimension_numbers = #tpu.dot_dimension_numbers<[1], [0], [0], [1], [0, 0, 1, 1], [], []>} : vector<256x120xbf16>, vector<120x256xbf16>, vector<256x256xf32> -> vector<256x256xf32>
    %72 = arith.addf %66, %71 : vector<256x256xf32>
    %73 = vector.extract_strided_slice %55 {offsets = [3, 0, 0], sizes = [8, 32, 120], strides = [1, 1, 1]} : vector<12x32x120xbf16> to vector<8x32x120xbf16>
    %74 = vector.shape_cast %73 : vector<8x32x120xbf16> to vector<256x120xbf16>
    %c3_41 = arith.constant 3 : index
    %c0_42 = arith.constant 0 : index
    %c0_43 = arith.constant 0 : index
    %75 = vector.load %arg3[%c3_41, %c0_42, %c0_43] : memref<5x120x256xbf16, #tpu.memory_space<vmem>>, vector<1x120x256xbf16>
    %76 = vector.shape_cast %75 : vector<1x120x256xbf16> to vector<120x256xbf16>
    %cst_44 = arith.constant dense<0.000000e+00> : vector<256x256xf32>
    %77 = tpu.matmul %74, %76, %cst_44 {dimension_numbers = #tpu.dot_dimension_numbers<[1], [0], [0], [1], [0, 0, 1, 1], [], []>} : vector<256x120xbf16>, vector<120x256xbf16>, vector<256x256xf32> -> vector<256x256xf32>
    %78 = arith.addf %72, %77 : vector<256x256xf32>
    %79 = vector.extract_strided_slice %55 {offsets = [4, 0, 0], sizes = [8, 32, 120], strides = [1, 1, 1]} : vector<12x32x120xbf16> to vector<8x32x120xbf16>
    %80 = vector.shape_cast %79 : vector<8x32x120xbf16> to vector<256x120xbf16>
    %c4_45 = arith.constant 4 : index
    %c0_46 = arith.constant 0 : index
    %c0_47 = arith.constant 0 : index
    %81 = vector.load %arg3[%c4_45, %c0_46, %c0_47] : memref<5x120x256xbf16, #tpu.memory_space<vmem>>, vector<1x120x256xbf16>
    %82 = vector.shape_cast %81 : vector<1x120x256xbf16> to vector<120x256xbf16>
    %cst_48 = arith.constant dense<0.000000e+00> : vector<256x256xf32>
    %83 = tpu.matmul %80, %82, %cst_48 {dimension_numbers = #tpu.dot_dimension_numbers<[1], [0], [0], [1], [0, 0, 1, 1], [], []>} : vector<256x120xbf16>, vector<120x256xbf16>, vector<256x256xf32> -> vector<256x256xf32>
    %84 = arith.addf %78, %83 : vector<256x256xf32>
    %85 = vector.extract_strided_slice %84 {offsets = [0, 0], sizes = [256, 128], strides = [1, 1]} : vector<256x256xf32> to vector<256x128xf32>
    %86 = vector.extract_strided_slice %84 {offsets = [0, 128], sizes = [256, 128], strides = [1, 1]} : vector<256x256xf32> to vector<256x128xf32>
    %87 = arith.maximumf %85, %86 : vector<256x128xf32>
    %c0_49 = arith.constant 0 : index
    %c0_50 = arith.constant 0 : index
    %88 = vector.load %arg7[%c0_49, %c0_50] : memref<1x128xf32, #tpu.memory_space<vmem>>, vector<1x128xf32>
    %89 = vector.broadcast %88 : vector<1x128xf32> to vector<256x128xf32>
    %90 = arith.addf %87, %89 : vector<256x128xf32>
    %91 = vector.shape_cast %90 : vector<256x128xf32> to vector<4x64x128xf32>
    %92 = vector.extract_strided_slice %91 {offsets = [0, 0, 0], sizes = [4, 32, 128], strides = [1, 1, 1]} : vector<4x64x128xf32> to vector<4x32x128xf32>
    %93 = vector.extract_strided_slice %91 {offsets = [0, 32, 0], sizes = [4, 32, 128], strides = [1, 1, 1]} : vector<4x64x128xf32> to vector<4x32x128xf32>
    %94 = arith.maximumf %92, %93 : vector<4x32x128xf32>
    %cst_51 = arith.constant 0.000000e+00 : f32
    %95 = vector.broadcast %cst_51 : f32 to vector<4x32x128xf32>
    %96 = arith.maximumf %94, %95 : vector<4x32x128xf32>
    %c8 = arith.constant 8 : index
    %c0_52 = arith.constant 0 : index
    %c0_53 = arith.constant 0 : index
    %97 = vector.load %arg14[%c8, %c0_52, %c0_53] : memref<15x32x128xf32, #tpu.memory_space<vmem>>, vector<4x32x128xf32>
    tpu.vector_store %arg14[%c8, %c0_52, %c0_53], %96 {strides = array<i32>} : memref<15x32x128xf32, #tpu.memory_space<vmem>>, vector<4x32x128xf32>,
    %98 = vector.extract_strided_slice %96 {offsets = [0, 0, 0], sizes = [4, 32, 80], strides = [1, 1, 1]} : vector<4x32x128xf32> to vector<4x32x80xf32>
    %99 = arith.truncf %98 : vector<4x32x80xf32> to vector<4x32x80xbf16>
    %cst_54 = arith.constant 0.000000e+00 : bf16
    %100 = vector.broadcast %cst_54 : bf16 to vector<4x32x40xbf16>
    %cst_55 = arith.constant 0.000000e+00 : bf16
    %101 = vector.broadcast %cst_55 : bf16 to vector<4x32x40xbf16>
    %cst_56 = arith.constant 0.000000e+00 : bf16
    %102 = vector.broadcast %cst_56 : bf16 to vector<2x32x160xbf16>
    %103 = tpu.concatenate %100, %99, %101 in 2 : vector<4x32x40xbf16>, vector<4x32x80xbf16>, vector<4x32x40xbf16> -> vector<4x32x160xbf16>
    %104 = tpu.concatenate %102, %103, %102 in 0 : vector<2x32x160xbf16>, vector<4x32x160xbf16>, vector<2x32x160xbf16> -> vector<8x32x160xbf16>
    %105 = vector.extract_strided_slice %104 {offsets = [0, 0, 0], sizes = [4, 32, 160], strides = [1, 1, 1]} : vector<8x32x160xbf16> to vector<4x32x160xbf16>
    %106 = vector.shape_cast %105 : vector<4x32x160xbf16> to vector<128x160xbf16>
    %c0_57 = arith.constant 0 : index
    %c0_58 = arith.constant 0 : index
    %c0_59 = arith.constant 0 : index
    %107 = vector.load %arg4[%c0_57, %c0_58, %c0_59] : memref<5x160x256xbf16, #tpu.memory_space<vmem>>, vector<1x160x256xbf16>
    %108 = vector.shape_cast %107 : vector<1x160x256xbf16> to vector<160x256xbf16>
    %cst_60 = arith.constant dense<0.000000e+00> : vector<128x256xf32>
    %109 = tpu.matmul %106, %108, %cst_60 {dimension_numbers = #tpu.dot_dimension_numbers<[1], [0], [0], [1], [0, 0, 1, 1], [], []>} : vector<128x160xbf16>, vector<160x256xbf16>, vector<128x256xf32> -> vector<128x256xf32>
    %110 = vector.extract_strided_slice %104 {offsets = [1, 0, 0], sizes = [4, 32, 160], strides = [1, 1, 1]} : vector<8x32x160xbf16> to vector<4x32x160xbf16>
    %111 = vector.shape_cast %110 : vector<4x32x160xbf16> to vector<128x160xbf16>
    %c1_61 = arith.constant 1 : index
    %c0_62 = arith.constant 0 : index
    %c0_63 = arith.constant 0 : index
    %112 = vector.load %arg4[%c1_61, %c0_62, %c0_63] : memref<5x160x256xbf16, #tpu.memory_space<vmem>>, vector<1x160x256xbf16>
    %113 = vector.shape_cast %112 : vector<1x160x256xbf16> to vector<160x256xbf16>
    %cst_64 = arith.constant dense<0.000000e+00> : vector<128x256xf32>
    %114 = tpu.matmul %111, %113, %cst_64 {dimension_numbers = #tpu.dot_dimension_numbers<[1], [0], [0], [1], [0, 0, 1, 1], [], []>} : vector<128x160xbf16>, vector<160x256xbf16>, vector<128x256xf32> -> vector<128x256xf32>
    %115 = arith.addf %109, %114 : vector<128x256xf32>
    %116 = vector.extract_strided_slice %104 {offsets = [2, 0, 0], sizes = [4, 32, 160], strides = [1, 1, 1]} : vector<8x32x160xbf16> to vector<4x32x160xbf16>
    %117 = vector.shape_cast %116 : vector<4x32x160xbf16> to vector<128x160xbf16>
    %c2_65 = arith.constant 2 : index
    %c0_66 = arith.constant 0 : index
    %c0_67 = arith.constant 0 : index
    %118 = vector.load %arg4[%c2_65, %c0_66, %c0_67] : memref<5x160x256xbf16, #tpu.memory_space<vmem>>, vector<1x160x256xbf16>
    %119 = vector.shape_cast %118 : vector<1x160x256xbf16> to vector<160x256xbf16>
    %cst_68 = arith.constant dense<0.000000e+00> : vector<128x256xf32>
    %120 = tpu.matmul %117, %119, %cst_68 {dimension_numbers = #tpu.dot_dimension_numbers<[1], [0], [0], [1], [0, 0, 1, 1], [], []>} : vector<128x160xbf16>, vector<160x256xbf16>, vector<128x256xf32> -> vector<128x256xf32>
    %121 = arith.addf %115, %120 : vector<128x256xf32>
    %122 = vector.extract_strided_slice %104 {offsets = [3, 0, 0], sizes = [4, 32, 160], strides = [1, 1, 1]} : vector<8x32x160xbf16> to vector<4x32x160xbf16>
    %123 = vector.shape_cast %122 : vector<4x32x160xbf16> to vector<128x160xbf16>
    %c3_69 = arith.constant 3 : index
    %c0_70 = arith.constant 0 : index
    %c0_71 = arith.constant 0 : index
    %124 = vector.load %arg4[%c3_69, %c0_70, %c0_71] : memref<5x160x256xbf16, #tpu.memory_space<vmem>>, vector<1x160x256xbf16>
    %125 = vector.shape_cast %124 : vector<1x160x256xbf16> to vector<160x256xbf16>
    %cst_72 = arith.constant dense<0.000000e+00> : vector<128x256xf32>
    %126 = tpu.matmul %123, %125, %cst_72 {dimension_numbers = #tpu.dot_dimension_numbers<[1], [0], [0], [1], [0, 0, 1, 1], [], []>} : vector<128x160xbf16>, vector<160x256xbf16>, vector<128x256xf32> -> vector<128x256xf32>
    %127 = arith.addf %121, %126 : vector<128x256xf32>
    %128 = vector.extract_strided_slice %104 {offsets = [4, 0, 0], sizes = [4, 32, 160], strides = [1, 1, 1]} : vector<8x32x160xbf16> to vector<4x32x160xbf16>
    %129 = vector.shape_cast %128 : vector<4x32x160xbf16> to vector<128x160xbf16>
    %c4_73 = arith.constant 4 : index
    %c0_74 = arith.constant 0 : index
    %c0_75 = arith.constant 0 : index
    %130 = vector.load %arg4[%c4_73, %c0_74, %c0_75] : memref<5x160x256xbf16, #tpu.memory_space<vmem>>, vector<1x160x256xbf16>
    %131 = vector.shape_cast %130 : vector<1x160x256xbf16> to vector<160x256xbf16>
    %cst_76 = arith.constant dense<0.000000e+00> : vector<128x256xf32>
    %132 = tpu.matmul %129, %131, %cst_76 {dimension_numbers = #tpu.dot_dimension_numbers<[1], [0], [0], [1], [0, 0, 1, 1], [], []>} : vector<128x160xbf16>, vector<160x256xbf16>, vector<128x256xf32> -> vector<128x256xf32>
    %133 = arith.addf %127, %132 : vector<128x256xf32>
    %134 = vector.extract_strided_slice %133 {offsets = [0, 0], sizes = [128, 128], strides = [1, 1]} : vector<128x256xf32> to vector<128x128xf32>
    %135 = vector.extract_strided_slice %133 {offsets = [0, 128], sizes = [128, 128], strides = [1, 1]} : vector<128x256xf32> to vector<128x128xf32>
    %136 = arith.maximumf %134, %135 : vector<128x128xf32>
    %c0_77 = arith.constant 0 : index
    %c0_78 = arith.constant 0 : index
    %137 = vector.load %arg8[%c0_77, %c0_78] : memref<1x128xf32, #tpu.memory_space<vmem>>, vector<1x128xf32>
    %138 = vector.broadcast %137 : vector<1x128xf32> to vector<128x128xf32>
    %139 = arith.addf %136, %138 : vector<128x128xf32>
    %140 = vector.shape_cast %139 : vector<128x128xf32> to vector<2x64x128xf32>
    %141 = vector.extract_strided_slice %140 {offsets = [0, 0, 0], sizes = [2, 32, 128], strides = [1, 1, 1]} : vector<2x64x128xf32> to vector<2x32x128xf32>
    %142 = vector.extract_strided_slice %140 {offsets = [0, 32, 0], sizes = [2, 32, 128], strides = [1, 1, 1]} : vector<2x64x128xf32> to vector<2x32x128xf32>
    %143 = arith.maximumf %141, %142 : vector<2x32x128xf32>
    %cst_79 = arith.constant 0.000000e+00 : f32
    %144 = vector.broadcast %cst_79 : f32 to vector<2x32x128xf32>
    %145 = arith.maximumf %143, %144 : vector<2x32x128xf32>
    %c12 = arith.constant 12 : index
    %c0_80 = arith.constant 0 : index
    %c0_81 = arith.constant 0 : index
    %146 = vector.load %arg14[%c12, %c0_80, %c0_81] : memref<15x32x128xf32, #tpu.memory_space<vmem>>, vector<2x32x128xf32>
    tpu.vector_store %arg14[%c12, %c0_80, %c0_81], %145 {strides = array<i32>} : memref<15x32x128xf32, #tpu.memory_space<vmem>>, vector<2x32x128xf32>,
    %147 = vector.extract_strided_slice %145 {offsets = [0, 0, 0], sizes = [2, 32, 80], strides = [1, 1, 1]} : vector<2x32x128xf32> to vector<2x32x80xf32>
    %148 = arith.truncf %147 : vector<2x32x80xf32> to vector<2x32x80xbf16>
    %cst_82 = arith.constant 0.000000e+00 : bf16
    %149 = vector.broadcast %cst_82 : bf16 to vector<2x32x80xbf16>
    %cst_83 = arith.constant 0.000000e+00 : bf16
    %150 = vector.broadcast %cst_83 : bf16 to vector<2x32x80xbf16>
    %cst_84 = arith.constant 0.000000e+00 : bf16
    %151 = vector.broadcast %cst_84 : bf16 to vector<2x32x240xbf16>
    %152 = tpu.concatenate %149, %148, %150 in 2 : vector<2x32x80xbf16>, vector<2x32x80xbf16>, vector<2x32x80xbf16> -> vector<2x32x240xbf16>
    %153 = tpu.concatenate %151, %152, %151 in 0 : vector<2x32x240xbf16>, vector<2x32x240xbf16>, vector<2x32x240xbf16> -> vector<6x32x240xbf16>
    %154 = vector.extract_strided_slice %153 {offsets = [0, 0, 0], sizes = [2, 32, 240], strides = [1, 1, 1]} : vector<6x32x240xbf16> to vector<2x32x240xbf16>
    %155 = vector.shape_cast %154 : vector<2x32x240xbf16> to vector<64x240xbf16>
    %c0_85 = arith.constant 0 : index
    %c0_86 = arith.constant 0 : index
    %c0_87 = arith.constant 0 : index
    %156 = vector.load %arg5[%c0_85, %c0_86, %c0_87] : memref<5x240x256xbf16, #tpu.memory_space<vmem>>, vector<1x240x256xbf16>
    %157 = vector.shape_cast %156 : vector<1x240x256xbf16> to vector<240x256xbf16>
    %cst_88 = arith.constant dense<0.000000e+00> : vector<64x256xf32>
    %158 = tpu.matmul %155, %157, %cst_88 {dimension_numbers = #tpu.dot_dimension_numbers<[1], [0], [0], [1], [0, 0, 1, 1], [], []>} : vector<64x240xbf16>, vector<240x256xbf16>, vector<64x256xf32> -> vector<64x256xf32>
    %159 = vector.extract_strided_slice %153 {offsets = [1, 0, 0], sizes = [2, 32, 240], strides = [1, 1, 1]} : vector<6x32x240xbf16> to vector<2x32x240xbf16>
    %160 = vector.shape_cast %159 : vector<2x32x240xbf16> to vector<64x240xbf16>
    %c1_89 = arith.constant 1 : index
    %c0_90 = arith.constant 0 : index
    %c0_91 = arith.constant 0 : index
    %161 = vector.load %arg5[%c1_89, %c0_90, %c0_91] : memref<5x240x256xbf16, #tpu.memory_space<vmem>>, vector<1x240x256xbf16>
    %162 = vector.shape_cast %161 : vector<1x240x256xbf16> to vector<240x256xbf16>
    %cst_92 = arith.constant dense<0.000000e+00> : vector<64x256xf32>
    %163 = tpu.matmul %160, %162, %cst_92 {dimension_numbers = #tpu.dot_dimension_numbers<[1], [0], [0], [1], [0, 0, 1, 1], [], []>} : vector<64x240xbf16>, vector<240x256xbf16>, vector<64x256xf32> -> vector<64x256xf32>
    %164 = arith.addf %158, %163 : vector<64x256xf32>
    %165 = vector.extract_strided_slice %153 {offsets = [2, 0, 0], sizes = [2, 32, 240], strides = [1, 1, 1]} : vector<6x32x240xbf16> to vector<2x32x240xbf16>
    %166 = vector.shape_cast %165 : vector<2x32x240xbf16> to vector<64x240xbf16>
    %c2_93 = arith.constant 2 : index
    %c0_94 = arith.constant 0 : index
    %c0_95 = arith.constant 0 : index
    %167 = vector.load %arg5[%c2_93, %c0_94, %c0_95] : memref<5x240x256xbf16, #tpu.memory_space<vmem>>, vector<1x240x256xbf16>
    %168 = vector.shape_cast %167 : vector<1x240x256xbf16> to vector<240x256xbf16>
    %cst_96 = arith.constant dense<0.000000e+00> : vector<64x256xf32>
    %169 = tpu.matmul %166, %168, %cst_96 {dimension_numbers = #tpu.dot_dimension_numbers<[1], [0], [0], [1], [0, 0, 1, 1], [], []>} : vector<64x240xbf16>, vector<240x256xbf16>, vector<64x256xf32> -> vector<64x256xf32>
    %170 = arith.addf %164, %169 : vector<64x256xf32>
    %171 = vector.extract_strided_slice %153 {offsets = [3, 0, 0], sizes = [2, 32, 240], strides = [1, 1, 1]} : vector<6x32x240xbf16> to vector<2x32x240xbf16>
    %172 = vector.shape_cast %171 : vector<2x32x240xbf16> to vector<64x240xbf16>
    %c3_97 = arith.constant 3 : index
    %c0_98 = arith.constant 0 : index
    %c0_99 = arith.constant 0 : index
    %173 = vector.load %arg5[%c3_97, %c0_98, %c0_99] : memref<5x240x256xbf16, #tpu.memory_space<vmem>>, vector<1x240x256xbf16>
    %174 = vector.shape_cast %173 : vector<1x240x256xbf16> to vector<240x256xbf16>
    %cst_100 = arith.constant dense<0.000000e+00> : vector<64x256xf32>
    %175 = tpu.matmul %172, %174, %cst_100 {dimension_numbers = #tpu.dot_dimension_numbers<[1], [0], [0], [1], [0, 0, 1, 1], [], []>} : vector<64x240xbf16>, vector<240x256xbf16>, vector<64x256xf32> -> vector<64x256xf32>
    %176 = arith.addf %170, %175 : vector<64x256xf32>
    %177 = vector.extract_strided_slice %153 {offsets = [4, 0, 0], sizes = [2, 32, 240], strides = [1, 1, 1]} : vector<6x32x240xbf16> to vector<2x32x240xbf16>
    %178 = vector.shape_cast %177 : vector<2x32x240xbf16> to vector<64x240xbf16>
    %c4_101 = arith.constant 4 : index
    %c0_102 = arith.constant 0 : index
    %c0_103 = arith.constant 0 : index
    %179 = vector.load %arg5[%c4_101, %c0_102, %c0_103] : memref<5x240x256xbf16, #tpu.memory_space<vmem>>, vector<1x240x256xbf16>
    %180 = vector.shape_cast %179 : vector<1x240x256xbf16> to vector<240x256xbf16>
    %cst_104 = arith.constant dense<0.000000e+00> : vector<64x256xf32>
    %181 = tpu.matmul %178, %180, %cst_104 {dimension_numbers = #tpu.dot_dimension_numbers<[1], [0], [0], [1], [0, 0, 1, 1], [], []>} : vector<64x240xbf16>, vector<240x256xbf16>, vector<64x256xf32> -> vector<64x256xf32>
    %182 = arith.addf %176, %181 : vector<64x256xf32>
    %183 = vector.extract_strided_slice %182 {offsets = [0, 0], sizes = [64, 128], strides = [1, 1]} : vector<64x256xf32> to vector<64x128xf32>
    %184 = vector.extract_strided_slice %182 {offsets = [0, 128], sizes = [64, 128], strides = [1, 1]} : vector<64x256xf32> to vector<64x128xf32>
    %185 = arith.maximumf %183, %184 : vector<64x128xf32>
    %c0_105 = arith.constant 0 : index
    %c0_106 = arith.constant 0 : index
    %186 = vector.load %arg9[%c0_105, %c0_106] : memref<1x128xf32, #tpu.memory_space<vmem>>, vector<1x128xf32>
    %187 = vector.broadcast %186 : vector<1x128xf32> to vector<64x128xf32>
    %188 = arith.addf %185, %187 : vector<64x128xf32>
    %189 = vector.shape_cast %188 : vector<64x128xf32> to vector<1x64x128xf32>
    %190 = vector.extract_strided_slice %189 {offsets = [0, 0, 0], sizes = [1, 32, 128], strides = [1, 1, 1]} : vector<1x64x128xf32> to vector<1x32x128xf32>
    %191 = vector.extract_strided_slice %189 {offsets = [0, 32, 0], sizes = [1, 32, 128], strides = [1, 1, 1]} : vector<1x64x128xf32> to vector<1x32x128xf32>
    %192 = arith.maximumf %190, %191 : vector<1x32x128xf32>
    %cst_107 = arith.constant 0.000000e+00 : f32
    %193 = vector.broadcast %cst_107 : f32 to vector<1x32x128xf32>
    %194 = arith.maximumf %192, %193 : vector<1x32x128xf32>
    %c14 = arith.constant 14 : index
    %c0_108 = arith.constant 0 : index
    %c0_109 = arith.constant 0 : index
    %195 = vector.load %arg14[%c14, %c0_108, %c0_109] : memref<15x32x128xf32, #tpu.memory_space<vmem>>, vector<1x32x128xf32>
    tpu.vector_store %arg14[%c14, %c0_108, %c0_109], %194 {strides = array<i32>} : memref<15x32x128xf32, #tpu.memory_space<vmem>>, vector<1x32x128xf32>,
    %196 = vector.shape_cast %194 : vector<1x32x128xf32> to vector<32x128xf32>
    %c0_110 = arith.constant 0 : index
    %c0_111 = arith.constant 0 : index
    %197 = vector.load %arg10[%c0_110, %c0_111] : memref<128x128xf32, #tpu.memory_space<vmem>>, vector<128x128xf32>
    %cst_112 = arith.constant dense<0.000000e+00> : vector<32x128xf32>
    %198 = tpu.matmul %196, %197, %cst_112 {dimension_numbers = #tpu.dot_dimension_numbers<[1], [0], [0], [1], [0, 0, 1, 1], [], []>} : vector<32x128xf32>, vector<128x128xf32>, vector<32x128xf32> -> vector<32x128xf32>
    %c0_113 = arith.constant 0 : index
    %c0_114 = arith.constant 0 : index
    %199 = vector.load %arg11[%c0_113, %c0_114] : memref<1x128xf32, #tpu.memory_space<vmem>>, vector<1x128xf32>
    %200 = vector.broadcast %199 : vector<1x128xf32> to vector<32x128xf32>
    %201 = arith.addf %198, %200 : vector<32x128xf32>
    %cst_115 = arith.constant 0.000000e+00 : f32
    %202 = vector.broadcast %cst_115 : f32 to vector<32x128xf32>
    %203 = arith.maximumf %201, %202 : vector<32x128xf32>
    %c0_116 = arith.constant 0 : index
    %c0_117 = arith.constant 0 : index
    %204 = vector.load %arg15[%c0_116, %c0_117] : memref<32x128xf32, #tpu.memory_space<vmem>>, vector<32x128xf32>
    tpu.vector_store %arg15[%c0_116, %c0_117], %203 {strides = array<i32>} : memref<32x128xf32, #tpu.memory_space<vmem>>, vector<32x128xf32>,
    %c0_118 = arith.constant 0 : index
    %c0_119 = arith.constant 0 : index
    %205 = vector.load %arg12[%c0_118, %c0_119] : memref<128x128xf32, #tpu.memory_space<vmem>>, vector<128x128xf32>
    %cst_120 = arith.constant dense<0.000000e+00> : vector<32x128xf32>
    %206 = tpu.matmul %203, %205, %cst_120 {dimension_numbers = #tpu.dot_dimension_numbers<[1], [0], [0], [1], [0, 0, 1, 1], [], []>} : vector<32x128xf32>, vector<128x128xf32>, vector<32x128xf32> -> vector<32x128xf32>
    %c0_121 = arith.constant 0 : index
    %c0_122 = arith.constant 0 : index
    %207 = vector.load %arg13[%c0_121, %c0_122] : memref<1x128xf32, #tpu.memory_space<vmem>>, vector<1x128xf32>
    %208 = vector.broadcast %207 : vector<1x128xf32> to vector<32x128xf32>
    %209 = arith.addf %206, %208 : vector<32x128xf32>
    %cst_123 = arith.constant dense<0xFF800000> : vector<32xf32>
    %210 = vector.multi_reduction <maximumf>, %209, %cst_123 [1] : vector<32x128xf32> to vector<32xf32>
    %211 = vector.shape_cast %210 : vector<32xf32> to vector<32x1xf32>
    %212 = vector.broadcast %211 : vector<32x1xf32> to vector<32x128xf32>
    %213 = arith.subf %209, %212 : vector<32x128xf32>
    %214 = math.exp %213 : vector<32x128xf32>
    %cst_124 = arith.constant dense<0.000000e+00> : vector<32xf32>
    %215 = vector.multi_reduction <add>, %214, %cst_124 [1] : vector<32x128xf32> to vector<32xf32>
    %216 = vector.shape_cast %215 : vector<32xf32> to vector<32x1xf32>
    %217 = math.log %216 : vector<32x1xf32>
    %218 = vector.broadcast %217 : vector<32x1xf32> to vector<32x128xf32>
    %219 = arith.subf %213, %218 : vector<32x128xf32>
    %c0_125 = arith.constant 0 : index
    %c0_126 = arith.constant 0 : index
    %220 = vector.load %arg16[%c0_125, %c0_126] : memref<32x128xf32, #tpu.memory_space<vmem>>, vector<32x128xf32>
    tpu.vector_store %arg16[%c0_125, %c0_126], %219 {strides = array<i32>} : memref<32x128xf32, #tpu.memory_space<vmem>>, vector<32x128xf32>,
    return
  }
  func.func @transform_0(%arg0: i32) -> (i32, i32, i32) {
    %c0_i32 = arith.constant 0 : i32
    %c0_i32_0 = arith.constant 0 : i32
    %c0_i32_1 = arith.constant 0 : i32
    return %c0_i32, %arg0, %c0_i32_0 : i32, i32, i32
  }
  func.func @transform_1(%arg0: i32) -> (i32, i32, i32) {
    %c0_i32 = arith.constant 0 : i32
    %c0_i32_0 = arith.constant 0 : i32
    %c0_i32_1 = arith.constant 0 : i32
    %c0_i32_2 = arith.constant 0 : i32
    return %c0_i32, %c0_i32_0, %c0_i32_1 : i32, i32, i32
  }
  func.func @transform_2(%arg0: i32) -> (i32, i32, i32) {
    %c0_i32 = arith.constant 0 : i32
    %c0_i32_0 = arith.constant 0 : i32
    %c0_i32_1 = arith.constant 0 : i32
    %c0_i32_2 = arith.constant 0 : i32
    return %c0_i32, %c0_i32_0, %c0_i32_1 : i32, i32, i32
  }
  func.func @transform_3(%arg0: i32) -> (i32, i32, i32) {
    %c0_i32 = arith.constant 0 : i32
    %c0_i32_0 = arith.constant 0 : i32
    %c0_i32_1 = arith.constant 0 : i32
    %c0_i32_2 = arith.constant 0 : i32
    return %c0_i32, %c0_i32_0, %c0_i32_1 : i32, i32, i32
  }
  func.func @transform_4(%arg0: i32) -> (i32, i32, i32) {
    %c0_i32 = arith.constant 0 : i32
    %c0_i32_0 = arith.constant 0 : i32
    %c0_i32_1 = arith.constant 0 : i32
    %c0_i32_2 = arith.constant 0 : i32
    return %c0_i32, %c0_i32_0, %c0_i32_1 : i32, i32, i32
  }
  func.func @transform_5(%arg0: i32) -> (i32, i32) {
    %c0_i32 = arith.constant 0 : i32
    %c0_i32_0 = arith.constant 0 : i32
    %c0_i32_1 = arith.constant 0 : i32
    return %c0_i32, %c0_i32_0 : i32, i32
  }
  func.func @transform_6(%arg0: i32) -> (i32, i32) {
    %c0_i32 = arith.constant 0 : i32
    %c0_i32_0 = arith.constant 0 : i32
    %c0_i32_1 = arith.constant 0 : i32
    return %c0_i32, %c0_i32_0 : i32, i32
  }
  func.func @transform_7(%arg0: i32) -> (i32, i32) {
    %c0_i32 = arith.constant 0 : i32
    %c0_i32_0 = arith.constant 0 : i32
    %c0_i32_1 = arith.constant 0 : i32
    return %c0_i32, %c0_i32_0 : i32, i32
  }
  func.func @transform_8(%arg0: i32) -> (i32, i32) {
    %c0_i32 = arith.constant 0 : i32
    %c0_i32_0 = arith.constant 0 : i32
    %c0_i32_1 = arith.constant 0 : i32
    return %c0_i32, %c0_i32_0 : i32, i32
  }
  func.func @transform_9(%arg0: i32) -> (i32, i32) {
    %c0_i32 = arith.constant 0 : i32
    %c0_i32_0 = arith.constant 0 : i32
    %c0_i32_1 = arith.constant 0 : i32
    return %c0_i32, %c0_i32_0 : i32, i32
  }
  func.func @transform_10(%arg0: i32) -> (i32, i32) {
    %c0_i32 = arith.constant 0 : i32
    %c0_i32_0 = arith.constant 0 : i32
    %c0_i32_1 = arith.constant 0 : i32
    return %c0_i32, %c0_i32_0 : i32, i32
  }
  func.func @transform_11(%arg0: i32) -> (i32, i32) {
    %c0_i32 = arith.constant 0 : i32
    %c0_i32_0 = arith.constant 0 : i32
    %c0_i32_1 = arith.constant 0 : i32
    return %c0_i32, %c0_i32_0 : i32, i32
  }
  func.func @transform_12(%arg0: i32) -> (i32, i32) {
    %c0_i32 = arith.constant 0 : i32
    %c0_i32_0 = arith.constant 0 : i32
    %c0_i32_1 = arith.constant 0 : i32
    return %c0_i32, %c0_i32_0 : i32, i32
  }
  func.func @transform_13(%arg0: i32) -> (i32, i32, i32) {
    %c0_i32 = arith.constant 0 : i32
    %c0_i32_0 = arith.constant 0 : i32
    %c0_i32_1 = arith.constant 0 : i32
    return %c0_i32, %arg0, %c0_i32_0 : i32, i32, i32
  }
  func.func @transform_14(%arg0: i32) -> (i32, i32) {
    %c0_i32 = arith.constant 0 : i32
    %c0_i32_0 = arith.constant 0 : i32
    return %arg0, %c0_i32 : i32, i32
  }
  func.func @transform_15(%arg0: i32) -> (i32, i32) {
    %c0_i32 = arith.constant 0 : i32
    %c0_i32_0 = arith.constant 0 : i32
    return %arg0, %c0_i32 : i32, i32
  }
}

</mosaic_0001>

<bundles_post_ra>
// kernel: tile.18
= control target key start
LH: loop header
LB: loop body
LE: loop exit
PB: predicated region body
PF: predicated region fallthrough
CT: control target
= control target key end

     0   :  { %s22_s0 = inlined_call_operand.vmem [shape: f32[10], index: 0, kind: input, shape index: {}]   ;;  %s23_s1 = inlined_call_operand.vmem [shape: f32[8,10], index: 1, kind: output, shape index: {}]  }
   0x1   :  { %v4_v0 = vld [vmem:[%s22_s0] ss:$0 sm:$0xff] }
   0x2   :  { %5 = vst [vmem:[%s23_s1] sm:$0xff] %v4_v0 }

// kernel: tile.19
= control target key start
LH: loop header
LB: loop body
LE: loop exit
PB: predicated region body
PF: predicated region fallthrough
CT: control target
= control target key end

     0   :  { %s69_s10 = smov 70   ;;  %s70_s11 = smov 50   ;;  %vm3_vm0 = vcmask 80896   ;;  %vm9_vm1 = vcmask 654896   ;;  %vm15_vm2 = vcmask 572896   ;;  %vm21_vm3 = vcmask 490896   ;;  %s113_s0 = inlined_call_operand.vmem [shape: f32[8,10], index: 0, kind: input, shape index: {}]   ;;  %s114_s1 = inlined_call_operand.vmem [shape: f32[80], index: 1, kind: output, shape index: {}]  }
   0x1   :  { %v55_v0 = vld [vmem:[%s113_s0 + $0x7] sm:$0x1]   ;;  %v57_v1 = vld [vmem:[%s113_s0 + $0x5] sm:$0x1]   ;;  %v56_v2 = vld [vmem:[%s113_s0 + $0x6] sm:$0x1]  }
   0x2   :  { %7 = vrot.lane.b32.xlu0 %v55_v0, %s69_s10  ;;  %19 = vrot.lane.b32.xlu1 %v57_v1, %s70_s11  ;;  %v58_v3 = vld [vmem:[%s113_s0 + $0x4] sm:$0x1]   ;;  %v2_v4 = vld [vmem:[%s113_s0] sm:$0x1]   ;;  %s71_s18 = smov 60   ;;  %s72_s19 = smov 40  }
   0x3   :  { %4 = vst.msk [vmem:[#allocation0] sm:$0x1] %vm3_vm0, %v2_v4   ;;  %v59_v5 = vld [vmem:[%s113_s0 + $0x3] sm:$0x1]   ;;  %v60_v6 = vld [vmem:[%s113_s0 + $0x2] sm:$0x1]  }
   0x4   :  { %s73_s24 = smov 30   ;;  %s74_s25 = smov 20   ;;  %v61_v7 = vld [vmem:[%s113_s0 + $0x1] sm:$0x1]   ;;  %vm27_vm4 = vcmask 408896   ;;  %vm33_vm5 = vcmask 326896  }
   0x5   :  { %s75_s0 = smov 10   ;;  %vm39_vm6 = vcmask 244896   ;;  %vm45_vm7 = vcmask 162896  }
   0x6   :  { %13 = vrot.lane.b32.xlu0 %v56_v2, %s71_s18  ;;  %25 = vrot.lane.b32.xlu1 %v58_v3, %s72_s19 }
   0xa   :  { %31 = vrot.lane.b32.xlu0 %v59_v5, %s73_s24  ;;  %37 = vrot.lane.b32.xlu1 %v60_v6, %s74_s25 }
   0xe   :  { %43 = vrot.lane.b32.xlu0 %v61_v7, %s75_s0 }
  0x74   :  { %v8_v8 = vpop.permute.xlu0 %7   ;;  %v20_v9 = vpop.permute.xlu1 %19  }
  0x75   :  { %10 = vst.msk [vmem:[#allocation0] sm:$0x1] %vm9_vm1, %v8_v8  }
  0x78   :  { %v14_v10 = vpop.permute.xlu0 %13   ;;  %v26_v11 = vpop.permute.xlu1 %25  }
  0x79   :  { %16 = vst.msk [vmem:[#allocation0] sm:$0x1] %vm15_vm2, %v14_v10  }
  0x7a   :  { %22 = vst.msk [vmem:[#allocation0] sm:$0x1] %vm21_vm3, %v20_v9  }
  0x7b   :  { %28 = vst.msk [vmem:[#allocation0] sm:$0x1] %vm27_vm4, %v26_v11  }
  0x7c   :  { %v32_v12 = vpop.permute.xlu0 %31   ;;  %v38_v13 = vpop.permute.xlu1 %37  }
  0x7d   :  { %34 = vst.msk [vmem:[#allocation0] sm:$0x1] %vm33_vm5, %v32_v12  }
  0x7e   :  { %40 = vst.msk [vmem:[#allocation0] sm:$0x1] %vm39_vm6, %v38_v13  }
  0x80   :  { %v44_v14 = vpop.permute.xlu0 %43  }
  0x81   :  { %46 = vst.msk [vmem:[#allocation0] sm:$0x1] %vm45_vm7, %v44_v14  }
  0x88   :  { %v51_v15 = vld [vmem:[#allocation0] sm:$0x1] }
  0x89   :  { %54 = vst [vmem:[%s114_s1] sm:$0x1] %v51_v15 }

// kernel: tile.23
= control target key start
LH: loop header
LB: loop body
LE: loop exit
PB: predicated region body
PF: predicated region fallthrough
CT: control target
= control target key end

     0   :  { %s22_s0 = inlined_call_operand.vmem [shape: f32[20], index: 0, kind: input, shape index: {}]   ;;  %s23_s1 = inlined_call_operand.vmem [shape: f32[4,20], index: 1, kind: output, shape index: {}]  }
   0x1   :  { %v4_v0 = vld [vmem:[%s22_s0] ss:$0 sm:$0xff] }
   0x2   :  { %5 = vst [vmem:[%s23_s1] sm:$0xf] %v4_v0 }

// kernel: tile.24
= control target key start
LH: loop header
LB: loop body
LE: loop exit
PB: predicated region body
PF: predicated region fallthrough
CT: control target
= control target key end

     0   :  { %vm8_vm0 = vcmask 162816   ;;  %s40_s8 = smov 20   ;;  %s41_s9 = smov 40   ;;  %vm14_vm1 = vcmask 654816   ;;  %vm20_vm2 = vcmask 490816   ;;  %vm26_vm3 = vcmask 326816   ;;  %s58_s0 = inlined_call_operand.vmem [shape: f32[4,20], index: 0, kind: input, shape index: {}]   ;;  %s59_s1 = inlined_call_operand.vmem [shape: f32[80], index: 1, kind: output, shape index: {}]  }
   0x1   :  { %v5_v0 = vld [vmem:[%s58_s0] sm:$0xf]  ;;  %s39_s0 = smov 60  }
   0x2   :  { %6 = vst [vmem:[#allocation1] sm:$0xf] %v5_v0 }
   0x9   :  { %v11_v1 = vld [vmem:[#allocation1 + $0x3] sm:$0x1]   ;;  %v23_v2 = vld [vmem:[#allocation1 + $0x1] sm:$0x1]   ;;  %v7_v3 = vld [vmem:[#allocation1] sm:$0x1]  }
   0xa   :  { %12 = vrot.lane.b32.xlu0 %v11_v1, %s39_s0  ;;  %24 = vrot.lane.b32.xlu1 %v23_v2, %s40_s8  ;;  %v17_v4 = vld [vmem:[#allocation1 + $0x2] sm:$0x1]   ;;  %9 = vst.msk [vmem:[#allocation0] sm:$0x1] %vm8_vm0, %v7_v3  }
   0xe   :  { %18 = vrot.lane.b32.xlu0 %v17_v4, %s41_s9 }
  0x7c   :  { %v13_v5 = vpop.permute.xlu0 %12   ;;  %v25_v6 = vpop.permute.xlu1 %24  }
  0x7d   :  { %15 = vst.msk [vmem:[#allocation0] sm:$0x1] %vm14_vm1, %v13_v5  }
  0x80   :  { %v19_v7 = vpop.permute.xlu0 %18  }
  0x81   :  { %21 = vst.msk [vmem:[#allocation0] sm:$0x1] %vm20_vm2, %v19_v7  }
  0x82   :  { %27 = vst.msk [vmem:[#allocation0] sm:$0x1] %vm26_vm3, %v25_v6  }
  0x89   :  { %v32_v8 = vld [vmem:[#allocation0] sm:$0x1] }
  0x8a   :  { %35 = vst [vmem:[%s59_s1] sm:$0x1] %v32_v8 }

// kernel: tile.28
= control target key start
LH: loop header
LB: loop body
LE: loop exit
PB: predicated region body
PF: predicated region fallthrough
CT: control target
= control target key end

     0   :  { %s22_s0 = inlined_call_operand.vmem [shape: f32[40], index: 0, kind: input, shape index: {}]   ;;  %s23_s1 = inlined_call_operand.vmem [shape: f32[2,40], index: 1, kind: output, shape index: {}]  }
   0x1   :  { %v4_v0 = vld [vmem:[%s22_s0] ss:$0 sm:$0xff] }
   0x2   :  { %5 = vst [vmem:[%s23_s1] sm:$0x3] %v4_v0 }

// kernel: tile.29
= control target key start
LH: loop header
LB: loop body
LE: loop exit
PB: predicated region body
PF: predicated region fallthrough
CT: control target
= control target key end

     0   :  { %vm8_vm0 = vcmask 326656   ;;  %vm14_vm1 = vcmask 654656   ;;  %s42_s0 = inlined_call_operand.vmem [shape: f32[2,40], index: 0, kind: input, shape index: {}]   ;;  %s43_s1 = inlined_call_operand.vmem [shape: f32[80], index: 1, kind: output, shape index: {}]  }
   0x1   :  { %v5_v0 = vld [vmem:[%s42_s0] sm:$0x3]  ;;  %s25_s0 = smov 40  }
   0x2   :  { %6 = vst [vmem:[#allocation1] sm:$0x3] %v5_v0 }
   0x9   :  { %v11_v1 = vld [vmem:[#allocation1 + $0x1] sm:$0x1]   ;;  %v7_v2 = vld [vmem:[#allocation1] sm:$0x1]  }
   0xa   :  { %12 = vrot.lane.b32.xlu0 %v11_v1, %s25_s0  ;;  %9 = vst.msk [vmem:[#allocation0] sm:$0x1] %vm8_vm0, %v7_v2  }
  0x7c   :  { %v13_v3 = vpop.permute.xlu0 %12  }
  0x7d   :  { %15 = vst.msk [vmem:[#allocation0] sm:$0x1] %vm14_vm1, %v13_v3  }
  0x84   :  { %v20_v4 = vld [vmem:[#allocation0] sm:$0x1] }
  0x85   :  { %23 = vst [vmem:[%s43_s1] sm:$0x1] %v20_v4 }

// kernel: net4_forward.1
= control target key start
LH: loop header
LB: loop body
LE: loop exit
PB: predicated region body
PF: predicated region fallthrough
CT: control target
= control target key end

     0   :  { %v14939_v3 = vmov 0   ;;  %s9483_s19 = smov 2   ;;  %vm424_vm0 = vcmask 1041408   ;;  %vm240_vm1 = vcmask 15360   ;;  %vm306_vm2 = vcmask 146432   ;;  %s9484_s17 = smov 20   ;;  %s14923_s0 = inlined_call_operand.vmem [shape: f32[16,32,16], index: 0, kind: input, shape index: {}]   ;;  %s14924_s1 = inlined_call_operand.vmem [shape: bf16[5,20,256], index: 1, kind: input, shape index: {}]   ;;  %s14925_s2 = inlined_call_operand.vmem [shape: bf16[5,120,256], index: 2, kind: input, shape index: {}]   ;;  %s14926_s5 = inlined_call_operand.vmem [shape: f32[1,128], index: 5, kind: input, shape index: {}]   ;;  %s14927_s13 = inlined_call_operand.vmem [shape: f32[15,32,128], index: 13, kind: output, shape index: {0}]   ;;  %s14928_s3 = inlined_call_operand.vmem [shape: bf16[5,160,256], index: 3, kind: input, shape index: {}]   ;;  %s14929_s6 = inlined_call_operand.vmem [shape: f32[1,128], index: 6, kind: input, shape index: {}]   ;;  %s14930_s4 = inlined_call_operand.vmem [shape: bf16[5,240,256], index: 4, kind: input, shape index: {}]   ;;  %s14931_s7 = inlined_call_operand.vmem [shape: f32[1,128], index: 7, kind: input, shape index: {}]   ;;  %s14932_s9 = inlined_call_operand.vmem [shape: f32[128,128], index: 9, kind: input, shape index: {}]   ;;  %s14933_s11 = inlined_call_operand.vmem [shape: f32[128,128], index: 11, kind: input, shape index: {}]   ;;  %s14934_s8 = inlined_call_operand.vmem [shape: f32[1,128], index: 8, kind: input, shape index: {}]   ;;  %s14935_s10 = inlined_call_operand.vmem [shape: f32[1,128], index: 10, kind: input, shape index: {}]   ;;  %s14936_s14 = inlined_call_operand.vmem [shape: f32[32,128], index: 14, kind: output, shape index: {1}]   ;;  %s14937_s12 = inlined_call_operand.vmem [shape: f32[1,128], index: 12, kind: input, shape index: {}]   ;;  %s14938_s15 = inlined_call_operand.vmem [shape: f32[32,128], index: 15, kind: output, shape index: {2}]  }
   0x1   :  { %v48_v0 = vld [vmem:[%s14923_s0] sm:$0xff]  ;;  %v49_v1 = vld [vmem:[%s14923_s0 + $0x8] sm:$0xff]  ;;  %v50_v2 = vld [vmem:[%s14923_s0 + $0x10] sm:$0xff]  ;;  %837 = vmatprep.mubr.bf16.mxu1 %v14939_v3  ;;  %463 = vmatprep.mubr.bf16.mxu0 %v14939_v3  ;;  %vm361_vm3 = vcmask 162816   ;;  %vm3161_vm4 = vcmask 1043456   ;;  %vm3007_vm5 = vcmask 818176  }
   0x2   :  { %v112_v4 = vpack.c.bf16 %v49_v1, %v48_v0  ;;  %v51_v5 = vld [vmem:[%s14923_s0 + $0x18] sm:$0xff]  ;;  %v52_v6 = vld [vmem:[%s14923_s0 + $0x20] sm:$0xff]  ;;  %v53_v7 = vld [vmem:[%s14923_s0 + $0x28] sm:$0xff]  ;;  %vm3130_vm6 = vcmask 982016   ;;  %vm4853_vm7 = vcmask 326656   ;;  %s9486_s18 = smov 80  }
   0x3   :  { %v114_v8 = vpack.c.bf16 %v53_v7, %v52_v6  ;;  %v54_v9 = vld [vmem:[%s14923_s0 + $0x30] sm:$0xff]  ;;  %v55_v10 = vld [vmem:[%s14923_s0 + $0x38] sm:$0xff]  ;;  %v113_v11 = vpack.c.bf16 %v51_v5, %v50_v2  ;;  %v56_v13 = vld [vmem:[%s14923_s0 + $0x40] sm:$0xff]  ;;  %vm6234_vm8 = vcmask 654336   ;;  %vm5027_vm9 = vcmask 261120  }
   0x4   :  { %176 = vrot.lane.b32.xlu0 %v112_v4, %s9483_s19  ;;  %v115_v12 = vpack.c.bf16 %v55_v10, %v54_v9  ;;  %v57_v14 = vld [vmem:[%s14923_s0 + $0x48] sm:$0xff]  ;;  %v58_v15 = vld [vmem:[%s14923_s0 + $0x50] sm:$0xff]  ;;  %v59_v16 = vld [vmem:[%s14923_s0 + $0x58] sm:$0xff]  ;;  %vm6462_vm10 = vcmask 916480  }
   0x5   :  { %180 = vrot.lane.b32.xlu1 %v114_v8, %s9483_s19  ;;  %v341_v17 = vld [vmem:[%s14924_s1 + $0x10] sm:$0x33]  ;;  %v116_v18 = vpack.c.bf16 %v57_v14, %v56_v13  ;;  %v60_v19 = vld [vmem:[%s14923_s0 + $0x60] sm:$0xff]  ;;  %v61_v20 = vld [vmem:[%s14923_s0 + $0x68] sm:$0xff]  ;;  %v117_v23 = vpack.c.bf16 %v59_v16, %v58_v15 }
   0x6   :  { %v7936_v21 = vcombine.high %v341_v17, %v341_v17  ;;  %v7935_v22 = vcombine.low %v341_v17, %v341_v17  ;;  %v62_v24 = vld [vmem:[%s14923_s0 + $0x70] sm:$0xff]  ;;  %v8952_v25 = vld [vmem:[%s14924_s1 + $0x4] ss:$8 sps:$4 sm:$0xff]   ;;  %v63_v26 = vld [vmem:[%s14923_s0 + $0x78] sm:$0xff]  ;;  %v118_v33 = vpack.c.bf16 %v61_v20, %v60_v19 }
   0x7   :  { %v8954_v28 = vld [vmem:[%s14924_s1] ss:$8 sps:$4 sm:$0xff]   ;;  %v8957_v32 = vld [vmem:[%s14924_s1 + $0x1c] ss:$8 sps:$4 sm:$0xff]   ;;  %v119_v34 = vpack.c.bf16 %v63_v26, %v62_v24  ;;  %v66_v39 = vld [vmem:[%s14923_s0 + $0x90] sm:$0xff] }
   0x8   :  { %178 = vrot.lane.b32.xlu0 %v113_v11, %s9483_s19  ;;  %7937 = vmatprep.subr.msk.bf16.mxu1 %vm424_vm0, %v7936_v21  ;;  %v800_v27 = vsel %vm424_vm0, %v7935_v22, 0  ;;  %v7897_v29 = vld [vmem:[%s14924_s1 + $0x28] sm:$0x33]  ;;  %v64_v35 = vld [vmem:[%s14923_s0 + $0x80] sm:$0xff]  ;;  %v67_v40 = vld [vmem:[%s14923_s0 + $0x98] sm:$0xff] }
   0x9   :  { %182 = vrot.lane.b32.xlu1 %v115_v12, %s9483_s19  ;;  %818 = vmatpush1.bf16.msra.mxu1 %v800_v27  ;;  %v7901_v30 = vcombine.high %v7897_v29, %v7897_v29  ;;  %v7900_v31 = vcombine.low %v7897_v29, %v7897_v29  ;;  %v65_v36 = vld [vmem:[%s14923_s0 + $0x88] sm:$0xff]  ;;  %v7968_v38 = vld [vmem:[%s14924_s1 + $0x40] sm:$0x33]  ;;  %v121_v47 = vpack.c.bf16 %v67_v40, %v66_v39  ;;  %v70_v48 = vld [vmem:[%s14923_s0 + $0xb0] sm:$0xff] }
   0xa   :  { %819 = vmatprep.subr.bf16.mxu1 %v8952_v25  ;;  %v8959_v41 = vld [vmem:[%s14924_s1 + $0x18] ss:$8 sps:$4 sm:$0xff]   ;;  %v7972_v42 = vcombine.high %v7968_v38, %v7968_v38  ;;  %v7971_v43 = vcombine.low %v7968_v38, %v7968_v38  ;;  %v120_v44 = vpack.c.bf16 %v65_v36, %v64_v35  ;;  %v69_v46 = vld [vmem:[%s14923_s0 + $0xa8] sm:$0xff]  ;;  %v74_v55 = vld [vmem:[%s14923_s0 + $0xd0] sm:$0xff] }
   0xb   :  { %7902 = vmatprep.subr.msk.bf16.mxu0 %vm424_vm0, %v7901_v30  ;;  %v426_v37 = vsel %vm424_vm0, %v7900_v31, 0  ;;  %v68_v45 = vld [vmem:[%s14923_s0 + $0xa0] sm:$0xff]  ;;  %v71_v49 = vld [vmem:[%s14923_s0 + $0xb8] sm:$0xff]  ;;  %v73_v54 = vld [vmem:[%s14923_s0 + $0xc8] sm:$0xff] }
   0xc   :  { %184 = vrot.lane.b32.xlu0 %v116_v18, %s9483_s19  ;;  %444 = vmatpush1.bf16.msra.mxu0 %v426_v37  ;;  %v1182_v50 = vsel %vm424_vm0, %v7971_v43, 0  ;;  %v122_v51 = vpack.c.bf16 %v69_v46, %v68_v45  ;;  %v123_v52 = vpack.c.bf16 %v71_v49, %v70_v48  ;;  %v72_v53 = vld [vmem:[%s14923_s0 + $0xc0] sm:$0xff]  ;;  %v75_v56 = vld [vmem:[%s14923_s0 + $0xd8] sm:$0xff]  ;;  %v77_v60 = vld [vmem:[%s14923_s0 + $0xe8] sm:$0xff] }
   0xd   :  { %186 = vrot.lane.b32.xlu1 %v117_v23, %s9483_s19  ;;  %820 = vmatpush1.bf16.msra.mxu1 %v8954_v28  ;;  %v124_v57 = vpack.c.bf16 %v73_v54, %v72_v53  ;;  %v125_v58 = vpack.c.bf16 %v75_v56, %v74_v55  ;;  %v76_v59 = vld [vmem:[%s14923_s0 + $0xe0] sm:$0xff]  ;;  %v78_v61 = vld [vmem:[%s14923_s0 + $0xf0] sm:$0xff]  ;;  %v79_v62 = vld [vmem:[%s14923_s0 + $0xf8] sm:$0xff] }
   0xe   :  { %445 = vmatprep.subr.bf16.mxu0 %v8957_v32  ;;  %v126_v63 = vpack.c.bf16 %v77_v60, %v76_v59  ;;  %v127_v0 = vpack.c.bf16 %v79_v62, %v78_v61  ;;  %v80_v1 = vld [vmem:[%s14923_s0 + $0x100] sm:$0xff]  ;;  %v81_v2 = vld [vmem:[%s14923_s0 + $0x108] sm:$0xff]  ;;  %v82_v4 = vld [vmem:[%s14923_s0 + $0x110] sm:$0xff] }
   0xf   :  { %v83_v5 = vld [vmem:[%s14923_s0 + $0x118] sm:$0xff]  ;;  %v128_v6 = vpack.c.bf16 %v81_v2, %v80_v1  ;;  %v84_v8 = vld [vmem:[%s14923_s0 + $0x120] sm:$0xff]  ;;  %v85_v9 = vld [vmem:[%s14923_s0 + $0x128] sm:$0xff] }
  0x10   :  { %188 = vrot.lane.b32.xlu0 %v118_v33, %s9483_s19  ;;  %838 = vmatmul.mubr.bf16.vlgmr.msra.gmra.mxu1 %v14939_v3  ;;  %v129_v7 = vpack.c.bf16 %v83_v5, %v82_v4  ;;  %v86_v10 = vld [vmem:[%s14923_s0 + $0x130] sm:$0xff]  ;;  %v87_v11 = vld [vmem:[%s14923_s0 + $0x138] sm:$0xff]  ;;  %v130_v12 = vpack.c.bf16 %v85_v9, %v84_v8  ;;  %v88_v14 = vld [vmem:[%s14923_s0 + $0x140] sm:$0xff] }
  0x11   :  { %190 = vrot.lane.b32.xlu1 %v119_v34, %s9483_s19  ;;  %446 = vmatpush1.bf16.msra.mxu0 %v8959_v41  ;;  %v131_v13 = vpack.c.bf16 %v87_v11, %v86_v10  ;;  %v89_v15 = vld [vmem:[%s14923_s0 + $0x148] sm:$0xff]  ;;  %v90_v17 = vld [vmem:[%s14923_s0 + $0x150] sm:$0xff]  ;;  %v91_v18 = vld [vmem:[%s14923_s0 + $0x158] sm:$0xff] }
  0x12   :  { %847 = vmatprep.mubr.bf16.mxu1 %v14939_v3  ;;  %7973 = vmatprep.subr.msk.bf16.mxu0 %vm424_vm0, %v7972_v42  ;;  %v132_v16 = vpack.c.bf16 %v89_v15, %v88_v14  ;;  %v133_v19 = vpack.c.bf16 %v91_v18, %v90_v17  ;;  %v92_v20 = vld [vmem:[%s14923_s0 + $0x160] sm:$0xff]  ;;  %v93_v21 = vld [vmem:[%s14923_s0 + $0x168] sm:$0xff]  ;;  %v94_v23 = vld [vmem:[%s14923_s0 + $0x170] sm:$0xff] }
  0x13   :  { %v134_v22 = vpack.c.bf16 %v93_v21, %v92_v20  ;;  %v95_v24 = vld [vmem:[%s14923_s0 + $0x178] sm:$0xff]  ;;  %v96_v26 = vld [vmem:[%s14923_s0 + $0x180] sm:$0xff]  ;;  %v97_v27 = vld [vmem:[%s14923_s0 + $0x188] sm:$0xff] }
  0x14   :  { %192 = vrot.lane.b32.xlu0 %v120_v44, %s9483_s19  ;;  %464 = vmatmul.mubr.bf16.vlgmr.msra.gmra.mxu0 %v14939_v3  ;;  %v135_v25 = vpack.c.bf16 %v95_v24, %v94_v23  ;;  %v136_v28 = vpack.c.bf16 %v97_v27, %v96_v26  ;;  %v98_v29 = vld [vmem:[%s14923_s0 + $0x190] sm:$0xff]  ;;  %v99_v30 = vld [vmem:[%s14923_s0 + $0x198] sm:$0xff]  ;;  %v100_v32 = vld [vmem:[%s14923_s0 + $0x1a0] sm:$0xff] }
  0x15   :  { %194 = vrot.lane.b32.xlu1 %v121_v47, %s9483_s19  ;;  %1200 = vmatpush1.bf16.msra.mxu0 %v1182_v50  ;;  %v137_v31 = vpack.c.bf16 %v99_v30, %v98_v29  ;;  %v101_v33 = vld [vmem:[%s14923_s0 + $0x1a8] sm:$0xff]  ;;  %v102_v35 = vld [vmem:[%s14923_s0 + $0x1b0] sm:$0xff]  ;;  %v103_v36 = vld [vmem:[%s14923_s0 + $0x1b8] sm:$0xff] }
  0x16   :  { %473 = vmatprep.mubr.bf16.mxu0 %v14939_v3  ;;  %v138_v34 = vpack.c.bf16 %v101_v33, %v100_v32  ;;  %v139_v37 = vpack.c.bf16 %v103_v36, %v102_v35  ;;  %v104_v38 = vld [vmem:[%s14923_s0 + $0x1c0] sm:$0xff]  ;;  %v105_v39 = vld [vmem:[%s14923_s0 + $0x1c8] sm:$0xff]  ;;  %v8962_v41 = vld [vmem:[%s14924_s1 + $0x30] ss:$8 sps:$4 sm:$0xff]  }
  0x17   :  { %v140_v40 = vpack.c.bf16 %v105_v39, %v104_v38  ;;  %v8964_v42 = vld [vmem:[%s14924_s1 + $0x34] ss:$8 sps:$4 sm:$0xff]   ;;  %vm14428_vm11 = vmneg %vm6234_vm8 }
  0x18   :  { %196 = vrot.lane.b32.xlu0 %v122_v51, %s9483_s19  ;;  %848 = vmatmul.mubr.bf16.gmra.mxu1 %v14939_v3  ;;  %v106_v43 = vld [vmem:[%s14923_s0 + $0x1d0] sm:$0xff]  ;;  %v107_v44 = vld [vmem:[%s14923_s0 + $0x1d8] sm:$0xff] }
  0x19   :  { %198 = vrot.lane.b32.xlu1 %v123_v52, %s9483_s19  ;;  %857 = vmatprep.mubr.bf16.mxu1 %v14939_v3  ;;  %v141_v45 = vpack.c.bf16 %v107_v44, %v106_v43  ;;  %v8969_v26 = vld [vmem:[%s14924_s1 + $0x4c] ss:$8 sps:$4 sm:$0xff]  }
  0x1a   :  { %1201 = vmatprep.subr.bf16.mxu0 %v8964_v42 }
  0x1b   :  { %1202 = vmatpush1.bf16.msra.mxu0 %v8962_v41 }
  0x1c   :  { %200 = vrot.lane.b32.xlu0 %v124_v57, %s9483_s19  ;;  %474 = vmatmul.mubr.bf16.gmra.mxu0 %v14939_v3 }
  0x1d   :  { %202 = vrot.lane.b32.xlu1 %v125_v58, %s9483_s19  ;;  %483 = vmatprep.mubr.bf16.mxu0 %v14939_v3 }
  0x20   :  { %204 = vrot.lane.b32.xlu0 %v126_v63, %s9483_s19  ;;  %858 = vmatmul.mubr.bf16.gmra.mxu1 %v14939_v3 }
  0x21   :  { %206 = vrot.lane.b32.xlu1 %v127_v0, %s9483_s19  ;;  %867 = vmatprep.mubr.bf16.mxu1 %v14939_v3 }
  0x24   :  { %208 = vrot.lane.b32.xlu0 %v128_v6, %s9483_s19 }
  0x25   :  { %210 = vrot.lane.b32.xlu1 %v129_v7, %s9483_s19 }
  0x28   :  { %212 = vrot.lane.b32.xlu0 %v130_v12, %s9483_s19  ;;  %868 = vmatmul.mubr.bf16.gmra.mxu1 %v14939_v3 }
  0x29   :  { %214 = vrot.lane.b32.xlu1 %v131_v13, %s9483_s19  ;;  %877 = vmatprep.mubr.bf16.mxu1 %v14939_v3 }
  0x2c   :  { %216 = vrot.lane.b32.xlu0 %v132_v16, %s9483_s19 }
  0x2d   :  { %218 = vrot.lane.b32.xlu1 %v133_v19, %s9483_s19  ;;  %v8008_v19 = vld [vmem:[%s14924_s1 + $0x58] sm:$0x33] }
  0x2e   :  { %v8012_v20 = vcombine.high %v8008_v19, %v8008_v19  ;;  %v8011_v21 = vcombine.low %v8008_v19, %v8008_v19 }
  0x30   :  { %220 = vrot.lane.b32.xlu0 %v134_v22, %s9483_s19  ;;  %v1688_v23 = vsel %vm424_vm0, %v8011_v21, 0  ;;  %8013 = vmatprep.subr.msk.bf16.mxu1 %vm424_vm0, %v8012_v20 }
  0x31   :  { %222 = vrot.lane.b32.xlu1 %v135_v25, %s9483_s19  ;;  %1706 = vmatpush1.bf16.msra.mxu1 %v1688_v23 }
  0x32   :  { %1707 = vmatprep.subr.bf16.mxu1 %v8969_v26 }
  0x34   :  { %224 = vrot.lane.b32.xlu0 %v136_v28, %s9483_s19  ;;  %v8967_v28 = vld [vmem:[%s14924_s1 + $0x48] ss:$8 sps:$4 sm:$0xff]  }
  0x35   :  { %226 = vrot.lane.b32.xlu1 %v137_v31, %s9483_s19  ;;  %1708 = vmatpush1.bf16.msra.mxu1 %v8967_v28 }
  0x38   :  { %228 = vrot.lane.b32.xlu0 %v138_v34, %s9483_s19 }
  0x39   :  { %230 = vrot.lane.b32.xlu1 %v139_v37, %s9483_s19 }
  0x3c   :  { %232 = vrot.lane.b32.xlu0 %v140_v40, %s9483_s19 }
  0x3d   :  { %234 = vrot.lane.b32.xlu1 %v141_v45, %s9483_s19 }
  0x76   :  { %v177_v46 = vpop.permute.xlu0 %176 }
  0x77   :  { %v243_v47 = vsel %vm240_vm1, 0, %v177_v46  ;;  %v181_v52 = vpop.permute.xlu1 %180 }
  0x78   :  { %v9826_v48 = vsel %vm306_vm2, %v243_v47, 0  ;;  %v247_v53 = vsel %vm240_vm1, 0, %v181_v52 }
  0x79   :  { %7903 = vmatmul.mubr.msk.bf16.gmra.mxu0 %vm361_vm3, %v9826_v48  ;;  %7938 = vmatmul.mubr.msk.bf16.gmra.mxu1 %vm361_vm3, %v9826_v48  ;;  %v9846_v54 = vsel %vm306_vm2, %v247_v53, 0 }
  0x7a   :  { %v179_v49 = vpop.permute.xlu0 %178  ;;  %493 = vmatprep.mubr.bf16.mxu0 %v14939_v3  ;;  %887 = vmatprep.mubr.bf16.mxu1 %v14939_v3 }
  0x7b   :  { %v245_v50 = vsel %vm240_vm1, 0, %v179_v49  ;;  %v183_v55 = vpop.permute.xlu1 %182 }
  0x7c   :  { %v9836_v51 = vsel %vm306_vm2, %v245_v50, 0  ;;  %v249_v56 = vsel %vm240_vm1, 0, %v183_v55 }
  0x7d   :  { %v9856_v57 = vsel %vm306_vm2, %v249_v56, 0 }
  0x7e   :  { %v185_v58 = vpop.permute.xlu0 %184 }
  0x7f   :  { %v251_v59 = vsel %vm240_vm1, 0, %v185_v58  ;;  %v187_v61 = vpop.permute.xlu1 %186 }
  0x80   :  { %v9866_v60 = vsel %vm306_vm2, %v251_v59, 0  ;;  %v253_v62 = vsel %vm240_vm1, 0, %v187_v61  ;;  %v9998_v59 = vld [vmem:[%s14924_s1 + $0x70] sm:$0x33] }
  0x81   :  { %7904 = vmatmul.mubr.msk.bf16.gmra.mxu0 %vm361_vm3, %v9836_v51  ;;  %7939 = vmatmul.mubr.msk.bf16.gmra.mxu1 %vm361_vm3, %v9836_v51  ;;  %v9876_v63 = vsel %vm306_vm2, %v253_v62, 0  ;;  %v8050_v61 = vcombine.high %v9998_v59, %v9998_v59 }
  0x82   :  { %503 = vmatprep.mubr.bf16.mxu0 %v14939_v3  ;;  %897 = vmatprep.mubr.bf16.mxu1 %v14939_v3  ;;  %v189_v0 = vpop.permute.xlu0 %188 }
  0x83   :  { %v255_v1 = vsel %vm240_vm1, 0, %v189_v0  ;;  %v191_v4 = vpop.permute.xlu1 %190  ;;  %8051 = vmatprep.subr.msk.bf16.mxu0 %vm424_vm0, %v8050_v61 }
  0x84   :  { %v9886_v2 = vsel %vm306_vm2, %v255_v1, 0  ;;  %v257_v5 = vsel %vm240_vm1, 0, %v191_v4 }
  0x85   :  { %v9896_v6 = vsel %vm306_vm2, %v257_v5, 0 }
  0x86   :  { %v193_v7 = vpop.permute.xlu0 %192 }
  0x87   :  { %v259_v8 = vsel %vm240_vm1, 0, %v193_v7  ;;  %v195_v10 = vpop.permute.xlu1 %194 }
  0x88   :  { %v9906_v9 = vsel %vm306_vm2, %v259_v8, 0  ;;  %v261_v11 = vsel %vm240_vm1, 0, %v195_v10 }
  0x89   :  { %7905 = vmatmul.mubr.msk.bf16.gmra.mxu0 %vm361_vm3, %v9846_v54  ;;  %7940 = vmatmul.mubr.msk.bf16.gmra.mxu1 %vm361_vm3, %v9846_v54  ;;  %v9916_v12 = vsel %vm306_vm2, %v261_v11, 0 }
  0x8a   :  { %513 = vmatprep.mubr.bf16.mxu0 %v14939_v3  ;;  %907 = vmatprep.mubr.bf16.mxu1 %v14939_v3  ;;  %v197_v13 = vpop.permute.xlu0 %196 }
  0x8b   :  { %v263_v14 = vsel %vm240_vm1, 0, %v197_v13  ;;  %v199_v16 = vpop.permute.xlu1 %198 }
  0x8c   :  { %v9926_v15 = vsel %vm306_vm2, %v263_v14, 0  ;;  %v265_v17 = vsel %vm240_vm1, 0, %v199_v16 }
  0x8d   :  { %v9936_v18 = vsel %vm306_vm2, %v265_v17, 0 }
  0x8e   :  { %v201_v22 = vpop.permute.xlu0 %200 }
  0x8f   :  { %v267_v25 = vsel %vm240_vm1, 0, %v201_v22  ;;  %v203_v34 = vpop.permute.xlu1 %202 }
  0x90   :  { %v9957_v30 = vsel %vm306_vm2, %v267_v25, 0  ;;  %v269_v40 = vsel %vm240_vm1, 0, %v203_v34 }
  0x91   :  { %7906 = vmatmul.mubr.msk.bf16.gmra.mxu0 %vm361_vm3, %v9856_v57  ;;  %7941 = vmatmul.mubr.msk.bf16.gmra.mxu1 %vm361_vm3, %v9856_v57  ;;  %v9977_v44 = vsel %vm306_vm2, %v269_v40, 0 }
  0x92   :  { %523 = vmatprep.mubr.bf16.mxu0 %v14939_v3  ;;  %917 = vmatprep.mubr.bf16.mxu1 %v14939_v3  ;;  %v205_v47 = vpop.permute.xlu0 %204 }
  0x93   :  { %v271_v55 = vsel %vm240_vm1, 0, %v205_v47  ;;  %v207_v58 = vpop.permute.xlu1 %206 }
  0x94   :  { %v9993_v56 = vsel %vm306_vm2, %v271_v55, 0  ;;  %v273_v62 = vsel %vm240_vm1, 0, %v207_v58 }
  0x95   :  { %v10011_v0 = vsel %vm306_vm2, %v273_v62, 0 }
  0x96   :  { %v209_v1 = vpop.permute.xlu0 %208 }
  0x97   :  { %v275_v4 = vsel %vm240_vm1, 0, %v209_v1  ;;  %v211_v7 = vpop.permute.xlu1 %210 }
  0x98   :  { %v10021_v5 = vsel %vm306_vm2, %v275_v4, 0  ;;  %v277_v8 = vsel %vm240_vm1, 0, %v211_v7 }
  0x99   :  { %7907 = vmatmul.mubr.msk.bf16.gmra.mxu0 %vm361_vm3, %v9866_v60  ;;  %7942 = vmatmul.mubr.msk.bf16.gmra.mxu1 %vm361_vm3, %v9866_v60  ;;  %v10031_v10 = vsel %vm306_vm2, %v277_v8, 0 }
  0x9a   :  { %533 = vmatprep.mubr.bf16.mxu0 %v14939_v3  ;;  %927 = vmatprep.mubr.bf16.mxu1 %v14939_v3  ;;  %v213_v11 = vpop.permute.xlu0 %212 }
  0x9b   :  { %v279_v13 = vsel %vm240_vm1, 0, %v213_v11  ;;  %v215_v16 = vpop.permute.xlu1 %214 }
  0x9c   :  { %v10041_v14 = vsel %vm306_vm2, %v279_v13, 0  ;;  %v281_v17 = vsel %vm240_vm1, 0, %v215_v16 }
  0x9d   :  { %v10051_v19 = vsel %vm306_vm2, %v281_v17, 0 }
  0x9e   :  { %v217_v20 = vpop.permute.xlu0 %216 }
  0x9f   :  { %v283_v21 = vsel %vm240_vm1, 0, %v217_v20 }
  0xa0   :  { %v10063_v23 = vsel %vm306_vm2, %v283_v21, 0 }
  0xa1   :  { %7908 = vmatmul.mubr.msk.bf16.gmra.mxu0 %vm361_vm3, %v9876_v63  ;;  %7943 = vmatmul.mubr.msk.bf16.gmra.mxu1 %vm361_vm3, %v9876_v63 }
  0xa2   :  { %543 = vmatprep.mubr.bf16.mxu0 %v14939_v3  ;;  %937 = vmatprep.mubr.bf16.mxu1 %v14939_v3 }
  0xa9   :  { %7909 = vmatmul.mubr.msk.bf16.gmra.mxu0 %vm361_vm3, %v9886_v2  ;;  %7944 = vmatmul.mubr.msk.bf16.gmra.mxu1 %vm361_vm3, %v9886_v2 }
  0xaa   :  { %553 = vmatprep.mubr.bf16.mxu0 %v14939_v3  ;;  %947 = vmatprep.mubr.bf16.mxu1 %v14939_v3 }
  0xb1   :  { %7910 = vmatmul.mubr.msk.bf16.gmra.mxu0 %vm361_vm3, %v9896_v6  ;;  %7945 = vmatmul.mubr.msk.bf16.gmra.mxu1 %vm361_vm3, %v9896_v6 }
  0xb2   :  { %563 = vmatprep.mubr.bf16.mxu0 %v14939_v3  ;;  %957 = vmatprep.mubr.bf16.mxu1 %v14939_v3 }
  0xb9   :  { %7911 = vmatmul.mubr.msk.bf16.gmra.mxu0 %vm361_vm3, %v9906_v9  ;;  %7946 = vmatmul.mubr.msk.bf16.gmra.mxu1 %vm361_vm3, %v9906_v9 }
  0xba   :  { %573 = vmatprep.mubr.bf16.mxu0 %v14939_v3  ;;  %967 = vmatprep.mubr.bf16.mxu1 %v14939_v3 }
  0xc1   :  { %7912 = vmatmul.mubr.msk.bf16.gmra.mxu0 %vm361_vm3, %v9916_v12  ;;  %7947 = vmatmul.mubr.msk.bf16.gmra.mxu1 %vm361_vm3, %v9916_v12 }
  0xc2   :  { %583 = vmatprep.mubr.bf16.mxu0 %v14939_v3  ;;  %977 = vmatprep.mubr.bf16.mxu1 %v14939_v3 }
  0xc9   :  { %7913 = vmatmul.mubr.msk.bf16.gmra.mxu0 %vm361_vm3, %v9926_v15  ;;  %7948 = vmatmul.mubr.msk.bf16.gmra.mxu1 %vm361_vm3, %v9926_v15 }
  0xca   :  { %593 = vmatprep.mubr.bf16.mxu0 %v14939_v3  ;;  %987 = vmatprep.mubr.bf16.mxu1 %v14939_v3 }
  0xd0   :  { %v839_v24 = vpop.f32.mrf.mxu1 }
  0xd1   :  { %7914 = vmatmul.mubr.msk.bf16.gmra.mxu0 %vm361_vm3, %v9936_v18  ;;  %7949 = vmatmul.mubr.msk.bf16.gmra.mxu1 %vm361_vm3, %v9936_v18 }
  0xd2   :  { %603 = vmatprep.mubr.bf16.mxu0 %v14939_v3  ;;  %997 = vmatprep.mubr.bf16.mxu1 %v14939_v3  ;;  %v841_v27 = vpop.f32.mrf.mxu1 }
  0xd4   :  { %v465_v29 = vpop.f32.mrf.mxu0  ;;  %v843_v31 = vpop.f32.mrf.mxu1 }
  0xd5   :  { %v9959_v32 = vadd.f32 %v839_v24, %v465_v29  ;;  %v219_v24 = vpop.permute.xlu1 %218  ;;  %v221_v29 = vpop.permute.xlu0 %220 }
  0xd6   :  { %v467_v33 = vpop.f32.mrf.mxu0  ;;  %v9961_v35 = vpop.f32.mrf.mxu1  ;;  %v285_v26 = vsel %vm240_vm1, 0, %v219_v24 }
  0xd7   :  { %v9963_v36 = vadd.f32 %v841_v27, %v467_v33  ;;  %v10077_v28 = vsel %vm306_vm2, %v285_v26, 0  ;;  %v287_v33 = vsel %vm240_vm1, 0, %v221_v29 }
  0xd8   :  { %v469_v37 = vpop.f32.mrf.mxu0  ;;  %v849_v38 = vpop.f32.mrf.mxu1 }
  0xd9   :  { %7915 = vmatmul.mubr.msk.bf16.gmra.mxu0 %vm361_vm3, %v9957_v30  ;;  %7950 = vmatmul.mubr.msk.bf16.gmra.mxu1 %vm361_vm3, %v9957_v30  ;;  %v9971_v39 = vadd.f32 %v843_v31, %v469_v37  ;;  %v10091_v37 = vsel %vm306_vm2, %v287_v33, 0  ;;  %v225_v47 = vpop.permute.xlu0 %224 }
  0xda   :  { %613 = vmatprep.mubr.bf16.mxu0 %v14939_v3  ;;  %1007 = vmatprep.mubr.bf16.mxu1 %v14939_v3  ;;  %v9974_v41 = vpop.f32.mrf.mxu0  ;;  %v851_v42 = vpop.f32.mrf.mxu1 }
  0xdc   :  { %v475_v43 = vpop.f32.mrf.mxu0  ;;  %v853_v50 = vpop.f32.mrf.mxu1 }
  0xdd   :  { %v9979_v45 = vadd.f32 %v849_v38, %v475_v43  ;;  %v223_v38 = vpop.permute.xlu1 %222  ;;  %v229_v24 = vpop.permute.xlu0 %228 }
  0xde   :  { %v477_v46 = vpop.f32.mrf.mxu0  ;;  %v10060_v22 = vpop.f32.mrf.mxu1 }
  0xdf   :  { %v9981_v49 = vadd.f32 %v851_v42, %v477_v46  ;;  %v289_v42 = vsel %vm240_vm1, 0, %v223_v38 }
  0xe0   :  { %v479_v52 = vpop.f32.mrf.mxu0  ;;  %v10069_v25 = vpop.f32.mrf.mxu1  ;;  %v10105_v46 = vsel %vm306_vm2, %v289_v42, 0  ;;  %v295_v42 = vsel %vm240_vm1, 0, %v229_v24 }
  0xe1   :  { %7916 = vmatmul.mubr.msk.bf16.gmra.mxu0 %vm361_vm3, %v9977_v44  ;;  %7951 = vmatmul.mubr.msk.bf16.gmra.mxu1 %vm361_vm3, %v9977_v44  ;;  %v9989_v53 = vadd.f32 %v853_v50, %v479_v52  ;;  %14942 = vst [vmem:[#allocation2_spill] sm:$0xff] %v10069_v25  ;;  %v291_v52 = vsel %vm240_vm1, 0, %v225_v47  ;;  %v227_v62 = vpop.permute.xlu1 %226 }
  0xe2   :  { %623 = vmatprep.mubr.bf16.mxu0 %v14939_v3  ;;  %1017 = vmatprep.mubr.bf16.mxu1 %v14939_v3  ;;  %v10074_v27 = vpop.f32.mrf.mxu1  ;;  %v10117_v58 = vsel %vm306_vm2, %v291_v52, 0  ;;  %v10119_v61 = vpop.f32.mrf.mxu0  ;;  %v293_v11 = vsel %vm240_vm1, 0, %v227_v62  ;;  %v10153_v62 = vsel %vm306_vm2, %v295_v42, 0 }
  0xe3   :  { %14943 = vst [vmem:[#allocation3_spill] sm:$0xff] %v10074_v27  ;;  %v10135_v17 = vsel %vm306_vm2, %v293_v11, 0 }
  0xe4   :  { %v10083_v31 = vpop.f32.mrf.mxu1 }
  0xe5   :  { %14944 = vst [vmem:[#allocation4_spill] sm:$0xff] %v10083_v31 }
  0xe6   :  { %v10088_v34 = vpop.f32.mrf.mxu1 }
  0xe7   :  { %14945 = vst [vmem:[#allocation5_spill] sm:$0xff] %v10088_v34 }
  0xe8   :  { %v10097_v40 = vpop.f32.mrf.mxu1 }
  0xe9   :  { %7917 = vmatmul.mubr.msk.bf16.gmra.mxu0 %vm361_vm3, %v9993_v56  ;;  %7952 = vmatmul.mubr.msk.bf16.gmra.mxu1 %vm361_vm3, %v9993_v56  ;;  %14946 = vst [vmem:[#allocation6_spill] sm:$0xff] %v10097_v40  ;;  %v231_v40 = vpop.permute.xlu1 %230 }
  0xea   :  { %633 = vmatprep.mubr.bf16.mxu0 %v14939_v3  ;;  %1027 = vmatprep.mubr.bf16.mxu1 %v14939_v3  ;;  %v10102_v43 = vpop.f32.mrf.mxu1 }
  0xeb   :  { %14947 = vst [vmem:[#allocation7_spill] sm:$0xff] %v10102_v43 }
  0xec   :  { %v10111_v50 = vpop.f32.mrf.mxu1 }
  0xed   :  { %14948 = vst [vmem:[#allocation8_spill] sm:$0xff] %v10111_v50  ;;  %v235_v25 = vpop.permute.xlu1 %234 }
  0xee   :  { %v875_v55 = vpop.f32.mrf.mxu1 }
  0xf1   :  { %7918 = vmatmul.mubr.msk.bf16.gmra.mxu0 %vm361_vm3, %v10011_v0  ;;  %7953 = vmatmul.mubr.msk.bf16.gmra.mxu1 %vm361_vm3, %v10011_v0 }
  0xf2   :  { %643 = vmatprep.mubr.bf16.mxu0 %v14939_v3  ;;  %1037 = vmatprep.mubr.bf16.mxu1 %v14939_v3 }
  0xf9   :  { %7919 = vmatmul.mubr.msk.bf16.gmra.mxu0 %vm361_vm3, %v10021_v5  ;;  %7954 = vmatmul.mubr.msk.bf16.gmra.mxu1 %vm361_vm3, %v10021_v5 }
  0xfa   :  { %653 = vmatprep.mubr.bf16.mxu0 %v14939_v3  ;;  %1047 = vmatprep.mubr.bf16.mxu1 %v14939_v3 }
 0x101   :  { %7920 = vmatmul.mubr.msk.bf16.gmra.mxu0 %vm361_vm3, %v10031_v10  ;;  %7955 = vmatmul.mubr.msk.bf16.gmra.mxu1 %vm361_vm3, %v10031_v10 }
 0x102   :  { %663 = vmatprep.mubr.bf16.mxu0 %v14939_v3  ;;  %1057 = vmatprep.mubr.bf16.mxu1 %v14939_v3 }
 0x109   :  { %7921 = vmatmul.mubr.msk.bf16.gmra.mxu0 %vm361_vm3, %v10041_v14  ;;  %7956 = vmatmul.mubr.msk.bf16.gmra.mxu1 %vm361_vm3, %v10041_v14 }
 0x10a   :  { %673 = vmatprep.mubr.bf16.mxu0 %v14939_v3  ;;  %1067 = vmatprep.mubr.bf16.mxu1 %v14939_v3 }
 0x111   :  { %7922 = vmatmul.mubr.msk.bf16.gmra.mxu0 %vm361_vm3, %v10051_v19  ;;  %7957 = vmatmul.mubr.msk.bf16.gmra.mxu1 %vm361_vm3, %v10051_v19 }
 0x112   :  { %683 = vmatprep.mubr.bf16.mxu0 %v14939_v3  ;;  %1077 = vmatprep.mubr.bf16.mxu1 %v14939_v3 }
 0x119   :  { %7923 = vmatmul.mubr.msk.bf16.gmra.mxu0 %vm361_vm3, %v10063_v23  ;;  %7958 = vmatmul.mubr.msk.bf16.gmra.mxu1 %vm361_vm3, %v10063_v23 }
 0x11a   :  { %693 = vmatprep.mubr.bf16.mxu0 %v14939_v3  ;;  %1087 = vmatprep.mubr.bf16.mxu1 %v14939_v3 }
 0x121   :  { %7924 = vmatmul.mubr.msk.bf16.gmra.mxu0 %vm361_vm3, %v10077_v28  ;;  %7959 = vmatmul.mubr.msk.bf16.gmra.mxu1 %vm361_vm3, %v10077_v28 }
 0x122   :  { %703 = vmatprep.mubr.bf16.mxu0 %v14939_v3  ;;  %1097 = vmatprep.mubr.bf16.mxu1 %v14939_v3 }
 0x129   :  { %7925 = vmatmul.mubr.msk.bf16.gmra.mxu0 %vm361_vm3, %v10091_v37  ;;  %7960 = vmatmul.mubr.msk.bf16.gmra.mxu1 %vm361_vm3, %v10091_v37 }
 0x12a   :  { %713 = vmatprep.mubr.bf16.mxu0 %v14939_v3  ;;  %1107 = vmatprep.mubr.bf16.mxu1 %v14939_v3 }
 0x131   :  { %7926 = vmatmul.mubr.msk.bf16.gmra.mxu0 %vm361_vm3, %v10105_v46  ;;  %7961 = vmatmul.mubr.msk.bf16.gmra.mxu1 %vm361_vm3, %v10105_v46 }
 0x132   :  { %723 = vmatprep.mubr.bf16.mxu0 %v14939_v3  ;;  %1117 = vmatprep.mubr.bf16.mxu1 %v14939_v3 }
 0x139   :  { %v10121_v1 = vpop.f32.mrf.mxu0  ;;  %7927 = vmatmul.mubr.msk.bf16.gmra.mxu0 %vm361_vm3, %v10117_v58  ;;  %v879_v4 = vpop.f32.mrf.mxu1  ;;  %7962 = vmatmul.mubr.msk.bf16.gmra.mxu1 %vm361_vm3, %v10117_v58 }
 0x13a   :  { %14949 = vst [vmem:[#allocation9_spill] sm:$0xff] %v10121_v1  ;;  %733 = vmatprep.mubr.bf16.mxu0 %v14939_v3  ;;  %1127 = vmatprep.mubr.bf16.mxu1 %v14939_v3 }
 0x13b   :  { %v10129_v7 = vpop.f32.mrf.mxu0  ;;  %v881_v8 = vpop.f32.mrf.mxu1 }
 0x13c   :  { %14950 = vst [vmem:[#allocation10_spill] sm:$0xff] %v10129_v7 }
 0x13d   :  { %v10132_v13 = vpop.f32.mrf.mxu0  ;;  %v883_v16 = vpop.f32.mrf.mxu1 }
 0x13e   :  { %14951 = vst [vmem:[#allocation11_spill] sm:$0xff] %v10132_v13 }
 0x13f   :  { %v10137_v20 = vpop.f32.mrf.mxu0  ;;  %v885_v21 = vpop.f32.mrf.mxu1 }
 0x140   :  { %14952 = vst [vmem:[#allocation12_spill] sm:$0xff] %v10137_v20 }
 0x141   :  { %v10139_v26 = vpop.f32.mrf.mxu0  ;;  %7928 = vmatmul.mubr.msk.bf16.gmra.mxu0 %vm361_vm3, %v10135_v17  ;;  %v889_v29 = vpop.f32.mrf.mxu1  ;;  %7963 = vmatmul.mubr.msk.bf16.gmra.mxu1 %vm361_vm3, %v10135_v17 }
 0x142   :  { %14953 = vst [vmem:[#allocation13_spill] sm:$0xff] %v10139_v26  ;;  %743 = vmatprep.mubr.bf16.mxu0 %v14939_v3  ;;  %1137 = vmatprep.mubr.bf16.mxu1 %v14939_v3 }
 0x143   :  { %v10147_v33 = vpop.f32.mrf.mxu0  ;;  %v891_v38 = vpop.f32.mrf.mxu1 }
 0x144   :  { %14954 = vst [vmem:[#allocation14_spill] sm:$0xff] %v10147_v33 }
 0x145   :  { %v10150_v47 = vpop.f32.mrf.mxu0  ;;  %v893_v52 = vpop.f32.mrf.mxu1 }
 0x146   :  { %14955 = vst [vmem:[#allocation15_spill] sm:$0xff] %v10150_v47  ;;  %v14958_v47 = vmov 0  }
 0x147   :  { %v501_v11 = vpop.f32.mrf.mxu0  ;;  %v895_v50 = vpop.f32.mrf.mxu1 }
 0x148   :  { %v10155_v43 = vadd.f32 %v875_v55, %v501_v11  ;;  %v297_v55 = vsel %vm240_vm1, 0, %v231_v40 }
 0x149   :  { %v505_v26 = vpop.f32.mrf.mxu0  ;;  %7929 = vmatmul.mubr.msk.bf16.gmra.mxu0 %vm361_vm3, %v10153_v62  ;;  %v899_v3 = vpop.f32.mrf.mxu1  ;;  %7964 = vmatmul.mubr.msk.bf16.gmra.mxu1 %vm361_vm3, %v10153_v62  ;;  %v10171_v31 = vsel %vm306_vm2, %v297_v55, 0 }
 0x14a   :  { %14956 = vst [vmem:[#allocation16_spill] sm:$0xff] %v10155_v43  ;;  %v10161_v24 = vadd.f32 %v879_v4, %v505_v26  ;;  %753 = vmatprep.mubr.bf16.mxu0 %v14958_v47  ;;  %1147 = vmatprep.mubr.bf16.mxu1 %v14958_v47 }
 0x14b   :  { %v507_v42 = vpop.f32.mrf.mxu0  ;;  %v901_v33 = vpop.f32.mrf.mxu1 }
 0x14c   :  { %14957 = vst [vmem:[#allocation17_spill] sm:$0xff] %v10161_v24  ;;  %v10166_v11 = vadd.f32 %v881_v8, %v507_v42  ;;  %v233_v24 = vpop.permute.xlu0 %232 }
 0x14d   :  { %v509_v43 = vpop.f32.mrf.mxu0  ;;  %v903_v34 = vpop.f32.mrf.mxu1 }
 0x14e   :  { %14959 = vst [vmem:[#allocation18_spill] sm:$0xff] %v10166_v11  ;;  %v10168_v20 = vadd.f32 %v883_v16, %v509_v43  ;;  %v108_v16 = vld [vmem:[%s14923_s0 + $0x1e0] sm:$0xff] }
 0x14f   :  { %v511_v13 = vpop.f32.mrf.mxu0  ;;  %v905_v4 = vpop.f32.mrf.mxu1 }
 0x150   :  { %14960 = vst [vmem:[#allocation19_spill] sm:$0xff] %v10168_v20  ;;  %v10173_v26 = vadd.f32 %v885_v21, %v511_v13  ;;  %v299_v13 = vsel %vm240_vm1, 0, %v233_v24  ;;  %v109_v21 = vld [vmem:[%s14923_s0 + $0x1e8] sm:$0xff] }
 0x151   :  { %v515_v27 = vpop.f32.mrf.mxu0  ;;  %7930 = vmatmul.mubr.msk.bf16.gmra.mxu0 %vm361_vm3, %v10171_v31  ;;  %v909_v7 = vpop.f32.mrf.mxu1  ;;  %7965 = vmatmul.mubr.msk.bf16.gmra.mxu1 %vm361_vm3, %v10171_v31 }
 0x152   :  { %14961 = vst [vmem:[#allocation20_spill] sm:$0xff] %v10173_v26  ;;  %v10179_v40 = vadd.f32 %v889_v29, %v515_v27  ;;  %763 = vmatprep.mubr.bf16.mxu0 %v14958_v47  ;;  %1725 = vmatprep.mubr.bf16.mxu1 %v14958_v47  ;;  %v142_v27 = vpack.c.bf16 %v109_v21, %v108_v16  ;;  %v10195_v26 = vsel %vm306_vm2, %v299_v13, 0  ;;  %v110_v16 = vld [vmem:[%s14923_s0 + $0x1f0] sm:$0xff]  ;;  %v111_v21 = vld [vmem:[%s14923_s0 + $0x1f8] sm:$0xff]  ;;  %s9485_s0 = smov 40  }
 0x153   :  { %v517_v43 = vpop.f32.mrf.mxu0  ;;  %v911_v8 = vpop.f32.mrf.mxu1 }
 0x154   :  { %14962 = vst [vmem:[#allocation21_spill] sm:$0xff] %v10179_v40  ;;  %v10190_v42 = vadd.f32 %v891_v38, %v517_v43  ;;  %236 = vrot.lane.b32.xlu0 %v142_v27, %s9483_s19 }
 0x155   :  { %v519_v29 = vpop.f32.mrf.mxu0  ;;  %v913_v55 = vpop.f32.mrf.mxu1 }
 0x156   :  { %14963 = vst [vmem:[#allocation22_spill] sm:$0xff] %v10190_v42  ;;  %v10192_v40 = vadd.f32 %v893_v52, %v519_v29 }
 0x157   :  { %v521_v24 = vpop.f32.mrf.mxu0  ;;  %v915_v20 = vpop.f32.mrf.mxu1 }
 0x158   :  { %14964 = vst [vmem:[#allocation23_spill] sm:$0xff] %v10192_v40  ;;  %v10198_v11 = vadd.f32 %v895_v50, %v521_v24  ;;  %v301_v50 = vsel %vm240_vm1, 0, %v235_v25 }
 0x159   :  { %v525_v1 = vpop.f32.mrf.mxu0  ;;  %7931 = vmatmul.mubr.msk.bf16.gmra.mxu0 %vm361_vm3, %v10195_v26  ;;  %v919_v38 = vpop.f32.mrf.mxu1  ;;  %8014 = vmatmul.mubr.msk.bf16.vlgmr.msra.gmra.mxu1 %vm361_vm3, %v9846_v54 }
 0x15a   :  { %14965 = vst [vmem:[#allocation24_spill] sm:$0xff] %v10198_v11  ;;  %v10204_v52 = vadd.f32 %v899_v3, %v525_v1  ;;  %773 = vmatprep.mubr.bf16.mxu0 %v14958_v47  ;;  %1735 = vmatprep.mubr.bf16.mxu1 %v14958_v47  ;;  %v143_v3 = vpack.c.bf16 %v111_v21, %v110_v16 }
 0x15b   :  { %v527_v43 = vpop.f32.mrf.mxu0  ;;  %v921_v13 = vpop.f32.mrf.mxu1 }
 0x15c   :  { %14966 = vst [vmem:[#allocation25_spill] sm:$0xff] %v10204_v52  ;;  %v10215_v27 = vadd.f32 %v901_v33, %v527_v43  ;;  %v10220_v52 = vsel %vm306_vm2, %v301_v50, 0  ;;  %238 = vrot.lane.b32.xlu1 %v143_v3, %s9483_s19 }
 0x15d   :  { %v529_v1 = vpop.f32.mrf.mxu0  ;;  %v923_v29 = vpop.f32.mrf.mxu1 }
 0x15e   :  { %14967 = vst [vmem:[#allocation26_spill] sm:$0xff] %v10215_v27  ;;  %v10217_v24 = vadd.f32 %v903_v34, %v529_v1 }
 0x15f   :  { %v531_v25 = vpop.f32.mrf.mxu0  ;;  %v925_v11 = vpop.f32.mrf.mxu1 }
 0x160   :  { %14968 = vst [vmem:[#allocation27_spill] sm:$0xff] %v10217_v24  ;;  %v10223_v40 = vadd.f32 %v905_v4, %v531_v25  ;;  %v8049_v4 = vcombine.low %v9998_v59, %v9998_v59 }
 0x161   :  { %v535_v42 = vpop.f32.mrf.mxu0  ;;  %7932 = vmatmul.mubr.msk.bf16.gmra.mxu0 %vm361_vm3, %v10220_v52  ;;  %v929_v33 = vpop.f32.mrf.mxu1  ;;  %8015 = vmatmul.mubr.msk.bf16.gmra.mxu1 %vm361_vm3, %v9856_v57 }
 0x162   :  { %14969 = vst [vmem:[#allocation28_spill] sm:$0xff] %v10223_v40  ;;  %v10229_v43 = vadd.f32 %v909_v7, %v535_v42  ;;  %1219 = vmatprep.mubr.bf16.mxu0 %v14958_v47  ;;  %1745 = vmatprep.mubr.bf16.mxu1 %v14958_v47  ;;  %v2194_v7 = vsel %vm424_vm0, %v8049_v4, 0 }
 0x163   :  { %v537_v34 = vpop.f32.mrf.mxu0  ;;  %v931_v50 = vpop.f32.mrf.mxu1 }
 0x164   :  { %14970 = vst [vmem:[#allocation29_spill] sm:$0xff] %v10229_v43  ;;  %v10235_v16 = vadd.f32 %v911_v8, %v537_v34  ;;  %v8974_v43 = vld [vmem:[%s14924_s1 + $0x64] ss:$8 sps:$4 sm:$0xff]  }
 0x165   :  { %v539_v21 = vpop.f32.mrf.mxu0  ;;  %v933_v3 = vpop.f32.mrf.mxu1 }
 0x166   :  { %v10237_v1 = vadd.f32 %v913_v55, %v539_v21 }
 0x167   :  { %v541_v25 = vpop.f32.mrf.mxu0  ;;  %v935_v40 = vpop.f32.mrf.mxu1 }
 0x168   :  { %v10240_v42 = vadd.f32 %v915_v20, %v541_v25  ;;  %v8972_v20 = vld [vmem:[%s14924_s1 + $0x60] ss:$8 sps:$4 sm:$0xff]  }
 0x169   :  { %v545_v24 = vpop.f32.mrf.mxu0  ;;  %v939_v27 = vpop.f32.mrf.mxu1  ;;  %7974 = vmatmul.mubr.msk.bf16.vlgmr.msra.gmra.mxu0 %vm361_vm3, %v9826_v48  ;;  %8016 = vmatmul.mubr.msk.bf16.gmra.mxu1 %vm361_vm3, %v9866_v60 }
 0x16a   :  { %v10249_v59 = vadd.f32 %v919_v38, %v545_v24  ;;  %2212 = vmatpush1.bf16.msra.mxu0 %v2194_v7  ;;  %1229 = vmatprep.mubr.bf16.mxu0 %v14958_v47 }
 0x16b   :  { %v547_v8 = vpop.f32.mrf.mxu0  ;;  %v941_v55 = vpop.f32.mrf.mxu1  ;;  %1755 = vmatprep.mubr.bf16.mxu1 %v14958_v47  ;;  %2213 = vmatprep.subr.bf16.mxu0 %v8974_v43 }
 0x16c   :  { %14971 = vst [vmem:[#allocation30_spill] sm:$0xff] %v10249_v59  ;;  %v10256_v34 = vadd.f32 %v921_v13, %v547_v8 }
 0x16d   :  { %v549_v48 = vpop.f32.mrf.mxu0  ;;  %v943_v4 = vpop.f32.mrf.mxu1 }
 0x16e   :  { %14972 = vst [vmem:[#allocation31_spill] sm:$0xff] %v10256_v34  ;;  %v10258_v21 = vadd.f32 %v923_v29, %v549_v48  ;;  %2214 = vmatpush1.bf16.msra.mxu0 %v8972_v20 }
 0x16f   :  { %v551_v38 = vpop.f32.mrf.mxu0  ;;  %v945_v24 = vpop.f32.mrf.mxu1 }
 0x170   :  { %14973 = vst [vmem:[#allocation32_spill] sm:$0xff] %v10258_v21  ;;  %v10260_v25 = vadd.f32 %v925_v11, %v551_v38 }
 0x171   :  { %v555_v7 = vpop.f32.mrf.mxu0  ;;  %v949_v59 = vpop.f32.mrf.mxu1  ;;  %7975 = vmatmul.mubr.msk.bf16.gmra.mxu0 %vm361_vm3, %v9836_v51  ;;  %8017 = vmatmul.mubr.msk.bf16.gmra.mxu1 %vm361_vm3, %v9876_v63 }
 0x172   :  { %14974 = vst [vmem:[#allocation33_spill] sm:$0xff] %v10260_v25  ;;  %v10266_v43 = vadd.f32 %v929_v33, %v555_v7  ;;  %1239 = vmatprep.mubr.bf16.mxu0 %v14958_v47  ;;  %1765 = vmatprep.mubr.bf16.mxu1 %v14958_v47 }
 0x173   :  { %v557_v13 = vpop.f32.mrf.mxu0  ;;  %v951_v29 = vpop.f32.mrf.mxu1 }
 0x174   :  { %v10270_v20 = vadd.f32 %v931_v50, %v557_v13 }
 0x175   :  { %v559_v11 = vpop.f32.mrf.mxu0  ;;  %v953_v8 = vpop.f32.mrf.mxu1 }
 0x176   :  { %14975 = vst [vmem:[#allocation34_spill] sm:$0xff] %v10270_v20  ;;  %v10272_v48 = vadd.f32 %v933_v3, %v559_v11 }
 0x177   :  { %v561_v38 = vpop.f32.mrf.mxu0  ;;  %v955_v25 = vpop.f32.mrf.mxu1 }
 0x178   :  { %14976 = vst [vmem:[#allocation35_spill] sm:$0xff] %v10272_v48  ;;  %v10274_v51 = vadd.f32 %v935_v40, %v561_v38 }
 0x179   :  { %v565_v21 = vpop.f32.mrf.mxu0  ;;  %v959_v34 = vpop.f32.mrf.mxu1  ;;  %7976 = vmatmul.mubr.msk.bf16.gmra.mxu0 %vm361_vm3, %v9846_v54  ;;  %8018 = vmatmul.mubr.msk.bf16.gmra.mxu1 %vm361_vm3, %v9886_v2 }
 0x17a   :  { %14977 = vst [vmem:[#allocation36_spill] sm:$0xff] %v10274_v51  ;;  %v10280_v33 = vadd.f32 %v939_v27, %v565_v21  ;;  %1249 = vmatprep.mubr.bf16.mxu0 %v14958_v47  ;;  %1775 = vmatprep.mubr.bf16.mxu1 %v14958_v47 }
 0x17b   :  { %v567_v50 = vpop.f32.mrf.mxu0  ;;  %v961_v3 = vpop.f32.mrf.mxu1 }
 0x17c   :  { %v10284_v7 = vadd.f32 %v941_v55, %v567_v50 }
 0x17d   :  { %v569_v40 = vpop.f32.mrf.mxu0  ;;  %v963_v13 = vpop.f32.mrf.mxu1 }
 0x17e   :  { %14978 = vst [vmem:[#allocation37_spill] sm:$0xff] %v10284_v7  ;;  %v10286_v11 = vadd.f32 %v943_v4, %v569_v40 }
 0x17f   :  { %v571_v38 = vpop.f32.mrf.mxu0  ;;  %v965_v51 = vpop.f32.mrf.mxu1 }
 0x180   :  { %14979 = vst [vmem:[#allocation38_spill] sm:$0xff] %v10286_v11  ;;  %v10288_v54 = vadd.f32 %v945_v24, %v571_v38 }
 0x181   :  { %v575_v48 = vpop.f32.mrf.mxu0  ;;  %v969_v20 = vpop.f32.mrf.mxu1  ;;  %7977 = vmatmul.mubr.msk.bf16.gmra.mxu0 %vm361_vm3, %v9856_v57  ;;  %8019 = vmatmul.mubr.msk.bf16.gmra.mxu1 %vm361_vm3, %v9896_v6 }
 0x182   :  { %14980 = vst [vmem:[#allocation39_spill] sm:$0xff] %v10288_v54  ;;  %v10294_v27 = vadd.f32 %v949_v59, %v575_v48  ;;  %1259 = vmatprep.mubr.bf16.mxu0 %v14958_v47  ;;  %1785 = vmatprep.mubr.bf16.mxu1 %v14958_v47 }
 0x183   :  { %v577_v55 = vpop.f32.mrf.mxu0  ;;  %v971_v4 = vpop.f32.mrf.mxu1 }
 0x184   :  { %14981 = vst [vmem:[#allocation40_spill] sm:$0xff] %v10294_v27  ;;  %v10298_v21 = vadd.f32 %v951_v29, %v577_v55 }
 0x185   :  { %v579_v24 = vpop.f32.mrf.mxu0  ;;  %v973_v50 = vpop.f32.mrf.mxu1 }
 0x186   :  { %14982 = vst [vmem:[#allocation41_spill] sm:$0xff] %v10298_v21  ;;  %v10300_v40 = vadd.f32 %v953_v8, %v579_v24 }
 0x187   :  { %v581_v38 = vpop.f32.mrf.mxu0  ;;  %v975_v54 = vpop.f32.mrf.mxu1 }
 0x188   :  { %14983 = vst [vmem:[#allocation42_spill] sm:$0xff] %v10300_v40  ;;  %v10302_v57 = vadd.f32 %v955_v25, %v581_v38 }
 0x189   :  { %v585_v11 = vpop.f32.mrf.mxu0  ;;  %v979_v7 = vpop.f32.mrf.mxu1  ;;  %7978 = vmatmul.mubr.msk.bf16.gmra.mxu0 %vm361_vm3, %v9866_v60  ;;  %8020 = vmatmul.mubr.msk.bf16.gmra.mxu1 %vm361_vm3, %v9906_v9 }
 0x18a   :  { %14984 = vst [vmem:[#allocation43_spill] sm:$0xff] %v10302_v57  ;;  %v10308_v59 = vadd.f32 %v959_v34, %v585_v11  ;;  %1269 = vmatprep.mubr.bf16.mxu0 %v14958_v47  ;;  %1795 = vmatprep.mubr.bf16.mxu1 %v14958_v47 }
 0x18b   :  { %v587_v29 = vpop.f32.mrf.mxu0  ;;  %v981_v8 = vpop.f32.mrf.mxu1 }
 0x18c   :  { %14985 = vst [vmem:[#allocation44_spill] sm:$0xff] %v10308_v59  ;;  %v10312_v48 = vadd.f32 %v961_v3, %v587_v29 }
 0x18d   :  { %v589_v25 = vpop.f32.mrf.mxu0  ;;  %v983_v55 = vpop.f32.mrf.mxu1 }
 0x18e   :  { %14986 = vst [vmem:[#allocation45_spill] sm:$0xff] %v10312_v48  ;;  %v10314_v24 = vadd.f32 %v963_v13, %v589_v25 }
 0x18f   :  { %v591_v38 = vpop.f32.mrf.mxu0  ;;  %v985_v57 = vpop.f32.mrf.mxu1 }
 0x190   :  { %14987 = vst [vmem:[#allocation46_spill] sm:$0xff] %v10314_v24  ;;  %v10316_v40 = vadd.f32 %v965_v51, %v591_v38 }
 0x191   :  { %v595_v21 = vpop.f32.mrf.mxu0  ;;  %v989_v27 = vpop.f32.mrf.mxu1  ;;  %7979 = vmatmul.mubr.msk.bf16.gmra.mxu0 %vm361_vm3, %v9876_v63  ;;  %8021 = vmatmul.mubr.msk.bf16.gmra.mxu1 %vm361_vm3, %v9916_v12 }
 0x192   :  { %14988 = vst [vmem:[#allocation47_spill] sm:$0xff] %v10316_v40  ;;  %v10322_v34 = vadd.f32 %v969_v20, %v595_v21  ;;  %1279 = vmatprep.mubr.bf16.mxu0 %v14958_v47  ;;  %1805 = vmatprep.mubr.bf16.mxu1 %v14958_v47 }
 0x193   :  { %v597_v3 = vpop.f32.mrf.mxu0  ;;  %v991_v13 = vpop.f32.mrf.mxu1 }
 0x194   :  { %14989 = vst [vmem:[#allocation48_spill] sm:$0xff] %v10322_v34  ;;  %v10326_v11 = vadd.f32 %v971_v4, %v597_v3 }
 0x195   :  { %v599_v51 = vpop.f32.mrf.mxu0  ;;  %v993_v29 = vpop.f32.mrf.mxu1 }
 0x196   :  { %14990 = vst [vmem:[#allocation49_spill] sm:$0xff] %v10326_v11  ;;  %v10328_v25 = vadd.f32 %v973_v50, %v599_v51 }
 0x197   :  { %v601_v38 = vpop.f32.mrf.mxu0  ;;  %v995_v40 = vpop.f32.mrf.mxu1 }
 0x198   :  { %14991 = vst [vmem:[#allocation50_spill] sm:$0xff] %v10328_v25  ;;  %v10330_v24 = vadd.f32 %v975_v54, %v601_v38 }
 0x199   :  { %v605_v48 = vpop.f32.mrf.mxu0  ;;  %v999_v59 = vpop.f32.mrf.mxu1  ;;  %7980 = vmatmul.mubr.msk.bf16.gmra.mxu0 %vm361_vm3, %v9886_v2  ;;  %8022 = vmatmul.mubr.msk.bf16.gmra.mxu1 %vm361_vm3, %v9926_v15 }
 0x19a   :  { %14992 = vst [vmem:[#allocation51_spill] sm:$0xff] %v10330_v24  ;;  %v10336_v20 = vadd.f32 %v979_v7, %v605_v48  ;;  %1289 = vmatprep.mubr.bf16.mxu0 %v14958_v47  ;;  %1815 = vmatprep.mubr.bf16.mxu1 %v14958_v47 }
 0x19b   :  { %v607_v4 = vpop.f32.mrf.mxu0  ;;  %v1001_v21 = vpop.f32.mrf.mxu1 }
 0x19c   :  { %14993 = vst [vmem:[#allocation52_spill] sm:$0xff] %v10336_v20  ;;  %v10340_v50 = vadd.f32 %v981_v8, %v607_v4 }
 0x19d   :  { %v609_v54 = vpop.f32.mrf.mxu0  ;;  %v1003_v3 = vpop.f32.mrf.mxu1 }
 0x19e   :  { %14994 = vst [vmem:[#allocation53_spill] sm:$0xff] %v10340_v50  ;;  %v10342_v51 = vadd.f32 %v983_v55, %v609_v54 }
 0x19f   :  { %v611_v38 = vpop.f32.mrf.mxu0  ;;  %v1005_v24 = vpop.f32.mrf.mxu1 }
 0x1a0   :  { %14995 = vst [vmem:[#allocation54_spill] sm:$0xff] %v10342_v51  ;;  %v10344_v25 = vadd.f32 %v985_v57, %v611_v38 }
 0x1a1   :  { %v615_v11 = vpop.f32.mrf.mxu0  ;;  %v1009_v34 = vpop.f32.mrf.mxu1  ;;  %7981 = vmatmul.mubr.msk.bf16.gmra.mxu0 %vm361_vm3, %v9896_v6  ;;  %8023 = vmatmul.mubr.msk.bf16.gmra.mxu1 %vm361_vm3, %v9936_v18 }
 0x1a2   :  { %14996 = vst [vmem:[#allocation55_spill] sm:$0xff] %v10344_v25  ;;  %v10350_v7 = vadd.f32 %v989_v27, %v615_v11  ;;  %1299 = vmatprep.mubr.bf16.mxu0 %v14958_v47  ;;  %1825 = vmatprep.mubr.bf16.mxu1 %v14958_v47 }
 0x1a3   :  { %v617_v8 = vpop.f32.mrf.mxu0  ;;  %v1011_v48 = vpop.f32.mrf.mxu1 }
 0x1a4   :  { %14997 = vst [vmem:[#allocation56_spill] sm:$0xff] %v10350_v7  ;;  %v10354_v55 = vadd.f32 %v991_v13, %v617_v8 }
 0x1a5   :  { %v619_v57 = vpop.f32.mrf.mxu0  ;;  %v1013_v4 = vpop.f32.mrf.mxu1 }
 0x1a6   :  { %14998 = vst [vmem:[#allocation57_spill] sm:$0xff] %v10354_v55  ;;  %v10356_v54 = vadd.f32 %v993_v29, %v619_v57 }
 0x1a7   :  { %v621_v38 = vpop.f32.mrf.mxu0  ;;  %v1015_v25 = vpop.f32.mrf.mxu1 }
 0x1a8   :  { %14999 = vst [vmem:[#allocation58_spill] sm:$0xff] %v10356_v54  ;;  %v10358_v51 = vadd.f32 %v995_v40, %v621_v38 }
 0x1a9   :  { %v625_v50 = vpop.f32.mrf.mxu0  ;;  %v1019_v20 = vpop.f32.mrf.mxu1  ;;  %7982 = vmatmul.mubr.msk.bf16.gmra.mxu0 %vm361_vm3, %v9906_v9  ;;  %8024 = vmatmul.mubr.msk.bf16.gmra.mxu1 %vm361_vm3, %v9957_v30 }
 0x1aa   :  { %15000 = vst [vmem:[#allocation59_spill] sm:$0xff] %v10358_v51  ;;  %v10364_v27 = vadd.f32 %v999_v59, %v625_v50  ;;  %1309 = vmatprep.mubr.bf16.mxu0 %v14958_v47  ;;  %1835 = vmatprep.mubr.bf16.mxu1 %v14958_v47 }
 0x1ab   :  { %v627_v13 = vpop.f32.mrf.mxu0  ;;  %v1021_v11 = vpop.f32.mrf.mxu1 }
 0x1ac   :  { %15001 = vst [vmem:[#allocation60_spill] sm:$0xff] %v10364_v27  ;;  %v10368_v29 = vadd.f32 %v1001_v21, %v627_v13 }
 0x1ad   :  { %v629_v40 = vpop.f32.mrf.mxu0  ;;  %v1023_v8 = vpop.f32.mrf.mxu1 }
 0x1ae   :  { %15002 = vst [vmem:[#allocation61_spill] sm:$0xff] %v10368_v29  ;;  %v10370_v57 = vadd.f32 %v1003_v3, %v629_v40 }
 0x1af   :  { %v631_v38 = vpop.f32.mrf.mxu0  ;;  %v1025_v51 = vpop.f32.mrf.mxu1 }
 0x1b0   :  { %15003 = vst [vmem:[#allocation62_spill] sm:$0xff] %v10370_v57  ;;  %v10372_v54 = vadd.f32 %v1005_v24, %v631_v38 }
 0x1b1   :  { %v635_v55 = vpop.f32.mrf.mxu0  ;;  %v1029_v7 = vpop.f32.mrf.mxu1  ;;  %7983 = vmatmul.mubr.msk.bf16.gmra.mxu0 %vm361_vm3, %v9916_v12  ;;  %8025 = vmatmul.mubr.msk.bf16.gmra.mxu1 %vm361_vm3, %v9977_v44 }
 0x1b2   :  { %15004 = vst [vmem:[#allocation63_spill] sm:$0xff] %v10372_v54  ;;  %v10378_v59 = vadd.f32 %v1009_v34, %v635_v55  ;;  %1319 = vmatprep.mubr.bf16.mxu0 %v14958_v47  ;;  %1845 = vmatprep.mubr.bf16.mxu1 %v14958_v47 }
 0x1b3   :  { %v637_v21 = vpop.f32.mrf.mxu0  ;;  %v1031_v50 = vpop.f32.mrf.mxu1 }
 0x1b4   :  { %15005 = vst [vmem:[#allocation64_spill] sm:$0xff] %v10378_v59  ;;  %v10382_v3 = vadd.f32 %v1011_v48, %v637_v21 }
 0x1b5   :  { %v639_v24 = vpop.f32.mrf.mxu0  ;;  %v1033_v13 = vpop.f32.mrf.mxu1 }
 0x1b6   :  { %15006 = vst [vmem:[#allocation65_spill] sm:$0xff] %v10382_v3  ;;  %v10384_v40 = vadd.f32 %v1013_v4, %v639_v24 }
 0x1b7   :  { %v641_v38 = vpop.f32.mrf.mxu0  ;;  %v1035_v54 = vpop.f32.mrf.mxu1 }
 0x1b8   :  { %15007 = vst [vmem:[#allocation66_spill] sm:$0xff] %v10384_v40  ;;  %v10386_v57 = vadd.f32 %v1015_v25, %v641_v38 }
 0x1b9   :  { %v645_v29 = vpop.f32.mrf.mxu0  ;;  %v1039_v27 = vpop.f32.mrf.mxu1  ;;  %7984 = vmatmul.mubr.msk.bf16.gmra.mxu0 %vm361_vm3, %v9926_v15  ;;  %8026 = vmatmul.mubr.msk.bf16.gmra.mxu1 %vm361_vm3, %v9993_v56 }
 0x1ba   :  { %15008 = vst [vmem:[#allocation67_spill] sm:$0xff] %v10386_v57  ;;  %v10392_v34 = vadd.f32 %v1019_v20, %v645_v29  ;;  %1329 = vmatprep.mubr.bf16.mxu0 %v14958_v47  ;;  %1855 = vmatprep.mubr.bf16.mxu1 %v14958_v47 }
 0x1bb   :  { %v647_v48 = vpop.f32.mrf.mxu0  ;;  %v1041_v55 = vpop.f32.mrf.mxu1 }
 0x1bc   :  { %15009 = vst [vmem:[#allocation68_spill] sm:$0xff] %v10392_v34  ;;  %v10396_v4 = vadd.f32 %v1021_v11, %v647_v48 }
 0x1bd   :  { %v649_v25 = vpop.f32.mrf.mxu0  ;;  %v1043_v21 = vpop.f32.mrf.mxu1 }
 0x1be   :  { %15010 = vst [vmem:[#allocation69_spill] sm:$0xff] %v10396_v4  ;;  %v10398_v24 = vadd.f32 %v1023_v8, %v649_v25 }
 0x1bf   :  { %v651_v38 = vpop.f32.mrf.mxu0  ;;  %v1045_v57 = vpop.f32.mrf.mxu1 }
 0x1c0   :  { %15011 = vst [vmem:[#allocation70_spill] sm:$0xff] %v10398_v24  ;;  %v10400_v40 = vadd.f32 %v1025_v51, %v651_v38 }
 0x1c1   :  { %v655_v3 = vpop.f32.mrf.mxu0  ;;  %v1049_v59 = vpop.f32.mrf.mxu1  ;;  %7985 = vmatmul.mubr.msk.bf16.gmra.mxu0 %vm361_vm3, %v9936_v18  ;;  %8027 = vmatmul.mubr.msk.bf16.gmra.mxu1 %vm361_vm3, %v10011_v0 }
 0x1c2   :  { %15012 = vst [vmem:[#allocation71_spill] sm:$0xff] %v10400_v40  ;;  %v10406_v20 = vadd.f32 %v1029_v7, %v655_v3  ;;  %1339 = vmatprep.mubr.bf16.mxu0 %v14958_v47  ;;  %1865 = vmatprep.mubr.bf16.mxu1 %v14958_v47 }
 0x1c3   :  { %v657_v11 = vpop.f32.mrf.mxu0  ;;  %v1051_v29 = vpop.f32.mrf.mxu1 }
 0x1c4   :  { %15013 = vst [vmem:[#allocation72_spill] sm:$0xff] %v10406_v20  ;;  %v10410_v8 = vadd.f32 %v1031_v50, %v657_v11 }
 0x1c5   :  { %v659_v51 = vpop.f32.mrf.mxu0  ;;  %v1053_v48 = vpop.f32.mrf.mxu1 }
 0x1c6   :  { %15014 = vst [vmem:[#allocation73_spill] sm:$0xff] %v10410_v8  ;;  %v10412_v25 = vadd.f32 %v1033_v13, %v659_v51 }
 0x1c7   :  { %v661_v38 = vpop.f32.mrf.mxu0  ;;  %v1055_v40 = vpop.f32.mrf.mxu1 }
 0x1c8   :  { %15015 = vst [vmem:[#allocation74_spill] sm:$0xff] %v10412_v25  ;;  %v10414_v24 = vadd.f32 %v1035_v54, %v661_v38 }
 0x1c9   :  { %v665_v4 = vpop.f32.mrf.mxu0  ;;  %v1059_v34 = vpop.f32.mrf.mxu1  ;;  %7986 = vmatmul.mubr.msk.bf16.gmra.mxu0 %vm361_vm3, %v9957_v30  ;;  %8028 = vmatmul.mubr.msk.bf16.gmra.mxu1 %vm361_vm3, %v10021_v5 }
 0x1ca   :  { %15016 = vst [vmem:[#allocation75_spill] sm:$0xff] %v10414_v24  ;;  %v10420_v7 = vadd.f32 %v1039_v27, %v665_v4  ;;  %1349 = vmatprep.mubr.bf16.mxu0 %v14958_v47  ;;  %1875 = vmatprep.mubr.bf16.mxu1 %v14958_v47 }
 0x1cb   :  { %v667_v50 = vpop.f32.mrf.mxu0  ;;  %v1061_v3 = vpop.f32.mrf.mxu1 }
 0x1cc   :  { %15017 = vst [vmem:[#allocation76_spill] sm:$0xff] %v10420_v7  ;;  %v10424_v13 = vadd.f32 %v1041_v55, %v667_v50 }
 0x1cd   :  { %v669_v54 = vpop.f32.mrf.mxu0  ;;  %v1063_v11 = vpop.f32.mrf.mxu1 }
 0x1ce   :  { %15018 = vst [vmem:[#allocation77_spill] sm:$0xff] %v10424_v13  ;;  %v10426_v51 = vadd.f32 %v1043_v21, %v669_v54 }
 0x1cf   :  { %v671_v38 = vpop.f32.mrf.mxu0  ;;  %v1065_v24 = vpop.f32.mrf.mxu1 }
 0x1d0   :  { %15019 = vst [vmem:[#allocation78_spill] sm:$0xff] %v10426_v51  ;;  %v10428_v25 = vadd.f32 %v1045_v57, %v671_v38 }
 0x1d1   :  { %v675_v8 = vpop.f32.mrf.mxu0  ;;  %v1069_v20 = vpop.f32.mrf.mxu1  ;;  %7987 = vmatmul.mubr.msk.bf16.gmra.mxu0 %vm361_vm3, %v9977_v44  ;;  %8029 = vmatmul.mubr.msk.bf16.gmra.mxu1 %vm361_vm3, %v10031_v10 }
 0x1d2   :  { %15020 = vst [vmem:[#allocation79_spill] sm:$0xff] %v10428_v25  ;;  %v10434_v27 = vadd.f32 %v1049_v59, %v675_v8  ;;  %1359 = vmatprep.mubr.bf16.mxu0 %v14958_v47  ;;  %1885 = vmatprep.mubr.bf16.mxu1 %v14958_v47 }
 0x1d3   :  { %v677_v55 = vpop.f32.mrf.mxu0  ;;  %v1071_v4 = vpop.f32.mrf.mxu1 }
 0x1d4   :  { %15021 = vst [vmem:[#allocation80_spill] sm:$0xff] %v10434_v27  ;;  %v10438_v21 = vadd.f32 %v1051_v29, %v677_v55 }
 0x1d5   :  { %v679_v57 = vpop.f32.mrf.mxu0  ;;  %v1073_v50 = vpop.f32.mrf.mxu1 }
 0x1d6   :  { %15022 = vst [vmem:[#allocation81_spill] sm:$0xff] %v10438_v21  ;;  %v10440_v54 = vadd.f32 %v1053_v48, %v679_v57 }
 0x1d7   :  { %v681_v38 = vpop.f32.mrf.mxu0  ;;  %v1075_v25 = vpop.f32.mrf.mxu1 }
 0x1d8   :  { %15023 = vst [vmem:[#allocation82_spill] sm:$0xff] %v10440_v54  ;;  %v10442_v51 = vadd.f32 %v1055_v40, %v681_v38 }
 0x1d9   :  { %v685_v13 = vpop.f32.mrf.mxu0  ;;  %v1079_v7 = vpop.f32.mrf.mxu1  ;;  %7988 = vmatmul.mubr.msk.bf16.gmra.mxu0 %vm361_vm3, %v9993_v56  ;;  %8030 = vmatmul.mubr.msk.bf16.gmra.mxu1 %vm361_vm3, %v10041_v14 }
 0x1da   :  { %15024 = vst [vmem:[#allocation83_spill] sm:$0xff] %v10442_v51  ;;  %v10448_v59 = vadd.f32 %v1059_v34, %v685_v13  ;;  %1369 = vmatprep.mubr.bf16.mxu0 %v14958_v47  ;;  %1895 = vmatprep.mubr.bf16.mxu1 %v14958_v47 }
 0x1db   :  { %v687_v29 = vpop.f32.mrf.mxu0  ;;  %v1081_v8 = vpop.f32.mrf.mxu1 }
 0x1dc   :  { %15025 = vst [vmem:[#allocation84_spill] sm:$0xff] %v10448_v59  ;;  %v10452_v48 = vadd.f32 %v1061_v3, %v687_v29 }
 0x1dd   :  { %v689_v40 = vpop.f32.mrf.mxu0  ;;  %v1083_v55 = vpop.f32.mrf.mxu1 }
 0x1de   :  { %15026 = vst [vmem:[#allocation85_spill] sm:$0xff] %v10452_v48  ;;  %v10454_v57 = vadd.f32 %v1063_v11, %v689_v40 }
 0x1df   :  { %v691_v38 = vpop.f32.mrf.mxu0  ;;  %v1085_v51 = vpop.f32.mrf.mxu1 }
 0x1e0   :  { %15027 = vst [vmem:[#allocation86_spill] sm:$0xff] %v10454_v57  ;;  %v10456_v54 = vadd.f32 %v1065_v24, %v691_v38 }
 0x1e1   :  { %v695_v21 = vpop.f32.mrf.mxu0  ;;  %v1089_v27 = vpop.f32.mrf.mxu1  ;;  %7989 = vmatmul.mubr.msk.bf16.gmra.mxu0 %vm361_vm3, %v10011_v0  ;;  %8031 = vmatmul.mubr.msk.bf16.gmra.mxu1 %vm361_vm3, %v10051_v19 }
 0x1e2   :  { %15028 = vst [vmem:[#allocation87_spill] sm:$0xff] %v10456_v54  ;;  %v10462_v34 = vadd.f32 %v1069_v20, %v695_v21  ;;  %1379 = vmatprep.mubr.bf16.mxu0 %v14958_v47  ;;  %1905 = vmatprep.mubr.bf16.mxu1 %v14958_v47 }
 0x1e3   :  { %v697_v3 = vpop.f32.mrf.mxu0  ;;  %v1091_v13 = vpop.f32.mrf.mxu1 }
 0x1e4   :  { %15029 = vst [vmem:[#allocation88_spill] sm:$0xff] %v10462_v34  ;;  %v10466_v11 = vadd.f32 %v1071_v4, %v697_v3 }
 0x1e5   :  { %v699_v24 = vpop.f32.mrf.mxu0  ;;  %v1093_v29 = vpop.f32.mrf.mxu1 }
 0x1e6   :  { %15030 = vst [vmem:[#allocation89_spill] sm:$0xff] %v10466_v11  ;;  %v10468_v40 = vadd.f32 %v1073_v50, %v699_v24 }
 0x1e7   :  { %v701_v38 = vpop.f32.mrf.mxu0  ;;  %v1095_v54 = vpop.f32.mrf.mxu1 }
 0x1e8   :  { %15031 = vst [vmem:[#allocation90_spill] sm:$0xff] %v10468_v40  ;;  %v10470_v57 = vadd.f32 %v1075_v25, %v701_v38 }
 0x1e9   :  { %v705_v48 = vpop.f32.mrf.mxu0  ;;  %v1099_v59 = vpop.f32.mrf.mxu1  ;;  %7990 = vmatmul.mubr.msk.bf16.gmra.mxu0 %vm361_vm3, %v10021_v5  ;;  %8032 = vmatmul.mubr.msk.bf16.gmra.mxu1 %vm361_vm3, %v10063_v23 }
 0x1ea   :  { %15032 = vst [vmem:[#allocation91_spill] sm:$0xff] %v10470_v57  ;;  %v10476_v20 = vadd.f32 %v1079_v7, %v705_v48  ;;  %1389 = vmatprep.mubr.bf16.mxu0 %v14958_v47  ;;  %1915 = vmatprep.mubr.bf16.mxu1 %v14958_v47 }
 0x1eb   :  { %v707_v4 = vpop.f32.mrf.mxu0  ;;  %v1101_v21 = vpop.f32.mrf.mxu1 }
 0x1ec   :  { %15033 = vst [vmem:[#allocation92_spill] sm:$0xff] %v10476_v20  ;;  %v10480_v50 = vadd.f32 %v1081_v8, %v707_v4 }
 0x1ed   :  { %v709_v25 = vpop.f32.mrf.mxu0  ;;  %v1103_v3 = vpop.f32.mrf.mxu1 }
 0x1ee   :  { %15034 = vst [vmem:[#allocation93_spill] sm:$0xff] %v10480_v50  ;;  %v10482_v24 = vadd.f32 %v1083_v55, %v709_v25 }
 0x1ef   :  { %v711_v38 = vpop.f32.mrf.mxu0  ;;  %v1105_v57 = vpop.f32.mrf.mxu1 }
 0x1f0   :  { %15035 = vst [vmem:[#allocation94_spill] sm:$0xff] %v10482_v24  ;;  %v10484_v40 = vadd.f32 %v1085_v51, %v711_v38 }
 0x1f1   :  { %v715_v11 = vpop.f32.mrf.mxu0  ;;  %v1109_v34 = vpop.f32.mrf.mxu1  ;;  %7991 = vmatmul.mubr.msk.bf16.gmra.mxu0 %vm361_vm3, %v10031_v10  ;;  %8033 = vmatmul.mubr.msk.bf16.gmra.mxu1 %vm361_vm3, %v10077_v28 }
 0x1f2   :  { %15036 = vst [vmem:[#allocation95_spill] sm:$0xff] %v10484_v40  ;;  %v10490_v7 = vadd.f32 %v1089_v27, %v715_v11  ;;  %1399 = vmatprep.mubr.bf16.mxu0 %v14958_v47  ;;  %1925 = vmatprep.mubr.bf16.mxu1 %v14958_v47 }
 0x1f3   :  { %v717_v8 = vpop.f32.mrf.mxu0  ;;  %v1111_v48 = vpop.f32.mrf.mxu1 }
 0x1f4   :  { %15037 = vst [vmem:[#allocation96_spill] sm:$0xff] %v10490_v7  ;;  %v10494_v55 = vadd.f32 %v1091_v13, %v717_v8 }
 0x1f5   :  { %v719_v51 = vpop.f32.mrf.mxu0  ;;  %v1113_v4 = vpop.f32.mrf.mxu1 }
 0x1f6   :  { %15038 = vst [vmem:[#allocation97_spill] sm:$0xff] %v10494_v55  ;;  %v10496_v25 = vadd.f32 %v1093_v29, %v719_v51 }
 0x1f7   :  { %v721_v38 = vpop.f32.mrf.mxu0  ;;  %v1115_v40 = vpop.f32.mrf.mxu1 }
 0x1f8   :  { %15039 = vst [vmem:[#allocation98_spill] sm:$0xff] %v10496_v25  ;;  %v10498_v24 = vadd.f32 %v1095_v54, %v721_v38 }
 0x1f9   :  { %v725_v50 = vpop.f32.mrf.mxu0  ;;  %v1119_v20 = vpop.f32.mrf.mxu1  ;;  %7992 = vmatmul.mubr.msk.bf16.gmra.mxu0 %vm361_vm3, %v10041_v14  ;;  %8034 = vmatmul.mubr.msk.bf16.gmra.mxu1 %vm361_vm3, %v10091_v37 }
 0x1fa   :  { %15040 = vst [vmem:[#allocation99_spill] sm:$0xff] %v10498_v24  ;;  %v10504_v27 = vadd.f32 %v1099_v59, %v725_v50  ;;  %1409 = vmatprep.mubr.bf16.mxu0 %v14958_v47  ;;  %1935 = vmatprep.mubr.bf16.mxu1 %v14958_v47 }
 0x1fb   :  { %v727_v13 = vpop.f32.mrf.mxu0  ;;  %v1121_v11 = vpop.f32.mrf.mxu1 }
 0x1fc   :  { %15041 = vst [vmem:[#allocation100_spill] sm:$0xff] %v10504_v27  ;;  %v10508_v29 = vadd.f32 %v1101_v21, %v727_v13 }
 0x1fd   :  { %v729_v54 = vpop.f32.mrf.mxu0  ;;  %v1123_v8 = vpop.f32.mrf.mxu1 }
 0x1fe   :  { %15042 = vst [vmem:[#allocation101_spill] sm:$0xff] %v10508_v29  ;;  %v10510_v51 = vadd.f32 %v1103_v3, %v729_v54 }
 0x1ff   :  { %v731_v38 = vpop.f32.mrf.mxu0  ;;  %v1125_v24 = vpop.f32.mrf.mxu1 }
 0x200   :  { %15043 = vst [vmem:[#allocation102_spill] sm:$0xff] %v10510_v51  ;;  %v10512_v25 = vadd.f32 %v1105_v57, %v731_v38 }
 0x201   :  { %v735_v55 = vpop.f32.mrf.mxu0  ;;  %v1129_v7 = vpop.f32.mrf.mxu1  ;;  %7993 = vmatmul.mubr.msk.bf16.gmra.mxu0 %vm361_vm3, %v10051_v19  ;;  %8035 = vmatmul.mubr.msk.bf16.gmra.mxu1 %vm361_vm3, %v10105_v46 }
 0x202   :  { %15044 = vst [vmem:[#allocation103_spill] sm:$0xff] %v10512_v25  ;;  %v10518_v59 = vadd.f32 %v1109_v34, %v735_v55  ;;  %1419 = vmatprep.mubr.bf16.mxu0 %v14958_v47  ;;  %1945 = vmatprep.mubr.bf16.mxu1 %v14958_v47 }
 0x203   :  { %v737_v21 = vpop.f32.mrf.mxu0  ;;  %v1131_v50 = vpop.f32.mrf.mxu1 }
 0x204   :  { %15045 = vst [vmem:[#allocation104_spill] sm:$0xff] %v10518_v59  ;;  %v10522_v3 = vadd.f32 %v1111_v48, %v737_v21 }
 0x205   :  { %v739_v57 = vpop.f32.mrf.mxu0  ;;  %v1133_v13 = vpop.f32.mrf.mxu1 }
 0x206   :  { %15046 = vst [vmem:[#allocation105_spill] sm:$0xff] %v10522_v3  ;;  %v10524_v54 = vadd.f32 %v1113_v4, %v739_v57 }
 0x207   :  { %v741_v38 = vpop.f32.mrf.mxu0  ;;  %v1135_v25 = vpop.f32.mrf.mxu1 }
 0x208   :  { %15047 = vst [vmem:[#allocation106_spill] sm:$0xff] %v10524_v54  ;;  %v10526_v51 = vadd.f32 %v1115_v40, %v741_v38 }
 0x209   :  { %v745_v29 = vpop.f32.mrf.mxu0  ;;  %v1139_v27 = vpop.f32.mrf.mxu1  ;;  %7994 = vmatmul.mubr.msk.bf16.gmra.mxu0 %vm361_vm3, %v10063_v23  ;;  %8036 = vmatmul.mubr.msk.bf16.gmra.mxu1 %vm361_vm3, %v10117_v58 }
 0x20a   :  { %15048 = vst [vmem:[#allocation107_spill] sm:$0xff] %v10526_v51  ;;  %v10532_v34 = vadd.f32 %v1119_v20, %v745_v29  ;;  %1429 = vmatprep.mubr.bf16.mxu0 %v14958_v47  ;;  %1955 = vmatprep.mubr.bf16.mxu1 %v14958_v47 }
 0x20b   :  { %v747_v48 = vpop.f32.mrf.mxu0  ;;  %v1141_v55 = vpop.f32.mrf.mxu1 }
 0x20c   :  { %15049 = vst [vmem:[#allocation108_spill] sm:$0xff] %v10532_v34  ;;  %v10536_v4 = vadd.f32 %v1121_v11, %v747_v48 }
 0x20d   :  { %v749_v40 = vpop.f32.mrf.mxu0  ;;  %v1143_v21 = vpop.f32.mrf.mxu1 }
 0x20e   :  { %15050 = vst [vmem:[#allocation109_spill] sm:$0xff] %v10536_v4  ;;  %v10538_v57 = vadd.f32 %v1123_v8, %v749_v40 }
 0x20f   :  { %v751_v38 = vpop.f32.mrf.mxu0  ;;  %v1145_v51 = vpop.f32.mrf.mxu1 }
 0x210   :  { %15051 = vst [vmem:[#allocation110_spill] sm:$0xff] %v10538_v57  ;;  %v10540_v54 = vadd.f32 %v1125_v24, %v751_v38 }
 0x211   :  { %v755_v3 = vpop.f32.mrf.mxu0  ;;  %v1149_v59 = vpop.f32.mrf.mxu1  ;;  %7995 = vmatmul.mubr.msk.bf16.gmra.mxu0 %vm361_vm3, %v10077_v28  ;;  %8037 = vmatmul.mubr.msk.bf16.gmra.mxu1 %vm361_vm3, %v10135_v17 }
 0x212   :  { %15052 = vst [vmem:[#allocation111_spill] sm:$0xff] %v10540_v54  ;;  %v10546_v20 = vadd.f32 %v1129_v7, %v755_v3  ;;  %1439 = vmatprep.mubr.bf16.mxu0 %v14958_v47  ;;  %1965 = vmatprep.mubr.bf16.mxu1 %v14958_v47 }
 0x213   :  { %v757_v11 = vpop.f32.mrf.mxu0  ;;  %v1151_v29 = vpop.f32.mrf.mxu1 }
 0x214   :  { %15053 = vst [vmem:[#allocation112_spill] sm:$0xff] %v10546_v20  ;;  %v10550_v8 = vadd.f32 %v1131_v50, %v757_v11 }
 0x215   :  { %v759_v24 = vpop.f32.mrf.mxu0  ;;  %v1153_v48 = vpop.f32.mrf.mxu1 }
 0x216   :  { %15054 = vst [vmem:[#allocation113_spill] sm:$0xff] %v10550_v8  ;;  %v10552_v40 = vadd.f32 %v1133_v13, %v759_v24 }
 0x217   :  { %v761_v38 = vpop.f32.mrf.mxu0  ;;  %v1155_v54 = vpop.f32.mrf.mxu1 }
 0x218   :  { %15055 = vst [vmem:[#allocation114_spill] sm:$0xff] %v10552_v40  ;;  %v10554_v57 = vadd.f32 %v1135_v25, %v761_v38 }
 0x219   :  { %v765_v4 = vpop.f32.mrf.mxu0  ;;  %7996 = vmatmul.mubr.msk.bf16.gmra.mxu0 %vm361_vm3, %v10091_v37  ;;  %v1727_v7 = vpop.f32.mrf.mxu1  ;;  %8038 = vmatmul.mubr.msk.bf16.gmra.mxu1 %vm361_vm3, %v10153_v62 }
 0x21a   :  { %15056 = vst [vmem:[#allocation115_spill] sm:$0xff] %v10554_v57  ;;  %v10560_v3 = vadd.f32 %v1139_v27, %v765_v4  ;;  %1449 = vmatprep.mubr.bf16.mxu0 %v14958_v47  ;;  %1975 = vmatprep.mubr.bf16.mxu1 %v14958_v47 }
 0x21b   :  { %v767_v50 = vpop.f32.mrf.mxu0  ;;  %v1729_v13 = vpop.f32.mrf.mxu1 }
 0x21c   :  { %15057 = vst [vmem:[#allocation116_spill] sm:$0xff] %v10560_v3  ;;  %v10564_v11 = vadd.f32 %v1141_v55, %v767_v50 }
 0x21d   :  { %v769_v25 = vpop.f32.mrf.mxu0  ;;  %v1731_v24 = vpop.f32.mrf.mxu1 }
 0x21e   :  { %15058 = vst [vmem:[#allocation117_spill] sm:$0xff] %v10564_v11  ;;  %v10566_v38 = vadd.f32 %v1143_v21, %v769_v25 }
 0x21f   :  { %v771_v57 = vpop.f32.mrf.mxu0  ;;  %v1733_v40 = vpop.f32.mrf.mxu1 }
 0x220   :  { %15059 = vst [vmem:[#allocation118_spill] sm:$0xff] %v10566_v38  ;;  %v10568_v8 = vadd.f32 %v1145_v51, %v771_v57 }
 0x221   :  { %v775_v20 = vpop.f32.mrf.mxu0  ;;  %7997 = vmatmul.mubr.msk.bf16.gmra.mxu0 %vm361_vm3, %v10105_v46  ;;  %v1737_v27 = vpop.f32.mrf.mxu1  ;;  %8039 = vmatmul.mubr.msk.bf16.gmra.mxu1 %vm361_vm3, %v10171_v31 }
 0x222   :  { %15060 = vst [vmem:[#allocation119_spill] sm:$0xff] %v10568_v8  ;;  %v10574_v4 = vadd.f32 %v1149_v59, %v775_v20  ;;  %1459 = vmatprep.mubr.bf16.mxu0 %v14958_v47  ;;  %1985 = vmatprep.mubr.bf16.mxu1 %v14958_v47 }
 0x223   :  { %v777_v55 = vpop.f32.mrf.mxu0  ;;  %v1739_v21 = vpop.f32.mrf.mxu1 }
 0x224   :  { %15061 = vst [vmem:[#allocation120_spill] sm:$0xff] %v10574_v4  ;;  %v10578_v50 = vadd.f32 %v1151_v29, %v777_v55  ;;  %v846_v55 = vadd.f32 %v9961_v35, %v9974_v41 }
 0x225   :  { %v779_v51 = vpop.f32.mrf.mxu0  ;;  %v1741_v57 = vpop.f32.mrf.mxu1 }
 0x226   :  { %15062 = vst [vmem:[#allocation121_spill] sm:$0xff] %v10578_v50  ;;  %v10580_v25 = vadd.f32 %v1153_v48, %v779_v51 }
 0x227   :  { %v781_v8 = vpop.f32.mrf.mxu0  ;;  %v1743_v11 = vpop.f32.mrf.mxu1 }
 0x228   :  { %15063 = vst [vmem:[#allocation122_spill] sm:$0xff] %v10580_v25  ;;  %v10582_v38 = vadd.f32 %v1155_v54, %v781_v8 }
 0x229   :  { %v1221_v3 = vpop.f32.mrf.mxu0  ;;  %7998 = vmatmul.mubr.msk.bf16.gmra.mxu0 %vm361_vm3, %v10117_v58  ;;  %8040 = vmatmul.mubr.msk.bf16.gmra.mxu1 %vm361_vm3, %v10195_v26  ;;  %v1747_v54 = vpop.f32.mrf.mxu1 }
 0x22a   :  { %15064 = vst [vmem:[#allocation123_spill] sm:$0xff] %v10582_v38  ;;  %v1540_v59 = vadd.f32 %v1221_v3, %v9959_v32  ;;  %1469 = vmatprep.mubr.bf16.mxu0 %v14958_v47  ;;  %1995 = vmatprep.mubr.bf16.mxu1 %v14958_v47  ;;  %v237_v3 = vpop.permute.xlu0 %236 }
 0x22b   :  { %v1223_v20 = vpop.f32.mrf.mxu0  ;;  %v1749_v4 = vpop.f32.mrf.mxu1  ;;  %v303_v41 = vsel %vm240_vm1, 0, %v237_v3 }
 0x22c   :  { %v1541_v29 = vadd.f32 %v1223_v20, %v9963_v36  ;;  %v10592_v48 = vadd.f32 %v1727_v7, %v1540_v59  ;;  %v856_v59 = vadd.f32 %v10060_v22, %v10119_v61  ;;  %v15070_v22 = vld [vmem:[#allocation3_spill] sm:$0xff] }
 0x22d   :  { %v1225_v8 = vpop.f32.mrf.mxu0 }
 0x22e   :  { %v1542_v51 = vadd.f32 %v1225_v8, %v9971_v39  ;;  %v10597_v38 = vadd.f32 %v1729_v13, %v1541_v29  ;;  %v15066_v29 = vld [vmem:[#allocation9_spill] sm:$0xff]  ;;  %v15067_v8 = vld [vmem:[#allocation2_spill] sm:$0xff] }
 0x22f   :  { %v1227_v25 = vpop.f32.mrf.mxu0 }
 0x230   :  { %v1543_v32 = vadd.f32 %v1227_v25, %v846_v55  ;;  %v10599_v50 = vadd.f32 %v1731_v24, %v1542_v51  ;;  %v1751_v24 = vpop.f32.mrf.mxu1  ;;  %v860_v55 = vadd.f32 %v15067_v8, %v15066_v29  ;;  %v15074_v8 = vld [vmem:[#allocation12_spill] sm:$0xff] }
 0x231   :  { %v1231_v34 = vpop.f32.mrf.mxu0  ;;  %7999 = vmatmul.mubr.msk.bf16.gmra.mxu0 %vm361_vm3, %v10135_v17  ;;  %8041 = vmatmul.mubr.msk.bf16.gmra.mxu1 %vm361_vm3, %v10220_v52 }
 0x232   :  { %v1544_v36 = vadd.f32 %v1231_v34, %v9979_v45  ;;  %1479 = vmatprep.mubr.bf16.mxu0 %v14958_v47  ;;  %2005 = vmatprep.mubr.bf16.mxu1 %v14958_v47  ;;  %v10608_v35 = vadd.f32 %v1733_v40, %v1543_v32  ;;  %v10618_v34 = vsel %vm306_vm2, %v303_v41, 0  ;;  %v1753_v32 = vpop.f32.mrf.mxu1  ;;  %v15072_v41 = vld [vmem:[#allocation11_spill] sm:$0xff] }
 0x233   :  { %v1233_v39 = vpop.f32.mrf.mxu0 }
 0x234   :  { %v1545_v7 = vadd.f32 %v1233_v39, %v9981_v49  ;;  %v10612_v13 = vadd.f32 %v1737_v27, %v1544_v36  ;;  %v239_v49 = vpop.permute.xlu1 %238 }
 0x235   :  { %v1235_v25 = vpop.f32.mrf.mxu0  ;;  %v305_v39 = vsel %vm240_vm1, 0, %v239_v49  ;;  %v15077_v49 = vld [vmem:[#allocation6_spill] sm:$0xff] }
 0x236   :  { %v1546_v45 = vadd.f32 %v1235_v25, %v9989_v53  ;;  %v10620_v20 = vadd.f32 %v1739_v21, %v1545_v7  ;;  %v15069_v53 = vld [vmem:[#allocation10_spill] sm:$0xff]  ;;  %v15073_v7 = vld [vmem:[#allocation4_spill] sm:$0xff] }
 0x237   :  { %v1237_v40 = vpop.f32.mrf.mxu0  ;;  %v862_v61 = vadd.f32 %v15070_v22, %v15069_v53  ;;  %v864_v25 = vadd.f32 %v15073_v7, %v15072_v41  ;;  %v15075_v53 = vld [vmem:[#allocation5_spill] sm:$0xff]  ;;  %v10644_v22 = vsel %vm306_vm2, %v305_v39, 0  ;;  %v15080_v7 = vld [vmem:[#allocation15_spill] sm:$0xff] }
 0x238   :  { %15065 = vst [vmem:[#allocation124_spill] sm:$0xff] %v10620_v20  ;;  %v1547_v51 = vadd.f32 %v1237_v40, %v856_v59  ;;  %v10624_v27 = vadd.f32 %v1741_v57, %v1546_v45  ;;  %v1757_v40 = vpop.f32.mrf.mxu1 }
 0x239   :  { %v1241_v3 = vpop.f32.mrf.mxu0  ;;  %8000 = vmatmul.mubr.msk.bf16.gmra.mxu0 %vm361_vm3, %v10153_v62  ;;  %8042 = vmatmul.mubr.msk.bf16.gmra.mxu1 %vm361_vm3, %v10618_v34 }
 0x23a   :  { %15068 = vst [vmem:[#allocation9_spill] sm:$0xff] %v10624_v27  ;;  %v1548_v21 = vadd.f32 %v1241_v3, %v860_v55  ;;  %1489 = vmatprep.mubr.bf16.mxu0 %v14958_v47  ;;  %2015 = vmatprep.mubr.bf16.mxu1 %v14958_v47  ;;  %v10634_v36 = vadd.f32 %v1743_v11, %v1547_v51 }
 0x23b   :  { %v1243_v57 = vpop.f32.mrf.mxu0  ;;  %v866_v55 = vadd.f32 %v15075_v53, %v15074_v8 }
 0x23c   :  { %15071 = vst [vmem:[#allocation2_spill] sm:$0xff] %v10634_v36  ;;  %v1549_v59 = vadd.f32 %v1243_v57, %v862_v61  ;;  %v10639_v45 = vadd.f32 %v1747_v54, %v1548_v21  ;;  %v15076_v36 = vld [vmem:[#allocation13_spill] sm:$0xff]  ;;  %v1759_v54 = vpop.f32.mrf.mxu1  ;;  %v15078_v21 = vld [vmem:[#allocation14_spill] sm:$0xff]  ;;  %v15079_v57 = vld [vmem:[#allocation7_spill] sm:$0xff] }
 0x23d   :  { %v1245_v29 = vpop.f32.mrf.mxu0  ;;  %v870_v27 = vadd.f32 %v15077_v49, %v15076_v36  ;;  %v872_v39 = vadd.f32 %v15079_v57, %v15078_v21 }
 0x23e   :  { %v1550_v3 = vadd.f32 %v1245_v29, %v864_v25  ;;  %v10646_v11 = vadd.f32 %v1749_v4, %v1549_v59  ;;  %v15081_v25 = vld [vmem:[#allocation8_spill] sm:$0xff]  ;;  %v1761_v53 = vpop.f32.mrf.mxu1 }
 0x23f   :  { %v1247_v51 = vpop.f32.mrf.mxu0  ;;  %v874_v59 = vadd.f32 %v15081_v25, %v15080_v7  ;;  %v15085_v25 = vld [vmem:[#allocation19_spill] sm:$0xff] }
 0x240   :  { %v1551_v20 = vadd.f32 %v1247_v51, %v866_v55  ;;  %v10650_v41 = vadd.f32 %v1751_v24, %v1550_v3  ;;  %v1763_v57 = vpop.f32.mrf.mxu1 }
 0x241   :  { %v1251_v61 = vpop.f32.mrf.mxu0  ;;  %8001 = vmatmul.mubr.msk.bf16.gmra.mxu0 %vm361_vm3, %v10171_v31  ;;  %8043 = vmatmul.mubr.msk.bf16.gmra.mxu1 %vm361_vm3, %v10644_v22 }
 0x242   :  { %v1552_v4 = vadd.f32 %v1251_v61, %v870_v27  ;;  %1499 = vmatprep.mubr.bf16.mxu0 %v14958_v47  ;;  %2025 = vmatprep.mubr.bf16.mxu1 %v14958_v47  ;;  %v10660_v36 = vadd.f32 %v1753_v32, %v1551_v20  ;;  %v15082_v27 = vld [vmem:[#allocation16_spill] sm:$0xff]  ;;  %v15083_v32 = vld [vmem:[#allocation17_spill] sm:$0xff] }
 0x243   :  { %v1253_v24 = vpop.f32.mrf.mxu0 }
 0x244   :  { %v1553_v29 = vadd.f32 %v1253_v24, %v872_v39  ;;  %v10664_v8 = vadd.f32 %v1757_v40, %v1552_v4  ;;  %v15084_v4 = vld [vmem:[#allocation18_spill] sm:$0xff] }
 0x245   :  { %v1255_v55 = vpop.f32.mrf.mxu0 }
 0x246   :  { %v1554_v3 = vadd.f32 %v1255_v55, %v874_v59  ;;  %v10666_v51 = vadd.f32 %v1759_v54, %v1553_v29 }
 0x247   :  { %v1257_v49 = vpop.f32.mrf.mxu0 }
 0x248   :  { %v1555_v61 = vadd.f32 %v1257_v49, %v15082_v27  ;;  %v10669_v21 = vadd.f32 %v1761_v53, %v1554_v3  ;;  %v15086_v53 = vld [vmem:[#allocation20_spill] sm:$0xff]  ;;  %v15087_v49 = vld [vmem:[#allocation21_spill] sm:$0xff] }
 0x249   :  { %v1261_v20 = vpop.f32.mrf.mxu0  ;;  %8002 = vmatmul.mubr.msk.bf16.gmra.mxu0 %vm361_vm3, %v10195_v26  ;;  %2026 = vmatmul.mubr.bf16.gmra.mxu1 %v14958_v47 }
 0x24a   :  { %v10675_v40 = vadd.f32 %v1261_v20, %v15083_v32  ;;  %1509 = vmatprep.mubr.bf16.mxu0 %v14958_v47  ;;  %2035 = vmatprep.mubr.bf16.mxu1 %v14958_v47  ;;  %v10679_v54 = vadd.f32 %v1763_v57, %v1555_v61  ;;  %v15089_v57 = vld [vmem:[#allocation22_spill] sm:$0xff] }
 0x24b   :  { %v1263_v39 = vpop.f32.mrf.mxu0 }
 0x24c   :  { %v10682_v24 = vadd.f32 %v1263_v39, %v15084_v4  ;;  %v15091_v39 = vld [vmem:[#allocation23_spill] sm:$0xff] }
 0x24d   :  { %v1265_v7 = vpop.f32.mrf.mxu0 }
 0x24e   :  { %v10685_v59 = vadd.f32 %v1265_v7, %v15085_v25  ;;  %v15093_v25 = vld [vmem:[#allocation24_spill] sm:$0xff] }
 0x24f   :  { %v1267_v29 = vpop.f32.mrf.mxu0 }
 0x250   :  { %v10688_v55 = vadd.f32 %v1267_v29, %v15086_v53 }
 0x251   :  { %v1271_v3 = vpop.f32.mrf.mxu0  ;;  %8003 = vmatmul.mubr.msk.bf16.gmra.mxu0 %vm361_vm3, %v10220_v52  ;;  %2036 = vmatmul.mubr.bf16.gmra.mxu1 %v14958_v47 }
 0x252   :  { %v10694_v27 = vadd.f32 %v1271_v3, %v15087_v49  ;;  %1519 = vmatprep.mubr.bf16.mxu0 %v14958_v47  ;;  %3200 = vmatprep.mubr.bf16.mxu1 %v14958_v47  ;;  %v15095_v3 = vld [vmem:[#allocation25_spill] sm:$0xff] }
 0x253   :  { %v1273_v61 = vpop.f32.mrf.mxu0 }
 0x254   :  { %15088 = vst [vmem:[#allocation10_spill] sm:$0xff] %v10694_v27  ;;  %v10699_v20 = vadd.f32 %v1273_v61, %v15089_v57  ;;  %v15097_v61 = vld [vmem:[#allocation26_spill] sm:$0xff] }
 0x255   :  { %v1275_v32 = vpop.f32.mrf.mxu0 }
 0x256   :  { %15090 = vst [vmem:[#allocation3_spill] sm:$0xff] %v10699_v20  ;;  %v10702_v4 = vadd.f32 %v1275_v32, %v15091_v39  ;;  %v15099_v32 = vld [vmem:[#allocation27_spill] sm:$0xff] }
 0x257   :  { %v1277_v7 = vpop.f32.mrf.mxu0 }
 0x258   :  { %15092 = vst [vmem:[#allocation11_spill] sm:$0xff] %v10702_v4  ;;  %v10705_v29 = vadd.f32 %v1277_v7, %v15093_v25  ;;  %v15101_v7 = vld [vmem:[#allocation28_spill] sm:$0xff] }
 0x259   :  { %v1281_v53 = vpop.f32.mrf.mxu0  ;;  %8004 = vmatmul.mubr.msk.bf16.gmra.mxu0 %vm361_vm3, %v10618_v34 }
 0x25a   :  { %15094 = vst [vmem:[#allocation4_spill] sm:$0xff] %v10705_v29  ;;  %v10710_v49 = vadd.f32 %v1281_v53, %v15095_v3  ;;  %1529 = vmatprep.mubr.bf16.mxu0 %v14958_v47  ;;  %v15103_v53 = vld [vmem:[#allocation29_spill] sm:$0xff] }
 0x25b   :  { %v1283_v27 = vpop.f32.mrf.mxu0 }
 0x25c   :  { %15096 = vst [vmem:[#allocation12_spill] sm:$0xff] %v10710_v49  ;;  %v10714_v57 = vadd.f32 %v1283_v27, %v15097_v61 }
 0x25d   :  { %v1285_v20 = vpop.f32.mrf.mxu0 }
 0x25e   :  { %15098 = vst [vmem:[#allocation5_spill] sm:$0xff] %v10714_v57  ;;  %v10717_v39 = vadd.f32 %v1285_v20, %v15099_v32 }
 0x25f   :  { %v1287_v4 = vpop.f32.mrf.mxu0 }
 0x260   :  { %15100 = vst [vmem:[#allocation13_spill] sm:$0xff] %v10717_v39  ;;  %v10720_v25 = vadd.f32 %v1287_v4, %v15101_v7  ;;  %v10737_v7 = vpop.f32.mrf.mxu1 }
 0x261   :  { %v1291_v29 = vpop.f32.mrf.mxu0  ;;  %8005 = vmatmul.mubr.msk.bf16.gmra.mxu0 %vm361_vm3, %v10644_v22 }
 0x262   :  { %15102 = vst [vmem:[#allocation6_spill] sm:$0xff] %v10720_v25  ;;  %v10725_v3 = vadd.f32 %v1291_v29, %v15103_v53  ;;  %2231 = vmatprep.mubr.bf16.mxu0 %v14958_v47  ;;  %v15108_v29 = vld [vmem:[#allocation30_spill] sm:$0xff] }
 0x263   :  { %v1293_v49 = vpop.f32.mrf.mxu0 }
 0x264   :  { %15104 = vst [vmem:[#allocation14_spill] sm:$0xff] %v10725_v3  ;;  %v10729_v27 = vadd.f32 %v1293_v49, %v10235_v16  ;;  %v15110_v49 = vld [vmem:[#allocation31_spill] sm:$0xff] }
 0x265   :  { %v1295_v61 = vpop.f32.mrf.mxu0 }
 0x266   :  { %15105 = vst [vmem:[#allocation7_spill] sm:$0xff] %v10729_v27  ;;  %v10732_v20 = vadd.f32 %v1295_v61, %v10237_v1  ;;  %v10748_v1 = vpop.f32.mrf.mxu1 }
 0x267   :  { %v1297_v32 = vpop.f32.mrf.mxu0 }
 0x268   :  { %15106 = vst [vmem:[#allocation15_spill] sm:$0xff] %v10732_v20  ;;  %v10735_v4 = vadd.f32 %v1297_v32, %v10240_v42  ;;  %v15112_v42 = vld [vmem:[#allocation32_spill] sm:$0xff]  ;;  %v15114_v20 = vld [vmem:[#allocation33_spill] sm:$0xff] }
 0x269   :  { %v1301_v25 = vpop.f32.mrf.mxu0  ;;  %8052 = vmatmul.mubr.msk.bf16.vlgmr.msra.gmra.mxu0 %vm361_vm3, %v9866_v60  ;;  %v10756_v60 = vpop.f32.mrf.mxu1 }
 0x26a   :  { %15107 = vst [vmem:[#allocation8_spill] sm:$0xff] %v10735_v4  ;;  %v10742_v53 = vadd.f32 %v1301_v25, %v15108_v29  ;;  %2241 = vmatprep.mubr.bf16.mxu0 %v14958_v47 }
 0x26b   :  { %v1303_v16 = vpop.f32.mrf.mxu0 }
 0x26c   :  { %15109 = vst [vmem:[#allocation16_spill] sm:$0xff] %v10742_v53  ;;  %v10746_v27 = vadd.f32 %v1303_v16, %v15110_v49  ;;  %v15117_v49 = vld [vmem:[#allocation34_spill] sm:$0xff] }
 0x26d   :  { %v1305_v61 = vpop.f32.mrf.mxu0 }
 0x26e   :  { %15111 = vst [vmem:[#allocation17_spill] sm:$0xff] %v10746_v27  ;;  %v10751_v32 = vadd.f32 %v1305_v61, %v15112_v42  ;;  %v10767_v61 = vpop.f32.mrf.mxu1 }
 0x26f   :  { %v1307_v4 = vpop.f32.mrf.mxu0 }
 0x270   :  { %15113 = vst [vmem:[#allocation18_spill] sm:$0xff] %v10751_v32  ;;  %v10754_v3 = vadd.f32 %v1307_v4, %v15114_v20  ;;  %v15119_v20 = vld [vmem:[#allocation35_spill] sm:$0xff]  ;;  %v15121_v32 = vld [vmem:[#allocation36_spill] sm:$0xff] }
 0x271   :  { %v1311_v25 = vpop.f32.mrf.mxu0  ;;  %8053 = vmatmul.mubr.msk.bf16.gmra.mxu0 %vm361_vm3, %v9876_v63  ;;  %v10775_v63 = vpop.f32.mrf.mxu1 }
 0x272   :  { %15115 = vst [vmem:[#allocation19_spill] sm:$0xff] %v10754_v3  ;;  %v10761_v29 = vadd.f32 %v1311_v25, %v10266_v43  ;;  %2251 = vmatprep.mubr.bf16.mxu0 %v14958_v47 }
 0x273   :  { %v1313_v16 = vpop.f32.mrf.mxu0 }
 0x274   :  { %15116 = vst [vmem:[#allocation20_spill] sm:$0xff] %v10761_v29  ;;  %v10765_v27 = vadd.f32 %v1313_v16, %v15117_v49  ;;  %v15124_v49 = vld [vmem:[#allocation37_spill] sm:$0xff] }
 0x275   :  { %v1315_v42 = vpop.f32.mrf.mxu0 }
 0x276   :  { %15118 = vst [vmem:[#allocation21_spill] sm:$0xff] %v10765_v27  ;;  %v10770_v4 = vadd.f32 %v1315_v42, %v15119_v20  ;;  %v10786_v42 = vpop.f32.mrf.mxu1 }
 0x277   :  { %v1317_v3 = vpop.f32.mrf.mxu0 }
 0x278   :  { %15120 = vst [vmem:[#allocation22_spill] sm:$0xff] %v10770_v4  ;;  %v10773_v53 = vadd.f32 %v1317_v3, %v15121_v32  ;;  %v15126_v3 = vld [vmem:[#allocation38_spill] sm:$0xff]  ;;  %v15128_v4 = vld [vmem:[#allocation39_spill] sm:$0xff] }
 0x279   :  { %v1321_v43 = vpop.f32.mrf.mxu0  ;;  %8054 = vmatmul.mubr.msk.bf16.gmra.mxu0 %vm361_vm3, %v9886_v2  ;;  %v10794_v2 = vpop.f32.mrf.mxu1 }
 0x27a   :  { %15122 = vst [vmem:[#allocation23_spill] sm:$0xff] %v10773_v53  ;;  %v10780_v25 = vadd.f32 %v1321_v43, %v10280_v33  ;;  %2261 = vmatprep.mubr.bf16.mxu0 %v14958_v47  ;;  %v15130_v43 = vld [vmem:[#allocation40_spill] sm:$0xff] }
 0x27b   :  { %v1323_v16 = vpop.f32.mrf.mxu0 }
 0x27c   :  { %15123 = vst [vmem:[#allocation24_spill] sm:$0xff] %v10780_v25  ;;  %v10784_v27 = vadd.f32 %v1323_v16, %v15124_v49  ;;  %v15132_v49 = vld [vmem:[#allocation41_spill] sm:$0xff] }
 0x27d   :  { %v1325_v20 = vpop.f32.mrf.mxu0 }
 0x27e   :  { %15125 = vst [vmem:[#allocation25_spill] sm:$0xff] %v10784_v27  ;;  %v10789_v32 = vadd.f32 %v1325_v20, %v15126_v3  ;;  %v10805_v20 = vpop.f32.mrf.mxu1 }
 0x27f   :  { %v1327_v53 = vpop.f32.mrf.mxu0 }
 0x280   :  { %15127 = vst [vmem:[#allocation26_spill] sm:$0xff] %v10789_v32  ;;  %v10792_v29 = vadd.f32 %v1327_v53, %v15128_v4  ;;  %v15134_v53 = vld [vmem:[#allocation42_spill] sm:$0xff]  ;;  %v15136_v32 = vld [vmem:[#allocation43_spill] sm:$0xff] }
 0x281   :  { %v1331_v33 = vpop.f32.mrf.mxu0  ;;  %8055 = vmatmul.mubr.msk.bf16.gmra.mxu0 %vm361_vm3, %v9896_v6  ;;  %v10813_v6 = vpop.f32.mrf.mxu1 }
 0x282   :  { %15129 = vst [vmem:[#allocation27_spill] sm:$0xff] %v10792_v29  ;;  %v10799_v25 = vadd.f32 %v1331_v33, %v15130_v43  ;;  %2271 = vmatprep.mubr.bf16.mxu0 %v14958_v47  ;;  %v15138_v43 = vld [vmem:[#allocation44_spill] sm:$0xff] }
 0x283   :  { %v1333_v16 = vpop.f32.mrf.mxu0 }
 0x284   :  { %15131 = vst [vmem:[#allocation28_spill] sm:$0xff] %v10799_v25  ;;  %v10803_v27 = vadd.f32 %v1333_v16, %v15132_v49  ;;  %v15140_v49 = vld [vmem:[#allocation45_spill] sm:$0xff] }
 0x285   :  { %v1335_v3 = vpop.f32.mrf.mxu0 }
 0x286   :  { %15133 = vst [vmem:[#allocation29_spill] sm:$0xff] %v10803_v27  ;;  %v10808_v4 = vadd.f32 %v1335_v3, %v15134_v53  ;;  %v10824_v3 = vpop.f32.mrf.mxu1 }
 0x287   :  { %v1337_v29 = vpop.f32.mrf.mxu0  ;;  %15142 = vst [vmem:[#allocation34_spill] sm:$0xff] %v10824_v3 }
 0x288   :  { %15135 = vst [vmem:[#allocation30_spill] sm:$0xff] %v10808_v4  ;;  %v10811_v39 = vadd.f32 %v1337_v29, %v15136_v32  ;;  %v15143_v29 = vld [vmem:[#allocation46_spill] sm:$0xff]  ;;  %v15145_v4 = vld [vmem:[#allocation47_spill] sm:$0xff] }
 0x289   :  { %v1341_v33 = vpop.f32.mrf.mxu0  ;;  %8056 = vmatmul.mubr.msk.bf16.gmra.mxu0 %vm361_vm3, %v9906_v9  ;;  %v10832_v9 = vpop.f32.mrf.mxu1 }
 0x28a   :  { %15137 = vst [vmem:[#allocation31_spill] sm:$0xff] %v10811_v39  ;;  %v10818_v25 = vadd.f32 %v1341_v33, %v15138_v43  ;;  %2281 = vmatprep.mubr.bf16.mxu0 %v14958_v47  ;;  %15147 = vst [vmem:[#allocation37_spill] sm:$0xff] %v10832_v9  ;;  %v8095_v43 = vld [vmem:[%s14925_s2 + $0xe8] sm:$0xff] }
 0x28b   :  { %v1343_v16 = vpop.f32.mrf.mxu0 }
 0x28c   :  { %15139 = vst [vmem:[#allocation32_spill] sm:$0xff] %v10818_v25  ;;  %v10822_v27 = vadd.f32 %v1343_v16, %v15140_v49  ;;  %v15148_v16 = vld [vmem:[#allocation48_spill] sm:$0xff]  ;;  %v15152_v25 = vld [vmem:[#allocation50_spill] sm:$0xff] }
 0x28d   :  { %v1345_v53 = vpop.f32.mrf.mxu0 }
 0x28e   :  { %15141 = vst [vmem:[#allocation33_spill] sm:$0xff] %v10822_v27  ;;  %v10827_v32 = vadd.f32 %v1345_v53, %v15143_v29  ;;  %v8111_v53 = vcombine.high %v8095_v43, %v8095_v43  ;;  %v8110_v29 = vcombine.low %v8095_v43, %v8095_v43 }
 0x28f   :  { %v1347_v39 = vpop.f32.mrf.mxu0 }
 0x290   :  { %15144 = vst [vmem:[#allocation35_spill] sm:$0xff] %v10827_v32  ;;  %v10830_v57 = vadd.f32 %v1347_v39, %v15145_v4  ;;  %v15150_v4 = vld [vmem:[#allocation49_spill] sm:$0xff]  ;;  %8112 = vmatprep.subr.msk.bf16.mxu1 %vm3161_vm4, %v8111_v53  ;;  %v10848_v32 = vpop.f32.mrf.mxu1  ;;  %v15156_v53 = vld [vmem:[#allocation52_spill] sm:$0xff] }
 0x291   :  { %v1351_v33 = vpop.f32.mrf.mxu0  ;;  %8057 = vmatmul.mubr.msk.bf16.gmra.mxu0 %vm361_vm3, %v9916_v12  ;;  %v3163_v12 = vsel %vm3161_vm4, %v8110_v29, 0 }
 0x292   :  { %15146 = vst [vmem:[#allocation36_spill] sm:$0xff] %v10830_v57  ;;  %v10840_v49 = vadd.f32 %v1351_v33, %v15148_v16  ;;  %2291 = vmatprep.mubr.bf16.mxu0 %v14958_v47  ;;  %3169 = vmatpush1.bf16.msra.mxu1 %v3163_v12  ;;  %v15154_v16 = vld [vmem:[#allocation51_spill] sm:$0xff]  ;;  %v10856_v43 = vpop.f32.mrf.mxu1 }
 0x293   :  { %v1353_v39 = vpop.f32.mrf.mxu0 }
 0x294   :  { %15149 = vst [vmem:[#allocation38_spill] sm:$0xff] %v10840_v49  ;;  %v10844_v57 = vadd.f32 %v1353_v39, %v15150_v4  ;;  %v15158_v4 = vld [vmem:[#allocation53_spill] sm:$0xff] }
 0x295   :  { %v1355_v27 = vpop.f32.mrf.mxu0 }
 0x296   :  { %15151 = vst [vmem:[#allocation39_spill] sm:$0xff] %v10844_v57  ;;  %v10851_v9 = vadd.f32 %v1355_v27, %v15152_v25  ;;  %v10867_v27 = vpop.f32.mrf.mxu1 }
 0x297   :  { %v1357_v33 = vpop.f32.mrf.mxu0 }
 0x298   :  { %15153 = vst [vmem:[#allocation40_spill] sm:$0xff] %v10851_v9  ;;  %v10854_v49 = vadd.f32 %v1357_v33, %v15154_v16  ;;  %v15160_v33 = vld [vmem:[#allocation54_spill] sm:$0xff]  ;;  %v15162_v9 = vld [vmem:[#allocation55_spill] sm:$0xff] }
 0x299   :  { %v1361_v3 = vpop.f32.mrf.mxu0  ;;  %8058 = vmatmul.mubr.msk.bf16.gmra.mxu0 %vm361_vm3, %v9926_v15  ;;  %v10875_v15 = vpop.f32.mrf.mxu1 }
 0x29a   :  { %15155 = vst [vmem:[#allocation41_spill] sm:$0xff] %v10854_v49  ;;  %v10861_v39 = vadd.f32 %v1361_v3, %v15156_v53  ;;  %2301 = vmatprep.mubr.bf16.mxu0 %v14958_v47  ;;  %15164 = vst [vmem:[#allocation46_spill] sm:$0xff] %v10875_v15  ;;  %v15165_v53 = vld [vmem:[#allocation56_spill] sm:$0xff] }
 0x29b   :  { %v1363_v29 = vpop.f32.mrf.mxu0 }
 0x29c   :  { %15157 = vst [vmem:[#allocation42_spill] sm:$0xff] %v10861_v39  ;;  %v10865_v12 = vadd.f32 %v1363_v29, %v15158_v4  ;;  %v15167_v4 = vld [vmem:[#allocation57_spill] sm:$0xff] }
 0x29d   :  { %v1365_v25 = vpop.f32.mrf.mxu0 }
 0x29e   :  { %15159 = vst [vmem:[#allocation43_spill] sm:$0xff] %v10865_v12  ;;  %v10870_v16 = vadd.f32 %v1365_v25, %v15160_v33  ;;  %v10886_v25 = vpop.f32.mrf.mxu1 }
 0x29f   :  { %v1367_v49 = vpop.f32.mrf.mxu0 }
 0x2a0   :  { %15161 = vst [vmem:[#allocation44_spill] sm:$0xff] %v10870_v16  ;;  %v10873_v57 = vadd.f32 %v1367_v49, %v15162_v9  ;;  %v15169_v9 = vld [vmem:[#allocation58_spill] sm:$0xff]  ;;  %v15171_v16 = vld [vmem:[#allocation59_spill] sm:$0xff] }
 0x2a1   :  { %v1371_v3 = vpop.f32.mrf.mxu0  ;;  %8059 = vmatmul.mubr.msk.bf16.gmra.mxu0 %vm361_vm3, %v9936_v18  ;;  %v10894_v18 = vpop.f32.mrf.mxu1 }
 0x2a2   :  { %15163 = vst [vmem:[#allocation45_spill] sm:$0xff] %v10873_v57  ;;  %v10880_v39 = vadd.f32 %v1371_v3, %v15165_v53  ;;  %2311 = vmatprep.mubr.bf16.mxu0 %v14958_v47  ;;  %15173 = vst [vmem:[#allocation51_spill] sm:$0xff] %v10894_v18  ;;  %v15174_v53 = vld [vmem:[#allocation60_spill] sm:$0xff] }
 0x2a3   :  { %v1373_v29 = vpop.f32.mrf.mxu0 }
 0x2a4   :  { %15166 = vst [vmem:[#allocation47_spill] sm:$0xff] %v10880_v39  ;;  %v10884_v12 = vadd.f32 %v1373_v29, %v15167_v4  ;;  %v15176_v4 = vld [vmem:[#allocation61_spill] sm:$0xff] }
 0x2a5   :  { %v1375_v33 = vpop.f32.mrf.mxu0 }
 0x2a6   :  { %15168 = vst [vmem:[#allocation48_spill] sm:$0xff] %v10884_v12  ;;  %v10889_v49 = vadd.f32 %v1375_v33, %v15169_v9  ;;  %v10905_v33 = vpop.f32.mrf.mxu1 }
 0x2a7   :  { %v1377_v57 = vpop.f32.mrf.mxu0 }
 0x2a8   :  { %15170 = vst [vmem:[#allocation49_spill] sm:$0xff] %v10889_v49  ;;  %v10892_v15 = vadd.f32 %v1377_v57, %v15171_v16  ;;  %v15178_v57 = vld [vmem:[#allocation62_spill] sm:$0xff]  ;;  %v15180_v49 = vld [vmem:[#allocation63_spill] sm:$0xff] }
 0x2a9   :  { %v1381_v3 = vpop.f32.mrf.mxu0  ;;  %8060 = vmatmul.mubr.msk.bf16.gmra.mxu0 %vm361_vm3, %v9957_v30  ;;  %v10913_v30 = vpop.f32.mrf.mxu1 }
 0x2aa   :  { %15172 = vst [vmem:[#allocation50_spill] sm:$0xff] %v10892_v15  ;;  %v10899_v39 = vadd.f32 %v1381_v3, %v15174_v53  ;;  %2321 = vmatprep.mubr.bf16.mxu0 %v14958_v47  ;;  %v15182_v53 = vld [vmem:[#allocation64_spill] sm:$0xff] }
 0x2ab   :  { %v1383_v29 = vpop.f32.mrf.mxu0 }
 0x2ac   :  { %15175 = vst [vmem:[#allocation52_spill] sm:$0xff] %v10899_v39  ;;  %v10903_v12 = vadd.f32 %v1383_v29, %v15176_v4  ;;  %v15184_v4 = vld [vmem:[#allocation65_spill] sm:$0xff] }
 0x2ad   :  { %v1385_v9 = vpop.f32.mrf.mxu0 }
 0x2ae   :  { %15177 = vst [vmem:[#allocation53_spill] sm:$0xff] %v10903_v12  ;;  %v10908_v16 = vadd.f32 %v1385_v9, %v15178_v57  ;;  %v10930_v9 = vpop.f32.mrf.mxu1  ;;  %v15187_v57 = vld [vmem:[#allocation66_spill] sm:$0xff] }
 0x2af   :  { %v1387_v15 = vpop.f32.mrf.mxu0  ;;  %15186 = vst [vmem:[#allocation58_spill] sm:$0xff] %v10930_v9 }
 0x2b0   :  { %15179 = vst [vmem:[#allocation54_spill] sm:$0xff] %v10908_v16  ;;  %v10911_v18 = vadd.f32 %v1387_v15, %v15180_v49  ;;  %v8977_v15 = vld [vmem:[%s14925_s2 + $0xd8] ss:$8 sps:$4 sm:$0xff]   ;;  %v8979_v49 = vld [vmem:[%s14925_s2 + $0xdc] ss:$8 sps:$4 sm:$0xff]  }
 0x2b1   :  { %v1391_v3 = vpop.f32.mrf.mxu0  ;;  %8061 = vmatmul.mubr.msk.bf16.gmra.mxu0 %vm361_vm3, %v9977_v44  ;;  %3170 = vmatprep.subr.bf16.mxu1 %v8979_v49 }
 0x2b2   :  { %15181 = vst [vmem:[#allocation55_spill] sm:$0xff] %v10911_v18  ;;  %v10918_v39 = vadd.f32 %v1391_v3, %v15182_v53  ;;  %2331 = vmatprep.mubr.bf16.mxu0 %v14958_v47  ;;  %3171 = vmatpush1.bf16.msra.mxu1 %v8977_v15  ;;  %v15192_v18 = vld [vmem:[#allocation68_spill] sm:$0xff] }
 0x2b3   :  { %v1393_v29 = vpop.f32.mrf.mxu0 }
 0x2b4   :  { %15183 = vst [vmem:[#allocation56_spill] sm:$0xff] %v10918_v39  ;;  %v10922_v12 = vadd.f32 %v1393_v29, %v15184_v4  ;;  %v15189_v39 = vld [vmem:[#allocation67_spill] sm:$0xff]  ;;  %v10938_v4 = vpop.f32.mrf.mxu1 }
 0x2b5   :  { %v1395_v44 = vpop.f32.mrf.mxu0  ;;  %15191 = vst [vmem:[#allocation61_spill] sm:$0xff] %v10938_v4 }
 0x2b6   :  { %15185 = vst [vmem:[#allocation57_spill] sm:$0xff] %v10922_v12  ;;  %v10933_v3 = vadd.f32 %v1395_v44, %v15187_v57  ;;  %v15194_v44 = vld [vmem:[#allocation69_spill] sm:$0xff]  ;;  %v10949_v49 = vpop.f32.mrf.mxu1 }
 0x2b7   :  { %v1397_v53 = vpop.f32.mrf.mxu0 }
 0x2b8   :  { %15188 = vst [vmem:[#allocation59_spill] sm:$0xff] %v10933_v3  ;;  %v10936_v29 = vadd.f32 %v1397_v53, %v15189_v39  ;;  %v15196_v39 = vld [vmem:[#allocation70_spill] sm:$0xff]  ;;  %v15198_v3 = vld [vmem:[#allocation71_spill] sm:$0xff] }
 0x2b9   :  { %v1401_v12 = vpop.f32.mrf.mxu0  ;;  %8062 = vmatmul.mubr.msk.bf16.gmra.mxu0 %vm361_vm3, %v9993_v56  ;;  %v10957_v56 = vpop.f32.mrf.mxu1 }
 0x2ba   :  { %15190 = vst [vmem:[#allocation60_spill] sm:$0xff] %v10936_v29  ;;  %v10943_v16 = vadd.f32 %v1401_v12, %v15192_v18  ;;  %2341 = vmatprep.mubr.bf16.mxu0 %v14958_v47  ;;  %15200 = vst [vmem:[#allocation66_spill] sm:$0xff] %v10957_v56  ;;  %v15201_v18 = vld [vmem:[#allocation72_spill] sm:$0xff] }
 0x2bb   :  { %v1403_v9 = vpop.f32.mrf.mxu0 }
 0x2bc   :  { %15193 = vst [vmem:[#allocation62_spill] sm:$0xff] %v10943_v16  ;;  %v10947_v57 = vadd.f32 %v1403_v9, %v15194_v44  ;;  %v15203_v44 = vld [vmem:[#allocation73_spill] sm:$0xff] }
 0x2bd   :  { %v1405_v15 = vpop.f32.mrf.mxu0 }
 0x2be   :  { %15195 = vst [vmem:[#allocation63_spill] sm:$0xff] %v10947_v57  ;;  %v10952_v53 = vadd.f32 %v1405_v15, %v15196_v39  ;;  %v10968_v15 = vpop.f32.mrf.mxu1 }
 0x2bf   :  { %v1407_v29 = vpop.f32.mrf.mxu0 }
 0x2c0   :  { %15197 = vst [vmem:[#allocation64_spill] sm:$0xff] %v10952_v53  ;;  %v10955_v4 = vadd.f32 %v1407_v29, %v15198_v3  ;;  %v15205_v3 = vld [vmem:[#allocation74_spill] sm:$0xff]  ;;  %v15207_v53 = vld [vmem:[#allocation75_spill] sm:$0xff] }
 0x2c1   :  { %v1411_v12 = vpop.f32.mrf.mxu0  ;;  %8063 = vmatmul.mubr.msk.bf16.gmra.mxu0 %vm361_vm3, %v10011_v0  ;;  %v10976_v0 = vpop.f32.mrf.mxu1 }
 0x2c2   :  { %15199 = vst [vmem:[#allocation65_spill] sm:$0xff] %v10955_v4  ;;  %v10962_v16 = vadd.f32 %v1411_v12, %v15201_v18  ;;  %2351 = vmatprep.mubr.bf16.mxu0 %v14958_v47  ;;  %15209 = vst [vmem:[#allocation71_spill] sm:$0xff] %v10976_v0  ;;  %v15210_v18 = vld [vmem:[#allocation76_spill] sm:$0xff] }
 0x2c3   :  { %v1413_v9 = vpop.f32.mrf.mxu0 }
 0x2c4   :  { %15202 = vst [vmem:[#allocation67_spill] sm:$0xff] %v10962_v16  ;;  %v10966_v57 = vadd.f32 %v1413_v9, %v15203_v44  ;;  %v15212_v44 = vld [vmem:[#allocation77_spill] sm:$0xff] }
 0x2c5   :  { %v1415_v39 = vpop.f32.mrf.mxu0 }
 0x2c6   :  { %15204 = vst [vmem:[#allocation68_spill] sm:$0xff] %v10966_v57  ;;  %v10971_v29 = vadd.f32 %v1415_v39, %v15205_v3  ;;  %v10987_v39 = vpop.f32.mrf.mxu1 }
 0x2c7   :  { %v1417_v4 = vpop.f32.mrf.mxu0 }
 0x2c8   :  { %15206 = vst [vmem:[#allocation69_spill] sm:$0xff] %v10971_v29  ;;  %v10974_v56 = vadd.f32 %v1417_v4, %v15207_v53  ;;  %v15214_v4 = vld [vmem:[#allocation78_spill] sm:$0xff]  ;;  %v15216_v29 = vld [vmem:[#allocation79_spill] sm:$0xff] }
 0x2c9   :  { %v1421_v12 = vpop.f32.mrf.mxu0  ;;  %8064 = vmatmul.mubr.msk.bf16.gmra.mxu0 %vm361_vm3, %v10021_v5  ;;  %v10995_v5 = vpop.f32.mrf.mxu1 }
 0x2ca   :  { %15208 = vst [vmem:[#allocation70_spill] sm:$0xff] %v10974_v56  ;;  %v10981_v16 = vadd.f32 %v1421_v12, %v15210_v18  ;;  %2361 = vmatprep.mubr.bf16.mxu0 %v14958_v47  ;;  %v15218_v18 = vld [vmem:[#allocation80_spill] sm:$0xff] }
 0x2cb   :  { %v1423_v9 = vpop.f32.mrf.mxu0 }
 0x2cc   :  { %15211 = vst [vmem:[#allocation72_spill] sm:$0xff] %v10981_v16  ;;  %v10985_v57 = vadd.f32 %v1423_v9, %v15212_v44  ;;  %v15220_v44 = vld [vmem:[#allocation81_spill] sm:$0xff] }
 0x2cd   :  { %v1425_v3 = vpop.f32.mrf.mxu0 }
 0x2ce   :  { %15213 = vst [vmem:[#allocation73_spill] sm:$0xff] %v10985_v57  ;;  %v10990_v53 = vadd.f32 %v1425_v3, %v15214_v4  ;;  %v11012_v3 = vpop.f32.mrf.mxu1  ;;  %v15223_v4 = vld [vmem:[#allocation82_spill] sm:$0xff] }
 0x2cf   :  { %v1427_v56 = vpop.f32.mrf.mxu0  ;;  %15222 = vst [vmem:[#allocation78_spill] sm:$0xff] %v11012_v3 }
 0x2d0   :  { %15215 = vst [vmem:[#allocation74_spill] sm:$0xff] %v10990_v53  ;;  %v10993_v0 = vadd.f32 %v1427_v56, %v15216_v29  ;;  %v8980_v56 = vld [vmem:[%s14925_s2 + $0xc8] ss:$8 sps:$4 sm:$0xff]   ;;  %v8982_v29 = vld [vmem:[%s14925_s2 + $0xcc] ss:$8 sps:$4 sm:$0xff]  }
 0x2d1   :  { %v1431_v12 = vpop.f32.mrf.mxu0  ;;  %8065 = vmatmul.mubr.msk.bf16.gmra.mxu0 %vm361_vm3, %v10031_v10  ;;  %3172 = vmatprep.subr.bf16.mxu1 %v8982_v29 }
 0x2d2   :  { %15217 = vst [vmem:[#allocation75_spill] sm:$0xff] %v10993_v0  ;;  %v11000_v16 = vadd.f32 %v1431_v12, %v15218_v18  ;;  %2371 = vmatprep.mubr.bf16.mxu0 %v14958_v47  ;;  %3173 = vmatpush1.bf16.msra.mxu1 %v8980_v56  ;;  %v15228_v0 = vld [vmem:[#allocation84_spill] sm:$0xff] }
 0x2d3   :  { %v1433_v9 = vpop.f32.mrf.mxu0 }
 0x2d4   :  { %15219 = vst [vmem:[#allocation76_spill] sm:$0xff] %v11000_v16  ;;  %v11004_v57 = vadd.f32 %v1433_v9, %v15220_v44  ;;  %v15225_v16 = vld [vmem:[#allocation83_spill] sm:$0xff]  ;;  %v11020_v44 = vpop.f32.mrf.mxu1 }
 0x2d5   :  { %v1435_v10 = vpop.f32.mrf.mxu0  ;;  %15227 = vst [vmem:[#allocation81_spill] sm:$0xff] %v11020_v44 }
 0x2d6   :  { %15221 = vst [vmem:[#allocation77_spill] sm:$0xff] %v11004_v57  ;;  %v11015_v12 = vadd.f32 %v1435_v10, %v15223_v4  ;;  %v15230_v10 = vld [vmem:[#allocation85_spill] sm:$0xff]  ;;  %v11031_v29 = vpop.f32.mrf.mxu1 }
 0x2d7   :  { %v1437_v18 = vpop.f32.mrf.mxu0 }
 0x2d8   :  { %15224 = vst [vmem:[#allocation79_spill] sm:$0xff] %v11015_v12  ;;  %v11018_v9 = vadd.f32 %v1437_v18, %v15225_v16  ;;  %v15232_v16 = vld [vmem:[#allocation86_spill] sm:$0xff]  ;;  %v15234_v12 = vld [vmem:[#allocation87_spill] sm:$0xff] }
 0x2d9   :  { %v1441_v57 = vpop.f32.mrf.mxu0  ;;  %8066 = vmatmul.mubr.msk.bf16.gmra.mxu0 %vm361_vm3, %v10041_v14  ;;  %v11039_v14 = vpop.f32.mrf.mxu1 }
 0x2da   :  { %15226 = vst [vmem:[#allocation80_spill] sm:$0xff] %v11018_v9  ;;  %v11025_v53 = vadd.f32 %v1441_v57, %v15228_v0  ;;  %2381 = vmatprep.mubr.bf16.mxu0 %v14958_v47  ;;  %15236 = vst [vmem:[#allocation86_spill] sm:$0xff] %v11039_v14  ;;  %v15237_v0 = vld [vmem:[#allocation88_spill] sm:$0xff] }
 0x2db   :  { %v1443_v3 = vpop.f32.mrf.mxu0 }
 0x2dc   :  { %15229 = vst [vmem:[#allocation82_spill] sm:$0xff] %v11025_v53  ;;  %v11029_v4 = vadd.f32 %v1443_v3, %v15230_v10  ;;  %v15239_v10 = vld [vmem:[#allocation89_spill] sm:$0xff] }
 0x2dd   :  { %v1445_v56 = vpop.f32.mrf.mxu0 }
 0x2de   :  { %15231 = vst [vmem:[#allocation83_spill] sm:$0xff] %v11029_v4  ;;  %v11034_v18 = vadd.f32 %v1445_v56, %v15232_v16  ;;  %v11050_v56 = vpop.f32.mrf.mxu1 }
 0x2df   :  { %v1447_v9 = vpop.f32.mrf.mxu0 }
 0x2e0   :  { %15233 = vst [vmem:[#allocation84_spill] sm:$0xff] %v11034_v18  ;;  %v11037_v44 = vadd.f32 %v1447_v9, %v15234_v12  ;;  %v15241_v12 = vld [vmem:[#allocation90_spill] sm:$0xff]  ;;  %v15243_v18 = vld [vmem:[#allocation91_spill] sm:$0xff] }
 0x2e1   :  { %v1451_v57 = vpop.f32.mrf.mxu0  ;;  %8067 = vmatmul.mubr.msk.bf16.gmra.mxu0 %vm361_vm3, %v10051_v19  ;;  %v11058_v19 = vpop.f32.mrf.mxu1 }
 0x2e2   :  { %15235 = vst [vmem:[#allocation85_spill] sm:$0xff] %v11037_v44  ;;  %v11044_v53 = vadd.f32 %v1451_v57, %v15237_v0  ;;  %2391 = vmatprep.mubr.bf16.mxu0 %v14958_v47  ;;  %15245 = vst [vmem:[#allocation91_spill] sm:$0xff] %v11058_v19  ;;  %v15246_v0 = vld [vmem:[#allocation92_spill] sm:$0xff] }
 0x2e3   :  { %v1453_v3 = vpop.f32.mrf.mxu0 }
 0x2e4   :  { %15238 = vst [vmem:[#allocation87_spill] sm:$0xff] %v11044_v53  ;;  %v11048_v4 = vadd.f32 %v1453_v3, %v15239_v10  ;;  %v15248_v10 = vld [vmem:[#allocation93_spill] sm:$0xff] }
 0x2e5   :  { %v1455_v16 = vpop.f32.mrf.mxu0 }
 0x2e6   :  { %15240 = vst [vmem:[#allocation88_spill] sm:$0xff] %v11048_v4  ;;  %v11053_v9 = vadd.f32 %v1455_v16, %v15241_v12  ;;  %v11069_v16 = vpop.f32.mrf.mxu1 }
 0x2e7   :  { %v1457_v44 = vpop.f32.mrf.mxu0 }
 0x2e8   :  { %15242 = vst [vmem:[#allocation89_spill] sm:$0xff] %v11053_v9  ;;  %v11056_v14 = vadd.f32 %v1457_v44, %v15243_v18  ;;  %v15250_v44 = vld [vmem:[#allocation94_spill] sm:$0xff]  ;;  %v15252_v9 = vld [vmem:[#allocation95_spill] sm:$0xff] }
 0x2e9   :  { %v1461_v57 = vpop.f32.mrf.mxu0  ;;  %8068 = vmatmul.mubr.msk.bf16.gmra.mxu0 %vm361_vm3, %v10063_v23  ;;  %v11077_v23 = vpop.f32.mrf.mxu1 }
 0x2ea   :  { %15244 = vst [vmem:[#allocation90_spill] sm:$0xff] %v11056_v14  ;;  %v11063_v53 = vadd.f32 %v1461_v57, %v15246_v0  ;;  %2401 = vmatprep.mubr.bf16.mxu0 %v14958_v47  ;;  %v15254_v0 = vld [vmem:[#allocation96_spill] sm:$0xff] }
 0x2eb   :  { %v1463_v3 = vpop.f32.mrf.mxu0 }
 0x2ec   :  { %15247 = vst [vmem:[#allocation92_spill] sm:$0xff] %v11063_v53  ;;  %v11067_v4 = vadd.f32 %v1463_v3, %v15248_v10  ;;  %v15256_v10 = vld [vmem:[#allocation97_spill] sm:$0xff] }
 0x2ed   :  { %v1465_v12 = vpop.f32.mrf.mxu0 }
 0x2ee   :  { %15249 = vst [vmem:[#allocation93_spill] sm:$0xff] %v11067_v4  ;;  %v11072_v18 = vadd.f32 %v1465_v12, %v15250_v44  ;;  %v11094_v12 = vpop.f32.mrf.mxu1  ;;  %v15259_v44 = vld [vmem:[#allocation98_spill] sm:$0xff] }
 0x2ef   :  { %v1467_v14 = vpop.f32.mrf.mxu0  ;;  %15258 = vst [vmem:[#allocation125_spill] sm:$0xff] %v11094_v12 }
 0x2f0   :  { %15251 = vst [vmem:[#allocation94_spill] sm:$0xff] %v11072_v18  ;;  %v11075_v19 = vadd.f32 %v1467_v14, %v15252_v9  ;;  %v8983_v14 = vld [vmem:[%s14925_s2 + $0xb8] ss:$8 sps:$4 sm:$0xff]   ;;  %v8985_v9 = vld [vmem:[%s14925_s2 + $0xbc] ss:$8 sps:$4 sm:$0xff]  }
 0x2f1   :  { %v1471_v57 = vpop.f32.mrf.mxu0  ;;  %8069 = vmatmul.mubr.msk.bf16.gmra.mxu0 %vm361_vm3, %v10077_v28  ;;  %3174 = vmatprep.subr.bf16.mxu1 %v8985_v9 }
 0x2f2   :  { %15253 = vst [vmem:[#allocation95_spill] sm:$0xff] %v11075_v19  ;;  %v11082_v53 = vadd.f32 %v1471_v57, %v15254_v0  ;;  %2411 = vmatprep.mubr.bf16.mxu0 %v14958_v47  ;;  %3175 = vmatpush1.bf16.msra.mxu1 %v8983_v14  ;;  %v15264_v19 = vld [vmem:[#allocation100_spill] sm:$0xff] }
 0x2f3   :  { %v1473_v3 = vpop.f32.mrf.mxu0 }
 0x2f4   :  { %15255 = vst [vmem:[#allocation96_spill] sm:$0xff] %v11082_v53  ;;  %v11086_v4 = vadd.f32 %v1473_v3, %v15256_v10  ;;  %v15261_v53 = vld [vmem:[#allocation99_spill] sm:$0xff]  ;;  %v11102_v10 = vpop.f32.mrf.mxu1 }
 0x2f5   :  { %v1475_v28 = vpop.f32.mrf.mxu0  ;;  %15263 = vst [vmem:[#allocation126_spill] sm:$0xff] %v11102_v10 }
 0x2f6   :  { %15257 = vst [vmem:[#allocation97_spill] sm:$0xff] %v11086_v4  ;;  %v11097_v57 = vadd.f32 %v1475_v28, %v15259_v44  ;;  %v15266_v28 = vld [vmem:[#allocation101_spill] sm:$0xff]  ;;  %v11113_v9 = vpop.f32.mrf.mxu1 }
 0x2f7   :  { %v1477_v0 = vpop.f32.mrf.mxu0 }
 0x2f8   :  { %15260 = vst [vmem:[#allocation98_spill] sm:$0xff] %v11097_v57  ;;  %v11100_v3 = vadd.f32 %v1477_v0, %v15261_v53  ;;  %v15268_v53 = vld [vmem:[#allocation102_spill] sm:$0xff]  ;;  %v15270_v57 = vld [vmem:[#allocation103_spill] sm:$0xff] }
 0x2f9   :  { %v1481_v4 = vpop.f32.mrf.mxu0  ;;  %8070 = vmatmul.mubr.msk.bf16.gmra.mxu0 %vm361_vm3, %v10091_v37  ;;  %v11121_v37 = vpop.f32.mrf.mxu1 }
 0x2fa   :  { %15262 = vst [vmem:[#allocation99_spill] sm:$0xff] %v11100_v3  ;;  %v11107_v18 = vadd.f32 %v1481_v4, %v15264_v19  ;;  %2421 = vmatprep.mubr.bf16.mxu0 %v14958_v47  ;;  %15272 = vst [vmem:[#allocation127_spill] sm:$0xff] %v11121_v37  ;;  %v15273_v19 = vld [vmem:[#allocation104_spill] sm:$0xff] }
 0x2fb   :  { %v1483_v12 = vpop.f32.mrf.mxu0 }
 0x2fc   :  { %15265 = vst [vmem:[#allocation100_spill] sm:$0xff] %v11107_v18  ;;  %v11111_v44 = vadd.f32 %v1483_v12, %v15266_v28  ;;  %v15275_v28 = vld [vmem:[#allocation105_spill] sm:$0xff] }
 0x2fd   :  { %v1485_v14 = vpop.f32.mrf.mxu0 }
 0x2fe   :  { %15267 = vst [vmem:[#allocation101_spill] sm:$0xff] %v11111_v44  ;;  %v11116_v0 = vadd.f32 %v1485_v14, %v15268_v53  ;;  %v11132_v14 = vpop.f32.mrf.mxu1 }
 0x2ff   :  { %v1487_v3 = vpop.f32.mrf.mxu0 }
 0x300   :  { %15269 = vst [vmem:[#allocation102_spill] sm:$0xff] %v11116_v0  ;;  %v11119_v10 = vadd.f32 %v1487_v3, %v15270_v57  ;;  %v15277_v57 = vld [vmem:[#allocation106_spill] sm:$0xff]  ;;  %v15279_v0 = vld [vmem:[#allocation107_spill] sm:$0xff] }
 0x301   :  { %v1491_v4 = vpop.f32.mrf.mxu0  ;;  %8071 = vmatmul.mubr.msk.bf16.gmra.mxu0 %vm361_vm3, %v10105_v46  ;;  %v11140_v46 = vpop.f32.mrf.mxu1 }
 0x302   :  { %15271 = vst [vmem:[#allocation103_spill] sm:$0xff] %v11119_v10  ;;  %v11126_v18 = vadd.f32 %v1491_v4, %v15273_v19  ;;  %2431 = vmatprep.mubr.bf16.mxu0 %v14958_v47  ;;  %15281 = vst [vmem:[#allocation128_spill] sm:$0xff] %v11140_v46  ;;  %v15282_v19 = vld [vmem:[#allocation108_spill] sm:$0xff] }
 0x303   :  { %v1493_v12 = vpop.f32.mrf.mxu0 }
 0x304   :  { %15274 = vst [vmem:[#allocation104_spill] sm:$0xff] %v11126_v18  ;;  %v11130_v44 = vadd.f32 %v1493_v12, %v15275_v28  ;;  %v15284_v28 = vld [vmem:[#allocation109_spill] sm:$0xff] }
 0x305   :  { %v1495_v53 = vpop.f32.mrf.mxu0 }
 0x306   :  { %15276 = vst [vmem:[#allocation105_spill] sm:$0xff] %v11130_v44  ;;  %v11135_v3 = vadd.f32 %v1495_v53, %v15277_v57  ;;  %v11151_v53 = vpop.f32.mrf.mxu1 }
 0x307   :  { %v1497_v10 = vpop.f32.mrf.mxu0  ;;  %15286 = vst [vmem:[#allocation129_spill] sm:$0xff] %v11151_v53 }
 0x308   :  { %15278 = vst [vmem:[#allocation106_spill] sm:$0xff] %v11135_v3  ;;  %v11138_v37 = vadd.f32 %v1497_v10, %v15279_v0  ;;  %v15287_v10 = vld [vmem:[#allocation110_spill] sm:$0xff]  ;;  %v15289_v3 = vld [vmem:[#allocation111_spill] sm:$0xff] }
 0x309   :  { %v1501_v4 = vpop.f32.mrf.mxu0  ;;  %8072 = vmatmul.mubr.msk.bf16.gmra.mxu0 %vm361_vm3, %v10117_v58  ;;  %v11159_v58 = vpop.f32.mrf.mxu1 }
 0x30a   :  { %15280 = vst [vmem:[#allocation107_spill] sm:$0xff] %v11138_v37  ;;  %v11145_v18 = vadd.f32 %v1501_v4, %v15282_v19  ;;  %2441 = vmatprep.mubr.bf16.mxu0 %v14958_v47  ;;  %15291 = vst [vmem:[#allocation130_spill] sm:$0xff] %v11159_v58  ;;  %v15292_v19 = vld [vmem:[#allocation112_spill] sm:$0xff] }
 0x30b   :  { %v1503_v12 = vpop.f32.mrf.mxu0 }
 0x30c   :  { %15283 = vst [vmem:[#allocation108_spill] sm:$0xff] %v11145_v18  ;;  %v11149_v44 = vadd.f32 %v1503_v12, %v15284_v28  ;;  %v15294_v28 = vld [vmem:[#allocation113_spill] sm:$0xff] }
 0x30d   :  { %v1505_v57 = vpop.f32.mrf.mxu0 }
 0x30e   :  { %15285 = vst [vmem:[#allocation109_spill] sm:$0xff] %v11149_v44  ;;  %v11154_v0 = vadd.f32 %v1505_v57, %v15287_v10  ;;  %v11179_v57 = vpop.f32.mrf.mxu1 }
 0x30f   :  { %v1507_v37 = vpop.f32.mrf.mxu0  ;;  %15296 = vst [vmem:[#allocation131_spill] sm:$0xff] %v11179_v57  ;;  %v15301_v57 = vld [vmem:[#allocation116_spill] sm:$0xff] }
 0x310   :  { %15288 = vst [vmem:[#allocation110_spill] sm:$0xff] %v11154_v0  ;;  %v11157_v46 = vadd.f32 %v1507_v37, %v15289_v3  ;;  %v8986_v37 = vld [vmem:[%s14925_s2 + $0xa8] ss:$8 sps:$4 sm:$0xff]   ;;  %v8988_v3 = vld [vmem:[%s14925_s2 + $0xac] ss:$8 sps:$4 sm:$0xff]   ;;  %v11188_v0 = vpop.f32.mrf.mxu1 }
 0x311   :  { %v1511_v4 = vpop.f32.mrf.mxu0  ;;  %8073 = vmatmul.mubr.msk.bf16.gmra.mxu0 %vm361_vm3, %v10135_v17  ;;  %v8170_v17 = vld [vmem:[%s14925_s2 + $0x160] sm:$0xff]  ;;  %3176 = vmatprep.subr.bf16.mxu1 %v8988_v3 }
 0x312   :  { %15290 = vst [vmem:[#allocation111_spill] sm:$0xff] %v11157_v46  ;;  %v11164_v18 = vadd.f32 %v1511_v4, %v15292_v19  ;;  %2451 = vmatprep.mubr.bf16.mxu0 %v14958_v47  ;;  %v8186_v4 = vcombine.high %v8170_v17, %v8170_v17  ;;  %v15297_v19 = vld [vmem:[#allocation114_spill] sm:$0xff]  ;;  %3177 = vmatpush1.bf16.msra.mxu1 %v8986_v37 }
 0x313   :  { %v1513_v12 = vpop.f32.mrf.mxu0  ;;  %v8185_v46 = vcombine.low %v8170_v17, %v8170_v17 }
 0x314   :  { %15293 = vst [vmem:[#allocation112_spill] sm:$0xff] %v11164_v18  ;;  %v11168_v44 = vadd.f32 %v1513_v12, %v15294_v28  ;;  %8187 = vmatprep.subr.msk.bf16.mxu0 %vm3161_vm4, %v8186_v4  ;;  %v15299_v28 = vld [vmem:[#allocation115_spill] sm:$0xff] }
 0x315   :  { %v1515_v10 = vpop.f32.mrf.mxu0  ;;  %v3731_v3 = vsel %vm3161_vm4, %v8185_v46, 0  ;;  %v15309_v46 = vld [vmem:[#allocation120_spill] sm:$0xff] }
 0x316   :  { %15295 = vst [vmem:[#allocation113_spill] sm:$0xff] %v11168_v44  ;;  %v11182_v18 = vadd.f32 %v1515_v10, %v15297_v19  ;;  %3737 = vmatpush1.bf16.msra.mxu0 %v3731_v3  ;;  %v15303_v10 = vld [vmem:[#allocation117_spill] sm:$0xff]  ;;  %v11200_v19 = vpop.f32.mrf.mxu1 }
 0x317   :  { %v1517_v12 = vpop.f32.mrf.mxu0 }
 0x318   :  { %15298 = vst [vmem:[#allocation114_spill] sm:$0xff] %v11182_v18  ;;  %v11186_v44 = vadd.f32 %v1517_v12, %v15299_v28  ;;  %v15305_v12 = vld [vmem:[#allocation118_spill] sm:$0xff] }
 0x319   :  { %v1521_v58 = vpop.f32.mrf.mxu0  ;;  %8074 = vmatmul.mubr.msk.bf16.gmra.mxu0 %vm361_vm3, %v10153_v62  ;;  %v15307_v62 = vld [vmem:[#allocation119_spill] sm:$0xff] }
 0x31a   :  { %15300 = vst [vmem:[#allocation115_spill] sm:$0xff] %v11186_v44  ;;  %v11193_v53 = vadd.f32 %v1521_v58, %v15301_v57  ;;  %2461 = vmatprep.mubr.bf16.mxu0 %v14958_v47  ;;  %v11208_v58 = vpop.f32.mrf.mxu1 }
 0x31b   :  { %v1523_v37 = vpop.f32.mrf.mxu0 }
 0x31c   :  { %15302 = vst [vmem:[#allocation116_spill] sm:$0xff] %v11193_v53  ;;  %v11198_v4 = vadd.f32 %v1523_v37, %v15303_v10  ;;  %v8993_v10 = vld [vmem:[%s14925_s2 + $0x9c] ss:$8 sps:$4 sm:$0xff]  }
 0x31d   :  { %v1525_v17 = vpop.f32.mrf.mxu0  ;;  %3178 = vmatprep.subr.bf16.mxu1 %v8993_v10  ;;  %v8997_v10 = vld [vmem:[%s14925_s2 + $0x88] ss:$8 sps:$4 sm:$0xff]  }
 0x31e   :  { %15304 = vst [vmem:[#allocation117_spill] sm:$0xff] %v11198_v4  ;;  %v11203_v28 = vadd.f32 %v1525_v17, %v15305_v12  ;;  %v15311_v17 = vld [vmem:[#allocation121_spill] sm:$0xff] }
 0x31f   :  { %v1527_v44 = vpop.f32.mrf.mxu0 }
 0x320   :  { %15306 = vst [vmem:[#allocation118_spill] sm:$0xff] %v11203_v28  ;;  %v11206_v18 = vadd.f32 %v1527_v44, %v15307_v62  ;;  %v8996_v44 = vld [vmem:[%s14925_s2 + $0x154] ss:$8 sps:$4 sm:$0xff]   ;;  %v8994_v62 = vld [vmem:[%s14925_s2 + $0x150] ss:$8 sps:$4 sm:$0xff]   ;;  %v15315_v28 = vld [vmem:[#allocation123_spill] sm:$0xff] }
 0x321   :  { %v1531_v57 = vpop.f32.mrf.mxu0  ;;  %8075 = vmatmul.mubr.msk.bf16.gmra.mxu0 %vm361_vm3, %v10171_v31  ;;  %v8991_v31 = vld [vmem:[%s14925_s2 + $0x98] ss:$8 sps:$4 sm:$0xff]   ;;  %3738 = vmatprep.subr.bf16.mxu0 %v8996_v44 }
 0x322   :  { %15308 = vst [vmem:[#allocation119_spill] sm:$0xff] %v11206_v18  ;;  %v11213_v3 = vadd.f32 %v1531_v57, %v15309_v46  ;;  %2471 = vmatprep.mubr.bf16.mxu0 %v14958_v47  ;;  %v11231_v57 = vpop.f32.mrf.mxu1  ;;  %3179 = vmatpush1.bf16.msra.mxu1 %v8991_v31 }
 0x323   :  { %v1533_v37 = vpop.f32.mrf.mxu0  ;;  %3739 = vmatpush1.bf16.msra.mxu0 %v8994_v62  ;;  %v9005_v62 = vld [vmem:[%s14925_s2 + $0x7c] ss:$8 sps:$4 sm:$0xff]  }
 0x324   :  { %15310 = vst [vmem:[#allocation120_spill] sm:$0xff] %v11213_v3  ;;  %v11223_v12 = vadd.f32 %v1533_v37, %v15311_v17  ;;  %v15313_v3 = vld [vmem:[#allocation122_spill] sm:$0xff]  ;;  %v8999_v17 = vld [vmem:[%s14925_s2 + $0x8c] ss:$8 sps:$4 sm:$0xff]   ;;  %v11251_v44 = vpop.f32.mrf.mxu1 }
 0x325   :  { %v1535_v46 = vpop.f32.mrf.mxu0  ;;  %3180 = vmatprep.subr.bf16.mxu1 %v8999_v17  ;;  %v9006_v17 = vld [vmem:[%s14925_s2 + $0x130] ss:$8 sps:$4 sm:$0xff]  }
 0x326   :  { %15312 = vst [vmem:[#allocation121_spill] sm:$0xff] %v11223_v12  ;;  %v11234_v18 = vadd.f32 %v1535_v46, %v15313_v3  ;;  %v9002_v12 = vld [vmem:[%s14925_s2 + $0x144] ss:$8 sps:$4 sm:$0xff]   ;;  %v9000_v3 = vld [vmem:[%s14925_s2 + $0x140] ss:$8 sps:$4 sm:$0xff]   ;;  %3181 = vmatpush1.bf16.msra.mxu1 %v8997_v10  ;;  %v11272_v10 = vpop.f32.mrf.mxu1 }
 0x327   :  { %v1537_v37 = vpop.f32.mrf.mxu0  ;;  %3740 = vmatprep.subr.bf16.mxu0 %v9002_v12  ;;  %v9008_v46 = vld [vmem:[%s14925_s2 + $0x134] ss:$8 sps:$4 sm:$0xff]   ;;  %v9003_v12 = vld [vmem:[%s14925_s2 + $0x78] ss:$8 sps:$4 sm:$0xff]   ;;  %3182 = vmatprep.subr.bf16.mxu1 %v9005_v62 }
 0x328   :  { %15314 = vst [vmem:[#allocation122_spill] sm:$0xff] %v11234_v18  ;;  %v11243_v4 = vadd.f32 %v1537_v37, %v15315_v28  ;;  %3741 = vmatpush1.bf16.msra.mxu0 %v9000_v3  ;;  %v11283_v53 = vpop.f32.mrf.mxu1 }
 0x329   :  { %v2233_v31 = vpop.f32.mrf.mxu0  ;;  %8076 = vmatmul.mubr.msk.bf16.gmra.mxu0 %vm361_vm3, %v10195_v26  ;;  %3742 = vmatprep.subr.bf16.mxu0 %v9008_v46 }
 0x32a   :  { %15316 = vst [vmem:[#allocation123_spill] sm:$0xff] %v11243_v4  ;;  %2481 = vmatprep.mubr.bf16.mxu0 %v14958_v47  ;;  %v11263_v37 = vadd.f32 %v2233_v31, %v10592_v48  ;;  %3183 = vmatpush1.bf16.msra.mxu1 %v9003_v12  ;;  %v11298_v12 = vpop.f32.mrf.mxu1 }
 0x32b   :  { %v2235_v28 = vpop.f32.mrf.mxu0 }
 0x32c   :  { %v2553_v26 = vadd.f32 %v2235_v28, %v10597_v38  ;;  %3743 = vmatpush1.bf16.msra.mxu0 %v9006_v17  ;;  %v9011_v38 = vld [vmem:[%s14925_s2 + $0x124] ss:$8 sps:$4 sm:$0xff]   ;;  %v9009_v28 = vld [vmem:[%s14925_s2 + $0x120] ss:$8 sps:$4 sm:$0xff]  }
 0x32d   :  { %v2237_v3 = vpop.f32.mrf.mxu0  ;;  %3744 = vmatprep.subr.bf16.mxu0 %v9011_v38  ;;  %3201 = vmatmul.mubr.bf16.vlgmr.msra.gmra.mxu1 %v14958_v47 }
 0x32e   :  { %v2680_v4 = vmax.f32 %v11263_v37, %v2553_v26  ;;  %v2554_v48 = vadd.f32 %v2237_v3, %v10599_v50  ;;  %v9014_v50 = vld [vmem:[%s14925_s2 + $0x114] ss:$8 sps:$4 sm:$0xff]   ;;  %3210 = vmatprep.mubr.bf16.mxu1 %v14958_v47 }
 0x32f   :  { %v2239_v18 = vpop.f32.mrf.mxu0 }
 0x330   :  { %v2555_v31 = vadd.f32 %v2239_v18, %v10608_v35  ;;  %3745 = vmatpush1.bf16.msra.mxu0 %v9009_v28  ;;  %v15317_v18 = vld [vmem:[#allocation124_spill] sm:$0xff] }
 0x331   :  { %v2243_v62 = vpop.f32.mrf.mxu0  ;;  %8077 = vmatmul.mubr.msk.bf16.gmra.mxu0 %vm361_vm3, %v10220_v52  ;;  %v9012_v52 = vld [vmem:[%s14925_s2 + $0x110] ss:$8 sps:$4 sm:$0xff]   ;;  %3746 = vmatprep.subr.bf16.mxu0 %v9014_v50 }
 0x332   :  { %v2681_v46 = vmax.f32 %v2554_v48, %v2555_v31  ;;  %2491 = vmatprep.mubr.bf16.mxu0 %v14958_v47  ;;  %v2556_v35 = vadd.f32 %v2243_v62, %v10612_v13  ;;  %v9017_v48 = vld [vmem:[%s14925_s2 + $0x104] ss:$8 sps:$4 sm:$0xff]   ;;  %v15318_v31 = vld [vmem:[#allocation9_spill] sm:$0xff] }
 0x333   :  { %v2245_v37 = vpop.f32.mrf.mxu0  ;;  %v15319_v13 = vld [vmem:[#allocation2_spill] sm:$0xff] }
 0x334   :  { %v2557_v26 = vadd.f32 %v2245_v37, %v15317_v18  ;;  %3747 = vmatpush1.bf16.msra.mxu0 %v9012_v52  ;;  %v9015_v37 = vld [vmem:[%s14925_s2 + $0x100] ss:$8 sps:$4 sm:$0xff]   ;;  %v11312_v18 = vpop.f32.mrf.mxu1  ;;  %v9020_v52 = vld [vmem:[%s14925_s2 + $0xf4] ss:$8 sps:$4 sm:$0xff]  }
 0x335   :  { %v2247_v17 = vpop.f32.mrf.mxu0  ;;  %15320 = vst [vmem:[#allocation124_spill] sm:$0xff] %v11312_v18  ;;  %3748 = vmatprep.subr.bf16.mxu0 %v9017_v48  ;;  %3211 = vmatmul.mubr.bf16.gmra.mxu1 %v14958_v47 }
 0x336   :  { %v2682_v3 = vmax.f32 %v2556_v35, %v2557_v26  ;;  %v11304_v28 = vadd.f32 %v2247_v17, %v15318_v31  ;;  %3220 = vmatprep.mubr.bf16.mxu1 %v14958_v47  ;;  %v11329_v48 = vpop.f32.mrf.mxu1  ;;  %v11334_v31 = vld [vmem:[%s14926_s5] ss:$0 sm:$0xff] }
 0x337   :  { %v2249_v38 = vpop.f32.mrf.mxu0  ;;  %15321 = vst [vmem:[#allocation9_spill] sm:$0xff] %v11329_v48 }
 0x338   :  { %v11307_v62 = vadd.f32 %v2249_v38, %v15319_v13  ;;  %3749 = vmatpush1.bf16.msra.mxu0 %v9015_v37  ;;  %v9018_v38 = vld [vmem:[%s14925_s2 + $0xf0] ss:$8 sps:$4 sm:$0xff]  }
 0x339   :  { %v2253_v50 = vpop.f32.mrf.mxu0  ;;  %8078 = vmatmul.mubr.msk.bf16.gmra.mxu0 %vm361_vm3, %v10618_v34  ;;  %3750 = vmatprep.subr.bf16.mxu0 %v9020_v52 }
 0x33a   :  { %v2683_v35 = vmax.f32 %v11304_v28, %v11307_v62  ;;  %2501 = vmatprep.mubr.bf16.mxu0 %v14958_v47  ;;  %v2560_v17 = vadd.f32 %v2253_v50, %v10639_v45  ;;  %v2751_v45 = vadd.f32 %v11334_v31, %v2680_v4 }
 0x33b   :  { %v2255_v26 = vpop.f32.mrf.mxu0 }
 0x33c   :  { %v2561_v34 = vadd.f32 %v2255_v26, %v10646_v11  ;;  %3751 = vmatpush1.bf16.msra.mxu0 %v9018_v38  ;;  %v11340_v26 = vpop.f32.mrf.mxu1 }
 0x33d   :  { %v2257_v28 = vpop.f32.mrf.mxu0  ;;  %15322 = vst [vmem:[#allocation2_spill] sm:$0xff] %v11340_v26 }
 0x33e   :  { %v2684_v13 = vmax.f32 %v2560_v17, %v2561_v34  ;;  %v2562_v37 = vadd.f32 %v2257_v28, %v10650_v41  ;;  %v2752_v17 = vadd.f32 %v11334_v31, %v2681_v46  ;;  %v11349_v28 = vpop.f32.mrf.mxu1 }
 0x33f   :  { %v2259_v62 = vpop.f32.mrf.mxu0 }
 0x340   :  { %v2755_v11 = vadd.f32 %v11334_v31, %v2684_v13  ;;  %v2563_v50 = vadd.f32 %v2259_v62, %v10660_v36 }
 0x341   :  { %v2263_v48 = vpop.f32.mrf.mxu0  ;;  %8079 = vmatmul.mubr.msk.bf16.gmra.mxu0 %vm361_vm3, %v10644_v22  ;;  %v2753_v22 = vadd.f32 %v11334_v31, %v2682_v3  ;;  %v2063_v3 = vadd.f32 %v10748_v1, %v10682_v24 }
 0x342   :  { %v2685_v18 = vmax.f32 %v2562_v37, %v2563_v50  ;;  %2511 = vmatprep.mubr.bf16.mxu0 %v14958_v47  ;;  %v2815_v52 = vmax.f32 %v2751_v45, %v2755_v11  ;;  %v2564_v38 = vadd.f32 %v2263_v48, %v10664_v8  ;;  %v11358_v48 = vpop.f32.mrf.mxu1  ;;  %v2062_v11 = vadd.f32 %v10737_v7, %v10675_v40 }
 0x343   :  { %v2265_v34 = vpop.f32.mrf.mxu0 }
 0x344   :  { %v2756_v4 = vadd.f32 %v11334_v31, %v2685_v18  ;;  %v2565_v41 = vadd.f32 %v2265_v34, %v10666_v51  ;;  %v2847_v36 = vmax.f32 %v2815_v52, 0.0  ;;  %v11372_v24 = vpop.f32.mrf.mxu1 }
 0x345   :  { %v2267_v13 = vpop.f32.mrf.mxu0 }
 0x346   :  { %v2686_v62 = vmax.f32 %v2564_v38, %v2565_v41  ;;  %v2816_v26 = vmax.f32 %v2752_v17, %v2756_v4  ;;  %2879 = vst [vmem:[%s14927_s13] sm:$0xff] %v2847_v36  ;;  %v2566_v18 = vadd.f32 %v2267_v13, %v10669_v21  ;;  %v2064_v38 = vadd.f32 %v10756_v60, %v10685_v59  ;;  %v15324_v60 = vld [vmem:[#allocation3_spill] sm:$0xff] }
 0x347   :  { %v2269_v46 = vpop.f32.mrf.mxu0  ;;  %v2065_v41 = vadd.f32 %v10767_v61, %v10688_v55  ;;  %v2067_v55 = vadd.f32 %v10786_v42, %v15324_v60  ;;  %v15326_v42 = vld [vmem:[#allocation4_spill] sm:$0xff]  ;;  %v15331_v60 = vld [vmem:[#allocation37_spill] sm:$0xff] }
 0x348   :  { %v2757_v45 = vadd.f32 %v11334_v31, %v2686_v62  ;;  %v2567_v8 = vadd.f32 %v2269_v46, %v10679_v54  ;;  %v2848_v51 = vmax.f32 %v2816_v26, 0.0  ;;  %v2754_v54 = vadd.f32 %v11334_v31, %v2683_v35  ;;  %v11381_v46 = vpop.f32.mrf.mxu1 }
 0x349   :  { %v2273_v37 = vpop.f32.mrf.mxu0  ;;  %2512 = vmatmul.mubr.bf16.gmra.mxu0 %v14958_v47 }
 0x34a   :  { %v2687_v50 = vmax.f32 %v2566_v18, %v2567_v8  ;;  %v2911_v52 = vpack.c.bf16 %v2848_v51, %v2847_v36  ;;  %2880 = vst [vmem:[%s14927_s13 + $0x8] sm:$0xff] %v2848_v51  ;;  %2521 = vmatprep.mubr.bf16.mxu0 %v14958_v47  ;;  %v2817_v21 = vmax.f32 %v2753_v22, %v2757_v45  ;;  %v15323_v8 = vld [vmem:[#allocation10_spill] sm:$0xff] }
 0x34b   :  { %v2275_v26 = vpop.f32.mrf.mxu0  ;;  %v2568_v7 = vadd.f32 %v2273_v37, %v2062_v11  ;;  %v2066_v59 = vadd.f32 %v10775_v63, %v15323_v8  ;;  %v15325_v63 = vld [vmem:[#allocation11_spill] sm:$0xff] }
 0x34c   :  { %v2758_v40 = vadd.f32 %v11334_v31, %v2687_v50  ;;  %v2569_v17 = vadd.f32 %v2275_v26, %v2063_v3  ;;  %2943 = vrot.lane.b32.xlu0 %v2911_v52, %s9484_s17  ;;  %v2849_v34 = vmax.f32 %v2817_v21, 0.0  ;;  %v11393_v50 = vpop.f32.mrf.mxu1  ;;  %v2068_v21 = vadd.f32 %v10794_v2, %v15325_v63 }
 0x34d   :  { %v2277_v1 = vpop.f32.mrf.mxu0 }
 0x34e   :  { %v2688_v4 = vmax.f32 %v2568_v7, %v2569_v17  ;;  %v2818_v35 = vmax.f32 %v2754_v54, %v2758_v40  ;;  %2881 = vst [vmem:[%s14927_s13 + $0x10] sm:$0xff] %v2849_v34  ;;  %v2570_v13 = vadd.f32 %v2277_v1, %v2064_v38  ;;  %v2069_v54 = vadd.f32 %v10805_v20, %v15326_v42  ;;  %v11399_v17 = vpop.f32.mrf.mxu1  ;;  %v15327_v38 = vld [vmem:[#allocation12_spill] sm:$0xff] }
 0x34f   :  { %v2279_v36 = vpop.f32.mrf.mxu0 }
 0x350   :  { %v2571_v62 = vadd.f32 %v2279_v36, %v2065_v41  ;;  %v2850_v22 = vmax.f32 %v2818_v35, 0.0  ;;  %v2070_v41 = vadd.f32 %v10813_v6, %v15327_v38  ;;  %v15328_v35 = vld [vmem:[#allocation5_spill] sm:$0xff]  ;;  %v15329_v36 = vld [vmem:[#allocation34_spill] sm:$0xff]  ;;  %v2759_v6 = vadd.f32 %v11334_v31, %v2688_v4 }
 0x351   :  { %v2283_v45 = vpop.f32.mrf.mxu0  ;;  %2522 = vmatmul.mubr.bf16.gmra.mxu0 %v14958_v47 }
 0x352   :  { %v2689_v18 = vmax.f32 %v2570_v13, %v2571_v62  ;;  %v2912_v61 = vpack.c.bf16 %v2850_v22, %v2849_v34  ;;  %2882 = vst [vmem:[%s14927_s13 + $0x18] sm:$0xff] %v2850_v22  ;;  %2531 = vmatprep.mubr.bf16.mxu0 %v14958_v47  ;;  %v2572_v11 = vadd.f32 %v2283_v45, %v2066_v59  ;;  %v11407_v22 = vpop.f32.mrf.mxu1  ;;  %v15330_v59 = vld [vmem:[#allocation13_spill] sm:$0xff] }
 0x353   :  { %v2285_v51 = vpop.f32.mrf.mxu0  ;;  %v2071_v13 = vadd.f32 %v15329_v36, %v15328_v35 }
 0x354   :  { %v2573_v37 = vadd.f32 %v2285_v51, %v2067_v55  ;;  %2945 = vrot.lane.b32.xlu1 %v2912_v61, %s9484_s17  ;;  %v2072_v55 = vadd.f32 %v15331_v60, %v15330_v59  ;;  %v15332_v61 = vld [vmem:[#allocation6_spill] sm:$0xff]  ;;  %v2760_v4 = vadd.f32 %v11334_v31, %v2689_v18  ;;  %v15337_v59 = vld [vmem:[#allocation8_spill] sm:$0xff] }
 0x355   :  { %v2287_v3 = vpop.f32.mrf.mxu0  ;;  %v2073_v51 = vadd.f32 %v10848_v32, %v15332_v61 }
 0x356   :  { %v2690_v52 = vmax.f32 %v2572_v11, %v2573_v37  ;;  %v2574_v40 = vadd.f32 %v2287_v3, %v2068_v21  ;;  %v11415_v21 = vpop.f32.mrf.mxu1 }
 0x357   :  { %v2289_v26 = vpop.f32.mrf.mxu0 }
 0x358   :  { %v2575_v7 = vadd.f32 %v2289_v26, %v2069_v54  ;;  %v15333_v26 = vld [vmem:[#allocation14_spill] sm:$0xff]  ;;  %v2761_v18 = vadd.f32 %v11334_v31, %v2690_v52 }
 0x359   :  { %v2293_v34 = vpop.f32.mrf.mxu0  ;;  %2532 = vmatmul.mubr.bf16.gmra.mxu0 %v14958_v47 }
 0x35a   :  { %v2691_v1 = vmax.f32 %v2574_v40, %v2575_v7  ;;  %2541 = vmatprep.mubr.bf16.mxu0 %v14958_v47  ;;  %v2576_v62 = vadd.f32 %v2293_v34, %v2070_v41  ;;  %v2074_v40 = vadd.f32 %v10856_v43, %v15333_v26  ;;  %v15334_v7 = vld [vmem:[#allocation7_spill] sm:$0xff]  ;;  %v15336_v43 = vld [vmem:[#allocation46_spill] sm:$0xff]  ;;  %v15340_v26 = vld [vmem:[#allocation17_spill] sm:$0xff] }
 0x35b   :  { %v2295_v2 = vpop.f32.mrf.mxu0  ;;  %v2075_v34 = vadd.f32 %v10867_v27, %v15334_v7  ;;  %v2077_v27 = vadd.f32 %v10886_v25, %v15337_v59 }
 0x35c   :  { %v2577_v20 = vadd.f32 %v2295_v2, %v2071_v13  ;;  %v11425_v2 = vpop.f32.mrf.mxu1 }
 0x35d   :  { %v2297_v45 = vpop.f32.mrf.mxu0 }
 0x35e   :  { %v2692_v8 = vmax.f32 %v2576_v62, %v2577_v20  ;;  %v2578_v3 = vadd.f32 %v2297_v45, %v2072_v55  ;;  %v15335_v45 = vld [vmem:[#allocation15_spill] sm:$0xff] }
 0x35f   :  { %v2299_v11 = vpop.f32.mrf.mxu0 }
 0x360   :  { %v2763_v37 = vadd.f32 %v11334_v31, %v2692_v8  ;;  %v2579_v63 = vadd.f32 %v2299_v11, %v2073_v51  ;;  %v2076_v8 = vadd.f32 %v15336_v43, %v15335_v45  ;;  %v15342_v45 = vld [vmem:[#allocation19_spill] sm:$0xff]  ;;  %v15343_v43 = vld [vmem:[#allocation58_spill] sm:$0xff] }
 0x361   :  { %v2303_v42 = vpop.f32.mrf.mxu0  ;;  %2542 = vmatmul.mubr.bf16.gmra.mxu0 %v14958_v47 }
 0x362   :  { %v2693_v54 = vmax.f32 %v2578_v3, %v2579_v63  ;;  %v2819_v32 = vmax.f32 %v2759_v6, %v2763_v37  ;;  %3768 = vmatprep.mubr.bf16.mxu0 %v14958_v47  ;;  %v2580_v35 = vadd.f32 %v2303_v42, %v2074_v40  ;;  %v11436_v37 = vpop.f32.mrf.mxu1  ;;  %v15338_v3 = vld [vmem:[#allocation16_spill] sm:$0xff]  ;;  %v15339_v63 = vld [vmem:[#allocation51_spill] sm:$0xff]  ;;  %v2079_v40 = vadd.f32 %v10905_v33, %v15340_v26 }
 0x363   :  { %v2305_v38 = vpop.f32.mrf.mxu0  ;;  %v2078_v42 = vadd.f32 %v15339_v63, %v15338_v3 }
 0x364   :  { %v2764_v41 = vadd.f32 %v11334_v31, %v2693_v54  ;;  %v2581_v36 = vadd.f32 %v2305_v38, %v2075_v34  ;;  %v2851_v13 = vmax.f32 %v2819_v32, 0.0  ;;  %v2762_v34 = vadd.f32 %v11334_v31, %v2691_v1 }
 0x365   :  { %v2307_v62 = vpop.f32.mrf.mxu0 }
 0x366   :  { %v2694_v20 = vmax.f32 %v2580_v35, %v2581_v36  ;;  %v2820_v60 = vmax.f32 %v2760_v4, %v2764_v41  ;;  %2883 = vst [vmem:[%s14927_s13 + $0x20] sm:$0xff] %v2851_v13  ;;  %v2582_v51 = vadd.f32 %v2307_v62, %v2076_v8  ;;  %v11448_v36 = vpop.f32.mrf.mxu1  ;;  %v2081_v8 = vadd.f32 %v15343_v43, %v15342_v45  ;;  %v15350_v43 = vld [vmem:[#allocation24_spill] sm:$0xff] }
 0x367   :  { %v2309_v55 = vpop.f32.mrf.mxu0 }
 0x368   :  { %v2765_v61 = vadd.f32 %v11334_v31, %v2694_v20  ;;  %v2583_v11 = vadd.f32 %v2309_v55, %v2077_v27  ;;  %v2852_v6 = vmax.f32 %v2820_v60, 0.0  ;;  %v11457_v55 = vpop.f32.mrf.mxu1 }
 0x369   :  { %v2313_v54 = vpop.f32.mrf.mxu0 }
 0x36a   :  { %v2695_v25 = vmax.f32 %v2582_v51, %v2583_v11  ;;  %v2913_v7 = vpack.c.bf16 %v2852_v6, %v2851_v13  ;;  %2884 = vst [vmem:[%s14927_s13 + $0x28] sm:$0xff] %v2852_v6  ;;  %v2821_v52 = vmax.f32 %v2761_v18, %v2765_v61  ;;  %v2584_v38 = vadd.f32 %v2313_v54, %v2078_v42  ;;  %v15341_v13 = vld [vmem:[#allocation18_spill] sm:$0xff]  ;;  %v15344_v11 = vld [vmem:[#allocation20_spill] sm:$0xff]  ;;  %v15345_v6 = vld [vmem:[#allocation61_spill] sm:$0xff] }
 0x36b   :  { %v2315_v32 = vpop.f32.mrf.mxu0  ;;  %v2080_v20 = vadd.f32 %v10913_v30, %v15341_v13  ;;  %v2082_v3 = vadd.f32 %v15345_v6, %v15344_v11  ;;  %v15346_v30 = vld [vmem:[#allocation21_spill] sm:$0xff] }
 0x36c   :  { %v2766_v4 = vadd.f32 %v11334_v31, %v2695_v25  ;;  %v2585_v41 = vadd.f32 %v2315_v32, %v2079_v40  ;;  %2947 = vrot.lane.b32.xlu0 %v2913_v7, %s9484_s17  ;;  %v2853_v35 = vmax.f32 %v2821_v52, 0.0  ;;  %v2083_v63 = vadd.f32 %v10949_v49, %v15346_v30  ;;  %v11467_v40 = vpop.f32.mrf.mxu1  ;;  %v15348_v32 = vld [vmem:[#allocation66_spill] sm:$0xff] }
 0x36d   :  { %v2317_v62 = vpop.f32.mrf.mxu0 }
 0x36e   :  { %v2696_v33 = vmax.f32 %v2584_v38, %v2585_v41  ;;  %v2822_v59 = vmax.f32 %v2762_v34, %v2766_v4  ;;  %2885 = vst [vmem:[%s14927_s13 + $0x30] sm:$0xff] %v2853_v35  ;;  %v2586_v27 = vadd.f32 %v2317_v62, %v2080_v20  ;;  %v15347_v34 = vld [vmem:[#allocation22_spill] sm:$0xff]  ;;  %v15349_v38 = vld [vmem:[#allocation23_spill] sm:$0xff]  ;;  %v11473_v13 = vpop.f32.mrf.mxu1 }
 0x36f   :  { %v2319_v1 = vpop.f32.mrf.mxu0  ;;  %v2084_v4 = vadd.f32 %v15348_v32, %v15347_v34  ;;  %v2085_v49 = vadd.f32 %v10968_v15, %v15349_v38 }
 0x370   :  { %v2587_v60 = vadd.f32 %v2319_v1, %v2081_v8  ;;  %v2854_v18 = vmax.f32 %v2822_v59, 0.0  ;;  %v15351_v8 = vld [vmem:[#allocation71_spill] sm:$0xff]  ;;  %v15352_v1 = vld [vmem:[#allocation25_spill] sm:$0xff]  ;;  %v11479_v11 = vpop.f32.mrf.mxu1 }
 0x371   :  { %v2323_v61 = vpop.f32.mrf.mxu0  ;;  %v2086_v59 = vadd.f32 %v15351_v8, %v15350_v43 }
 0x372   :  { %v2697_v51 = vmax.f32 %v2586_v27, %v2587_v60  ;;  %v2914_v42 = vpack.c.bf16 %v2854_v18, %v2853_v35  ;;  %2886 = vst [vmem:[%s14927_s13 + $0x38] sm:$0xff] %v2854_v18  ;;  %v2588_v25 = vadd.f32 %v2323_v61, %v2082_v3  ;;  %v2087_v27 = vadd.f32 %v10987_v39, %v15352_v1  ;;  %v15353_v3 = vld [vmem:[#allocation26_spill] sm:$0xff]  ;;  %v11487_v32 = vpop.f32.mrf.mxu1 }
 0x373   :  { %v2325_v54 = vpop.f32.mrf.mxu0  ;;  %v2088_v30 = vadd.f32 %v10995_v5, %v15353_v3 }
 0x374   :  { %v2589_v26 = vadd.f32 %v2325_v54, %v2083_v63  ;;  %2949 = vrot.lane.b32.xlu1 %v2914_v42, %s9484_s17  ;;  %v15354_v63 = vld [vmem:[#allocation27_spill] sm:$0xff]  ;;  %v15355_v42 = vld [vmem:[#allocation78_spill] sm:$0xff]  ;;  %v2768_v43 = vadd.f32 %v11334_v31, %v2697_v51 }
 0x375   :  { %v2327_v7 = vpop.f32.mrf.mxu0  ;;  %v2089_v54 = vadd.f32 %v15355_v42, %v15354_v63 }
 0x376   :  { %v2698_v52 = vmax.f32 %v2588_v25, %v2589_v26  ;;  %v2590_v35 = vadd.f32 %v2327_v7, %v2084_v4  ;;  %v2767_v26 = vadd.f32 %v11334_v31, %v2696_v33 }
 0x377   :  { %v2329_v41 = vpop.f32.mrf.mxu0 }
 0x378   :  { %v2591_v62 = vadd.f32 %v2329_v41, %v2085_v49  ;;  %v15356_v49 = vld [vmem:[#allocation28_spill] sm:$0xff]  ;;  %v15357_v41 = vld [vmem:[#allocation81_spill] sm:$0xff]  ;;  %v2769_v51 = vadd.f32 %v11334_v31, %v2698_v52 }
 0x379   :  { %v2333_v20 = vpop.f32.mrf.mxu0 }
 0x37a   :  { %v2699_v45 = vmax.f32 %v2590_v35, %v2591_v62  ;;  %v2592_v18 = vadd.f32 %v2333_v20, %v2086_v59  ;;  %v2090_v35 = vadd.f32 %v15357_v41, %v15356_v49  ;;  %v15358_v62 = vld [vmem:[#allocation29_spill] sm:$0xff] }
 0x37b   :  { %v2335_v60 = vpop.f32.mrf.mxu0  ;;  %v2091_v5 = vadd.f32 %v11031_v29, %v15358_v62  ;;  %v15364_v41 = vld [vmem:[#allocation33_spill] sm:$0xff] }
 0x37c   :  { %v2593_v61 = vadd.f32 %v2335_v60, %v2087_v27  ;;  %v11495_v60 = vpop.f32.mrf.mxu1 }
 0x37d   :  { %v2337_v6 = vpop.f32.mrf.mxu0 }
 0x37e   :  { %v2700_v15 = vmax.f32 %v2592_v18, %v2593_v61  ;;  %v2594_v34 = vadd.f32 %v2337_v6, %v2088_v30  ;;  %v15359_v6 = vld [vmem:[#allocation30_spill] sm:$0xff]  ;;  %v15361_v30 = vld [vmem:[#allocation31_spill] sm:$0xff] }
 0x37f   :  { %v2339_v25 = vpop.f32.mrf.mxu0  ;;  %v2093_v63 = vadd.f32 %v11050_v56, %v15361_v30 }
 0x380   :  { %v2771_v7 = vadd.f32 %v11334_v31, %v2700_v15  ;;  %v2595_v39 = vadd.f32 %v2339_v25, %v2089_v54  ;;  %v15360_v15 = vld [vmem:[#allocation86_spill] sm:$0xff] }
 0x381   :  { %v2343_v4 = vpop.f32.mrf.mxu0  ;;  %v2092_v3 = vadd.f32 %v15360_v15, %v15359_v6  ;;  %v15366_v6 = vld [vmem:[#allocation36_spill] sm:$0xff]  ;;  %v15367_v15 = vld [vmem:[#allocation125_spill] sm:$0xff] }
 0x382   :  { %v2701_v38 = vmax.f32 %v2594_v34, %v2595_v39  ;;  %v2823_v20 = vmax.f32 %v2767_v26, %v2771_v7  ;;  %v2596_v59 = vadd.f32 %v2343_v4, %v2090_v35  ;;  %v11506_v34 = vpop.f32.mrf.mxu1  ;;  %v15362_v39 = vld [vmem:[#allocation32_spill] sm:$0xff]  ;;  %v15363_v4 = vld [vmem:[#allocation91_spill] sm:$0xff]  ;;  %v2095_v35 = vadd.f32 %v11069_v16, %v15364_v41 }
 0x383   :  { %v2345_v8 = vpop.f32.mrf.mxu0 }
 0x384   :  { %v2772_v33 = vadd.f32 %v11334_v31, %v2701_v38  ;;  %v2597_v1 = vadd.f32 %v2345_v8, %v2091_v5  ;;  %v2855_v27 = vmax.f32 %v2823_v20, 0.0  ;;  %v2094_v38 = vadd.f32 %v15363_v4, %v15362_v39 }
 0x385   :  { %v2347_v18 = vpop.f32.mrf.mxu0  ;;  %v2770_v5 = vadd.f32 %v11334_v31, %v2699_v45 }
 0x386   :  { %v2702_v61 = vmax.f32 %v2596_v59, %v2597_v1  ;;  %v2824_v29 = vmax.f32 %v2768_v43, %v2772_v33  ;;  %2887 = vst [vmem:[%s14927_s13 + $0x40] sm:$0xff] %v2855_v27  ;;  %v2598_v25 = vadd.f32 %v2347_v18, %v2092_v3  ;;  %v11518_v1 = vpop.f32.mrf.mxu1  ;;  %v2097_v3 = vadd.f32 %v15367_v15, %v15366_v6 }
 0x387   :  { %v2349_v42 = vpop.f32.mrf.mxu0 }
 0x388   :  { %v2773_v54 = vadd.f32 %v11334_v31, %v2702_v61  ;;  %v2599_v26 = vadd.f32 %v2349_v42, %v2093_v63  ;;  %v2856_v7 = vmax.f32 %v2824_v29, 0.0  ;;  %v11527_v42 = vpop.f32.mrf.mxu1 }
 0x389   :  { %v2353_v49 = vpop.f32.mrf.mxu0 }
 0x38a   :  { %v2703_v56 = vmax.f32 %v2598_v25, %v2599_v26  ;;  %v2915_v62 = vpack.c.bf16 %v2856_v7, %v2855_v27  ;;  %2888 = vst [vmem:[%s14927_s13 + $0x48] sm:$0xff] %v2856_v7  ;;  %v2825_v52 = vmax.f32 %v2769_v51, %v2773_v54  ;;  %v2600_v8 = vadd.f32 %v2353_v49, %v2094_v38  ;;  %v15365_v27 = vld [vmem:[#allocation35_spill] sm:$0xff]  ;;  %v15368_v26 = vld [vmem:[#allocation38_spill] sm:$0xff] }
 0x38b   :  { %v2355_v20 = vpop.f32.mrf.mxu0  ;;  %v2096_v61 = vadd.f32 %v11077_v23, %v15365_v27  ;;  %v15369_v7 = vld [vmem:[#allocation126_spill] sm:$0xff]  ;;  %v15370_v23 = vld [vmem:[#allocation39_spill] sm:$0xff] }
 0x38c   :  { %v2774_v43 = vadd.f32 %v11334_v31, %v2703_v56  ;;  %v2601_v33 = vadd.f32 %v2355_v20, %v2095_v35  ;;  %2951 = vrot.lane.b32.xlu0 %v2915_v62, %s9484_s17  ;;  %v2857_v59 = vmax.f32 %v2825_v52, 0.0  ;;  %v2098_v39 = vadd.f32 %v15369_v7, %v15368_v26  ;;  %v3038_v35 = vld [vmem:[%s14925_s2 + $0x70] sm:$0xff]  ;;  %v11540_v62 = vpop.f32.mrf.mxu1  ;;  %v15377_v26 = vld [vmem:[#allocation129_spill] sm:$0xff] }
 0x38d   :  { %v2357_v18 = vpop.f32.mrf.mxu0  ;;  %v2099_v4 = vadd.f32 %v11113_v9, %v15370_v23  ;;  %v8141_v20 = vcombine.low %v3038_v35, %v3038_v35 }
 0x38e   :  { %v2704_v16 = vmax.f32 %v2600_v8, %v2601_v33  ;;  %v2826_v30 = vmax.f32 %v2770_v5, %v2774_v43  ;;  %2889 = vst [vmem:[%s14927_s13 + $0x50] sm:$0xff] %v2857_v59  ;;  %v2602_v63 = vadd.f32 %v2357_v18, %v2096_v61  ;;  %v8142_v5 = vcombine.high %v3038_v35, %v3038_v35  ;;  %v15371_v43 = vld [vmem:[#allocation40_spill] sm:$0xff]  ;;  %v15372_v8 = vld [vmem:[#allocation127_spill] sm:$0xff] }
 0x38f   :  { %v2359_v45 = vpop.f32.mrf.mxu0  ;;  %v2100_v33 = vadd.f32 %v15372_v8, %v15371_v43  ;;  %v3437_v61 = vsel %vm3161_vm4, %v8141_v20, 0 }
 0x390   :  { %v2603_v29 = vadd.f32 %v2359_v45, %v2097_v3  ;;  %v2858_v51 = vmax.f32 %v2826_v30, 0.0  ;;  %8143 = vmatprep.subr.msk.bf16.mxu1 %vm3161_vm4, %v8142_v5  ;;  %v11548_v3 = vpop.f32.mrf.mxu1  ;;  %v15381_v5 = vld [vmem:[#allocation131_spill] sm:$0xff]  ;;  %v2775_v8 = vadd.f32 %v11334_v31, %v2704_v16 }
 0x391   :  { %v2363_v54 = vpop.f32.mrf.mxu0  ;;  %3443 = vmatpush1.bf16.msra.mxu1 %v3437_v61 }
 0x392   :  { %v2705_v25 = vmax.f32 %v2602_v63, %v2603_v29  ;;  %v2916_v38 = vpack.c.bf16 %v2858_v51, %v2857_v59  ;;  %2890 = vst [vmem:[%s14927_s13 + $0x58] sm:$0xff] %v2858_v51  ;;  %v2604_v56 = vadd.f32 %v2363_v54, %v2098_v39  ;;  %v15373_v59 = vld [vmem:[#allocation41_spill] sm:$0xff]  ;;  %v15374_v63 = vld [vmem:[#allocation42_spill] sm:$0xff]  ;;  %v15375_v29 = vld [vmem:[#allocation128_spill] sm:$0xff] }
 0x393   :  { %v2365_v49 = vpop.f32.mrf.mxu0  ;;  %v2101_v18 = vadd.f32 %v11132_v14, %v15373_v59  ;;  %v2102_v51 = vadd.f32 %v15375_v29, %v15374_v63  ;;  %v15376_v54 = vld [vmem:[#allocation43_spill] sm:$0xff]  ;;  %v15383_v63 = vld [vmem:[#allocation48_spill] sm:$0xff] }
 0x394   :  { %v2605_v41 = vadd.f32 %v2365_v49, %v2099_v4  ;;  %2953 = vrot.lane.b32.xlu1 %v2916_v38, %s9484_s17  ;;  %v2103_v7 = vadd.f32 %v15377_v26, %v15376_v54  ;;  %v11554_v4 = vpop.f32.mrf.mxu1  ;;  %v2107_v29 = vadd.f32 %v11200_v19, %v15383_v63  ;;  %v2776_v54 = vadd.f32 %v11334_v31, %v2705_v25 }
 0x395   :  { %v2367_v52 = vpop.f32.mrf.mxu0 }
 0x396   :  { %v2706_v9 = vmax.f32 %v2604_v56, %v2605_v41  ;;  %v2606_v6 = vadd.f32 %v2367_v52, %v2100_v33  ;;  %v15378_v56 = vld [vmem:[#allocation44_spill] sm:$0xff]  ;;  %v15379_v41 = vld [vmem:[#allocation130_spill] sm:$0xff]  ;;  %v15380_v52 = vld [vmem:[#allocation45_spill] sm:$0xff] }
 0x397   :  { %v2369_v27 = vpop.f32.mrf.mxu0  ;;  %v2104_v35 = vadd.f32 %v15379_v41, %v15378_v56  ;;  %v2105_v20 = vadd.f32 %v15381_v5, %v15380_v52  ;;  %v15384_v56 = vld [vmem:[#allocation49_spill] sm:$0xff]  ;;  %v15385_v41 = vld [vmem:[#allocation50_spill] sm:$0xff] }
 0x398   :  { %v2607_v15 = vadd.f32 %v2369_v27, %v2101_v18  ;;  %v11562_v27 = vpop.f32.mrf.mxu1  ;;  %v2108_v25 = vadd.f32 %v11208_v58, %v15384_v56  ;;  %v2777_v5 = vadd.f32 %v11334_v31, %v2706_v9  ;;  %v15386_v58 = vld [vmem:[#allocation52_spill] sm:$0xff] }
 0x399   :  { %v2373_v30 = vpop.f32.mrf.mxu0 }
 0x39a   :  { %v2707_v45 = vmax.f32 %v2606_v6, %v2607_v15  ;;  %v2608_v14 = vadd.f32 %v2373_v30, %v2102_v51  ;;  %v15382_v15 = vld [vmem:[#allocation47_spill] sm:$0xff] }
 0x39b   :  { %v2375_v39 = vpop.f32.mrf.mxu0  ;;  %v2106_v30 = vadd.f32 %v11188_v0, %v15382_v15  ;;  %v9025_v0 = vld [vmem:[%s14925_s2 + $0x64] ss:$8 sps:$4 sm:$0xff]   ;;  %v15387_v15 = vld [vmem:[#allocation53_spill] sm:$0xff] }
 0x39c   :  { %v2609_v23 = vadd.f32 %v2375_v39, %v2103_v7  ;;  %3444 = vmatprep.subr.bf16.mxu1 %v9025_v0 }
 0x39d   :  { %v2377_v38 = vpop.f32.mrf.mxu0 }
 0x39e   :  { %v2708_v49 = vmax.f32 %v2608_v14, %v2609_v23  ;;  %v2610_v59 = vadd.f32 %v2377_v38, %v2104_v35  ;;  %v9023_v23 = vld [vmem:[%s14925_s2 + $0x60] ss:$8 sps:$4 sm:$0xff]   ;;  %v11576_v38 = vpop.f32.mrf.mxu1  ;;  %v2109_v35 = vadd.f32 %v11231_v57, %v15385_v41  ;;  %v2110_v57 = vadd.f32 %v11251_v44, %v15386_v58 }
 0x39f   :  { %v2379_v43 = vpop.f32.mrf.mxu0  ;;  %3445 = vmatpush1.bf16.msra.mxu1 %v9023_v23  ;;  %v15388_v23 = vld [vmem:[#allocation54_spill] sm:$0xff] }
 0x3a0   :  { %v2779_v33 = vadd.f32 %v11334_v31, %v2708_v49  ;;  %v2611_v18 = vadd.f32 %v2379_v43, %v2105_v20  ;;  %v2112_v0 = vadd.f32 %v11283_v53, %v15388_v23  ;;  %v15391_v53 = vld [vmem:[#allocation124_spill] sm:$0xff] }
 0x3a1   :  { %v2383_v61 = vpop.f32.mrf.mxu0 }
 0x3a2   :  { %v2709_v6 = vmax.f32 %v2610_v59, %v2611_v18  ;;  %v2827_v51 = vmax.f32 %v2775_v8, %v2779_v33  ;;  %v2612_v7 = vadd.f32 %v2383_v61, %v2106_v30  ;;  %v11587_v18 = vpop.f32.mrf.mxu1  ;;  %v2111_v30 = vadd.f32 %v11272_v10, %v15387_v15  ;;  %v9026_v10 = vld [vmem:[%s14925_s2 + $0x50] ss:$8 sps:$4 sm:$0xff]  }
 0x3a3   :  { %v2385_v26 = vpop.f32.mrf.mxu0 }
 0x3a4   :  { %v2780_v16 = vadd.f32 %v11334_v31, %v2709_v6  ;;  %v2613_v39 = vadd.f32 %v2385_v26, %v2107_v29  ;;  %v2859_v14 = vmax.f32 %v2827_v51, 0.0  ;;  %v2778_v29 = vadd.f32 %v11334_v31, %v2707_v45 }
 0x3a5   :  { %v2387_v19 = vpop.f32.mrf.mxu0 }
 0x3a6   :  { %v2710_v49 = vmax.f32 %v2612_v7, %v2613_v39  ;;  %v2828_v52 = vmax.f32 %v2776_v54, %v2780_v16  ;;  %2891 = vst [vmem:[%s14927_s13 + $0x60] sm:$0xff] %v2859_v14  ;;  %v2614_v8 = vadd.f32 %v2387_v19, %v2108_v25  ;;  %v9028_v7 = vld [vmem:[%s14925_s2 + $0x54] ss:$8 sps:$4 sm:$0xff]   ;;  %v11605_v39 = vpop.f32.mrf.mxu1  ;;  %v15389_v19 = vld [vmem:[#allocation55_spill] sm:$0xff] }
 0x3a7   :  { %v2389_v20 = vpop.f32.mrf.mxu0  ;;  %3446 = vmatprep.subr.bf16.mxu1 %v9028_v7 }
 0x3a8   :  { %v2781_v43 = vadd.f32 %v11334_v31, %v2710_v49  ;;  %v2615_v33 = vadd.f32 %v2389_v20, %v2109_v35  ;;  %v2860_v59 = vmax.f32 %v2828_v52, 0.0  ;;  %v2113_v49 = vadd.f32 %v11298_v12, %v15389_v19  ;;  %3447 = vmatpush1.bf16.msra.mxu1 %v9026_v10  ;;  %v15393_v12 = vld [vmem:[#allocation9_spill] sm:$0xff]  ;;  %v15397_v19 = vld [vmem:[#allocation62_spill] sm:$0xff] }
 0x3a9   :  { %v2393_v61 = vpop.f32.mrf.mxu0 }
 0x3aa   :  { %v2711_v6 = vmax.f32 %v2614_v8, %v2615_v33  ;;  %v2917_v63 = vpack.c.bf16 %v2860_v59, %v2859_v14  ;;  %2892 = vst [vmem:[%s14927_s13 + $0x68] sm:$0xff] %v2860_v59  ;;  %v2829_v9 = vmax.f32 %v2777_v5, %v2781_v43  ;;  %v2616_v26 = vadd.f32 %v2393_v61, %v2110_v57  ;;  %v11614_v5 = vpop.f32.mrf.mxu1  ;;  %v15390_v8 = vld [vmem:[#allocation56_spill] sm:$0xff]  ;;  %v15392_v59 = vld [vmem:[#allocation57_spill] sm:$0xff] }
 0x3ab   :  { %v2395_v51 = vpop.f32.mrf.mxu0  ;;  %v2114_v33 = vadd.f32 %v15391_v53, %v15390_v8  ;;  %v2115_v58 = vadd.f32 %v15393_v12, %v15392_v59  ;;  %v15399_v53 = vld [vmem:[#allocation64_spill] sm:$0xff]  ;;  %v15400_v12 = vld [vmem:[#allocation65_spill] sm:$0xff] }
 0x3ac   :  { %v2782_v54 = vadd.f32 %v11334_v31, %v2711_v6  ;;  %v2617_v16 = vadd.f32 %v2395_v51, %v2111_v30  ;;  %2955 = vrot.lane.b32.xlu0 %v2917_v63, %s9484_s17  ;;  %v2861_v44 = vmax.f32 %v2829_v9, 0.0  ;;  %v11626_v30 = vpop.f32.mrf.mxu1  ;;  %v15395_v51 = vld [vmem:[#allocation2_spill] sm:$0xff] }
 0x3ad   :  { %v2397_v14 = vpop.f32.mrf.mxu0 }
 0x3ae   :  { %v2712_v45 = vmax.f32 %v2616_v26, %v2617_v16  ;;  %v2830_v56 = vmax.f32 %v2778_v29, %v2782_v54  ;;  %2893 = vst [vmem:[%s14927_s13 + $0x70] sm:$0xff] %v2861_v44  ;;  %v2618_v41 = vadd.f32 %v2397_v14, %v2112_v0  ;;  %v15394_v29 = vld [vmem:[#allocation59_spill] sm:$0xff]  ;;  %v15396_v26 = vld [vmem:[#allocation60_spill] sm:$0xff]  ;;  %v11637_v14 = vpop.f32.mrf.mxu1 }
 0x3af   :  { %v2399_v25 = vpop.f32.mrf.mxu0  ;;  %v2116_v54 = vadd.f32 %v15395_v51, %v15394_v29  ;;  %v2117_v16 = vadd.f32 %v11349_v28, %v15396_v26 }
 0x3b0   :  { %v2619_v35 = vadd.f32 %v2399_v25, %v2113_v49  ;;  %v2862_v52 = vmax.f32 %v2830_v56, 0.0  ;;  %v2118_v49 = vadd.f32 %v11358_v48, %v15397_v19  ;;  %v15398_v56 = vld [vmem:[#allocation63_spill] sm:$0xff]  ;;  %v2783_v48 = vadd.f32 %v11334_v31, %v2712_v45 }
 0x3b1   :  { %v2403_v20 = vpop.f32.mrf.mxu0  ;;  %v2119_v25 = vadd.f32 %v11372_v24, %v15398_v56  ;;  %v15401_v45 = vld [vmem:[#allocation67_spill] sm:$0xff] }
 0x3b2   :  { %v2713_v43 = vmax.f32 %v2618_v41, %v2619_v35  ;;  %v2918_v57 = vpack.c.bf16 %v2862_v52, %v2861_v44  ;;  %2894 = vst [vmem:[%s14927_s13 + $0x78] sm:$0xff] %v2862_v52  ;;  %v11623_v6 = vadd.f32 %v2403_v20, %v2114_v33  ;;  %v11645_v52 = vpop.f32.mrf.mxu1  ;;  %v2120_v33 = vadd.f32 %v11381_v46, %v15399_v53  ;;  %v9029_v46 = vld [vmem:[%s14925_s2 + $0x40] ss:$8 sps:$4 sm:$0xff]  }
 0x3b3   :  { %v2405_v61 = vpop.f32.mrf.mxu0  ;;  %v2122_v51 = vadd.f32 %v11399_v17, %v15401_v45  ;;  %v9034_v45 = vld [vmem:[%s14925_s2 + $0x34] ss:$8 sps:$4 sm:$0xff]  }
 0x3b4   :  { %v2621_v15 = vadd.f32 %v2405_v61, %v2115_v58  ;;  %2957 = vrot.lane.b32.xlu1 %v2918_v57, %s9484_s17  ;;  %v2121_v58 = vadd.f32 %v11393_v50, %v15400_v12  ;;  %v9031_v50 = vld [vmem:[%s14925_s2 + $0x44] ss:$8 sps:$4 sm:$0xff]   ;;  %v11663_v29 = vpop.f32.mrf.mxu1  ;;  %v2784_v19 = vadd.f32 %v11334_v31, %v2713_v43 }
 0x3b5   :  { %v2407_v63 = vpop.f32.mrf.mxu0  ;;  %3448 = vmatprep.subr.bf16.mxu1 %v9031_v50 }
 0x3b6   :  { %v2714_v9 = vmax.f32 %v11623_v6, %v2621_v15  ;;  %v11633_v10 = vadd.f32 %v2407_v63, %v2116_v54  ;;  %3449 = vmatpush1.bf16.msra.mxu1 %v9029_v46 }
 0x3b7   :  { %v2409_v44 = vpop.f32.mrf.mxu0  ;;  %3450 = vmatprep.subr.bf16.mxu1 %v9034_v45 }
 0x3b8   :  { %v11635_v7 = vadd.f32 %v2409_v44, %v2117_v16  ;;  %v15402_v16 = vld [vmem:[#allocation68_spill] sm:$0xff]  ;;  %v2785_v12 = vadd.f32 %v11334_v31, %v2714_v9 }
 0x3b9   :  { %v2413_v23 = vpop.f32.mrf.mxu0  ;;  %v2123_v44 = vadd.f32 %v11407_v22, %v15402_v16  ;;  %v9032_v9 = vld [vmem:[%s14925_s2 + $0x30] ss:$8 sps:$4 sm:$0xff]  }
 0x3ba   :  { %v2715_v0 = vmax.f32 %v11633_v10, %v11635_v7  ;;  %v2624_v35 = vadd.f32 %v2413_v23, %v2118_v49  ;;  %3451 = vmatpush1.bf16.msra.mxu1 %v9032_v9  ;;  %v15408_v7 = vld [vmem:[#allocation75_spill] sm:$0xff] }
 0x3bb   :  { %v2415_v41 = vpop.f32.mrf.mxu0 }
 0x3bc   :  { %v2625_v28 = vadd.f32 %v2415_v41, %v2119_v25 }
 0x3bd   :  { %v2417_v20 = vpop.f32.mrf.mxu0 }
 0x3be   :  { %v2716_v8 = vmax.f32 %v2624_v35, %v2625_v28  ;;  %v2944_v59 = vpop.permute.xlu0 %2943  ;;  %v2626_v6 = vadd.f32 %v2417_v20, %v2120_v33  ;;  %v11677_v35 = vpop.f32.mrf.mxu1  ;;  %v15403_v28 = vld [vmem:[#allocation69_spill] sm:$0xff]  ;;  %v15404_v33 = vld [vmem:[#allocation70_spill] sm:$0xff] }
 0x3bf   :  { %v2976_v24 = vsel %vm361_vm3, 0, %v2944_v59  ;;  %v2419_v57 = vpop.f32.mrf.mxu0  ;;  %v2124_v22 = vadd.f32 %v11415_v21, %v15403_v28  ;;  %v2125_v59 = vadd.f32 %v11425_v2, %v15404_v33  ;;  %v15405_v2 = vld [vmem:[#allocation72_spill] sm:$0xff]  ;;  %v15407_v28 = vld [vmem:[#allocation74_spill] sm:$0xff] }
 0x3c0   :  { %v2787_v61 = vadd.f32 %v11334_v31, %v2716_v8  ;;  %v11655_v15 = vsel %vm3007_vm5, %v2976_v24, 0  ;;  %v2627_v63 = vadd.f32 %v2419_v57, %v2121_v58  ;;  %v2126_v46 = vadd.f32 %v11436_v37, %v15405_v2 }
 0x3c1   :  { %v2423_v54 = vpop.f32.mrf.mxu0  ;;  %8113 = vmatmul.mubr.msk.bf16.gmra.mxu1 %vm3130_vm6, %v11655_v15  ;;  %8188 = vmatmul.mubr.msk.bf16.vlgmr.msra.gmra.mxu0 %vm3130_vm6, %v11655_v15  ;;  %v2128_v10 = vadd.f32 %v11457_v55, %v15407_v28  ;;  %v15410_v55 = vld [vmem:[#allocation77_spill] sm:$0xff] }
 0x3c2   :  { %v2717_v26 = vmax.f32 %v2626_v6, %v2627_v63  ;;  %3230 = vmatprep.mubr.bf16.mxu1 %v14958_v47  ;;  %3778 = vmatprep.mubr.bf16.mxu0 %v14958_v47  ;;  %v2831_v23 = vmax.f32 %v2783_v48, %v2787_v61  ;;  %v2628_v56 = vadd.f32 %v2423_v54, %v2122_v51  ;;  %v11692_v63 = vpop.f32.mrf.mxu1  ;;  %v15406_v54 = vld [vmem:[#allocation73_spill] sm:$0xff] }
 0x3c3   :  { %v2425_v49 = vpop.f32.mrf.mxu0 }
 0x3c4   :  { %v2788_v17 = vadd.f32 %v11334_v31, %v2717_v26  ;;  %v2629_v25 = vadd.f32 %v2425_v49, %v2123_v44  ;;  %v2863_v41 = vmax.f32 %v2831_v23, 0.0  ;;  %v2127_v26 = vadd.f32 %v11448_v36, %v15406_v54 }
 0x3c5   :  { %v2427_v20 = vpop.f32.mrf.mxu0  ;;  %v2786_v44 = vadd.f32 %v11334_v31, %v2715_v0  ;;  %v2129_v0 = vadd.f32 %v11467_v40, %v15408_v7  ;;  %v15415_v7 = vld [vmem:[#allocation84_spill] sm:$0xff] }
 0x3c6   :  { %v2718_v8 = vmax.f32 %v2628_v56, %v2629_v25  ;;  %v2946_v53 = vpop.permute.xlu1 %2945  ;;  %v2832_v43 = vmax.f32 %v2784_v19, %v2788_v17  ;;  %2895 = vst [vmem:[%s14927_s13 + $0x80] sm:$0xff] %v2863_v41  ;;  %v2630_v58 = vadd.f32 %v2427_v20, %v2124_v22  ;;  %v11719_v56 = vpop.f32.mrf.mxu1 }
 0x3c7   :  { %v2978_v48 = vsel %vm361_vm3, 0, %v2946_v53  ;;  %v2429_v24 = vpop.f32.mrf.mxu0 }
 0x3c8   :  { %v2789_v57 = vadd.f32 %v11334_v31, %v2718_v8  ;;  %v11690_v21 = vsel %vm3007_vm5, %v2978_v48, 0  ;;  %v2631_v61 = vadd.f32 %v2429_v24, %v2125_v59  ;;  %v2864_v6 = vmax.f32 %v2832_v43, 0.0  ;;  %v11728_v59 = vpop.f32.mrf.mxu1 }
 0x3c9   :  { %v2433_v50 = vpop.f32.mrf.mxu0  ;;  %8114 = vmatmul.mubr.msk.bf16.gmra.mxu1 %vm3130_vm6, %v11690_v21  ;;  %8189 = vmatmul.mubr.msk.bf16.gmra.mxu0 %vm3130_vm6, %v11690_v21  ;;  %v2131_v24 = vadd.f32 %v11479_v11, %v15410_v55  ;;  %v15412_v11 = vld [vmem:[#allocation80_spill] sm:$0xff] }
 0x3ca   :  { %v2719_v51 = vmax.f32 %v2630_v58, %v2631_v61  ;;  %v2919_v37 = vpack.c.bf16 %v2864_v6, %v2863_v41  ;;  %2896 = vst [vmem:[%s14927_s13 + $0x88] sm:$0xff] %v2864_v6  ;;  %v2833_v16 = vmax.f32 %v2785_v12, %v2789_v57  ;;  %3240 = vmatprep.mubr.bf16.mxu1 %v14958_v47  ;;  %v15409_v58 = vld [vmem:[#allocation76_spill] sm:$0xff]  ;;  %v11740_v2 = vpop.f32.mrf.mxu1 }
 0x3cb   :  { %v2435_v23 = vpop.f32.mrf.mxu0  ;;  %3788 = vmatprep.mubr.bf16.mxu0 %v14958_v47  ;;  %v2632_v36 = vadd.f32 %v2433_v50, %v2126_v46  ;;  %v2130_v48 = vadd.f32 %v11473_v13, %v15409_v58  ;;  %v15411_v13 = vld [vmem:[#allocation79_spill] sm:$0xff]  ;;  %v2133_v45 = vadd.f32 %v11495_v60, %v15412_v11 }
 0x3cc   :  { %v2790_v19 = vadd.f32 %v11334_v31, %v2719_v51  ;;  %v2633_v49 = vadd.f32 %v2435_v23, %v2127_v26  ;;  %2959 = vrot.lane.b32.xlu0 %v2919_v37, %s9484_s17  ;;  %v2865_v17 = vmax.f32 %v2833_v16, 0.0  ;;  %v2132_v9 = vadd.f32 %v11487_v32, %v15411_v13  ;;  %v11751_v37 = vpop.f32.mrf.mxu1  ;;  %v15413_v23 = vld [vmem:[#allocation82_spill] sm:$0xff] }
 0x3cd   :  { %v2437_v25 = vpop.f32.mrf.mxu0 }
 0x3ce   :  { %v2720_v41 = vmax.f32 %v2632_v36, %v2633_v49  ;;  %v2834_v22 = vmax.f32 %v2786_v44, %v2790_v19  ;;  %2897 = vst [vmem:[%s14927_s13 + $0x90] sm:$0xff] %v2865_v17  ;;  %v2634_v8 = vadd.f32 %v2437_v25, %v2128_v10  ;;  %v2134_v19 = vadd.f32 %v11506_v34, %v15413_v23  ;;  %v15414_v36 = vld [vmem:[#allocation83_spill] sm:$0xff]  ;;  %v11759_v25 = vpop.f32.mrf.mxu1  ;;  %v15419_v23 = vld [vmem:[#allocation89_spill] sm:$0xff] }
 0x3cf   :  { %v2439_v20 = vpop.f32.mrf.mxu0  ;;  %v2135_v32 = vadd.f32 %v11518_v1, %v15414_v36 }
 0x3d0   :  { %v2635_v53 = vadd.f32 %v2439_v20, %v2129_v0  ;;  %v2866_v33 = vmax.f32 %v2834_v22, 0.0  ;;  %v2136_v0 = vadd.f32 %v11527_v42, %v15415_v7  ;;  %v15416_v20 = vld [vmem:[#allocation85_spill] sm:$0xff]  ;;  %v9035_v42 = vld [vmem:[%s14925_s2 + $0x20] ss:$8 sps:$4 sm:$0xff]   ;;  %v11777_v55 = vpop.f32.mrf.mxu1 }
 0x3d1   :  { %v2443_v43 = vpop.f32.mrf.mxu0 }
 0x3d2   :  { %v2721_v12 = vmax.f32 %v2634_v8, %v2635_v53  ;;  %v2920_v40 = vpack.c.bf16 %v2866_v33, %v2865_v17  ;;  %2898 = vst [vmem:[%s14927_s13 + $0x98] sm:$0xff] %v2866_v33  ;;  %v11737_v61 = vadd.f32 %v2443_v43, %v2130_v48  ;;  %v2137_v8 = vadd.f32 %v11540_v62, %v15416_v20  ;;  %v9037_v62 = vld [vmem:[%s14925_s2 + $0x24] ss:$8 sps:$4 sm:$0xff]  }
 0x3d3   :  { %v2445_v57 = vpop.f32.mrf.mxu0  ;;  %v2791_v53 = vadd.f32 %v11334_v31, %v2720_v41  ;;  %v15417_v41 = vld [vmem:[#allocation87_spill] sm:$0xff]  ;;  %3452 = vmatprep.subr.bf16.mxu1 %v9037_v62 }
 0x3d4   :  { %v2637_v6 = vadd.f32 %v2445_v57, %v2131_v24  ;;  %2961 = vrot.lane.b32.xlu1 %v2920_v40, %s9484_s17  ;;  %v2138_v24 = vadd.f32 %v11548_v3, %v15417_v41  ;;  %v2792_v13 = vadd.f32 %v11334_v31, %v2721_v12  ;;  %v11793_v3 = vld [vmem:[%s14926_s5] ss:$0 sm:$0xff]  ;;  %3453 = vmatpush1.bf16.msra.mxu1 %v9035_v42 }
 0x3d5   :  { %v2447_v46 = vpop.f32.mrf.mxu0 }
 0x3d6   :  { %v2722_v50 = vmax.f32 %v11737_v61, %v2637_v6  ;;  %v11747_v54 = vadd.f32 %v2447_v46, %v2132_v9  ;;  %v15418_v61 = vld [vmem:[#allocation88_spill] sm:$0xff] }
 0x3d7   :  { %v2449_v51 = vpop.f32.mrf.mxu0  ;;  %v2139_v6 = vadd.f32 %v11554_v4, %v15418_v61  ;;  %v11796_v4 = vpop.f32.mrf.mxu1 }
 0x3d8   :  { %v11749_v26 = vadd.f32 %v2449_v51, %v2133_v45 }
 0x3d9   :  { %v2453_v16 = vpop.f32.mrf.mxu0 }
 0x3da   :  { %v2723_v44 = vmax.f32 %v11747_v54, %v11749_v26  ;;  %v2640_v17 = vadd.f32 %v2453_v16, %v2134_v19  ;;  %v2140_v19 = vadd.f32 %v11562_v27, %v15419_v23  ;;  %v15424_v54 = vld [vmem:[#allocation95_spill] sm:$0xff] }
 0x3db   :  { %v2455_v49 = vpop.f32.mrf.mxu0  ;;  %v2145_v26 = vadd.f32 %v11626_v30, %v15424_v54 }
 0x3dc   :  { %v2641_v60 = vadd.f32 %v2455_v49, %v2135_v32  ;;  %v15420_v32 = vld [vmem:[#allocation90_spill] sm:$0xff]  ;;  %v2794_v41 = vadd.f32 %v11793_v3, %v2723_v44 }
 0x3dd   :  { %v2457_v28 = vpop.f32.mrf.mxu0  ;;  %v2141_v49 = vadd.f32 %v11576_v38, %v15420_v32 }
 0x3de   :  { %v2724_v10 = vmax.f32 %v2640_v17, %v2641_v60  ;;  %v2948_v22 = vpop.permute.xlu0 %2947  ;;  %v2642_v43 = vadd.f32 %v2457_v28, %v2136_v0  ;;  %v11805_v60 = vpop.f32.mrf.mxu1  ;;  %v2793_v28 = vadd.f32 %v11793_v3, %v2722_v50  ;;  %v9038_v50 = vld [vmem:[%s14925_s2 + $0x10] ss:$8 sps:$4 sm:$0xff]  }
 0x3df   :  { %v2980_v34 = vsel %vm361_vm3, 0, %v2948_v22  ;;  %v2459_v33 = vpop.f32.mrf.mxu0 }
 0x3e0   :  { %v2795_v1 = vadd.f32 %v11334_v31, %v2724_v10  ;;  %v11769_v58 = vsel %vm3007_vm5, %v2980_v34, 0  ;;  %v2643_v48 = vadd.f32 %v2459_v33, %v2137_v8  ;;  %v15421_v8 = vld [vmem:[#allocation92_spill] sm:$0xff]  ;;  %v11831_v62 = vpop.f32.mrf.mxu1 }
 0x3e1   :  { %v2463_v40 = vpop.f32.mrf.mxu0  ;;  %8115 = vmatmul.mubr.msk.bf16.gmra.mxu1 %vm3130_vm6, %v11769_v58  ;;  %8190 = vmatmul.mubr.msk.bf16.gmra.mxu0 %vm3130_vm6, %v11769_v58  ;;  %v9040_v33 = vld [vmem:[%s14925_s2 + $0x14] ss:$8 sps:$4 sm:$0xff]  }
 0x3e2   :  { %v2725_v57 = vmax.f32 %v2642_v43, %v2643_v48  ;;  %3250 = vmatprep.mubr.bf16.mxu1 %v14958_v47  ;;  %3798 = vmatprep.mubr.bf16.mxu0 %v14958_v47  ;;  %v2835_v46 = vmax.f32 %v2791_v53, %v2795_v1  ;;  %v2644_v45 = vadd.f32 %v2463_v40, %v2138_v24  ;;  %v15422_v43 = vld [vmem:[#allocation93_spill] sm:$0xff] }
 0x3e3   :  { %v2465_v9 = vpop.f32.mrf.mxu0  ;;  %v2142_v53 = vadd.f32 %v11587_v18, %v15421_v8  ;;  %v2143_v48 = vadd.f32 %v11605_v39, %v15422_v43  ;;  %3454 = vmatprep.subr.bf16.mxu1 %v9040_v33 }
 0x3e4   :  { %v2796_v11 = vadd.f32 %v11793_v3, %v2725_v57  ;;  %v2645_v51 = vadd.f32 %v2465_v9, %v2139_v6  ;;  %v2867_v16 = vmax.f32 %v2835_v46, 0.0  ;;  %3455 = vmatpush1.bf16.msra.mxu1 %v9038_v50 }
 0x3e5   :  { %v2467_v36 = vpop.f32.mrf.mxu0 }
 0x3e6   :  { %v2726_v31 = vmax.f32 %v2644_v45, %v2645_v51  ;;  %v2950_v12 = vpop.permute.xlu1 %2949  ;;  %v2836_v17 = vmax.f32 %v2792_v13, %v2796_v11  ;;  %2899 = vst [vmem:[%s14927_s13 + $0xa0] sm:$0xff] %v2867_v16  ;;  %v2646_v10 = vadd.f32 %v2467_v36, %v2140_v19  ;;  %v15423_v13 = vld [vmem:[#allocation94_spill] sm:$0xff]  ;;  %v11847_v11 = vpop.f32.mrf.mxu1 }
 0x3e7   :  { %v2982_v7 = vsel %vm361_vm3, 0, %v2950_v12  ;;  %v2469_v0 = vpop.f32.mrf.mxu0  ;;  %v2144_v9 = vadd.f32 %v11614_v5, %v15423_v13  ;;  %v15426_v5 = vld [vmem:[#allocation97_spill] sm:$0xff] }
 0x3e8   :  { %v2797_v27 = vadd.f32 %v11793_v3, %v2726_v31  ;;  %v11811_v22 = vsel %vm3007_vm5, %v2982_v7, 0  ;;  %v2647_v20 = vadd.f32 %v2469_v0, %v2141_v49  ;;  %v2868_v38 = vmax.f32 %v2836_v17, 0.0  ;;  %v15425_v31 = vld [vmem:[#allocation96_spill] sm:$0xff]  ;;  %v11856_v49 = vpop.f32.mrf.mxu1 }
 0x3e9   :  { %v2473_v34 = vpop.f32.mrf.mxu0  ;;  %8116 = vmatmul.mubr.msk.bf16.gmra.mxu1 %vm3130_vm6, %v11811_v22  ;;  %8191 = vmatmul.mubr.msk.bf16.gmra.mxu0 %vm3130_vm6, %v11811_v22  ;;  %v2146_v12 = vadd.f32 %v11637_v14, %v15425_v31  ;;  %v2147_v32 = vadd.f32 %v11645_v52, %v15426_v5  ;;  %v15434_v31 = vld [vmem:[#allocation105_spill] sm:$0xff] }
 0x3ea   :  { %v2727_v1 = vmax.f32 %v2646_v10, %v2647_v20  ;;  %v2921_v18 = vpack.c.bf16 %v2868_v38, %v2867_v16  ;;  %2900 = vst [vmem:[%s14927_s13 + $0xa8] sm:$0xff] %v2868_v38  ;;  %v2837_v42 = vmax.f32 %v2793_v28, %v2797_v27  ;;  %3260 = vmatprep.mubr.bf16.mxu1 %v14958_v47  ;;  %v15427_v27 = vld [vmem:[#allocation98_spill] sm:$0xff]  ;;  %v15428_v20 = vld [vmem:[#allocation99_spill] sm:$0xff]  ;;  %v11863_v38 = vpop.f32.mrf.mxu1 }
 0x3eb   :  { %v2475_v24 = vpop.f32.mrf.mxu0  ;;  %3808 = vmatprep.mubr.bf16.mxu0 %v14958_v47  ;;  %v2648_v40 = vadd.f32 %v2473_v34, %v2142_v53  ;;  %v2148_v14 = vadd.f32 %v11663_v29, %v15427_v27  ;;  %v2149_v52 = vadd.f32 %v11677_v35, %v15428_v20  ;;  %v15435_v27 = vld [vmem:[#allocation106_spill] sm:$0xff] }
 0x3ec   :  { %v2798_v39 = vadd.f32 %v11793_v3, %v2727_v1  ;;  %v2649_v57 = vadd.f32 %v2475_v24, %v2143_v48  ;;  %2963 = vrot.lane.b32.xlu0 %v2921_v18, %s9484_s17  ;;  %v2869_v61 = vmax.f32 %v2837_v42, 0.0  ;;  %v15429_v1 = vld [vmem:[#allocation100_spill] sm:$0xff]  ;;  %v15430_v48 = vld [vmem:[#allocation101_spill] sm:$0xff]  ;;  %v11875_v18 = vpop.f32.mrf.mxu1 }
 0x3ed   :  { %v2477_v6 = vpop.f32.mrf.mxu0  ;;  %v2150_v43 = vadd.f32 %v11692_v63, %v15429_v1  ;;  %v2151_v29 = vadd.f32 %v11719_v56, %v15430_v48 }
 0x3ee   :  { %v2728_v46 = vmax.f32 %v2648_v40, %v2649_v57  ;;  %v2838_v44 = vmax.f32 %v2794_v41, %v2798_v39  ;;  %2901 = vst [vmem:[%s14927_s13 + $0xb0] sm:$0xff] %v2869_v61  ;;  %v2650_v51 = vadd.f32 %v2477_v6, %v2144_v9  ;;  %v15431_v40 = vld [vmem:[#allocation102_spill] sm:$0xff]  ;;  %v15432_v6 = vld [vmem:[#allocation103_spill] sm:$0xff]  ;;  %v11881_v9 = vpop.f32.mrf.mxu1 }
 0x3ef   :  { %v2479_v45 = vpop.f32.mrf.mxu0  ;;  %v2152_v57 = vadd.f32 %v11728_v59, %v15431_v40  ;;  %v2153_v13 = vadd.f32 %v11740_v2, %v15432_v6  ;;  %v9041_v59 = vld [vmem:[%s14925_s2] ss:$8 sps:$4 sm:$0xff]   ;;  %v9043_v2 = vld [vmem:[%s14925_s2 + $0x4] ss:$8 sps:$4 sm:$0xff]  }
 0x3f0   :  { %v2651_v16 = vadd.f32 %v2479_v45, %v2145_v26  ;;  %v2870_v23 = vmax.f32 %v2838_v44, 0.0  ;;  %v2799_v63 = vadd.f32 %v11793_v3, %v2728_v46  ;;  %3456 = vmatprep.subr.bf16.mxu1 %v9043_v2 }
 0x3f1   :  { %v2483_v19 = vpop.f32.mrf.mxu0  ;;  %3457 = vmatpush1.bf16.msra.mxu1 %v9041_v59  ;;  %v15439_v59 = vld [vmem:[#allocation110_spill] sm:$0xff] }
 0x3f2   :  { %v2729_v36 = vmax.f32 %v2650_v51, %v2651_v16  ;;  %v2922_v30 = vpack.c.bf16 %v2870_v23, %v2869_v61  ;;  %2902 = vst [vmem:[%s14927_s13 + $0xb8] sm:$0xff] %v2870_v23  ;;  %v2652_v28 = vadd.f32 %v2483_v19, %v2146_v12  ;;  %v15433_v16 = vld [vmem:[#allocation104_spill] sm:$0xff]  ;;  %v2155_v12 = vadd.f32 %v11759_v25, %v15434_v31 }
 0x3f3   :  { %v2485_v17 = vpop.f32.mrf.mxu0  ;;  %v2154_v46 = vadd.f32 %v11751_v37, %v15433_v16  ;;  %v2156_v25 = vadd.f32 %v11777_v55, %v15435_v27  ;;  %v2160_v2 = vadd.f32 %v11847_v11, %v15439_v59  ;;  %v15440_v16 = vld [vmem:[#allocation111_spill] sm:$0xff]  ;;  %v11962_v11 = vld [vmem:[%s14925_s2 + $0x1d8] sm:$0xff] }
 0x3f4   :  { %v2653_v10 = vadd.f32 %v2485_v17, %v2147_v32  ;;  %2965 = vrot.lane.b32.xlu1 %v2922_v30, %s9484_s17  ;;  %v11905_v32 = vpop.f32.mrf.mxu1  ;;  %v2800_v37 = vadd.f32 %v11793_v3, %v2729_v36  ;;  %v15442_v27 = vld [vmem:[#allocation113_spill] sm:$0xff] }
 0x3f5   :  { %v2487_v7 = vpop.f32.mrf.mxu0 }
 0x3f6   :  { %v2730_v0 = vmax.f32 %v2652_v28, %v2653_v10  ;;  %v11865_v53 = vadd.f32 %v2487_v7, %v2148_v14  ;;  %v11916_v36 = vpop.f32.mrf.mxu1 }
 0x3f7   :  { %v2489_v8 = vpop.f32.mrf.mxu0 }
 0x3f8   :  { %v11867_v34 = vadd.f32 %v2489_v8, %v2149_v52  ;;  %v15436_v8 = vld [vmem:[#allocation107_spill] sm:$0xff] }
 0x3f9   :  { %v2493_v50 = vpop.f32.mrf.mxu0 }
 0x3fa   :  { %v2731_v33 = vmax.f32 %v11865_v53, %v11867_v34  ;;  %v2656_v42 = vadd.f32 %v2493_v50, %v2150_v43  ;;  %v2157_v50 = vadd.f32 %v11796_v4, %v15436_v8  ;;  %v2801_v43 = vadd.f32 %v11793_v3, %v2730_v0  ;;  %v15438_v0 = vld [vmem:[#allocation109_spill] sm:$0xff] }
 0x3fb   :  { %v2495_v35 = vpop.f32.mrf.mxu0  ;;  %v2161_v53 = vadd.f32 %v11856_v49, %v15440_v16 }
 0x3fc   :  { %v2657_v41 = vadd.f32 %v2495_v35, %v2151_v29 }
 0x3fd   :  { %v2497_v24 = vpop.f32.mrf.mxu0 }
 0x3fe   :  { %v2732_v39 = vmax.f32 %v2656_v42, %v2657_v41  ;;  %v2952_v61 = vpop.permute.xlu0 %2951  ;;  %v2658_v44 = vadd.f32 %v2497_v24, %v2152_v57  ;;  %v15437_v24 = vld [vmem:[#allocation108_spill] sm:$0xff]  ;;  %v2159_v57 = vadd.f32 %v11831_v62, %v15438_v0 }
 0x3ff   :  { %v2984_v56 = vsel %vm361_vm3, 0, %v2952_v61  ;;  %v2499_v54 = vpop.f32.mrf.mxu0 }
 0x400   :  { %v2803_v26 = vadd.f32 %v11793_v3, %v2732_v39  ;;  %v11887_v45 = vsel %vm3007_vm5, %v2984_v56, 0  ;;  %v2659_v51 = vadd.f32 %v2499_v54, %v2153_v13  ;;  %v2158_v39 = vadd.f32 %v11805_v60, %v15437_v24  ;;  %v2029_v60 = vpop.f32.mrf.mxu1 }
 0x401   :  { %v2503_v23 = vpop.f32.mrf.mxu0  ;;  %8117 = vmatmul.mubr.msk.bf16.gmra.mxu1 %vm3130_vm6, %v11887_v45  ;;  %8192 = vmatmul.mubr.msk.bf16.gmra.mxu0 %vm3130_vm6, %v11887_v45 }
 0x402   :  { %v2733_v19 = vmax.f32 %v2658_v44, %v2659_v51  ;;  %3270 = vmatprep.mubr.bf16.mxu1 %v14958_v47  ;;  %3818 = vmatprep.mubr.bf16.mxu0 %v14958_v47  ;;  %v2839_v5 = vmax.f32 %v2799_v63, %v2803_v26  ;;  %v2660_v28 = vadd.f32 %v2503_v23, %v2154_v46  ;;  %v8264_v46 = vld [vmem:[%s14925_s2 + $0x250] sm:$0xff]  ;;  %v2031_v23 = vpop.f32.mrf.mxu1 }
 0x403   :  { %v2505_v30 = vpop.f32.mrf.mxu0  ;;  %v2802_v63 = vadd.f32 %v11793_v3, %v2731_v33  ;;  %v8280_v49 = vcombine.high %v8264_v46, %v8264_v46  ;;  %v8279_v31 = vcombine.low %v8264_v46, %v8264_v46 }
 0x404   :  { %v2804_v17 = vadd.f32 %v11793_v3, %v2733_v19  ;;  %v2661_v10 = vadd.f32 %v2505_v30, %v2155_v12  ;;  %v2871_v7 = vmax.f32 %v2839_v5, 0.0  ;;  %v8234_v30 = vcombine.high %v11962_v11, %v11962_v11 }
 0x405   :  { %v2507_v14 = vpop.f32.mrf.mxu0  ;;  %8281 = vmatprep.subr.msk.bf16.mxu0 %vm3161_vm4, %v8280_v49 }
 0x406   :  { %v2734_v20 = vmax.f32 %v2660_v28, %v2661_v10  ;;  %v2954_v52 = vpop.permute.xlu1 %2953  ;;  %v2840_v1 = vmax.f32 %v2800_v37, %v2804_v17  ;;  %2903 = vst [vmem:[%s14927_s13 + $0xc0] sm:$0xff] %v2871_v7  ;;  %v2662_v48 = vadd.f32 %v2507_v14, %v2156_v25  ;;  %v15441_v17 = vld [vmem:[#allocation112_spill] sm:$0xff]  ;;  %v2163_v25 = vadd.f32 %v11875_v18, %v15442_v27  ;;  %v2033_v18 = vpop.f32.mrf.mxu1 }
 0x407   :  { %v2986_v29 = vsel %vm361_vm3, 0, %v2954_v52  ;;  %v2509_v35 = vpop.f32.mrf.mxu0  ;;  %v2162_v28 = vadd.f32 %v11863_v38, %v15441_v17  ;;  %8235 = vmatprep.subr.msk.bf16.mxu1 %vm3161_vm4, %v8234_v30  ;;  %v9048_v38 = vld [vmem:[%s14925_s2 + $0x240] ss:$8 sps:$4 sm:$0xff]   ;;  %v9050_v52 = vld [vmem:[%s14925_s2 + $0x244] ss:$8 sps:$4 sm:$0xff]  }
 0x408   :  { %v2805_v55 = vadd.f32 %v11793_v3, %v2734_v20  ;;  %v11922_v42 = vsel %vm3007_vm5, %v2986_v29, 0  ;;  %v2663_v41 = vadd.f32 %v2509_v35, %v2157_v50  ;;  %v2872_v4 = vmax.f32 %v2840_v1, 0.0  ;;  %v15444_v35 = vld [vmem:[#allocation115_spill] sm:$0xff] }
 0x409   :  { %v2513_v40 = vpop.f32.mrf.mxu0  ;;  %8118 = vmatmul.mubr.msk.bf16.gmra.mxu1 %vm3130_vm6, %v11922_v42  ;;  %8193 = vmatmul.mubr.msk.bf16.gmra.mxu0 %vm3130_vm6, %v11922_v42 }
 0x40a   :  { %v2735_v61 = vmax.f32 %v2662_v48, %v2663_v41  ;;  %v2923_v6 = vpack.c.bf16 %v2872_v4, %v2871_v7  ;;  %2904 = vst [vmem:[%s14927_s13 + $0xc8] sm:$0xff] %v2872_v4  ;;  %v2841_v13 = vmax.f32 %v2801_v43, %v2805_v55  ;;  %3280 = vmatprep.mubr.bf16.mxu1 %v14958_v47  ;;  %v4439_v7 = vsel %vm3161_vm4, %v8279_v31, 0  ;;  %v15443_v48 = vld [vmem:[#allocation114_spill] sm:$0xff]  ;;  %v2037_v4 = vpop.f32.mrf.mxu1 }
 0x40b   :  { %v2515_v56 = vpop.f32.mrf.mxu0  ;;  %3828 = vmatprep.mubr.bf16.mxu0 %v14958_v47  ;;  %v11942_v54 = vadd.f32 %v2513_v40, %v2158_v39  ;;  %4445 = vmatpush1.bf16.msra.mxu0 %v4439_v7  ;;  %v2164_v29 = vadd.f32 %v11881_v9, %v15443_v48  ;;  %v2165_v55 = vadd.f32 %v11905_v32, %v15444_v35  ;;  %v9053_v39 = vld [vmem:[%s14925_s2 + $0x234] ss:$8 sps:$4 sm:$0xff]   ;;  %v9051_v9 = vld [vmem:[%s14925_s2 + $0x230] ss:$8 sps:$4 sm:$0xff]   ;;  %v9056_v32 = vld [vmem:[%s14925_s2 + $0x224] ss:$8 sps:$4 sm:$0xff]  }
 0x40c   :  { %v2806_v62 = vadd.f32 %v11793_v3, %v2735_v61  ;;  %v11944_v26 = vadd.f32 %v2515_v56, %v2159_v57  ;;  %2967 = vrot.lane.b32.xlu0 %v2923_v6, %s9484_s17  ;;  %v2873_v44 = vmax.f32 %v2841_v13, 0.0  ;;  %4446 = vmatprep.subr.bf16.mxu0 %v9050_v52  ;;  %v15445_v61 = vld [vmem:[#allocation116_spill] sm:$0xff]  ;;  %v15446_v13 = vld [vmem:[#allocation117_spill] sm:$0xff]  ;;  %v9065_v48 = vld [vmem:[%s14925_s2 + $0x204] ss:$8 sps:$4 sm:$0xff]  }
 0x40d   :  { %v2517_v51 = vpop.f32.mrf.mxu0  ;;  %v2166_v6 = vadd.f32 %v11916_v36, %v15445_v61 }
 0x40e   :  { %v2736_v34 = vmax.f32 %v11942_v54, %v11944_v26  ;;  %v2842_v33 = vmax.f32 %v2802_v63, %v2806_v62  ;;  %2905 = vst [vmem:[%s14927_s13 + $0xd0] sm:$0xff] %v2873_v44  ;;  %v11964_v12 = vadd.f32 %v2517_v51, %v2160_v2  ;;  %v2167_v63 = vadd.f32 %v2029_v60, %v15446_v13  ;;  %v9054_v62 = vld [vmem:[%s14925_s2 + $0x220] ss:$8 sps:$4 sm:$0xff]   ;;  %v2039_v54 = vpop.f32.mrf.mxu1 }
 0x40f   :  { %v2519_v19 = vpop.f32.mrf.mxu0  ;;  %4447 = vmatpush1.bf16.msra.mxu0 %v9048_v38  ;;  %v15447_v2 = vld [vmem:[#allocation118_spill] sm:$0xff] }
 0x410   :  { %v11966_v5 = vadd.f32 %v2519_v19, %v2161_v53  ;;  %v2874_v37 = vmax.f32 %v2842_v33, 0.0  ;;  %4448 = vmatprep.subr.bf16.mxu0 %v9053_v39  ;;  %v2168_v16 = vadd.f32 %v2031_v23, %v15447_v2  ;;  %v15448_v53 = vld [vmem:[#allocation119_spill] sm:$0xff]  ;;  %v2041_v46 = vpop.f32.mrf.mxu1  ;;  %v2807_v19 = vadd.f32 %v11793_v3, %v2736_v34  ;;  %v9060_v34 = vld [vmem:[%s14925_s2 + $0x210] ss:$8 sps:$4 sm:$0xff]   ;;  %v15451_v39 = vld [vmem:[#allocation122_spill] sm:$0xff] }
 0x411   :  { %v2523_v10 = vpop.f32.mrf.mxu0  ;;  %v2169_v36 = vadd.f32 %v2033_v18, %v15448_v53 }
 0x412   :  { %v2737_v14 = vmax.f32 %v11964_v12, %v11966_v5  ;;  %v2924_v20 = vpack.c.bf16 %v2874_v37, %v2873_v44  ;;  %2906 = vst [vmem:[%s14927_s13 + $0xd8] sm:$0xff] %v2874_v37  ;;  %v11988_v50 = vadd.f32 %v2523_v10, %v2162_v28  ;;  %v9062_v37 = vld [vmem:[%s14925_s2 + $0x214] ss:$8 sps:$4 sm:$0xff]   ;;  %v2043_v18 = vpop.f32.mrf.mxu1  ;;  %v2172_v12 = vadd.f32 %v2041_v46, %v15451_v39 }
 0x413   :  { %v2525_v8 = vpop.f32.mrf.mxu0  ;;  %4449 = vmatpush1.bf16.msra.mxu0 %v9051_v9  ;;  %v15449_v10 = vld [vmem:[#allocation120_spill] sm:$0xff]  ;;  %v8233_v39 = vcombine.low %v11962_v11, %v11962_v11 }
 0x414   :  { %v11990_v1 = vadd.f32 %v2525_v8, %v2163_v25  ;;  %2969 = vrot.lane.b32.xlu1 %v2924_v20, %s9484_s17  ;;  %4450 = vmatprep.subr.bf16.mxu0 %v9056_v32  ;;  %v2170_v7 = vadd.f32 %v2037_v4, %v15449_v10  ;;  %v15450_v25 = vld [vmem:[#allocation121_spill] sm:$0xff]  ;;  %v2808_v8 = vadd.f32 %v11793_v3, %v2737_v14  ;;  %v15452_v14 = vld [vmem:[#allocation123_spill] sm:$0xff] }
 0x415   :  { %v2527_v43 = vpop.f32.mrf.mxu0  ;;  %v2171_v20 = vadd.f32 %v2039_v54, %v15450_v25  ;;  %v2173_v9 = vadd.f32 %v2043_v18, %v15452_v14  ;;  %v9068_v54 = vld [vmem:[%s14925_s2 + $0x1f4] ss:$8 sps:$4 sm:$0xff]   ;;  %v4085_v14 = vsel %vm3161_vm4, %v8233_v39, 0  ;;  %v9057_v11 = vld [vmem:[%s14925_s2 + $0x1c8] ss:$8 sps:$4 sm:$0xff]  }
 0x416   :  { %v2738_v41 = vmax.f32 %v11988_v50, %v11990_v1  ;;  %v12002_v40 = vadd.f32 %v2527_v43, %v2164_v29  ;;  %v9066_v50 = vld [vmem:[%s14925_s2 + $0x1f0] ss:$8 sps:$4 sm:$0xff]  }
 0x417   :  { %v2529_v24 = vpop.f32.mrf.mxu0  ;;  %4451 = vmatpush1.bf16.msra.mxu0 %v9054_v62 }
 0x418   :  { %v12004_v0 = vadd.f32 %v2529_v24, %v2165_v55  ;;  %4452 = vmatprep.subr.bf16.mxu0 %v9062_v37  ;;  %v9063_v24 = vld [vmem:[%s14925_s2 + $0x200] ss:$8 sps:$4 sm:$0xff]  }
 0x419   :  { %v2533_v57 = vpop.f32.mrf.mxu0 }
 0x41a   :  { %v2739_v56 = vmax.f32 %v12002_v40, %v12004_v0  ;;  %v2672_v44 = vadd.f32 %v2533_v57, %v2166_v6  ;;  %v2809_v6 = vadd.f32 %v11793_v3, %v2738_v41 }
 0x41b   :  { %v2535_v26 = vpop.f32.mrf.mxu0  ;;  %4453 = vmatpush1.bf16.msra.mxu0 %v9060_v34  ;;  %v12141_v34 = vpop.f32.mrf.mxu1 }
 0x41c   :  { %v2673_v51 = vadd.f32 %v2535_v26, %v2167_v63  ;;  %4454 = vmatprep.subr.bf16.mxu0 %v9065_v48  ;;  %v2810_v53 = vadd.f32 %v11793_v3, %v2739_v56 }
 0x41d   :  { %v2537_v59 = vpop.f32.mrf.mxu0  ;;  %v12143_v25 = vpop.f32.mrf.mxu1 }
 0x41e   :  { %v2740_v33 = vmax.f32 %v2672_v44, %v2673_v51  ;;  %v2956_v60 = vpop.permute.xlu0 %2955  ;;  %v2674_v17 = vadd.f32 %v2537_v59, %v2168_v16  ;;  %v9071_v16 = vld [vmem:[%s14925_s2 + $0x1e4] ss:$8 sps:$4 sm:$0xff]  }
 0x41f   :  { %v2988_v49 = vsel %vm361_vm3, 0, %v2956_v60  ;;  %v2539_v31 = vpop.f32.mrf.mxu0  ;;  %4455 = vmatpush1.bf16.msra.mxu0 %v9063_v24  ;;  %v9069_v60 = vld [vmem:[%s14925_s2 + $0x1e0] ss:$8 sps:$4 sm:$0xff]  }
 0x420   :  { %v2811_v30 = vadd.f32 %v11793_v3, %v2740_v33  ;;  %v12029_v23 = vsel %vm3007_vm5, %v2988_v49, 0  ;;  %v2675_v28 = vadd.f32 %v2539_v31, %v2169_v36  ;;  %4456 = vmatprep.subr.bf16.mxu0 %v9068_v54 }
 0x421   :  { %v2543_v27 = vpop.f32.mrf.mxu0  ;;  %8119 = vmatmul.mubr.msk.bf16.gmra.mxu1 %vm3130_vm6, %v12029_v23  ;;  %8194 = vmatmul.mubr.msk.bf16.gmra.mxu0 %vm3130_vm6, %v12029_v23 }
 0x422   :  { %v2741_v38 = vmax.f32 %v2674_v17, %v2675_v28  ;;  %3290 = vmatprep.mubr.bf16.mxu1 %v14958_v47  ;;  %3838 = vmatprep.mubr.bf16.mxu0 %v14958_v47  ;;  %v2843_v52 = vmax.f32 %v2807_v19, %v2811_v30  ;;  %v2676_v35 = vadd.f32 %v2543_v27, %v2170_v7 }
 0x423   :  { %v2545_v43 = vpop.f32.mrf.mxu0  ;;  %4457 = vmatpush1.bf16.msra.mxu0 %v9066_v50 }
 0x424   :  { %v2812_v29 = vadd.f32 %v11793_v3, %v2741_v38  ;;  %v2677_v55 = vadd.f32 %v2545_v43, %v2171_v20  ;;  %v2875_v4 = vmax.f32 %v2843_v52, 0.0  ;;  %4458 = vmatprep.subr.bf16.mxu0 %v9071_v16  ;;  %v12145_v20 = vpop.f32.mrf.mxu1  ;;  %v9078_v16 = vld [vmem:[%s14925_s2 + $0x198] ss:$8 sps:$4 sm:$0xff]  }
 0x425   :  { %v2547_v5 = vpop.f32.mrf.mxu0 }
 0x426   :  { %v2742_v57 = vmax.f32 %v2676_v35, %v2677_v55  ;;  %v2958_v32 = vpop.permute.xlu1 %2957  ;;  %v2844_v61 = vmax.f32 %v2808_v8, %v2812_v29  ;;  %2907 = vst [vmem:[%s14927_s13 + $0xe0] sm:$0xff] %v2875_v4  ;;  %v2678_v13 = vadd.f32 %v2547_v5, %v2172_v12  ;;  %v12147_v38 = vpop.f32.mrf.mxu1 }
 0x427   :  { %v2990_v63 = vsel %vm361_vm3, 0, %v2958_v32  ;;  %v2549_v62 = vpop.f32.mrf.mxu0  ;;  %4459 = vmatpush1.bf16.msra.mxu0 %v9069_v60 }
 0x428   :  { %v2813_v26 = vadd.f32 %v11793_v3, %v2742_v57  ;;  %v12068_v44 = vsel %vm3007_vm5, %v2990_v63, 0  ;;  %v2679_v51 = vadd.f32 %v2549_v62, %v2173_v9  ;;  %v2876_v59 = vmax.f32 %v2844_v61, 0.0  ;;  %v12149_v52 = vpop.f32.mrf.mxu1  ;;  %v9059_v9 = vld [vmem:[%s14925_s2 + $0x1cc] ss:$8 sps:$4 sm:$0xff]   ;;  %v9074_v61 = vld [vmem:[%s14925_s2 + $0x1bc] ss:$8 sps:$4 sm:$0xff]  }
 0x429   :  { %8120 = vmatmul.mubr.msk.bf16.gmra.mxu1 %vm3130_vm6, %v12068_v44  ;;  %8195 = vmatmul.mubr.msk.bf16.gmra.mxu0 %vm3130_vm6, %v12068_v44  ;;  %v9077_v62 = vld [vmem:[%s14925_s2 + $0x1ac] ss:$8 sps:$4 sm:$0xff]  }
 0x42a   :  { %v2743_v1 = vmax.f32 %v2678_v13, %v2679_v51  ;;  %v2925_v41 = vpack.c.bf16 %v2876_v59, %v2875_v4  ;;  %2908 = vst [vmem:[%s14927_s13 + $0xe8] sm:$0xff] %v2876_v59  ;;  %v2845_v2 = vmax.f32 %v2809_v6, %v2813_v26  ;;  %3300 = vmatprep.mubr.bf16.mxu1 %v14958_v47  ;;  %v12155_v48 = vpop.f32.mrf.mxu1  ;;  %v9072_v13 = vld [vmem:[%s14925_s2 + $0x1b8] ss:$8 sps:$4 sm:$0xff]   ;;  %v9075_v26 = vld [vmem:[%s14925_s2 + $0x1a8] ss:$8 sps:$4 sm:$0xff]  }
 0x42b   :  { %3848 = vmatprep.mubr.bf16.mxu0 %v14958_v47  ;;  %v9080_v59 = vld [vmem:[%s14925_s2 + $0x19c] ss:$8 sps:$4 sm:$0xff]  }
 0x42c   :  { %v2814_v36 = vadd.f32 %v11793_v3, %v2743_v1  ;;  %2971 = vrot.lane.b32.xlu0 %v2925_v41, %s9484_s17  ;;  %v2877_v33 = vmax.f32 %v2845_v2, 0.0  ;;  %v12163_v29 = vpop.f32.mrf.mxu1 }
 0x42e   :  { %v2846_v46 = vmax.f32 %v2810_v53, %v2814_v36  ;;  %2909 = vst [vmem:[%s14927_s13 + $0xf0] sm:$0xff] %v2877_v33  ;;  %v12169_v24 = vpop.f32.mrf.mxu1  ;;  %v9083_v36 = vld [vmem:[%s14925_s2 + $0x18c] ss:$8 sps:$4 sm:$0xff]  }
 0x430   :  { %v2878_v19 = vmax.f32 %v2846_v46, 0.0  ;;  %v9081_v46 = vld [vmem:[%s14925_s2 + $0x188] ss:$8 sps:$4 sm:$0xff]  }
 0x432   :  { %v2926_v40 = vpack.c.bf16 %v2878_v19, %v2877_v33  ;;  %2910 = vst [vmem:[%s14927_s13 + $0xf8] sm:$0xff] %v2878_v19  ;;  %v9086_v19 = vld [vmem:[%s14925_s2 + $0x17c] ss:$8 sps:$4 sm:$0xff]  }
 0x434   :  { %2973 = vrot.lane.b32.xlu1 %v2926_v40, %s9484_s17 }
 0x43e   :  { %v2960_v3 = vpop.permute.xlu0 %2959 }
 0x43f   :  { %v2992_v0 = vsel %vm361_vm3, 0, %v2960_v3 }
 0x440   :  { %v12103_v56 = vsel %vm3007_vm5, %v2992_v0, 0 }
 0x441   :  { %8121 = vmatmul.mubr.msk.bf16.gmra.mxu1 %vm3130_vm6, %v12103_v56  ;;  %8196 = vmatmul.mubr.msk.bf16.gmra.mxu0 %vm3130_vm6, %v12103_v56 }
 0x442   :  { %3310 = vmatprep.mubr.bf16.mxu1 %v14958_v47  ;;  %3858 = vmatprep.mubr.bf16.mxu0 %v14958_v47 }
 0x446   :  { %v2962_v49 = vpop.permute.xlu1 %2961 }
 0x447   :  { %v2994_v31 = vsel %vm361_vm3, 0, %v2962_v49 }
 0x448   :  { %v12113_v37 = vsel %vm3007_vm5, %v2994_v31, 0  ;;  %v9084_v31 = vld [vmem:[%s14925_s2 + $0x178] ss:$8 sps:$4 sm:$0xff]  }
 0x449   :  { %8122 = vmatmul.mubr.msk.bf16.gmra.mxu1 %vm3130_vm6, %v12113_v37  ;;  %8197 = vmatmul.mubr.msk.bf16.gmra.mxu0 %vm3130_vm6, %v12113_v37 }
 0x44a   :  { %3320 = vmatprep.mubr.bf16.mxu1 %v14958_v47  ;;  %3868 = vmatprep.mubr.bf16.mxu0 %v14958_v47 }
 0x45e   :  { %v2964_v30 = vpop.permute.xlu0 %2963 }
 0x45f   :  { %v2996_v17 = vsel %vm361_vm3, 0, %v2964_v30 }
 0x460   :  { %v12123_v28 = vsel %vm3007_vm5, %v2996_v17, 0  ;;  %v9089_v17 = vld [vmem:[%s14925_s2 + $0x16c] ss:$8 sps:$4 sm:$0xff]  }
 0x461   :  { %8123 = vmatmul.mubr.msk.bf16.gmra.mxu1 %vm3130_vm6, %v12123_v28  ;;  %8198 = vmatmul.mubr.msk.bf16.gmra.mxu0 %vm3130_vm6, %v12123_v28 }
 0x462   :  { %3330 = vmatprep.mubr.bf16.mxu1 %v14958_v47  ;;  %3878 = vmatprep.mubr.bf16.mxu0 %v14958_v47 }
 0x466   :  { %v2966_v10 = vpop.permute.xlu1 %2965 }
 0x467   :  { %v2998_v7 = vsel %vm361_vm3, 0, %v2966_v10 }
 0x468   :  { %v12133_v27 = vsel %vm3007_vm5, %v2998_v7, 0 }
 0x469   :  { %8124 = vmatmul.mubr.msk.bf16.gmra.mxu1 %vm3130_vm6, %v12133_v27  ;;  %8199 = vmatmul.mubr.msk.bf16.gmra.mxu0 %vm3130_vm6, %v12133_v27 }
 0x46a   :  { %3340 = vmatprep.mubr.bf16.mxu1 %v14958_v47  ;;  %3888 = vmatprep.mubr.bf16.mxu0 %v14958_v47 }
 0x47e   :  { %v2968_v18 = vpop.permute.xlu0 %2967 }
 0x47f   :  { %v3000_v8 = vsel %vm361_vm3, 0, %v2968_v18 }
 0x480   :  { %v12153_v43 = vsel %vm3007_vm5, %v3000_v8, 0  ;;  %v9087_v8 = vld [vmem:[%s14925_s2 + $0x168] ss:$8 sps:$4 sm:$0xff]  }
 0x481   :  { %8125 = vmatmul.mubr.msk.bf16.gmra.mxu1 %vm3130_vm6, %v12153_v43  ;;  %8200 = vmatmul.mubr.msk.bf16.gmra.mxu0 %vm3130_vm6, %v12153_v43  ;;  %v12179_v12 = vpop.f32.mrf.mxu1  ;;  %v12181_v5 = vpop.f32.mrf.mxu0 }
 0x482   :  { %3350 = vmatprep.mubr.bf16.mxu1 %v14958_v47  ;;  %3898 = vmatprep.mubr.bf16.mxu0 %v14958_v47 }
 0x483   :  { %v12187_v57 = vpop.f32.mrf.mxu1  ;;  %v12194_v32 = vpop.f32.mrf.mxu0 }
 0x485   :  { %v12199_v6 = vpop.f32.mrf.mxu1  ;;  %v12204_v63 = vpop.f32.mrf.mxu0 }
 0x486   :  { %v2970_v35 = vpop.permute.xlu1 %2969 }
 0x487   :  { %v3002_v55 = vsel %vm361_vm3, 0, %v2970_v35  ;;  %v12209_v54 = vpop.f32.mrf.mxu1  ;;  %v12216_v51 = vpop.f32.mrf.mxu0 }
 0x488   :  { %v12167_v4 = vsel %vm3007_vm5, %v3002_v55, 0 }
 0x489   :  { %8126 = vmatmul.mubr.msk.bf16.gmra.mxu1 %vm3130_vm6, %v12167_v4  ;;  %8201 = vmatmul.mubr.msk.bf16.gmra.mxu0 %vm3130_vm6, %v12167_v4  ;;  %v12221_v50 = vpop.f32.mrf.mxu1  ;;  %v12223_v41 = vpop.f32.mrf.mxu0 }
 0x48a   :  { %3474 = vmatprep.mubr.bf16.mxu1 %v14958_v47  ;;  %3908 = vmatprep.mubr.bf16.mxu0 %v14958_v47 }
 0x48b   :  { %v12235_v33 = vpop.f32.mrf.mxu1  ;;  %v12242_v60 = vpop.f32.mrf.mxu0 }
 0x48d   :  { %v12250_v40 = vpop.f32.mrf.mxu1  ;;  %v12252_v0 = vpop.f32.mrf.mxu0 }
 0x48f   :  { %v12264_v10 = vpop.f32.mrf.mxu1  ;;  %v12271_v7 = vpop.f32.mrf.mxu0 }
 0x490   :  { %15453 = vst [vmem:[#allocation10_spill] sm:$0xff] %v12264_v10 }
 0x491   :  { %3475 = vmatmul.mubr.bf16.vlgmr.msra.gmra.mxu1 %v14958_v47 }
 0x492   :  { %4091 = vmatpush1.bf16.msra.mxu1 %v4085_v14  ;;  %3484 = vmatprep.mubr.bf16.mxu1 %v14958_v47 }
 0x493   :  { %4092 = vmatprep.subr.bf16.mxu1 %v9059_v9 }
 0x496   :  { %4093 = vmatpush1.bf16.msra.mxu1 %v9057_v11 }
 0x497   :  { %4094 = vmatprep.subr.bf16.mxu1 %v9074_v61 }
 0x499   :  { %3485 = vmatmul.mubr.bf16.gmra.mxu1 %v14958_v47 }
 0x49a   :  { %3494 = vmatprep.mubr.bf16.mxu1 %v14958_v47  ;;  %4095 = vmatpush1.bf16.msra.mxu1 %v9072_v13 }
 0x49b   :  { %4096 = vmatprep.subr.bf16.mxu1 %v9077_v62 }
 0x49e   :  { %v2972_v1 = vpop.permute.xlu0 %2971  ;;  %4097 = vmatpush1.bf16.msra.mxu1 %v9075_v26 }
 0x49f   :  { %v3004_v2 = vsel %vm361_vm3, 0, %v2972_v1  ;;  %4098 = vmatprep.subr.bf16.mxu1 %v9080_v59 }
 0x4a0   :  { %v12230_v53 = vsel %vm3007_vm5, %v3004_v2, 0 }
 0x4a1   :  { %3495 = vmatmul.mubr.bf16.gmra.mxu1 %v14958_v47  ;;  %8202 = vmatmul.mubr.msk.bf16.gmra.mxu0 %vm3130_vm6, %v12230_v53  ;;  %v12273_v18 = vpop.f32.mrf.mxu1  ;;  %v12278_v35 = vpop.f32.mrf.mxu0 }
 0x4a2   :  { %3504 = vmatprep.mubr.bf16.mxu1 %v14958_v47  ;;  %3918 = vmatprep.mubr.bf16.mxu0 %v14958_v47  ;;  %15454 = vst [vmem:[#allocation3_spill] sm:$0xff] %v12273_v18 }
 0x4a3   :  { %4099 = vmatpush1.bf16.msra.mxu1 %v9078_v16  ;;  %v12280_v55 = vpop.f32.mrf.mxu1  ;;  %v12282_v39 = vpop.f32.mrf.mxu0 }
 0x4a4   :  { %4100 = vmatprep.subr.bf16.mxu1 %v9083_v36  ;;  %15455 = vst [vmem:[#allocation11_spill] sm:$0xff] %v12280_v55 }
 0x4a5   :  { %v12290_v14 = vpop.f32.mrf.mxu1  ;;  %v12292_v9 = vpop.f32.mrf.mxu0 }
 0x4a6   :  { %v2974_v3 = vpop.permute.xlu1 %2973  ;;  %15456 = vst [vmem:[#allocation4_spill] sm:$0xff] %v12290_v14 }
 0x4a7   :  { %v3006_v49 = vsel %vm361_vm3, 0, %v2974_v3  ;;  %4101 = vmatpush1.bf16.msra.mxu1 %v9081_v46  ;;  %v12294_v11 = vpop.f32.mrf.mxu1  ;;  %v12296_v61 = vpop.f32.mrf.mxu0 }
 0x4a8   :  { %v12259_v30 = vsel %vm3007_vm5, %v3006_v49, 0  ;;  %4102 = vmatprep.subr.bf16.mxu1 %v9086_v19  ;;  %15457 = vst [vmem:[#allocation12_spill] sm:$0xff] %v12294_v11 }
 0x4a9   :  { %3505 = vmatmul.mubr.bf16.gmra.mxu1 %v14958_v47  ;;  %8203 = vmatmul.mubr.msk.bf16.gmra.mxu0 %vm3130_vm6, %v12259_v30  ;;  %v12306_v13 = vpop.f32.mrf.mxu0 }
 0x4aa   :  { %3514 = vmatprep.mubr.bf16.mxu1 %v14958_v47  ;;  %4476 = vmatprep.mubr.bf16.mxu0 %v14958_v47  ;;  %15459 = vst [vmem:[#allocation34_spill] sm:$0xff] %v12306_v13 }
 0x4ab   :  { %4103 = vmatpush1.bf16.msra.mxu1 %v9084_v31  ;;  %v12310_v26 = vpop.f32.mrf.mxu0 }
 0x4ac   :  { %4104 = vmatprep.subr.bf16.mxu1 %v9089_v17  ;;  %15461 = vst [vmem:[#allocation37_spill] sm:$0xff] %v12310_v26 }
 0x4ad   :  { %v12320_v59 = vpop.f32.mrf.mxu0 }
 0x4ae   :  { %15463 = vst [vmem:[#allocation14_spill] sm:$0xff] %v12320_v59 }
 0x4af   :  { %4105 = vmatpush1.bf16.msra.mxu1 %v9087_v8  ;;  %v12324_v2 = vpop.f32.mrf.mxu0 }
 0x4b0   :  { %15465 = vst [vmem:[#allocation15_spill] sm:$0xff] %v12324_v2 }
 0x4b1   :  { %8144 = vmatmul.mubr.msk.bf16.gmra.mxu1 %vm3130_vm6, %v11655_v15  ;;  %8282 = vmatmul.mubr.msk.bf16.vlgmr.msra.gmra.mxu0 %vm3130_vm6, %v11887_v45  ;;  %v12304_v15 = vpop.f32.mrf.mxu1 }
 0x4b2   :  { %3524 = vmatprep.mubr.bf16.mxu1 %v14958_v47  ;;  %4486 = vmatprep.mubr.bf16.mxu0 %v14958_v47  ;;  %15458 = vst [vmem:[#allocation5_spill] sm:$0xff] %v12304_v15 }
 0x4b3   :  { %v12308_v62 = vpop.f32.mrf.mxu1 }
 0x4b4   :  { %15460 = vst [vmem:[#allocation13_spill] sm:$0xff] %v12308_v62 }
 0x4b9   :  { %8145 = vmatmul.mubr.msk.bf16.gmra.mxu1 %vm3130_vm6, %v11690_v21  ;;  %8283 = vmatmul.mubr.msk.bf16.gmra.mxu0 %vm3130_vm6, %v11922_v42  ;;  %v12318_v21 = vpop.f32.mrf.mxu1 }
 0x4ba   :  { %3534 = vmatprep.mubr.bf16.mxu1 %v14958_v47  ;;  %4496 = vmatprep.mubr.bf16.mxu0 %v14958_v47  ;;  %15462 = vst [vmem:[#allocation6_spill] sm:$0xff] %v12318_v21 }
 0x4bb   :  { %v12322_v1 = vpop.f32.mrf.mxu1 }
 0x4bc   :  { %15464 = vst [vmem:[#allocation7_spill] sm:$0xff] %v12322_v1 }
 0x4c1   :  { %8146 = vmatmul.mubr.msk.bf16.gmra.mxu1 %vm3130_vm6, %v11769_v58  ;;  %8284 = vmatmul.mubr.msk.bf16.gmra.mxu0 %vm3130_vm6, %v12029_v23  ;;  %v12326_v16 = vpop.f32.mrf.mxu1  ;;  %v12334_v36 = vpop.f32.mrf.mxu0 }
 0x4c2   :  { %3544 = vmatprep.mubr.bf16.mxu1 %v14958_v47  ;;  %4506 = vmatprep.mubr.bf16.mxu0 %v14958_v47  ;;  %15466 = vst [vmem:[#allocation46_spill] sm:$0xff] %v12326_v16  ;;  %15467 = vst [vmem:[#allocation8_spill] sm:$0xff] %v12334_v36 }
 0x4c3   :  { %v12336_v46 = vpop.f32.mrf.mxu1  ;;  %v12338_v19 = vpop.f32.mrf.mxu0 }
 0x4c4   :  { %15468 = vst [vmem:[#allocation16_spill] sm:$0xff] %v12336_v46  ;;  %15469 = vst [vmem:[#allocation51_spill] sm:$0xff] %v12338_v19 }
 0x4c5   :  { %v12340_v3 = vpop.f32.mrf.mxu1  ;;  %v12348_v49 = vpop.f32.mrf.mxu0 }
 0x4c6   :  { %15470 = vst [vmem:[#allocation17_spill] sm:$0xff] %v12340_v3  ;;  %15471 = vst [vmem:[#allocation18_spill] sm:$0xff] %v12348_v49 }
 0x4c7   :  { %v12350_v31 = vpop.f32.mrf.mxu1  ;;  %v12352_v17 = vpop.f32.mrf.mxu0 }
 0x4c8   :  { %15472 = vst [vmem:[#allocation19_spill] sm:$0xff] %v12350_v31  ;;  %15473 = vst [vmem:[#allocation58_spill] sm:$0xff] %v12352_v17 }
 0x4c9   :  { %8147 = vmatmul.mubr.msk.bf16.gmra.mxu1 %vm3130_vm6, %v11811_v22  ;;  %8285 = vmatmul.mubr.msk.bf16.gmra.mxu0 %vm3130_vm6, %v12068_v44  ;;  %v12354_v8 = vpop.f32.mrf.mxu1  ;;  %v12362_v1 = vpop.f32.mrf.mxu0 }
 0x4ca   :  { %3554 = vmatprep.mubr.bf16.mxu1 %v14958_v47  ;;  %4516 = vmatprep.mubr.bf16.mxu0 %v14958_v47  ;;  %15474 = vst [vmem:[#allocation20_spill] sm:$0xff] %v12354_v8  ;;  %15475 = vst [vmem:[#allocation61_spill] sm:$0xff] %v12362_v1 }
 0x4cb   :  { %v12364_v21 = vpop.f32.mrf.mxu1  ;;  %v12366_v49 = vpop.f32.mrf.mxu0 }
 0x4cc   :  { %15476 = vst [vmem:[#allocation21_spill] sm:$0xff] %v12364_v21  ;;  %15477 = vst [vmem:[#allocation22_spill] sm:$0xff] %v12366_v49 }
 0x4cd   :  { %v12368_v31 = vpop.f32.mrf.mxu1  ;;  %v12376_v8 = vpop.f32.mrf.mxu0 }
 0x4ce   :  { %15478 = vst [vmem:[#allocation66_spill] sm:$0xff] %v12368_v31  ;;  %15479 = vst [vmem:[#allocation23_spill] sm:$0xff] %v12376_v8 }
 0x4cf   :  { %v12378_v3 = vpop.f32.mrf.mxu1  ;;  %v12380_v17 = vpop.f32.mrf.mxu0 }
 0x4d0   :  { %15480 = vst [vmem:[#allocation24_spill] sm:$0xff] %v12378_v3  ;;  %15481 = vst [vmem:[#allocation71_spill] sm:$0xff] %v12380_v17 }
 0x4d1   :  { %8148 = vmatmul.mubr.msk.bf16.gmra.mxu1 %vm3130_vm6, %v11887_v45  ;;  %8286 = vmatmul.mubr.msk.bf16.gmra.mxu0 %vm3130_vm6, %v12103_v56 }
 0x4d2   :  { %3564 = vmatprep.mubr.bf16.mxu1 %v14958_v47  ;;  %4526 = vmatprep.mubr.bf16.mxu0 %v14958_v47 }
 0x4d9   :  { %8149 = vmatmul.mubr.msk.bf16.gmra.mxu1 %vm3130_vm6, %v11922_v42  ;;  %8287 = vmatmul.mubr.msk.bf16.gmra.mxu0 %vm3130_vm6, %v12113_v37 }
 0x4da   :  { %3574 = vmatprep.mubr.bf16.mxu1 %v14958_v47  ;;  %4536 = vmatprep.mubr.bf16.mxu0 %v14958_v47 }
 0x4e1   :  { %8150 = vmatmul.mubr.msk.bf16.gmra.mxu1 %vm3130_vm6, %v12029_v23  ;;  %8288 = vmatmul.mubr.msk.bf16.gmra.mxu0 %vm3130_vm6, %v12123_v28  ;;  %v12382_v21 = vpop.f32.mrf.mxu1  ;;  %v12384_v46 = vpop.f32.mrf.mxu0 }
 0x4e2   :  { %3584 = vmatprep.mubr.bf16.mxu1 %v14958_v47  ;;  %4546 = vmatprep.mubr.bf16.mxu0 %v14958_v47  ;;  %15482 = vst [vmem:[#allocation25_spill] sm:$0xff] %v12382_v21  ;;  %15483 = vst [vmem:[#allocation26_spill] sm:$0xff] %v12384_v46 }
 0x4e3   :  { %v12392_v31 = vpop.f32.mrf.mxu1  ;;  %v12394_v8 = vpop.f32.mrf.mxu0 }
 0x4e4   :  { %15484 = vst [vmem:[#allocation27_spill] sm:$0xff] %v12392_v31  ;;  %15485 = vst [vmem:[#allocation78_spill] sm:$0xff] %v12394_v8 }
 0x4e5   :  { %v12396_v3 = vpop.f32.mrf.mxu1  ;;  %v12398_v17 = vpop.f32.mrf.mxu0 }
 0x4e6   :  { %15486 = vst [vmem:[#allocation28_spill] sm:$0xff] %v12396_v3  ;;  %15487 = vst [vmem:[#allocation81_spill] sm:$0xff] %v12398_v17 }
 0x4e7   :  { %v12406_v21 = vpop.f32.mrf.mxu1  ;;  %v12408_v46 = vpop.f32.mrf.mxu0 }
 0x4e8   :  { %15488 = vst [vmem:[#allocation29_spill] sm:$0xff] %v12406_v21  ;;  %15489 = vst [vmem:[#allocation30_spill] sm:$0xff] %v12408_v46 }
 0x4e9   :  { %8151 = vmatmul.mubr.msk.bf16.gmra.mxu1 %vm3130_vm6, %v12068_v44  ;;  %8289 = vmatmul.mubr.msk.bf16.gmra.mxu0 %vm3130_vm6, %v12133_v27  ;;  %v12410_v31 = vpop.f32.mrf.mxu1  ;;  %v12412_v8 = vpop.f32.mrf.mxu0 }
 0x4ea   :  { %3594 = vmatprep.mubr.bf16.mxu1 %v14958_v47  ;;  %4556 = vmatprep.mubr.bf16.mxu0 %v14958_v47  ;;  %15490 = vst [vmem:[#allocation86_spill] sm:$0xff] %v12410_v31  ;;  %15491 = vst [vmem:[#allocation31_spill] sm:$0xff] %v12412_v8 }
 0x4eb   :  { %v12420_v3 = vpop.f32.mrf.mxu1  ;;  %v12422_v17 = vpop.f32.mrf.mxu0 }
 0x4ec   :  { %15492 = vst [vmem:[#allocation32_spill] sm:$0xff] %v12420_v3  ;;  %15493 = vst [vmem:[#allocation91_spill] sm:$0xff] %v12422_v17 }
 0x4ed   :  { %v12424_v21 = vpop.f32.mrf.mxu1  ;;  %v12426_v46 = vpop.f32.mrf.mxu0 }
 0x4ee   :  { %15494 = vst [vmem:[#allocation33_spill] sm:$0xff] %v12424_v21  ;;  %15495 = vst [vmem:[#allocation35_spill] sm:$0xff] %v12426_v46 }
 0x4ef   :  { %v12434_v31 = vpop.f32.mrf.mxu1  ;;  %v12436_v8 = vpop.f32.mrf.mxu0 }
 0x4f0   :  { %15496 = vst [vmem:[#allocation36_spill] sm:$0xff] %v12434_v31  ;;  %15497 = vst [vmem:[#allocation125_spill] sm:$0xff] %v12436_v8 }
 0x4f1   :  { %8152 = vmatmul.mubr.msk.bf16.gmra.mxu1 %vm3130_vm6, %v12103_v56  ;;  %8290 = vmatmul.mubr.msk.bf16.gmra.mxu0 %vm3130_vm6, %v12153_v43 }
 0x4f2   :  { %3604 = vmatprep.mubr.bf16.mxu1 %v14958_v47  ;;  %4566 = vmatprep.mubr.bf16.mxu0 %v14958_v47 }
 0x4f9   :  { %8153 = vmatmul.mubr.msk.bf16.gmra.mxu1 %vm3130_vm6, %v12113_v37  ;;  %8291 = vmatmul.mubr.msk.bf16.gmra.mxu0 %vm3130_vm6, %v12167_v4 }
 0x4fa   :  { %3614 = vmatprep.mubr.bf16.mxu1 %v14958_v47  ;;  %4576 = vmatprep.mubr.bf16.mxu0 %v14958_v47 }
 0x501   :  { %8154 = vmatmul.mubr.msk.bf16.gmra.mxu1 %vm3130_vm6, %v12123_v28  ;;  %8292 = vmatmul.mubr.msk.bf16.gmra.mxu0 %vm3130_vm6, %v12230_v53  ;;  %v12438_v3 = vpop.f32.mrf.mxu1  ;;  %v12440_v17 = vpop.f32.mrf.mxu0 }
 0x502   :  { %3624 = vmatprep.mubr.bf16.mxu1 %v14958_v47  ;;  %4586 = vmatprep.mubr.bf16.mxu0 %v14958_v47  ;;  %15498 = vst [vmem:[#allocation38_spill] sm:$0xff] %v12438_v3  ;;  %15499 = vst [vmem:[#allocation126_spill] sm:$0xff] %v12440_v17 }
 0x503   :  { %v12442_v21 = vpop.f32.mrf.mxu1  ;;  %v12450_v46 = vpop.f32.mrf.mxu0 }
 0x504   :  { %15500 = vst [vmem:[#allocation39_spill] sm:$0xff] %v12442_v21  ;;  %15501 = vst [vmem:[#allocation40_spill] sm:$0xff] %v12450_v46 }
 0x505   :  { %v12452_v31 = vpop.f32.mrf.mxu1  ;;  %v12454_v8 = vpop.f32.mrf.mxu0 }
 0x506   :  { %15502 = vst [vmem:[#allocation127_spill] sm:$0xff] %v12452_v31  ;;  %15503 = vst [vmem:[#allocation41_spill] sm:$0xff] %v12454_v8 }
 0x507   :  { %v12456_v3 = vpop.f32.mrf.mxu1  ;;  %v12463_v21 = vpop.f32.mrf.mxu0 }
 0x508   :  { %15504 = vst [vmem:[#allocation42_spill] sm:$0xff] %v12456_v3  ;;  %15505 = vst [vmem:[#allocation128_spill] sm:$0xff] %v12463_v21 }
 0x509   :  { %8155 = vmatmul.mubr.msk.bf16.gmra.mxu1 %vm3130_vm6, %v12133_v27  ;;  %8293 = vmatmul.mubr.msk.bf16.gmra.mxu0 %vm3130_vm6, %v12259_v30  ;;  %v12465_v17 = vpop.f32.mrf.mxu1  ;;  %v12467_v46 = vpop.f32.mrf.mxu0 }
 0x50a   :  { %4122 = vmatprep.mubr.bf16.mxu1 %v14958_v47  ;;  %4596 = vmatprep.mubr.bf16.mxu0 %v14958_v47  ;;  %15506 = vst [vmem:[#allocation43_spill] sm:$0xff] %v12465_v17  ;;  %15507 = vst [vmem:[#allocation129_spill] sm:$0xff] %v12467_v46 }
 0x50b   :  { %v12469_v31 = vpop.f32.mrf.mxu1 }
 0x50c   :  { %15508 = vst [vmem:[#allocation44_spill] sm:$0xff] %v12469_v31 }
 0x50d   :  { %v12478_v3 = vpop.f32.mrf.mxu1 }
 0x50e   :  { %15510 = vst [vmem:[#allocation45_spill] sm:$0xff] %v12478_v3 }
 0x50f   :  { %v12482_v17 = vpop.f32.mrf.mxu1 }
 0x510   :  { %15512 = vst [vmem:[#allocation47_spill] sm:$0xff] %v12482_v17 }
 0x511   :  { %8236 = vmatmul.mubr.msk.bf16.vlgmr.msra.gmra.mxu1 %vm3130_vm6, %v11769_v58  ;;  %4597 = vmatmul.mubr.bf16.gmra.mxu0 %v14958_v47  ;;  %v12476_v58 = vpop.f32.mrf.mxu0 }
 0x512   :  { %4132 = vmatprep.mubr.bf16.mxu1 %v14958_v47  ;;  %4606 = vmatprep.mubr.bf16.mxu0 %v14958_v47  ;;  %15509 = vst [vmem:[#allocation130_spill] sm:$0xff] %v12476_v58 }
 0x513   :  { %v12480_v8 = vpop.f32.mrf.mxu0 }
 0x514   :  { %15511 = vst [vmem:[#allocation131_spill] sm:$0xff] %v12480_v8 }
 0x519   :  { %8237 = vmatmul.mubr.msk.bf16.gmra.mxu1 %vm3130_vm6, %v11811_v22  ;;  %4607 = vmatmul.mubr.bf16.gmra.mxu0 %v14958_v47  ;;  %v12489_v22 = vpop.f32.mrf.mxu0 }
 0x51a   :  { %4142 = vmatprep.mubr.bf16.mxu1 %v14958_v47  ;;  %4616 = vmatprep.mubr.bf16.mxu0 %v14958_v47  ;;  %15513 = vst [vmem:[#allocation48_spill] sm:$0xff] %v12489_v22 }
 0x521   :  { %8238 = vmatmul.mubr.msk.bf16.gmra.mxu1 %vm3130_vm6, %v11887_v45  ;;  %4617 = vmatmul.mubr.bf16.gmra.mxu0 %v14958_v47  ;;  %v12491_v31 = vpop.f32.mrf.mxu1  ;;  %v12493_v21 = vpop.f32.mrf.mxu0 }
 0x522   :  { %4152 = vmatprep.mubr.bf16.mxu1 %v14958_v47  ;;  %4626 = vmatprep.mubr.bf16.mxu0 %v14958_v47  ;;  %15514 = vst [vmem:[#allocation49_spill] sm:$0xff] %v12491_v31  ;;  %15515 = vst [vmem:[#allocation50_spill] sm:$0xff] %v12493_v21 }
 0x523   :  { %v12495_v3 = vpop.f32.mrf.mxu1  ;;  %v12497_v8 = vpop.f32.mrf.mxu0 }
 0x524   :  { %15516 = vst [vmem:[#allocation52_spill] sm:$0xff] %v12495_v3  ;;  %15517 = vst [vmem:[#allocation53_spill] sm:$0xff] %v12497_v8 }
 0x525   :  { %v12504_v45 = vpop.f32.mrf.mxu1  ;;  %v12506_v17 = vpop.f32.mrf.mxu0 }
 0x526   :  { %15518 = vst [vmem:[#allocation54_spill] sm:$0xff] %v12504_v45  ;;  %15519 = vst [vmem:[#allocation55_spill] sm:$0xff] %v12506_v17 }
 0x527   :  { %v12508_v31 = vpop.f32.mrf.mxu1  ;;  %v12510_v22 = vpop.f32.mrf.mxu0 }
 0x528   :  { %15520 = vst [vmem:[#allocation56_spill] sm:$0xff] %v12508_v31  ;;  %15521 = vst [vmem:[#allocation124_spill] sm:$0xff] %v12510_v22 }
 0x529   :  { %8239 = vmatmul.mubr.msk.bf16.gmra.mxu1 %vm3130_vm6, %v11922_v42  ;;  %4627 = vmatmul.mubr.bf16.gmra.mxu0 %v14958_v47  ;;  %v12515_v42 = vpop.f32.mrf.mxu1  ;;  %v12517_v3 = vpop.f32.mrf.mxu0 }
 0x52a   :  { %4162 = vmatprep.mubr.bf16.mxu1 %v14958_v47  ;;  %5509 = vmatprep.mubr.bf16.mxu0 %v14958_v47  ;;  %15522 = vst [vmem:[#allocation57_spill] sm:$0xff] %v12515_v42  ;;  %15523 = vst [vmem:[#allocation9_spill] sm:$0xff] %v12517_v3 }
 0x52b   :  { %v12519_v8 = vpop.f32.mrf.mxu1  ;;  %v12521_v21 = vpop.f32.mrf.mxu0 }
 0x52c   :  { %15524 = vst [vmem:[#allocation59_spill] sm:$0xff] %v12519_v8  ;;  %15525 = vst [vmem:[#allocation2_spill] sm:$0xff] %v12521_v21 }
 0x52d   :  { %v12526_v45 = vpop.f32.mrf.mxu1  ;;  %v12528_v31 = vpop.f32.mrf.mxu0 }
 0x52e   :  { %15526 = vst [vmem:[#allocation60_spill] sm:$0xff] %v12526_v45  ;;  %15527 = vst [vmem:[#allocation62_spill] sm:$0xff] %v12528_v31 }
 0x52f   :  { %v12532_v22 = vpop.f32.mrf.mxu0 }
 0x530   :  { %15529 = vst [vmem:[#allocation64_spill] sm:$0xff] %v12532_v22 }
 0x531   :  { %8240 = vmatmul.mubr.msk.bf16.gmra.mxu1 %vm3130_vm6, %v12029_v23  ;;  %v12530_v23 = vpop.f32.mrf.mxu1 }
 0x532   :  { %4172 = vmatprep.mubr.bf16.mxu1 %v14958_v47  ;;  %15528 = vst [vmem:[#allocation63_spill] sm:$0xff] %v12530_v23 }
 0x539   :  { %8241 = vmatmul.mubr.msk.bf16.gmra.mxu1 %vm3130_vm6, %v12068_v44 }
 0x53a   :  { %4182 = vmatprep.mubr.bf16.mxu1 %v14958_v47 }
 0x541   :  { %v12534_v42 = vpop.f32.mrf.mxu1  ;;  %8242 = vmatmul.mubr.msk.bf16.gmra.mxu1 %vm3130_vm6, %v12103_v56  ;;  %v12539_v8 = vpop.f32.mrf.mxu0 }
 0x542   :  { %15530 = vst [vmem:[#allocation65_spill] sm:$0xff] %v12534_v42  ;;  %4192 = vmatprep.mubr.bf16.mxu1 %v14958_v47  ;;  %15531 = vst [vmem:[#allocation67_spill] sm:$0xff] %v12539_v8 }
 0x543   :  { %v12541_v44 = vpop.f32.mrf.mxu1  ;;  %v12545_v45 = vpop.f32.mrf.mxu0 }
 0x544   :  { %15532 = vst [vmem:[#allocation68_spill] sm:$0xff] %v12541_v44  ;;  %15534 = vst [vmem:[#allocation70_spill] sm:$0xff] %v12545_v45 }
 0x545   :  { %v12543_v21 = vpop.f32.mrf.mxu1  ;;  %v12554_v56 = vpop.f32.mrf.mxu0 }
 0x546   :  { %15533 = vst [vmem:[#allocation69_spill] sm:$0xff] %v12543_v21  ;;  %15537 = vst [vmem:[#allocation74_spill] sm:$0xff] %v12554_v56 }
 0x547   :  { %v12547_v31 = vpop.f32.mrf.mxu1  ;;  %v12560_v44 = vpop.f32.mrf.mxu0 }
 0x548   :  { %15535 = vst [vmem:[#allocation72_spill] sm:$0xff] %v12547_v31  ;;  %15540 = vst [vmem:[#allocation77_spill] sm:$0xff] %v12560_v44 }
 0x549   :  { %v12549_v23 = vpop.f32.mrf.mxu1  ;;  %8243 = vmatmul.mubr.msk.bf16.gmra.mxu1 %vm3130_vm6, %v12113_v37  ;;  %v12569_v37 = vpop.f32.mrf.mxu0 }
 0x54a   :  { %15536 = vst [vmem:[#allocation73_spill] sm:$0xff] %v12549_v23  ;;  %4202 = vmatprep.mubr.bf16.mxu1 %v14958_v47  ;;  %15542 = vst [vmem:[#allocation80_spill] sm:$0xff] %v12569_v37 }
 0x54b   :  { %v12556_v42 = vpop.f32.mrf.mxu1 }
 0x54c   :  { %15538 = vst [vmem:[#allocation75_spill] sm:$0xff] %v12556_v42  ;;  %v12575_v42 = vpop.f32.mrf.mxu0 }
 0x54d   :  { %v12558_v8 = vpop.f32.mrf.mxu1  ;;  %15543 = vst [vmem:[#allocation82_spill] sm:$0xff] %v12575_v42 }
 0x54e   :  { %15539 = vst [vmem:[#allocation76_spill] sm:$0xff] %v12558_v8 }
 0x54f   :  { %v12562_v21 = vpop.f32.mrf.mxu1 }
 0x550   :  { %15541 = vst [vmem:[#allocation79_spill] sm:$0xff] %v12562_v21 }
 0x551   :  { %v12564_v45 = vpop.f32.mrf.mxu1  ;;  %8244 = vmatmul.mubr.msk.bf16.gmra.mxu1 %vm3130_vm6, %v12123_v28  ;;  %v12584_v28 = vpop.f32.mrf.mxu0 }
 0x552   :  { %4212 = vmatprep.mubr.bf16.mxu1 %v14958_v47  ;;  %15544 = vst [vmem:[#allocation83_spill] sm:$0xff] %v12584_v28 }
 0x553   :  { %v12571_v23 = vpop.f32.mrf.mxu1  ;;  %v12590_v37 = vpop.f32.mrf.mxu0 }
 0x554   :  { %15545 = vst [vmem:[#allocation84_spill] sm:$0xff] %v12590_v37 }
 0x555   :  { %v12573_v31 = vpop.f32.mrf.mxu1 }
 0x557   :  { %v12577_v8 = vpop.f32.mrf.mxu1 }
 0x559   :  { %v12579_v56 = vpop.f32.mrf.mxu1  ;;  %8245 = vmatmul.mubr.msk.bf16.gmra.mxu1 %vm3130_vm6, %v12133_v27 }
 0x55a   :  { %4222 = vmatprep.mubr.bf16.mxu1 %v14958_v47 }
 0x55b   :  { %v12586_v21 = vpop.f32.mrf.mxu1 }
 0x55d   :  { %v12588_v44 = vpop.f32.mrf.mxu1 }
 0x55f   :  { %v12592_v22 = vpop.f32.mrf.mxu1 }
 0x561   :  { %v12594_v42 = vpop.f32.mrf.mxu1  ;;  %v12596_v3 = vpop.f32.mrf.mxu0  ;;  %8246 = vmatmul.mubr.msk.bf16.gmra.mxu1 %vm3130_vm6, %v12153_v43 }
 0x562   :  { %15546 = vst [vmem:[#allocation85_spill] sm:$0xff] %v12596_v3  ;;  %4232 = vmatprep.mubr.bf16.mxu1 %v14958_v47 }
 0x563   :  { %v12601_v27 = vpop.f32.mrf.mxu1  ;;  %v12603_v28 = vpop.f32.mrf.mxu0 }
 0x564   :  { %15547 = vst [vmem:[#allocation87_spill] sm:$0xff] %v12603_v28 }
 0x565   :  { %v12605_v17 = vpop.f32.mrf.mxu1  ;;  %v12607_v58 = vpop.f32.mrf.mxu0 }
 0x566   :  { %15548 = vst [vmem:[#allocation88_spill] sm:$0xff] %v12607_v58 }
 0x567   :  { %v12609_v37 = vpop.f32.mrf.mxu1  ;;  %v12611_v46 = vpop.f32.mrf.mxu0 }
 0x568   :  { %15549 = vst [vmem:[#allocation89_spill] sm:$0xff] %v12611_v46 }
 0x569   :  { %v12613_v14 = vpop.f32.mrf.mxu1  ;;  %v12615_v3 = vpop.f32.mrf.mxu0  ;;  %8247 = vmatmul.mubr.msk.bf16.gmra.mxu1 %vm3130_vm6, %v12167_v4 }
 0x56a   :  { %15550 = vst [vmem:[#allocation90_spill] sm:$0xff] %v12615_v3  ;;  %4242 = vmatprep.mubr.bf16.mxu1 %v14958_v47 }
 0x56b   :  { %v12620_v43 = vpop.f32.mrf.mxu1  ;;  %v12622_v28 = vpop.f32.mrf.mxu0 }
 0x56c   :  { %15551 = vst [vmem:[#allocation92_spill] sm:$0xff] %v12622_v28 }
 0x56d   :  { %v12624_v16 = vpop.f32.mrf.mxu1  ;;  %v12626_v58 = vpop.f32.mrf.mxu0 }
 0x56e   :  { %15552 = vst [vmem:[#allocation93_spill] sm:$0xff] %v12624_v16  ;;  %15553 = vst [vmem:[#allocation94_spill] sm:$0xff] %v12626_v58 }
 0x56f   :  { %v12628_v11 = vpop.f32.mrf.mxu1  ;;  %v12630_v46 = vpop.f32.mrf.mxu0 }
 0x570   :  { %15554 = vst [vmem:[#allocation95_spill] sm:$0xff] %v12628_v11  ;;  %15555 = vst [vmem:[#allocation96_spill] sm:$0xff] %v12630_v46 }
 0x571   :  { %v12632_v49 = vpop.f32.mrf.mxu1  ;;  %8248 = vmatmul.mubr.msk.bf16.gmra.mxu1 %vm3130_vm6, %v12230_v53  ;;  %v12636_v4 = vpop.f32.mrf.mxu0 }
 0x572   :  { %15556 = vst [vmem:[#allocation97_spill] sm:$0xff] %v12632_v49  ;;  %4252 = vmatprep.mubr.bf16.mxu1 %v14958_v47 }
 0x573   :  { %v12639_v3 = vpop.f32.mrf.mxu1  ;;  %v12641_v28 = vpop.f32.mrf.mxu0 }
 0x574   :  { %15557 = vst [vmem:[#allocation98_spill] sm:$0xff] %v12639_v3 }
 0x575   :  { %v12643_v1 = vpop.f32.mrf.mxu1  ;;  %v12645_v58 = vpop.f32.mrf.mxu0 }
 0x576   :  { %15558 = vst [vmem:[#allocation99_spill] sm:$0xff] %v12643_v1 }
 0x577   :  { %v12647_v62 = vpop.f32.mrf.mxu1  ;;  %v12649_v46 = vpop.f32.mrf.mxu0 }
 0x578   :  { %15559 = vst [vmem:[#allocation100_spill] sm:$0xff] %v12647_v62 }
 0x579   :  { %v12651_v15 = vpop.f32.mrf.mxu1  ;;  %8249 = vmatmul.mubr.msk.bf16.gmra.mxu1 %vm3130_vm6, %v12259_v30  ;;  %v12655_v53 = vpop.f32.mrf.mxu0  ;;  %v9090_v30 = vld [vmem:[%s14928_s3 + $0x110] ss:$8 sps:$4 sm:$0xff]  }
 0x57a   :  { %15560 = vst [vmem:[#allocation101_spill] sm:$0xff] %v12651_v15  ;;  %4262 = vmatprep.mubr.bf16.mxu1 %v14958_v47  ;;  %v9092_v15 = vld [vmem:[%s14928_s3 + $0x114] ss:$8 sps:$4 sm:$0xff]  }
 0x57b   :  { %v12658_v19 = vpop.f32.mrf.mxu1  ;;  %v12660_v36 = vpop.f32.mrf.mxu0  ;;  %5030 = vmatprep.subr.bf16.mxu1 %v9092_v15  ;;  %v9093_v15 = vld [vmem:[%s14928_s3 + $0x100] ss:$8 sps:$4 sm:$0xff]  }
 0x57c   :  { %15561 = vst [vmem:[#allocation102_spill] sm:$0xff] %v12658_v19  ;;  %5031 = vmatpush1.bf16.msra.mxu1 %v9090_v30  ;;  %v9095_v30 = vld [vmem:[%s14928_s3 + $0x104] ss:$8 sps:$4 sm:$0xff]  }
 0x57d   :  { %v12662_v1 = vpop.f32.mrf.mxu1  ;;  %v12664_v2 = vpop.f32.mrf.mxu0  ;;  %5032 = vmatprep.subr.bf16.mxu1 %v9095_v30 }
 0x57e   :  { %15562 = vst [vmem:[#allocation103_spill] sm:$0xff] %v12662_v1 }
 0x57f   :  { %v12666_v62 = vpop.f32.mrf.mxu1  ;;  %v12668_v3 = vpop.f32.mrf.mxu0 }
 0x580   :  { %15563 = vst [vmem:[#allocation104_spill] sm:$0xff] %v12666_v62  ;;  %5033 = vmatpush1.bf16.msra.mxu1 %v9093_v15  ;;  %v9096_v15 = vld [vmem:[%s14928_s3 + $0xf0] ss:$8 sps:$4 sm:$0xff]  }
 0x581   :  { %v12676_v55 = vpop.f32.mrf.mxu1  ;;  %4263 = vmatmul.mubr.bf16.gmra.mxu1 %v14958_v47  ;;  %v12679_v19 = vpop.f32.mrf.mxu0 }
 0x582   :  { %15564 = vst [vmem:[#allocation105_spill] sm:$0xff] %v12676_v55  ;;  %4272 = vmatprep.mubr.bf16.mxu1 %v14958_v47 }
 0x583   :  { %v12682_v62 = vpop.f32.mrf.mxu1  ;;  %v12684_v1 = vpop.f32.mrf.mxu0 }
 0x584   :  { %15565 = vst [vmem:[#allocation106_spill] sm:$0xff] %v12682_v62 }
 0x585   :  { %v12686_v49 = vpop.f32.mrf.mxu1  ;;  %v12688_v18 = vpop.f32.mrf.mxu0 }
 0x586   :  { %15566 = vst [vmem:[#allocation107_spill] sm:$0xff] %v12686_v49  ;;  %15567 = vst [vmem:[#allocation108_spill] sm:$0xff] %v12688_v18 }
 0x587   :  { %v12690_v59 = vpop.f32.mrf.mxu1  ;;  %v12692_v26 = vpop.f32.mrf.mxu0 }
 0x588   :  { %15568 = vst [vmem:[#allocation109_spill] sm:$0xff] %v12690_v59  ;;  %15569 = vst [vmem:[#allocation110_spill] sm:$0xff] %v12692_v26 }
 0x589   :  { %v12694_v55 = vpop.f32.mrf.mxu1  ;;  %4273 = vmatmul.mubr.bf16.gmra.mxu1 %v14958_v47  ;;  %v12697_v11 = vpop.f32.mrf.mxu0 }
 0x58a   :  { %15570 = vst [vmem:[#allocation111_spill] sm:$0xff] %v12694_v55  ;;  %15571 = vst [vmem:[#allocation112_spill] sm:$0xff] %v12697_v11  ;;  %5062 = vmatprep.mubr.bf16.mxu1 %v14958_v47 }
 0x58b   :  { %v12706_v49 = vpop.f32.mrf.mxu1  ;;  %v12708_v59 = vpop.f32.mrf.mxu0 }
 0x58c   :  { %15572 = vst [vmem:[#allocation113_spill] sm:$0xff] %v12706_v49 }
 0x58d   :  { %v12710_v55 = vpop.f32.mrf.mxu1  ;;  %v12712_v62 = vpop.f32.mrf.mxu0 }
 0x58e   :  { %15573 = vst [vmem:[#allocation114_spill] sm:$0xff] %v12710_v55  ;;  %15574 = vst [vmem:[#allocation115_spill] sm:$0xff] %v12712_v62 }
 0x58f   :  { %v12714_v11 = vpop.f32.mrf.mxu1  ;;  %v12716_v26 = vpop.f32.mrf.mxu0 }
 0x590   :  { %15575 = vst [vmem:[#allocation116_spill] sm:$0xff] %v12714_v11  ;;  %15576 = vst [vmem:[#allocation117_spill] sm:$0xff] %v12716_v26 }
 0x591   :  { %v12718_v18 = vpop.f32.mrf.mxu1  ;;  %v12722_v13 = vpop.f32.mrf.mxu0 }
 0x592   :  { %15577 = vst [vmem:[#allocation118_spill] sm:$0xff] %v12718_v18  ;;  %15579 = vst [vmem:[#allocation120_spill] sm:$0xff] %v12722_v13  ;;  %v9098_v18 = vld [vmem:[%s14928_s3 + $0xf4] ss:$8 sps:$4 sm:$0xff]  }
 0x593   :  { %v12720_v10 = vpop.f32.mrf.mxu1  ;;  %v12728_v30 = vpop.f32.mrf.mxu0  ;;  %5034 = vmatprep.subr.bf16.mxu1 %v9098_v18  ;;  %v9099_v18 = vld [vmem:[%s14928_s3 + $0xe0] ss:$8 sps:$4 sm:$0xff]  }
 0x594   :  { %15578 = vst [vmem:[#allocation119_spill] sm:$0xff] %v12720_v10  ;;  %15582 = vst [vmem:[#allocation123_spill] sm:$0xff] %v12728_v30  ;;  %5035 = vmatpush1.bf16.msra.mxu1 %v9096_v15  ;;  %v9101_v15 = vld [vmem:[%s14928_s3 + $0xe4] ss:$8 sps:$4 sm:$0xff]  }
 0x595   :  { %v12724_v16 = vpop.f32.mrf.mxu1  ;;  %v12740_v10 = vpop.f32.mrf.mxu0  ;;  %5036 = vmatprep.subr.bf16.mxu1 %v9101_v15  ;;  %v9102_v15 = vld [vmem:[%s14928_s3 + $0xd0] ss:$8 sps:$4 sm:$0xff]  }
 0x596   :  { %15580 = vst [vmem:[#allocation121_spill] sm:$0xff] %v12724_v16  ;;  %15585 = vst [vmem:[#allocation134_spill] sm:$0xff] %v12740_v10 }
 0x597   :  { %v12726_v49 = vpop.f32.mrf.mxu1  ;;  %v12746_v30 = vpop.f32.mrf.mxu0 }
 0x598   :  { %15581 = vst [vmem:[#allocation122_spill] sm:$0xff] %v12726_v49  ;;  %15588 = vst [vmem:[#allocation137_spill] sm:$0xff] %v12746_v30  ;;  %5037 = vmatpush1.bf16.msra.mxu1 %v9099_v18  ;;  %v9104_v18 = vld [vmem:[%s14928_s3 + $0xd4] ss:$8 sps:$4 sm:$0xff]  }
 0x599   :  { %v12730_v55 = vpop.f32.mrf.mxu1  ;;  %v12752_v26 = vpop.f32.mrf.mxu0  ;;  %5038 = vmatprep.subr.bf16.mxu1 %v9104_v18  ;;  %v9105_v18 = vld [vmem:[%s14928_s3 + $0xc0] ss:$8 sps:$4 sm:$0xff]  }
 0x59a   :  { %15583 = vst [vmem:[#allocation132_spill] sm:$0xff] %v12730_v55  ;;  %15591 = vst [vmem:[#allocation140_spill] sm:$0xff] %v12752_v26 }
 0x59b   :  { %v12738_v11 = vpop.f32.mrf.mxu1 }
 0x59c   :  { %15584 = vst [vmem:[#allocation133_spill] sm:$0xff] %v12738_v11  ;;  %5039 = vmatpush1.bf16.msra.mxu1 %v9102_v15  ;;  %v9107_v15 = vld [vmem:[%s14928_s3 + $0xc4] ss:$8 sps:$4 sm:$0xff]  }
 0x59d   :  { %v12742_v16 = vpop.f32.mrf.mxu1  ;;  %5040 = vmatprep.subr.bf16.mxu1 %v9107_v15  ;;  %v9114_v15 = vld [vmem:[%s14928_s3 + $0x1a0] ss:$8 sps:$4 sm:$0xff]  }
 0x59e   :  { %15586 = vst [vmem:[#allocation135_spill] sm:$0xff] %v12742_v16 }
 0x59f   :  { %v12744_v49 = vpop.f32.mrf.mxu1 }
 0x5a0   :  { %15587 = vst [vmem:[#allocation136_spill] sm:$0xff] %v12744_v49  ;;  %v12764_v49 = vpop.f32.mrf.mxu0  ;;  %5041 = vmatpush1.bf16.msra.mxu1 %v9105_v18  ;;  %v9113_v18 = vld [vmem:[%s14928_s3 + $0xb4] ss:$8 sps:$4 sm:$0xff]  }
 0x5a1   :  { %v12748_v55 = vpop.f32.mrf.mxu1  ;;  %15594 = vst [vmem:[#allocation143_spill] sm:$0xff] %v12764_v49  ;;  %5042 = vmatprep.subr.bf16.mxu1 %v9113_v18  ;;  %v3481_v18 = vadd.f32 %v12573_v31, %v12145_v20  ;;  %v9129_v31 = vld [vmem:[%s14928_s3 + $0x170] ss:$8 sps:$4 sm:$0xff]  }
 0x5a2   :  { %15589 = vst [vmem:[#allocation138_spill] sm:$0xff] %v12748_v55  ;;  %v12770_v11 = vpop.f32.mrf.mxu0 }
 0x5a3   :  { %v12750_v13 = vpop.f32.mrf.mxu1  ;;  %15597 = vst [vmem:[#allocation146_spill] sm:$0xff] %v12770_v11 }
 0x5a4   :  { %15590 = vst [vmem:[#allocation139_spill] sm:$0xff] %v12750_v13  ;;  %v12776_v30 = vpop.f32.mrf.mxu0 }
 0x5a5   :  { %v12754_v62 = vpop.f32.mrf.mxu1  ;;  %15600 = vst [vmem:[#allocation149_spill] sm:$0xff] %v12776_v30 }
 0x5a6   :  { %15592 = vst [vmem:[#allocation141_spill] sm:$0xff] %v12754_v62 }
 0x5a7   :  { %v12762_v16 = vpop.f32.mrf.mxu1 }
 0x5a8   :  { %15593 = vst [vmem:[#allocation142_spill] sm:$0xff] %v12762_v16 }
 0x5a9   :  { %v12766_v55 = vpop.f32.mrf.mxu1 }
 0x5aa   :  { %15595 = vst [vmem:[#allocation144_spill] sm:$0xff] %v12766_v55 }
 0x5ab   :  { %v12768_v13 = vpop.f32.mrf.mxu1 }
 0x5ac   :  { %15596 = vst [vmem:[#allocation145_spill] sm:$0xff] %v12768_v13  ;;  %v12788_v13 = vpop.f32.mrf.mxu0 }
 0x5ad   :  { %v12772_v62 = vpop.f32.mrf.mxu1 }
 0x5ae   :  { %15598 = vst [vmem:[#allocation147_spill] sm:$0xff] %v12772_v62  ;;  %v12794_v16 = vpop.f32.mrf.mxu0 }
 0x5af   :  { %v12774_v10 = vpop.f32.mrf.mxu1  ;;  %15605 = vst [vmem:[#allocation154_spill] sm:$0xff] %v12794_v16 }
 0x5b0   :  { %15599 = vst [vmem:[#allocation148_spill] sm:$0xff] %v12774_v10  ;;  %v12800_v30 = vpop.f32.mrf.mxu0 }
 0x5b1   :  { %v12778_v26 = vpop.f32.mrf.mxu1  ;;  %15608 = vst [vmem:[#allocation157_spill] sm:$0xff] %v12800_v30 }
 0x5b2   :  { %15601 = vst [vmem:[#allocation150_spill] sm:$0xff] %v12778_v26 }
 0x5b3   :  { %v12786_v55 = vpop.f32.mrf.mxu1 }
 0x5b4   :  { %15602 = vst [vmem:[#allocation151_spill] sm:$0xff] %v12786_v55 }
 0x5b5   :  { %v12790_v62 = vpop.f32.mrf.mxu1 }
 0x5b6   :  { %15603 = vst [vmem:[#allocation152_spill] sm:$0xff] %v12790_v62  ;;  %v9108_v62 = vld [vmem:[%s14928_s3 + $0x1b0] ss:$8 sps:$4 sm:$0xff]  }
 0x5b7   :  { %v12792_v10 = vpop.f32.mrf.mxu1 }
 0x5b8   :  { %15604 = vst [vmem:[#allocation153_spill] sm:$0xff] %v12792_v10 }
 0x5b9   :  { %v12796_v26 = vpop.f32.mrf.mxu1 }
 0x5ba   :  { %15606 = vst [vmem:[#allocation155_spill] sm:$0xff] %v12796_v26 }
 0x5bb   :  { %v12798_v11 = vpop.f32.mrf.mxu1 }
 0x5bc   :  { %15607 = vst [vmem:[#allocation156_spill] sm:$0xff] %v12798_v11  ;;  %v9110_v11 = vld [vmem:[%s14928_s3 + $0x1b4] ss:$8 sps:$4 sm:$0xff]  }
 0x5bd   :  { %v12802_v49 = vpop.f32.mrf.mxu1  ;;  %5477 = vmatprep.subr.bf16.mxu0 %v9110_v11 }
 0x5be   :  { %15609 = vst [vmem:[#allocation158_spill] sm:$0xff] %v12802_v49  ;;  %v12818_v49 = vpop.f32.mrf.mxu0  ;;  %5478 = vmatpush1.bf16.msra.mxu0 %v9108_v62 }
 0x5bf   :  { %v12813_v10 = vpop.f32.mrf.mxu1  ;;  %15611 = vst [vmem:[#allocation160_spill] sm:$0xff] %v12818_v49 }
 0x5c0   :  { %15610 = vst [vmem:[#allocation159_spill] sm:$0xff] %v12813_v10  ;;  %v12824_v30 = vpop.f32.mrf.mxu0  ;;  %v9116_v10 = vld [vmem:[%s14928_s3 + $0x1a4] ss:$8 sps:$4 sm:$0xff]  }
 0x5c1   :  { %v12820_v26 = vpop.f32.mrf.mxu1  ;;  %15614 = vst [vmem:[#allocation163_spill] sm:$0xff] %v12824_v30  ;;  %5479 = vmatprep.subr.bf16.mxu0 %v9116_v10  ;;  %v9117_v10 = vld [vmem:[%s14928_s3 + $0x190] ss:$8 sps:$4 sm:$0xff]   ;;  %v9125_v30 = vld [vmem:[%s14928_s3 + $0x184] ss:$8 sps:$4 sm:$0xff]  }
 0x5c2   :  { %15612 = vst [vmem:[#allocation161_spill] sm:$0xff] %v12820_v26  ;;  %5480 = vmatpush1.bf16.msra.mxu0 %v9114_v15  ;;  %v12836_v11 = vpop.f32.mrf.mxu0 }
 0x5c3   :  { %v12822_v55 = vpop.f32.mrf.mxu1  ;;  %15617 = vst [vmem:[#allocation166_spill] sm:$0xff] %v12836_v11  ;;  %v9122_v11 = vld [vmem:[%s14928_s3 + $0xa4] ss:$8 sps:$4 sm:$0xff]  }
 0x5c4   :  { %15613 = vst [vmem:[#allocation162_spill] sm:$0xff] %v12822_v55  ;;  %v9111_v55 = vld [vmem:[%s14928_s3 + $0xb0] ss:$8 sps:$4 sm:$0xff]  }
 0x5c5   :  { %v12826_v16 = vpop.f32.mrf.mxu1  ;;  %5043 = vmatpush1.bf16.msra.mxu1 %v9111_v55  ;;  %v9123_v55 = vld [vmem:[%s14928_s3 + $0x180] ss:$8 sps:$4 sm:$0xff]  }
 0x5c6   :  { %15615 = vst [vmem:[#allocation164_spill] sm:$0xff] %v12826_v16  ;;  %v9119_v16 = vld [vmem:[%s14928_s3 + $0x194] ss:$8 sps:$4 sm:$0xff]   ;;  %5044 = vmatprep.subr.bf16.mxu1 %v9122_v11 }
 0x5c7   :  { %v12834_v49 = vpop.f32.mrf.mxu1  ;;  %5481 = vmatprep.subr.bf16.mxu0 %v9119_v16  ;;  %v3479_v16 = vadd.f32 %v12571_v23, %v12143_v25 }
 0x5c8   :  { %15616 = vst [vmem:[#allocation165_spill] sm:$0xff] %v12834_v49  ;;  %5482 = vmatpush1.bf16.msra.mxu0 %v9117_v10  ;;  %v12856_v49 = vpop.f32.mrf.mxu0 }
 0x5c9   :  { %v12838_v62 = vpop.f32.mrf.mxu1  ;;  %5483 = vmatprep.subr.bf16.mxu0 %v9125_v30  ;;  %v3483_v30 = vadd.f32 %v12577_v8, %v12147_v38  ;;  %v3930_v20 = vadd.f32 %v12194_v32, %v3479_v16  ;;  %v3931_v38 = vadd.f32 %v12204_v63, %v3481_v18  ;;  %v3489_v32 = vadd.f32 %v12586_v21, %v12155_v48  ;;  %v9132_v21 = vld [vmem:[%s14928_s3 + $0x120] ss:$8 sps:$4 sm:$0xff]  }
 0x5ca   :  { %15618 = vst [vmem:[#allocation167_spill] sm:$0xff] %v12838_v62  ;;  %v3477_v62 = vadd.f32 %v12564_v45, %v12141_v34  ;;  %v9120_v34 = vld [vmem:[%s14928_s3 + $0xa0] ss:$8 sps:$4 sm:$0xff]   ;;  %v12879_v25 = vpop.f32.mrf.mxu0  ;;  %v3491_v18 = vadd.f32 %v12588_v44, %v12163_v29 }
 0x5cb   :  { %v12852_v15 = vpop.f32.mrf.mxu1  ;;  %5045 = vmatpush1.bf16.msra.mxu1 %v9120_v34  ;;  %v3487_v34 = vadd.f32 %v12579_v56, %v12149_v52  ;;  %v3932_v48 = vadd.f32 %v12216_v51, %v3483_v30 }
 0x5cc   :  { %v3929_v10 = vadd.f32 %v12181_v5, %v3477_v62  ;;  %5484 = vmatpush1.bf16.msra.mxu0 %v9123_v55  ;;  %v9126_v5 = vld [vmem:[%s14928_s3 + $0x130] ss:$8 sps:$4 sm:$0xff]   ;;  %v12901_v8 = vpop.f32.mrf.mxu0 }
 0x5cd   :  { %v12858_v26 = vpop.f32.mrf.mxu1  ;;  %v3933_v30 = vadd.f32 %v12223_v41, %v3487_v34 }
 0x5ce   :  { %15619 = vst [vmem:[#allocation168_spill] sm:$0xff] %v12858_v26  ;;  %v9128_v26 = vld [vmem:[%s14928_s3 + $0x134] ss:$8 sps:$4 sm:$0xff]   ;;  %v12933_v29 = vpop.f32.mrf.mxu0 }
 0x5cf   :  { %v12874_v45 = vpop.f32.mrf.mxu1  ;;  %5058 = vmatprep.subr.bf16.mxu1 %v9128_v26  ;;  %v9137_v26 = vld [vmem:[%s14928_s3 + $0x164] ss:$8 sps:$4 sm:$0xff]  }
 0x5d0   :  { %15620 = vst [vmem:[#allocation169_spill] sm:$0xff] %v12874_v45  ;;  %v9131_v45 = vld [vmem:[%s14928_s3 + $0x174] ss:$8 sps:$4 sm:$0xff]   ;;  %5059 = vmatpush2.bf16.msra.mxu1 %v9126_v5  ;;  %v9143_v5 = vld [vmem:[%s14928_s3 + $0x144] ss:$8 sps:$4 sm:$0xff]  }
 0x5d1   :  { %v4124_v23 = vpop.f32.mrf.mxu1  ;;  %5485 = vmatprep.subr.bf16.mxu0 %v9131_v45  ;;  %v9135_v45 = vld [vmem:[%s14928_s3 + $0x160] ss:$8 sps:$4 sm:$0xff]  }
 0x5d2   :  { %v4283_v11 = vadd.f32 %v4124_v23, %v3929_v10  ;;  %5486 = vmatpush1.bf16.msra.mxu0 %v9129_v31  ;;  %v9134_v10 = vld [vmem:[%s14928_s3 + $0x124] ss:$8 sps:$4 sm:$0xff]   ;;  %v3493_v31 = vadd.f32 %v12592_v22, %v12169_v24  ;;  %v9141_v24 = vld [vmem:[%s14928_s3 + $0x140] ss:$8 sps:$4 sm:$0xff]  }
 0x5d3   :  { %v4126_v62 = vpop.f32.mrf.mxu1  ;;  %5060 = vmatprep.subr.bf16.mxu1 %v9134_v10  ;;  %5487 = vmatprep.subr.bf16.mxu0 %v9137_v26  ;;  %v9146_v26 = vld [vmem:[%s14928_s3 + $0x1d4] ss:$8 sps:$4 sm:$0xff]  }
 0x5d4   :  { %v4284_v55 = vadd.f32 %v4126_v62, %v3930_v20  ;;  %v12910_v52 = vadd.f32 %v12636_v4, %v4283_v11  ;;  %5061 = vmatpush2.bf16.msra.mxu1 %v9132_v21  ;;  %v9138_v11 = vld [vmem:[%s14928_s3 + $0x150] ss:$8 sps:$4 sm:$0xff]   ;;  %v3934_v20 = vadd.f32 %v12242_v60, %v3489_v32  ;;  %v3497_v60 = vadd.f32 %v12594_v42, %v12179_v12 }
 0x5d5   :  { %v4128_v16 = vpop.f32.mrf.mxu1  ;;  %v3936_v10 = vadd.f32 %v12271_v7, %v3493_v31 }
 0x5d6   :  { %v12913_v63 = vadd.f32 %v12641_v28, %v4284_v55  ;;  %v4285_v56 = vadd.f32 %v4128_v16, %v3931_v38  ;;  %v9140_v28 = vld [vmem:[%s14928_s3 + $0x154] ss:$8 sps:$4 sm:$0xff]   ;;  %5488 = vmatpush1.bf16.msra.mxu0 %v9135_v45  ;;  %v3935_v38 = vadd.f32 %v12252_v0, %v3491_v18  ;;  %v12959_v0 = vpop.f32.mrf.mxu0 }
 0x5d7   :  { %v4130_v23 = vpop.f32.mrf.mxu1  ;;  %5489 = vmatprep.subr.bf16.mxu0 %v9140_v28  ;;  %5063 = vmatmul.mubr.bf16.vlgmr.msra.gmra.mxu1 %v14958_v47 }
 0x5d8   :  { %v4701_v51 = vmax.f32 %v12910_v52, %v12913_v63  ;;  %v4286_v4 = vadd.f32 %v4130_v23, %v3932_v48  ;;  %v12942_v41 = vadd.f32 %v12645_v58, %v4285_v56  ;;  %5072 = vmatprep.mubr.bf16.mxu1 %v14958_v47  ;;  %v12979_v7 = vpop.f32.mrf.mxu0 }
 0x5d9   :  { %v4134_v44 = vpop.f32.mrf.mxu1 }
 0x5da   :  { %v12945_v62 = vadd.f32 %v12649_v46, %v4286_v4  ;;  %v4287_v34 = vadd.f32 %v4134_v44, %v3933_v30  ;;  %5490 = vmatpush1.bf16.msra.mxu0 %v9138_v11  ;;  %v3499_v46 = vadd.f32 %v12601_v27, %v12187_v57  ;;  %v3501_v57 = vadd.f32 %v12605_v17, %v12199_v6  ;;  %v9149_v6 = vld [vmem:[%s14928_s3 + $0x1c4] ss:$8 sps:$4 sm:$0xff]  }
 0x5db   :  { %v4136_v55 = vpop.f32.mrf.mxu1  ;;  %5491 = vmatprep.subr.bf16.mxu0 %v9143_v5  ;;  %v3503_v17 = vadd.f32 %v12609_v37, %v12209_v54  ;;  %v9147_v54 = vld [vmem:[%s14928_s3 + $0x1c0] ss:$8 sps:$4 sm:$0xff]   ;;  %v15621_v5 = vld [vmem:[#allocation93_spill] sm:$0xff] }
 0x5dc   :  { %v4702_v32 = vmax.f32 %v12942_v41, %v12945_v62  ;;  %v4288_v16 = vadd.f32 %v4136_v55, %v3934_v20  ;;  %v12962_v12 = vadd.f32 %v12655_v53, %v4287_v34  ;;  %v3937_v53 = vadd.f32 %v12278_v35, %v3497_v60  ;;  %v15622_v55 = vld [vmem:[#allocation34_spill] sm:$0xff]  ;;  %v15636_v62 = vld [vmem:[#allocation115_spill] sm:$0xff] }
 0x5dd   :  { %v4138_v58 = vpop.f32.mrf.mxu1  ;;  %v3938_v45 = vadd.f32 %v12282_v39, %v3499_v46  ;;  %v3939_v4 = vadd.f32 %v12292_v9, %v3501_v57  ;;  %v3507_v39 = vadd.f32 %v12613_v14, %v12221_v50  ;;  %v13005_v9 = vpop.f32.mrf.mxu0  ;;  %v13010_v50 = vld [vmem:[%s14929_s6] ss:$0 sm:$0xff]  ;;  %v3940_v20 = vadd.f32 %v12296_v61, %v3503_v17 }
 0x5de   :  { %v12965_v22 = vadd.f32 %v12660_v36, %v4288_v16  ;;  %v4289_v42 = vadd.f32 %v4138_v58, %v3935_v38  ;;  %5492 = vmatpush1.bf16.msra.mxu0 %v9141_v24  ;;  %v9144_v36 = vld [vmem:[%s14928_s3 + $0x1d0] ss:$8 sps:$4 sm:$0xff]   ;;  %v3511_v31 = vadd.f32 %v15621_v5, %v12250_v40  ;;  %v15623_v60 = vld [vmem:[#allocation10_spill] sm:$0xff]  ;;  %v15624_v16 = vld [vmem:[#allocation95_spill] sm:$0xff] }
 0x5df   :  { %v4140_v27 = vpop.f32.mrf.mxu1  ;;  %5505 = vmatprep.subr.bf16.mxu0 %v9146_v26  ;;  %5073 = vmatmul.mubr.bf16.gmra.mxu1 %v14958_v47  ;;  %v3941_v38 = vadd.f32 %v15622_v55, %v3507_v39  ;;  %v3513_v24 = vadd.f32 %v15624_v16, %v15623_v60  ;;  %v13020_v46 = vpop.f32.mrf.mxu0  ;;  %v15627_v26 = vld [vmem:[#allocation110_spill] sm:$0xff]  ;;  %v4741_v39 = vadd.f32 %v13010_v50, %v4702_v32  ;;  %v15637_v16 = vld [vmem:[#allocation51_spill] sm:$0xff] }
 0x5e0   :  { %v4703_v56 = vmax.f32 %v12962_v12, %v12965_v22  ;;  %v4290_v48 = vadd.f32 %v4140_v27, %v3936_v10  ;;  %v12988_v35 = vadd.f32 %v12664_v2, %v4289_v42  ;;  %5082 = vmatprep.mubr.bf16.mxu1 %v14958_v47  ;;  %v3509_v2 = vadd.f32 %v12620_v43, %v12235_v33  ;;  %v15626_v42 = vld [vmem:[#allocation108_spill] sm:$0xff]  ;;  %v15642_v12 = vld [vmem:[#allocation102_spill] sm:$0xff] }
 0x5e1   :  { %v4144_v21 = vpop.f32.mrf.mxu1 }
 0x5e2   :  { %v12991_v18 = vadd.f32 %v12668_v3, %v4290_v48  ;;  %v4291_v23 = vadd.f32 %v4144_v21, %v3937_v53  ;;  %5506 = vmatpush2.bf16.msra.mxu0 %v9144_v36  ;;  %v15628_v53 = vld [vmem:[#allocation14_spill] sm:$0xff]  ;;  %v15629_v21 = vld [vmem:[#allocation3_spill] sm:$0xff] }
 0x5e3   :  { %v4146_v28 = vpop.f32.mrf.mxu1  ;;  %5507 = vmatprep.subr.bf16.mxu0 %v9149_v6  ;;  %v3943_v36 = vadd.f32 %v15628_v53, %v3511_v31 }
 0x5e4   :  { %v4704_v30 = vmax.f32 %v12988_v35, %v12991_v18  ;;  %v4292_v11 = vadd.f32 %v4146_v28, %v3938_v45  ;;  %v4645_v14 = vadd.f32 %v12679_v19, %v4291_v23  ;;  %v15625_v19 = vld [vmem:[#allocation37_spill] sm:$0xff]  ;;  %v15632_v23 = vld [vmem:[#allocation98_spill] sm:$0xff] }
 0x5e5   :  { %v4148_v3 = vpop.f32.mrf.mxu1  ;;  %v3942_v58 = vadd.f32 %v15625_v19, %v3509_v2  ;;  %v15630_v45 = vld [vmem:[#allocation97_spill] sm:$0xff] }
 0x5e6   :  { %v4646_v37 = vadd.f32 %v12684_v1, %v4292_v11  ;;  %v4293_v44 = vadd.f32 %v4148_v3, %v3939_v4  ;;  %5508 = vmatpush2.bf16.msra.mxu0 %v9147_v54  ;;  %v4740_v1 = vadd.f32 %v13010_v50, %v4701_v51  ;;  %v3517_v6 = vadd.f32 %v15630_v45, %v15629_v21  ;;  %v15631_v51 = vld [vmem:[#allocation11_spill] sm:$0xff]  ;;  %v13035_v4 = vpop.f32.mrf.mxu0  ;;  %v15633_v11 = vld [vmem:[#allocation112_spill] sm:$0xff] }
 0x5e7   :  { %v4150_v33 = vpop.f32.mrf.mxu1  ;;  %v3519_v28 = vadd.f32 %v15632_v23, %v15631_v51  ;;  %v15634_v3 = vld [vmem:[#allocation15_spill] sm:$0xff]  ;;  %v9158_v35 = vld [vmem:[%s14928_s3 + $0x54] ss:$8 sps:$4 sm:$0xff]  }
 0x5e8   :  { %v4705_v43 = vmax.f32 %v4645_v14, %v4646_v37  ;;  %v4294_v34 = vadd.f32 %v4150_v33, %v3940_v20  ;;  %v4647_v10 = vadd.f32 %v15626_v42, %v4293_v44  ;;  %v3944_v14 = vadd.f32 %v15634_v3, %v3513_v24  ;;  %v13049_v41 = vpop.f32.mrf.mxu0  ;;  %v9152_v42 = vld [vmem:[%s14928_s3 + $0x74] ss:$8 sps:$4 sm:$0xff]   ;;  %v9153_v51 = vld [vmem:[%s14928_s3 + $0x60] ss:$8 sps:$4 sm:$0xff]  }
 0x5e9   :  { %v4154_v61 = vpop.f32.mrf.mxu1  ;;  %v3946_v24 = vadd.f32 %v15637_v16, %v3519_v28  ;;  %5243 = vmatprep.subr.bf16.mxu1 %v9152_v42  ;;  %v15643_v28 = vld [vmem:[#allocation120_spill] sm:$0xff]  ;;  %v15645_v3 = vld [vmem:[#allocation61_spill] sm:$0xff] }
 0x5ea   :  { %v4744_v40 = vadd.f32 %v13010_v50, %v4705_v43  ;;  %v4648_v57 = vadd.f32 %v15627_v26, %v4294_v34  ;;  %v4295_v27 = vadd.f32 %v4154_v61, %v3941_v38  ;;  %v15635_v34 = vld [vmem:[#allocation8_spill] sm:$0xff]  ;;  %v15650_v16 = vld [vmem:[#allocation105_spill] sm:$0xff] }
 0x5eb   :  { %v4156_v48 = vpop.f32.mrf.mxu1  ;;  %v3945_v55 = vadd.f32 %v15635_v34, %v3517_v6  ;;  %v15641_v6 = vld [vmem:[#allocation13_spill] sm:$0xff] }
 0x5ec   :  { %v4706_v17 = vmax.f32 %v4647_v10, %v4648_v57  ;;  %v4296_v52 = vadd.f32 %v4156_v48, %v3942_v58  ;;  %v4772_v63 = vmax.f32 %v4740_v1, %v4744_v40  ;;  %v4649_v54 = vadd.f32 %v15633_v11, %v4295_v27  ;;  %v15638_v1 = vld [vmem:[#allocation117_spill] sm:$0xff]  ;;  %v9155_v57 = vld [vmem:[%s14928_s3 + $0x64] ss:$8 sps:$4 sm:$0xff]  }
 0x5ed   :  { %v4158_v2 = vpop.f32.mrf.mxu1  ;;  %v9150_v40 = vld [vmem:[%s14928_s3 + $0x70] ss:$8 sps:$4 sm:$0xff]   ;;  %v4742_v10 = vadd.f32 %v13010_v50, %v4703_v56  ;;  %v3529_v22 = vadd.f32 %v15642_v12, %v15641_v6  ;;  %v13075_v56 = vpop.f32.mrf.mxu0  ;;  %v15644_v11 = vld [vmem:[#allocation123_spill] sm:$0xff] }
 0x5ee   :  { %v4745_v37 = vadd.f32 %v13010_v50, %v4706_v17  ;;  %v4650_v44 = vadd.f32 %v12708_v59, %v4296_v52  ;;  %v4297_v20 = vadd.f32 %v4158_v2, %v3943_v36  ;;  %v4788_v5 = vmax.f32 %v4772_v63, 0.0  ;;  %v15639_v27 = vld [vmem:[#allocation5_spill] sm:$0xff]  ;;  %5244 = vmatpush1.bf16.msra.mxu1 %v9150_v40 }
 0x5ef   :  { %v4160_v31 = vpop.f32.mrf.mxu1  ;;  %v15640_v48 = vld [vmem:[#allocation101_spill] sm:$0xff]  ;;  %v4743_v17 = vadd.f32 %v13010_v50, %v4704_v30  ;;  %5245 = vmatprep.subr.bf16.mxu1 %v9155_v57 }
 0x5f0   :  { %v4707_v33 = vmax.f32 %v4649_v54, %v4650_v44  ;;  %v4298_v43 = vadd.f32 %v4160_v31, %v3944_v14  ;;  %v4773_v38 = vmax.f32 %v4741_v39, %v4745_v37  ;;  %8295 = vst [vmem:[%s14927_s13 + $0x100] sm:$0xff] %v4788_v5  ;;  %v4651_v32 = vadd.f32 %v15636_v62, %v4297_v20  ;;  %v13098_v44 = vpop.f32.mrf.mxu0  ;;  %v15658_v12 = vld [vmem:[#allocation17_spill] sm:$0xff] }
 0x5f1   :  { %v4164_v60 = vpop.f32.mrf.mxu1  ;;  %v3527_v53 = vadd.f32 %v15640_v48, %v15639_v27  ;;  %v15655_v27 = vld [vmem:[#allocation140_spill] sm:$0xff] }
 0x5f2   :  { %v4746_v59 = vadd.f32 %v13010_v50, %v4707_v33  ;;  %v4652_v61 = vadd.f32 %v15638_v1, %v4298_v43  ;;  %v4299_v19 = vadd.f32 %v4164_v60, %v3945_v55  ;;  %v4789_v58 = vmax.f32 %v4773_v38, 0.0  ;;  %5246 = vmatpush1.bf16.msra.mxu1 %v9153_v51  ;;  %v15646_v33 = vld [vmem:[#allocation22_spill] sm:$0xff]  ;;  %v15647_v55 = vld [vmem:[#allocation12_spill] sm:$0xff]  ;;  %v13116_v40 = vpop.f32.mrf.mxu0 }
 0x5f3   :  { %v4166_v26 = vpop.f32.mrf.mxu1  ;;  %v3949_v14 = vadd.f32 %v15645_v3, %v3527_v53  ;;  %v3950_v43 = vadd.f32 %v15646_v33, %v3529_v22  ;;  %5247 = vmatprep.subr.bf16.mxu1 %v9158_v35  ;;  %v15648_v38 = vld [vmem:[#allocation100_spill] sm:$0xff]  ;;  %v15649_v60 = vld [vmem:[#allocation46_spill] sm:$0xff]  ;;  %v15656_v53 = vld [vmem:[#allocation143_spill] sm:$0xff] }
 0x5f4   :  { %v4708_v36 = vmax.f32 %v4651_v32, %v4652_v61  ;;  %v4300_v21 = vadd.f32 %v4166_v26, %v3946_v24  ;;  %v4821_v45 = vpack.c.bf16 %v4789_v58, %v4788_v5  ;;  %8296 = vst [vmem:[%s14927_s13 + $0x108] sm:$0xff] %v4789_v58  ;;  %v4774_v63 = vmax.f32 %v4742_v10, %v4746_v59  ;;  %v9156_v5 = vld [vmem:[%s14928_s3 + $0x50] ss:$8 sps:$4 sm:$0xff]   ;;  %v15654_v26 = vld [vmem:[#allocation106_spill] sm:$0xff]  ;;  %v15659_v22 = vld [vmem:[#allocation107_spill] sm:$0xff] }
 0x5f5   :  { %v4168_v52 = vpop.f32.mrf.mxu1  ;;  %v13086_v39 = vadd.f32 %v15643_v28, %v4299_v19  ;;  %v3523_v62 = vadd.f32 %v15648_v38, %v15647_v55  ;;  %v3537_v24 = vadd.f32 %v15650_v16, %v15649_v60  ;;  %v15651_v61 = vld [vmem:[#allocation4_spill] sm:$0xff]  ;;  %v15652_v19 = vld [vmem:[#allocation99_spill] sm:$0xff]  ;;  %v15660_v51 = vld [vmem:[#allocation26_spill] sm:$0xff]  ;;  %v13133_v28 = vpop.f32.mrf.mxu0 }
 0x5f6   :  { %v4747_v23 = vadd.f32 %v13010_v50, %v4708_v36  ;;  %v13089_v54 = vadd.f32 %v15644_v11, %v4300_v21  ;;  %4837 = vrot.lane.b32.xlu0 %v4821_v45, %s9485_s0  ;;  %v4790_v30 = vmax.f32 %v4774_v63, 0.0  ;;  %v3521_v58 = vadd.f32 %v15652_v19, %v15651_v61  ;;  %5248 = vmatpush1.bf16.msra.mxu1 %v9156_v5  ;;  %v15653_v10 = vld [vmem:[#allocation16_spill] sm:$0xff]  ;;  %v15657_v21 = vld [vmem:[#allocation58_spill] sm:$0xff]  ;;  %v15667_v38 = vld [vmem:[#allocation7_spill] sm:$0xff] }
 0x5f7   :  { %v4170_v18 = vpop.f32.mrf.mxu1  ;;  %v3539_v57 = vadd.f32 %v15654_v26, %v15653_v10  ;;  %v3948_v45 = vadd.f32 %v15657_v21, %v3523_v62  ;;  %v15661_v11 = vld [vmem:[#allocation18_spill] sm:$0xff]  ;;  %v15668_v62 = vld [vmem:[#allocation104_spill] sm:$0xff]  ;;  %v15673_v10 = vld [vmem:[#allocation113_spill] sm:$0xff] }
 0x5f8   :  { %v4709_v2 = vmax.f32 %v13086_v39, %v13089_v54  ;;  %v4775_v37 = vmax.f32 %v4743_v17, %v4747_v23  ;;  %8297 = vst [vmem:[%s14927_s13 + $0x110] sm:$0xff] %v4790_v30  ;;  %v3541_v17 = vadd.f32 %v15659_v22, %v15658_v12  ;;  %v3953_v23 = vadd.f32 %v15660_v51, %v3537_v24  ;;  %v15669_v24 = vld [vmem:[#allocation20_spill] sm:$0xff]  ;;  %v15675_v12 = vld [vmem:[#allocation154_spill] sm:$0xff]  ;;  %v15688_v54 = vld [vmem:[#allocation25_spill] sm:$0xff] }
 0x5f9   :  { %v4174_v20 = vpop.f32.mrf.mxu1  ;;  %v3947_v35 = vadd.f32 %v15661_v11, %v3521_v58  ;;  %v15672_v58 = vld [vmem:[#allocation21_spill] sm:$0xff]  ;;  %v15676_v51 = vld [vmem:[#allocation30_spill] sm:$0xff] }
 0x5fa   :  { %v4303_v31 = vadd.f32 %v4174_v20, %v3949_v14  ;;  %v4791_v34 = vmax.f32 %v4775_v37, 0.0  ;;  %v15662_v14 = vld [vmem:[#allocation19_spill] sm:$0xff]  ;;  %v15663_v37 = vld [vmem:[#allocation109_spill] sm:$0xff]  ;;  %v3549_v26 = vadd.f32 %v15673_v10, %v15672_v58  ;;  %v15677_v11 = vld [vmem:[#allocation66_spill] sm:$0xff] }
 0x5fb   :  { %v4176_v32 = vpop.f32.mrf.mxu1  ;;  %v3543_v20 = vadd.f32 %v15663_v37, %v15662_v14  ;;  %v4301_v60 = vadd.f32 %v4168_v52, %v3947_v35  ;;  %v15678_v35 = vld [vmem:[#allocation114_spill] sm:$0xff]  ;;  %v15680_v37 = vld [vmem:[#allocation23_spill] sm:$0xff]  ;;  %v15686_v58 = vld [vmem:[#allocation157_spill] sm:$0xff] }
 0x5fc   :  { %v4304_v59 = vadd.f32 %v4176_v32, %v3950_v43  ;;  %v4822_v1 = vpack.c.bf16 %v4791_v34, %v4790_v30  ;;  %8298 = vst [vmem:[%s14927_s13 + $0x118] sm:$0xff] %v4791_v34  ;;  %v13121_v48 = vadd.f32 %v15655_v27, %v4303_v31  ;;  %v4302_v30 = vadd.f32 %v4170_v18, %v3948_v45  ;;  %v15664_v31 = vld [vmem:[#allocation78_spill] sm:$0xff]  ;;  %v15666_v34 = vld [vmem:[#allocation103_spill] sm:$0xff]  ;;  %v15671_v18 = vld [vmem:[#allocation81_spill] sm:$0xff]  ;;  %v13148_v27 = vpop.f32.mrf.mxu0 }
 0x5fd   :  { %v4178_v42 = vpop.f32.mrf.mxu1  ;;  %v3954_v33 = vadd.f32 %v15664_v31, %v3539_v57  ;;  %v15665_v43 = vld [vmem:[#allocation6_spill] sm:$0xff]  ;;  %v3533_v32 = vadd.f32 %v15668_v62, %v15667_v38  ;;  %v3955_v19 = vadd.f32 %v15671_v18, %v3541_v17  ;;  %v15674_v57 = vld [vmem:[#allocation137_spill] sm:$0xff]  ;;  %v15682_v38 = vld [vmem:[#allocation24_spill] sm:$0xff] }
 0x5fe   :  { %v13124_v36 = vadd.f32 %v15656_v53, %v4304_v59  ;;  %4839 = vrot.lane.b32.xlu1 %v4822_v1, %s9485_s0  ;;  %v3531_v55 = vadd.f32 %v15666_v34, %v15665_v43  ;;  %v15670_v59 = vld [vmem:[#allocation111_spill] sm:$0xff]  ;;  %v4656_v53 = vadd.f32 %v15674_v57, %v4302_v30  ;;  %v15679_v14 = vld [vmem:[#allocation134_spill] sm:$0xff]  ;;  %v15683_v30 = vld [vmem:[#allocation116_spill] sm:$0xff] }
 0x5ff   :  { %v4180_v6 = vpop.f32.mrf.mxu1  ;;  %v3547_v1 = vadd.f32 %v15670_v59, %v15669_v24  ;;  %v4655_v17 = vadd.f32 %v15679_v14, %v4301_v60  ;;  %v3553_v62 = vadd.f32 %v15683_v30, %v15682_v38  ;;  %v13162_v59 = vpop.f32.mrf.mxu0  ;;  %v15685_v18 = vld [vmem:[#allocation91_spill] sm:$0xff]  ;;  %v15687_v57 = vld [vmem:[#allocation160_spill] sm:$0xff] }
 0x600   :  { %v4711_v63 = vmax.f32 %v13121_v48, %v13124_v36  ;;  %v3951_v31 = vadd.f32 %v15680_v37, %v3531_v55  ;;  %v9161_v39 = vld [vmem:[%s14928_s3 + $0x44] ss:$8 sps:$4 sm:$0xff]   ;;  %v15702_v48 = vld [vmem:[#allocation32_spill] sm:$0xff]  ;;  %v15703_v36 = vld [vmem:[#allocation133_spill] sm:$0xff] }
 0x601   :  { %v4184_v3 = vpop.f32.mrf.mxu1  ;;  %v4710_v60 = vmax.f32 %v4655_v17, %v4656_v53  ;;  %5249 = vmatprep.subr.bf16.mxu1 %v9161_v39  ;;  %v15692_v14 = vld [vmem:[#allocation27_spill] sm:$0xff] }
 0x602   :  { %v4307_v5 = vadd.f32 %v4184_v3, %v3953_v23  ;;  %v3956_v23 = vadd.f32 %v15676_v51, %v3543_v20  ;;  %v3551_v3 = vadd.f32 %v15678_v35, %v15677_v11  ;;  %v4748_v20 = vadd.f32 %v13010_v50, %v4709_v2  ;;  %v15689_v2 = vld [vmem:[#allocation118_spill] sm:$0xff]  ;;  %v15693_v17 = vld [vmem:[#allocation119_spill] sm:$0xff] }
 0x603   :  { %v4186_v16 = vpop.f32.mrf.mxu1  ;;  %v4305_v53 = vadd.f32 %v4178_v42, %v3951_v31  ;;  %v3559_v37 = vadd.f32 %v15693_v17, %v15692_v14  ;;  %v15695_v30 = vld [vmem:[#allocation163_spill] sm:$0xff] }
 0x604   :  { %v4308_v61 = vadd.f32 %v4186_v16, %v3954_v33  ;;  %v4661_v45 = vadd.f32 %v12788_v13, %v4307_v5  ;;  %v15681_v33 = vld [vmem:[#allocation71_spill] sm:$0xff] }
 0x605   :  { %v4188_v21 = vpop.f32.mrf.mxu1  ;;  %v3952_v43 = vadd.f32 %v15681_v33, %v3533_v32  ;;  %v15684_v5 = vld [vmem:[#allocation31_spill] sm:$0xff]  ;;  %v3958_v32 = vadd.f32 %v15685_v18, %v3549_v26  ;;  %v13184_v33 = vpop.f32.mrf.mxu0 }
 0x606   :  { %v4662_v22 = vadd.f32 %v15675_v12, %v4308_v61  ;;  %v4309_v52 = vadd.f32 %v4188_v21, %v3955_v19  ;;  %v3957_v24 = vadd.f32 %v15684_v5, %v3547_v1  ;;  %v9159_v1 = vld [vmem:[%s14928_s3 + $0x40] ss:$8 sps:$4 sm:$0xff]  }
 0x607   :  { %v4190_v34 = vpop.f32.mrf.mxu1  ;;  %v4306_v61 = vadd.f32 %v4180_v6, %v3952_v43  ;;  %v3557_v6 = vadd.f32 %v15689_v2, %v15688_v54  ;;  %v15690_v12 = vld [vmem:[#allocation35_spill] sm:$0xff]  ;;  %v4749_v43 = vadd.f32 %v13010_v50, %v4710_v60  ;;  %5250 = vmatpush1.bf16.msra.mxu1 %v9159_v1 }
 0x608   :  { %v4713_v16 = vmax.f32 %v4661_v45, %v4662_v22  ;;  %v4310_v13 = vadd.f32 %v4190_v34, %v3956_v23  ;;  %v4663_v10 = vadd.f32 %v15686_v58, %v4309_v52  ;;  %v3959_v22 = vadd.f32 %v15690_v12, %v3551_v3  ;;  %v15691_v23 = vld [vmem:[#allocation125_spill] sm:$0xff] }
 0x609   :  { %v4194_v55 = vpop.f32.mrf.mxu1  ;;  %v3960_v11 = vadd.f32 %v15691_v23, %v3553_v62  ;;  %v15694_v34 = vld [vmem:[#allocation149_spill] sm:$0xff] }
 0x60a   :  { %v4752_v19 = vadd.f32 %v13010_v50, %v4713_v16  ;;  %v4664_v21 = vadd.f32 %v15687_v57, %v4310_v13  ;;  %v4311_v45 = vadd.f32 %v4194_v55, %v3957_v24  ;;  %v4660_v38 = vadd.f32 %v15694_v34, %v4306_v61  ;;  %v15696_v16 = vld [vmem:[#allocation166_spill] sm:$0xff]  ;;  %v13196_v61 = vpop.f32.mrf.mxu0 }
 0x60b   :  { %v4196_v26 = vpop.f32.mrf.mxu1  ;;  %v15697_v24 = vld [vmem:[#allocation146_spill] sm:$0xff] }
 0x60c   :  { %v4714_v51 = vmax.f32 %v4663_v10, %v4664_v21  ;;  %v4312_v52 = vadd.f32 %v4196_v26, %v3958_v32  ;;  %v4776_v35 = vmax.f32 %v4748_v20, %v4752_v19  ;;  %v4665_v42 = vadd.f32 %v15695_v30, %v4311_v45  ;;  %v15698_v19 = vld [vmem:[#allocation126_spill] sm:$0xff]  ;;  %v15699_v45 = vld [vmem:[#allocation40_spill] sm:$0xff] }
 0x60d   :  { %v4198_v31 = vpop.f32.mrf.mxu1  ;;  %v4659_v20 = vadd.f32 %v15697_v24, %v4305_v53  ;;  %v3961_v58 = vadd.f32 %v15698_v19, %v3557_v6  ;;  %v3962_v1 = vadd.f32 %v15699_v45, %v3559_v37  ;;  %v9162_v6 = vld [vmem:[%s14928_s3 + $0x30] ss:$8 sps:$4 sm:$0xff]   ;;  %v9164_v26 = vld [vmem:[%s14928_s3 + $0x34] ss:$8 sps:$4 sm:$0xff]   ;;  %v9165_v34 = vld [vmem:[%s14928_s3 + $0x20] ss:$8 sps:$4 sm:$0xff]  }
 0x60e   :  { %v4753_v3 = vadd.f32 %v13010_v50, %v4714_v51  ;;  %v4666_v13 = vadd.f32 %v15696_v16, %v4312_v52  ;;  %v4313_v62 = vadd.f32 %v4198_v31, %v3959_v22  ;;  %v4792_v5 = vmax.f32 %v4776_v35, 0.0  ;;  %v13212_v22 = vpop.f32.mrf.mxu0  ;;  %v15700_v51 = vld [vmem:[#allocation86_spill] sm:$0xff]  ;;  %v15701_v52 = vld [vmem:[#allocation132_spill] sm:$0xff]  ;;  %5251 = vmatprep.subr.bf16.mxu1 %v9164_v26  ;;  %v15711_v26 = vld [vmem:[#allocation121_spill] sm:$0xff] }
 0x60f   :  { %v4200_v55 = vpop.f32.mrf.mxu1  ;;  %v4712_v10 = vmax.f32 %v4659_v20, %v4660_v38  ;;  %v3567_v23 = vadd.f32 %v15701_v52, %v15700_v51  ;;  %5252 = vmatpush1.bf16.msra.mxu1 %v9162_v6  ;;  %v9170_v31 = vld [vmem:[%s14928_s3 + $0x14] ss:$8 sps:$4 sm:$0xff]   ;;  %v15712_v51 = vld [vmem:[#allocation39_spill] sm:$0xff] }
 0x610   :  { %v4715_v18 = vmax.f32 %v4665_v42, %v4666_v13  ;;  %v4314_v32 = vadd.f32 %v4200_v55, %v3960_v11  ;;  %v4777_v60 = vmax.f32 %v4749_v43, %v4753_v3  ;;  %8299 = vst [vmem:[%s14927_s13 + $0x120] sm:$0xff] %v4792_v5  ;;  %v4667_v57 = vadd.f32 %v12856_v49, %v4313_v62  ;;  %v13239_v13 = vpop.f32.mrf.mxu0  ;;  %v15710_v6 = vld [vmem:[#allocation28_spill] sm:$0xff]  ;;  %v15713_v52 = vld [vmem:[#allocation139_spill] sm:$0xff] }
 0x611   :  { %v4204_v21 = vpop.f32.mrf.mxu1  ;;  %v4750_v49 = vadd.f32 %v13010_v50, %v4711_v63  ;;  %v3569_v63 = vadd.f32 %v15703_v36, %v15702_v48  ;;  %v4751_v17 = vadd.f32 %v13010_v50, %v4712_v10  ;;  %v15707_v10 = vld [vmem:[#allocation122_spill] sm:$0xff] }
 0x612   :  { %v4754_v39 = vadd.f32 %v13010_v50, %v4715_v18  ;;  %v4668_v54 = vadd.f32 %v12879_v25, %v4314_v32  ;;  %v4315_v2 = vadd.f32 %v4204_v21, %v3961_v58  ;;  %v4793_v53 = vmax.f32 %v4777_v60, 0.0  ;;  %v9167_v25 = vld [vmem:[%s14928_s3 + $0x24] ss:$8 sps:$4 sm:$0xff]   ;;  %v15706_v60 = vld [vmem:[#allocation29_spill] sm:$0xff]  ;;  %v13256_v45 = vpop.f32.mrf.mxu0 }
 0x613   :  { %v4206_v12 = vpop.f32.mrf.mxu1  ;;  %5253 = vmatprep.subr.bf16.mxu1 %v9167_v25  ;;  %v15705_v18 = vld [vmem:[#allocation130_spill] sm:$0xff] }
 0x614   :  { %v4716_v11 = vmax.f32 %v4667_v57, %v4668_v54  ;;  %v4316_v35 = vadd.f32 %v4206_v12, %v3962_v1  ;;  %v4823_v14 = vpack.c.bf16 %v4793_v53, %v4792_v5  ;;  %8300 = vst [vmem:[%s14927_s13 + $0x128] sm:$0xff] %v4793_v53  ;;  %v4778_v43 = vmax.f32 %v4750_v49, %v4754_v39  ;;  %v15704_v5 = vld [vmem:[#allocation129_spill] sm:$0xff]  ;;  %v9173_v58 = vld [vmem:[%s14928_s3 + $0x4] ss:$8 sps:$4 sm:$0xff]   ;;  %v9171_v25 = vld [vmem:[%s14928_s3] ss:$8 sps:$4 sm:$0xff]  }
 0x615   :  { %v4208_v37 = vpop.f32.mrf.mxu1  ;;  %v13230_v30 = vadd.f32 %v12901_v8, %v4315_v2  ;;  %v3965_v8 = vadd.f32 %v15704_v5, %v3567_v23  ;;  %5254 = vmatpush1.bf16.msra.mxu1 %v9165_v34  ;;  %v3966_v32 = vadd.f32 %v15705_v18, %v3569_v63  ;;  %v3563_v57 = vadd.f32 %v15707_v10, %v15706_v60  ;;  %v15708_v1 = vld [vmem:[#allocation38_spill] sm:$0xff]  ;;  %v13278_v63 = vpop.f32.mrf.mxu0  ;;  %v15721_v18 = vld [vmem:[#allocation53_spill] sm:$0xff]  ;;  %v15724_v10 = vld [vmem:[#allocation36_spill] sm:$0xff] }
 0x616   :  { %v4755_v38 = vadd.f32 %v13010_v50, %v4716_v11  ;;  %v13233_v42 = vadd.f32 %v12933_v29, %v4316_v35  ;;  %4841 = vrot.lane.b32.xlu0 %v4823_v14, %s9485_s0  ;;  %v4794_v16 = vmax.f32 %v4778_v43, 0.0  ;;  %v9168_v29 = vld [vmem:[%s14928_s3 + $0x10] ss:$8 sps:$4 sm:$0xff]   ;;  %5255 = vmatprep.subr.bf16.mxu1 %v9170_v31  ;;  %v15709_v39 = vld [vmem:[#allocation138_spill] sm:$0xff]  ;;  %v3561_v49 = vadd.f32 %v15711_v26, %v15710_v6  ;;  %v15728_v26 = vld [vmem:[#allocation55_spill] sm:$0xff] }
 0x617   :  { %v4210_v3 = vpop.f32.mrf.mxu1  ;;  %v3577_v54 = vadd.f32 %v15709_v39, %v15708_v1  ;;  %v3579_v23 = vadd.f32 %v15713_v52, %v15712_v51  ;;  %v15714_v14 = vld [vmem:[#allocation128_spill] sm:$0xff]  ;;  %v15716_v43 = vld [vmem:[#allocation141_spill] sm:$0xff]  ;;  %v15717_v31 = vld [vmem:[#allocation50_spill] sm:$0xff] }
 0x618   :  { %v4717_v62 = vmax.f32 %v13230_v30, %v13233_v42  ;;  %v4779_v24 = vmax.f32 %v4751_v17, %v4755_v38  ;;  %8301 = vst [vmem:[%s14927_s13 + $0x130] sm:$0xff] %v4794_v16  ;;  %v3964_v48 = vadd.f32 %v15714_v14, %v3563_v57  ;;  %v15715_v17 = vld [vmem:[#allocation127_spill] sm:$0xff]  ;;  %v15725_v57 = vld [vmem:[#allocation136_spill] sm:$0xff]  ;;  %v15730_v51 = vld [vmem:[#allocation145_spill] sm:$0xff] }
 0x619   :  { %v4214_v20 = vpop.f32.mrf.mxu1  ;;  %5256 = vmatpush1.bf16.msra.mxu1 %v9168_v29  ;;  %v3581_v34 = vadd.f32 %v15716_v43, %v15715_v17  ;;  %v15731_v43 = vld [vmem:[#allocation124_spill] sm:$0xff]  ;;  %v15740_v42 = vld [vmem:[#allocation49_spill] sm:$0xff] }
 0x61a   :  { %v4319_v55 = vadd.f32 %v4214_v20, %v3965_v8  ;;  %v4795_v19 = vmax.f32 %v4779_v24, 0.0  ;;  %5257 = vmatprep.subr.bf16.mxu1 %v9173_v58  ;;  %v15719_v24 = vld [vmem:[#allocation42_spill] sm:$0xff]  ;;  %v15723_v58 = vld [vmem:[#allocation135_spill] sm:$0xff]  ;;  %v9176_v30 = vld [vmem:[%s14928_s3 + $0x94] ss:$8 sps:$4 sm:$0xff]  }
 0x61b   :  { %v4216_v21 = vpop.f32.mrf.mxu1  ;;  %v15720_v20 = vld [vmem:[#allocation142_spill] sm:$0xff] }
 0x61c   :  { %v4320_v2 = vadd.f32 %v4216_v21, %v3966_v32  ;;  %v4824_v53 = vpack.c.bf16 %v4795_v19, %v4794_v16  ;;  %8302 = vst [vmem:[%s14927_s13 + $0x138] sm:$0xff] %v4795_v19  ;;  %v13271_v11 = vadd.f32 %v13005_v9, %v4319_v55  ;;  %v3969_v9 = vadd.f32 %v15717_v31, %v3577_v54  ;;  %v15718_v16 = vld [vmem:[#allocation41_spill] sm:$0xff]  ;;  %v13293_v54 = vpop.f32.mrf.mxu0 }
 0x61d   :  { %v4218_v12 = vpop.f32.mrf.mxu1  ;;  %v3963_v5 = vadd.f32 %v15718_v16, %v3561_v49  ;;  %5258 = vmatpush1.bf16.msra.mxu1 %v9171_v25  ;;  %v3583_v29 = vadd.f32 %v15720_v20, %v15719_v24  ;;  %v3970_v32 = vadd.f32 %v15721_v18, %v3579_v23  ;;  %v15722_v19 = vld [vmem:[#allocation33_spill] sm:$0xff]  ;;  %v3573_v21 = vadd.f32 %v15725_v57, %v15724_v10  ;;  %v15729_v25 = vld [vmem:[#allocation44_spill] sm:$0xff]  ;;  %v15733_v16 = vld [vmem:[#allocation147_spill] sm:$0xff] }
 0x61e   :  { %v13274_v35 = vadd.f32 %v13020_v46, %v4320_v2  ;;  %4843 = vrot.lane.b32.xlu1 %v4824_v53, %s9485_s0  ;;  %v4318_v46 = vadd.f32 %v4210_v3, %v3964_v48  ;;  %v3571_v60 = vadd.f32 %v15723_v58, %v15722_v19  ;;  %v15726_v2 = vld [vmem:[#allocation43_spill] sm:$0xff]  ;;  %v15727_v3 = vld [vmem:[#allocation144_spill] sm:$0xff]  ;;  %v3971_v49 = vadd.f32 %v15728_v26, %v3581_v34  ;;  %v13309_v19 = vpop.f32.mrf.mxu0  ;;  %v15738_v58 = vld [vmem:[#allocation9_spill] sm:$0xff] }
 0x61f   :  { %v4220_v36 = vpop.f32.mrf.mxu1  ;;  %v4317_v1 = vadd.f32 %v4208_v37, %v3963_v5  ;;  %v3587_v53 = vadd.f32 %v15727_v3, %v15726_v2  ;;  %v3589_v52 = vadd.f32 %v15730_v51, %v15729_v25  ;;  %v3972_v31 = vadd.f32 %v15731_v43, %v3583_v29  ;;  %v15734_v24 = vld [vmem:[#allocation131_spill] sm:$0xff]  ;;  %v15735_v20 = vld [vmem:[#allocation48_spill] sm:$0xff]  ;;  %v15742_v25 = vld [vmem:[#allocation62_spill] sm:$0xff]  ;;  %5271 = vmatprep.subr.bf16.mxu1 %v9176_v30 }
 0x620   :  { %v4719_v38 = vmax.f32 %v13271_v11, %v13274_v35  ;;  %v4672_v23 = vadd.f32 %v12979_v7, %v4318_v46  ;;  %v3967_v34 = vadd.f32 %v15734_v24, %v3571_v60  ;;  %v3968_v18 = vadd.f32 %v15735_v20, %v3573_v21  ;;  %v15736_v7 = vld [vmem:[#allocation47_spill] sm:$0xff]  ;;  %v15737_v46 = vld [vmem:[#allocation148_spill] sm:$0xff] }
 0x621   :  { %v4224_v8 = vpop.f32.mrf.mxu1  ;;  %v3973_v10 = vadd.f32 %v15738_v58, %v3587_v53  ;;  %v4756_v29 = vadd.f32 %v13010_v50, %v4717_v62  ;;  %v9174_v53 = vld [vmem:[%s14928_s3 + $0x90] ss:$8 sps:$4 sm:$0xff]   ;;  %v15741_v62 = vld [vmem:[#allocation150_spill] sm:$0xff]  ;;  %v9188_v11 = vld [vmem:[%s14928_s3 + $0x254] ss:$8 sps:$4 sm:$0xff]  }
 0x622   :  { %v4323_v55 = vadd.f32 %v4224_v8, %v3969_v9  ;;  %v15732_v9 = vld [vmem:[#allocation45_spill] sm:$0xff]  ;;  %v4671_v8 = vadd.f32 %v12959_v0, %v4317_v1  ;;  %v4322_v57 = vadd.f32 %v4220_v36, %v3968_v18  ;;  %v15739_v1 = vld [vmem:[#allocation2_spill] sm:$0xff]  ;;  %v3597_v36 = vadd.f32 %v15741_v62, %v15740_v42  ;;  %5272 = vmatpush2.bf16.msra.mxu1 %v9174_v53  ;;  %v15750_v35 = vld [vmem:[#allocation59_spill] sm:$0xff] }
 0x623   :  { %v4226_v39 = vpop.f32.mrf.mxu1  ;;  %v3591_v5 = vadd.f32 %v15733_v16, %v15732_v9  ;;  %v3974_v21 = vadd.f32 %v15739_v1, %v3589_v52  ;;  %v4321_v26 = vadd.f32 %v4218_v12, %v3967_v34  ;;  %v13331_v52 = vpop.f32.mrf.mxu0  ;;  %v15747_v58 = vld [vmem:[#allocation70_spill] sm:$0xff] }
 0x624   :  { %v4324_v6 = vadd.f32 %v4226_v39, %v3970_v32  ;;  %v4677_v48 = vadd.f32 %v13075_v56, %v4323_v55  ;;  %v3593_v56 = vadd.f32 %v15737_v46, %v15736_v7  ;;  %v4718_v0 = vmax.f32 %v4671_v8, %v4672_v23  ;;  %v15743_v23 = vld [vmem:[#allocation64_spill] sm:$0xff]  ;;  %v9180_v1 = vld [vmem:[%s14928_s3 + $0x80] ss:$8 sps:$4 sm:$0xff]  }
 0x625   :  { %v4228_v14 = vpop.f32.mrf.mxu1  ;;  %v3975_v51 = vadd.f32 %v15742_v25, %v3591_v5  ;;  %v4676_v9 = vadd.f32 %v13049_v41, %v4322_v57  ;;  %v4675_v20 = vadd.f32 %v13035_v4, %v4321_v26  ;;  %v9179_v4 = vld [vmem:[%s14928_s3 + $0x2f4] ss:$8 sps:$4 sm:$0xff]  }
 0x626   :  { %v4678_v17 = vadd.f32 %v13098_v44, %v4324_v6  ;;  %v4325_v37 = vadd.f32 %v4228_v14, %v3971_v49  ;;  %v3976_v14 = vadd.f32 %v15743_v23, %v3593_v56  ;;  %v15746_v56 = vld [vmem:[#allocation67_spill] sm:$0xff]  ;;  %6009 = vmatprep.subr.bf16.mxu0 %v9179_v4 }
 0x627   :  { %v4230_v32 = vpop.f32.mrf.mxu1 }
 0x628   :  { %v4721_v55 = vmax.f32 %v4677_v48, %v4678_v17  ;;  %v4326_v44 = vadd.f32 %v4230_v32, %v3972_v31  ;;  %v4679_v2 = vadd.f32 %v13116_v40, %v4325_v37  ;;  %v15744_v17 = vld [vmem:[#allocation52_spill] sm:$0xff]  ;;  %v15745_v37 = vld [vmem:[#allocation151_spill] sm:$0xff]  ;;  %v4757_v31 = vadd.f32 %v13010_v50, %v4718_v0  ;;  %v13342_v32 = vpop.f32.mrf.mxu0 }
 0x629   :  { %v4234_v60 = vpop.f32.mrf.mxu1  ;;  %v3599_v43 = vadd.f32 %v15745_v37, %v15744_v17  ;;  %v15752_v17 = vld [vmem:[#allocation80_spill] sm:$0xff] }
 0x62a   :  { %v4760_v39 = vadd.f32 %v13010_v50, %v4721_v55  ;;  %v4680_v3 = vadd.f32 %v13133_v28, %v4326_v44  ;;  %v4327_v6 = vadd.f32 %v4234_v60, %v3973_v10  ;;  %v3977_v55 = vadd.f32 %v15746_v56, %v3597_v36 }
 0x62b   :  { %v4236_v49 = vpop.f32.mrf.mxu1  ;;  %v3978_v10 = vadd.f32 %v15747_v58, %v3599_v43  ;;  %v15761_v58 = vld [vmem:[#allocation162_spill] sm:$0xff] }
 0x62c   :  { %v4722_v40 = vmax.f32 %v4679_v2, %v4680_v3  ;;  %v4328_v28 = vadd.f32 %v4236_v49, %v3974_v21  ;;  %v4780_v48 = vmax.f32 %v4756_v29, %v4760_v39  ;;  %v4681_v12 = vadd.f32 %v13148_v27, %v4327_v6  ;;  %v13362_v39 = vpop.f32.mrf.mxu0  ;;  %v9182_v2 = vld [vmem:[%s14928_s3 + $0x84] ss:$8 sps:$4 sm:$0xff]  }
 0x62d   :  { %v4238_v16 = vpop.f32.mrf.mxu1  ;;  %v4720_v27 = vmax.f32 %v4675_v20, %v4676_v9  ;;  %v15749_v3 = vld [vmem:[#allocation155_spill] sm:$0xff]  ;;  %5273 = vmatprep.subr.bf16.mxu1 %v9182_v2  ;;  %v15756_v20 = vld [vmem:[#allocation65_spill] sm:$0xff] }
 0x62e   :  { %v4761_v5 = vadd.f32 %v13010_v50, %v4722_v40  ;;  %v4682_v8 = vadd.f32 %v13162_v59, %v4328_v28  ;;  %v4329_v24 = vadd.f32 %v4238_v16, %v3975_v51  ;;  %v4796_v34 = vmax.f32 %v4780_v48, 0.0  ;;  %5274 = vmatpush2.bf16.msra.mxu1 %v9180_v1  ;;  %v15754_v16 = vld [vmem:[#allocation56_spill] sm:$0xff] }
 0x62f   :  { %v4240_v18 = vpop.f32.mrf.mxu1  ;;  %v4759_v36 = vadd.f32 %v13010_v50, %v4720_v27  ;;  %5743 = vmatprep.subr.bf16.mxu1 %v9188_v11  ;;  %v15768_v11 = vld [vmem:[#allocation165_spill] sm:$0xff] }
 0x630   :  { %v4723_v7 = vmax.f32 %v4681_v12, %v4682_v8  ;;  %v4330_v46 = vadd.f32 %v4240_v18, %v3976_v14  ;;  %v4781_v41 = vmax.f32 %v4757_v31, %v4761_v5  ;;  %8303 = vst [vmem:[%s14927_s13 + $0x140] sm:$0xff] %v4796_v34  ;;  %v4683_v44 = vadd.f32 %v13184_v33, %v4329_v24  ;;  %v4620_v14 = vpop.f32.mrf.mxu0  ;;  %v15755_v5 = vld [vmem:[#allocation153_spill] sm:$0xff] }
 0x631   :  { %v4244_v59 = vpop.f32.mrf.mxu1  ;;  %v4758_v33 = vadd.f32 %v13010_v50, %v4719_v38  ;;  %v15751_v38 = vld [vmem:[#allocation156_spill] sm:$0xff]  ;;  %v3603_v8 = vadd.f32 %v15755_v5, %v15754_v16  ;;  %v15757_v18 = vld [vmem:[#allocation161_spill] sm:$0xff] }
 0x632   :  { %v4762_v29 = vadd.f32 %v13010_v50, %v4723_v7  ;;  %v4684_v0 = vadd.f32 %v13196_v61, %v4330_v46  ;;  %v4331_v57 = vadd.f32 %v4244_v59, %v3977_v55  ;;  %v4797_v60 = vmax.f32 %v4781_v41, 0.0  ;;  %v15748_v61 = vld [vmem:[#allocation57_spill] sm:$0xff]  ;;  %v15758_v55 = vld [vmem:[#allocation54_spill] sm:$0xff]  ;;  %v15759_v41 = vld [vmem:[#allocation152_spill] sm:$0xff] }
 0x633   :  { %v4246_v21 = vpop.f32.mrf.mxu1  ;;  %v3607_v6 = vadd.f32 %v15749_v3, %v15748_v61  ;;  %v3609_v62 = vadd.f32 %v15751_v38, %v15750_v35  ;;  %v3617_v7 = vadd.f32 %v15757_v18, %v15756_v20  ;;  %v3601_v27 = vadd.f32 %v15759_v41, %v15758_v55  ;;  %v15760_v59 = vld [vmem:[#allocation68_spill] sm:$0xff]  ;;  %v15765_v3 = vld [vmem:[#allocation85_spill] sm:$0xff] }
 0x634   :  { %v4724_v53 = vmax.f32 %v4683_v44, %v4684_v0  ;;  %v4332_v30 = vadd.f32 %v4246_v21, %v3978_v10  ;;  %v4825_v42 = vpack.c.bf16 %v4797_v60, %v4796_v34  ;;  %8304 = vst [vmem:[%s14927_s13 + $0x148] sm:$0xff] %v4797_v60  ;;  %v4782_v49 = vmax.f32 %v4758_v33, %v4762_v29  ;;  %v4622_v34 = vpop.f32.mrf.mxu0  ;;  %v15762_v0 = vld [vmem:[#allocation77_spill] sm:$0xff]  ;;  %v15764_v21 = vld [vmem:[#allocation164_spill] sm:$0xff] }
 0x635   :  { %v4248_v26 = vpop.f32.mrf.mxu1  ;;  %v13380_v51 = vadd.f32 %v13212_v22, %v4331_v57  ;;  %v3981_v37 = vadd.f32 %v15752_v17, %v3607_v6  ;;  %v3619_v10 = vadd.f32 %v15761_v58, %v15760_v59  ;;  %v3980_v57 = vadd.f32 %v15762_v0, %v3603_v8  ;;  %v15763_v33 = vld [vmem:[#allocation69_spill] sm:$0xff]  ;;  %v15777_v5 = vld [vmem:[#allocation88_spill] sm:$0xff] }
 0x636   :  { %v4763_v25 = vadd.f32 %v13010_v50, %v4724_v53  ;;  %v13383_v40 = vadd.f32 %v13239_v13, %v4332_v30  ;;  %4845 = vrot.lane.b32.xlu0 %v4825_v42, %s9485_s0  ;;  %v4798_v23 = vmax.f32 %v4782_v49, 0.0  ;;  %v15753_v13 = vld [vmem:[#allocation82_spill] sm:$0xff]  ;;  %v4624_v1 = vpop.f32.mrf.mxu0  ;;  %v3621_v2 = vadd.f32 %v15764_v21, %v15763_v33  ;;  %v15770_v49 = vld [vmem:[#allocation60_spill] sm:$0xff] }
 0x637   :  { %v4250_v28 = vpop.f32.mrf.mxu1  ;;  %v3982_v9 = vadd.f32 %v15753_v13, %v3609_v62  ;;  %v3985_v6 = vadd.f32 %v15765_v3, %v3617_v7  ;;  %v15766_v53 = vld [vmem:[#allocation74_spill] sm:$0xff]  ;;  %v15769_v62 = vld [vmem:[#allocation87_spill] sm:$0xff]  ;;  %v15780_v59 = vld [vmem:[#allocation84_spill] sm:$0xff] }
 0x638   :  { %v4725_v48 = vmax.f32 %v13380_v51, %v13383_v40  ;;  %v4783_v43 = vmax.f32 %v4759_v36, %v4763_v25  ;;  %8305 = vst [vmem:[%s14927_s13 + $0x150] sm:$0xff] %v4798_v23  ;;  %v4334_v30 = vadd.f32 %v4250_v28, %v3980_v57  ;;  %v3986_v36 = vadd.f32 %v15769_v62, %v3619_v10  ;;  %v15771_v25 = vld [vmem:[#allocation158_spill] sm:$0xff]  ;;  %v15772_v40 = vld [vmem:[#allocation63_spill] sm:$0xff]  ;;  %v15782_v33 = vld [vmem:[#allocation76_spill] sm:$0xff] }
 0x639   :  { %v4254_v31 = vpop.f32.mrf.mxu1  ;;  %v3611_v51 = vadd.f32 %v15771_v25, %v15770_v49  ;;  %v15776_v28 = vld [vmem:[#allocation75_spill] sm:$0xff]  ;;  %v3987_v8 = vadd.f32 %v15777_v5, %v3621_v2  ;;  %v15783_v21 = vld [vmem:[#allocation168_spill] sm:$0xff] }
 0x63a   :  { %v4335_v22 = vadd.f32 %v4254_v31, %v3981_v37  ;;  %v4799_v12 = vmax.f32 %v4783_v43, 0.0  ;;  %v15774_v37 = vld [vmem:[#allocation73_spill] sm:$0xff]  ;;  %v15775_v43 = vld [vmem:[#allocation167_spill] sm:$0xff] }
 0x63b   :  { %v4256_v24 = vpop.f32.mrf.mxu1  ;;  %v3627_v31 = vadd.f32 %v15775_v43, %v15774_v37 }
 0x63c   :  { %v4336_v46 = vadd.f32 %v4256_v24, %v3982_v9  ;;  %v4826_v56 = vpack.c.bf16 %v4799_v12, %v4798_v23  ;;  %8306 = vst [vmem:[%s14927_s13 + $0x158] sm:$0xff] %v4799_v12  ;;  %v13405_v4 = vadd.f32 %v13293_v54, %v4335_v22  ;;  %v3979_v54 = vadd.f32 %v15766_v53, %v3601_v27  ;;  %v15773_v23 = vld [vmem:[#allocation159_spill] sm:$0xff]  ;;  %v4628_v9 = vpop.f32.mrf.mxu0  ;;  %v15786_v53 = vld [vmem:[#allocation169_spill] sm:$0xff] }
 0x63d   :  { %v4258_v44 = vpop.f32.mrf.mxu1  ;;  %v3613_v17 = vadd.f32 %v15773_v23, %v15772_v40  ;;  %v3629_v12 = vadd.f32 %v12852_v15, %v15776_v28  ;;  %v4688_v24 = vadd.f32 %v13278_v63, %v4334_v30  ;;  %v15781_v15 = vld [vmem:[#allocation90_spill] sm:$0xff]  ;;  %v3631_v63 = vadd.f32 %v15783_v21, %v15782_v33  ;;  %v9189_v21 = vld [vmem:[%s14928_s3 + $0x2d0] ss:$8 sps:$4 sm:$0xff]  }
 0x63e   :  { %v13408_v29 = vadd.f32 %v13309_v19, %v4336_v46  ;;  %4847 = vrot.lane.b32.xlu1 %v4826_v56, %s9485_s0  ;;  %v15767_v19 = vld [vmem:[#allocation72_spill] sm:$0xff]  ;;  %v4333_v22 = vadd.f32 %v4248_v26, %v3979_v54  ;;  %v15778_v56 = vld [vmem:[#allocation89_spill] sm:$0xff]  ;;  %v15779_v26 = vld [vmem:[#allocation83_spill] sm:$0xff]  ;;  %v3989_v0 = vadd.f32 %v15781_v15, %v3627_v31  ;;  %v4630_v57 = vpop.f32.mrf.mxu0 }
 0x63f   :  { %v4260_v60 = vpop.f32.mrf.mxu1  ;;  %v3623_v35 = vadd.f32 %v15768_v11, %v15767_v19  ;;  %v3983_v27 = vadd.f32 %v15779_v26, %v3611_v51  ;;  %v3984_v58 = vadd.f32 %v15780_v59, %v3613_v17  ;;  %v15787_v23 = vld [vmem:[#allocation94_spill] sm:$0xff] }
 0x640   :  { %v4727_v61 = vmax.f32 %v13405_v4, %v13408_v29  ;;  %v4687_v41 = vadd.f32 %v13256_v45, %v4333_v22  ;;  %v4764_v45 = vadd.f32 %v13010_v50, %v4725_v48  ;;  %v4632_v25 = vpop.f32.mrf.mxu0  ;;  %v3991_v17 = vadd.f32 %v15787_v23, %v3631_v63  ;;  %v15788_v22 = vld [vmem:[#allocation96_spill] sm:$0xff]  ;;  %v9185_v15 = vld [vmem:[%s14928_s3 + $0x2e4] ss:$8 sps:$4 sm:$0xff]  }
 0x641   :  { %v4264_v42 = vpop.f32.mrf.mxu1  ;;  %v3988_v55 = vadd.f32 %v15778_v56, %v3623_v35 }
 0x642   :  { %v4339_v38 = vadd.f32 %v4264_v42, %v3985_v6  ;;  %v4726_v30 = vmax.f32 %v4687_v41, %v4688_v24  ;;  %v4338_v42 = vadd.f32 %v4260_v60, %v3984_v58  ;;  %v4634_v5 = vpop.f32.mrf.mxu0 }
 0x643   :  { %v4266_v13 = vpop.f32.mrf.mxu1 }
 0x644   :  { %v4340_v16 = vadd.f32 %v4266_v13, %v3986_v36  ;;  %v4693_v18 = vadd.f32 %v13362_v39, %v4339_v38  ;;  %v15784_v39 = vld [vmem:[#allocation92_spill] sm:$0xff]  ;;  %v4337_v36 = vadd.f32 %v4258_v44, %v3983_v27  ;;  %v4765_v43 = vadd.f32 %v13010_v50, %v4726_v30  ;;  %v9215_v30 = vld [vmem:[%s14928_s3 + $0x284] ss:$8 sps:$4 sm:$0xff]  }
 0x645   :  { %v4268_v20 = vpop.f32.mrf.mxu1  ;;  %v3990_v6 = vadd.f32 %v15784_v39, %v3629_v12  ;;  %v4692_v48 = vadd.f32 %v13342_v32, %v4338_v42  ;;  %v4766_v32 = vadd.f32 %v13010_v50, %v4727_v61  ;;  %v9200_v39 = vld [vmem:[%s14928_s3 + $0x2b4] ss:$8 sps:$4 sm:$0xff]   ;;  %v9213_v42 = vld [vmem:[%s14928_s3 + $0x280] ss:$8 sps:$4 sm:$0xff]  }
 0x646   :  { %v4341_v7 = vadd.f32 %v4268_v20, %v3987_v8  ;;  %v4694_v46 = vadd.f32 %v4620_v14, %v4340_v16  ;;  %v15785_v14 = vld [vmem:[#allocation79_spill] sm:$0xff]  ;;  %v4691_v12 = vadd.f32 %v13331_v52, %v4337_v36 }
 0x647   :  { %v4270_v10 = vpop.f32.mrf.mxu1  ;;  %v3633_v54 = vadd.f32 %v15786_v53, %v15785_v14  ;;  %v9206_v14 = vld [vmem:[%s14928_s3 + $0x2a4] ss:$8 sps:$4 sm:$0xff]   ;;  %v9204_v53 = vld [vmem:[%s14928_s3 + $0x2a0] ss:$8 sps:$4 sm:$0xff]  }
 0x648   :  { %v4729_v2 = vmax.f32 %v4693_v18, %v4694_v46  ;;  %v4342_v3 = vadd.f32 %v4270_v10, %v3988_v55  ;;  %v4695_v35 = vadd.f32 %v4622_v34, %v4341_v7  ;;  %v9222_v36 = vld [vmem:[%s14928_s3 + $0x300] ss:$8 sps:$4 sm:$0xff]  }
 0x649   :  { %v4274_v19 = vpop.f32.mrf.mxu1  ;;  %v3992_v13 = vadd.f32 %v15788_v22, %v3633_v54  ;;  %v9209_v54 = vld [vmem:[%s14928_s3 + $0x294] ss:$8 sps:$4 sm:$0xff]   ;;  %v9212_v22 = vld [vmem:[%s14928_s3 + $0x224] ss:$8 sps:$4 sm:$0xff]  }
 0x64a   :  { %v4768_v11 = vadd.f32 %v13010_v50, %v4729_v2  ;;  %v4343_v38 = vadd.f32 %v4274_v19, %v3989_v0  ;;  %v4696_v62 = vadd.f32 %v4624_v1, %v4342_v3  ;;  %v9183_v0 = vld [vmem:[%s14928_s3 + $0x2e0] ss:$8 sps:$4 sm:$0xff]   ;;  %v9194_v2 = vld [vmem:[%s14928_s3 + $0x2c4] ss:$8 sps:$4 sm:$0xff]   ;;  %v9218_v19 = vld [vmem:[%s14928_s3 + $0x314] ss:$8 sps:$4 sm:$0xff]  }
 0x64b   :  { %v4276_v49 = vpop.f32.mrf.mxu1  ;;  %v9192_v3 = vld [vmem:[%s14928_s3 + $0x2c0] ss:$8 sps:$4 sm:$0xff]  }
 0x64c   :  { %v4730_v51 = vmax.f32 %v4695_v35, %v4696_v62  ;;  %v4344_v40 = vadd.f32 %v4276_v49, %v3990_v6  ;;  %v4784_v37 = vmax.f32 %v4764_v45, %v4768_v11  ;;  %v4697_v31 = vadd.f32 %v4628_v9, %v4343_v38  ;;  %v9198_v6 = vld [vmem:[%s14928_s3 + $0x2b0] ss:$8 sps:$4 sm:$0xff]   ;;  %v9224_v62 = vld [vmem:[%s14928_s3 + $0x304] ss:$8 sps:$4 sm:$0xff]  }
 0x64d   :  { %v4278_v60 = vpop.f32.mrf.mxu1  ;;  %v4728_v9 = vmax.f32 %v4691_v12, %v4692_v48  ;;  %v9207_v45 = vld [vmem:[%s14928_s3 + $0x290] ss:$8 sps:$4 sm:$0xff]   ;;  %v9195_v48 = vld [vmem:[%s14928_s3 + $0x240] ss:$8 sps:$4 sm:$0xff]   ;;  %v9227_v12 = vld [vmem:[%s14928_s3 + $0x204] ss:$8 sps:$4 sm:$0xff]  }
 0x64e   :  { %v4769_v34 = vadd.f32 %v13010_v50, %v4730_v51  ;;  %v4345_v28 = vadd.f32 %v4278_v60, %v3991_v17  ;;  %v4698_v1 = vadd.f32 %v4630_v57, %v4344_v40  ;;  %v4800_v44 = vmax.f32 %v4784_v37, 0.0  ;;  %v9191_v57 = vld [vmem:[%s14928_s3 + $0x2d4] ss:$8 sps:$4 sm:$0xff]   ;;  %v9216_v35 = vld [vmem:[%s14928_s3 + $0x310] ss:$8 sps:$4 sm:$0xff]  }
 0x64f   :  { %v4280_v16 = vpop.f32.mrf.mxu1  ;;  %v4767_v26 = vadd.f32 %v13010_v50, %v4728_v9  ;;  %v9186_v37 = vld [vmem:[%s14928_s3 + $0x250] ss:$8 sps:$4 sm:$0xff]   ;;  %v9231_v9 = vld [vmem:[%s14928_s3 + $0x1e0] ss:$8 sps:$4 sm:$0xff]  }
 0x650   :  { %v4731_v8 = vmax.f32 %v4697_v31, %v4698_v1  ;;  %v4346_v24 = vadd.f32 %v4280_v16, %v3992_v13  ;;  %v4785_v20 = vmax.f32 %v4765_v43, %v4769_v34  ;;  %8307 = vst [vmem:[%s14927_s13 + $0x160] sm:$0xff] %v4800_v44  ;;  %v4699_v7 = vadd.f32 %v4632_v25, %v4345_v28  ;;  %v9197_v43 = vld [vmem:[%s14928_s3 + $0x244] ss:$8 sps:$4 sm:$0xff]   ;;  %v9203_v31 = vld [vmem:[%s14928_s3 + $0x234] ss:$8 sps:$4 sm:$0xff]  }
 0x651   :  { %v9201_v60 = vld [vmem:[%s14928_s3 + $0x230] ss:$8 sps:$4 sm:$0xff]   ;;  %v9210_v13 = vld [vmem:[%s14928_s3 + $0x220] ss:$8 sps:$4 sm:$0xff]   ;;  %v9221_v34 = vld [vmem:[%s14928_s3 + $0x214] ss:$8 sps:$4 sm:$0xff]  }
 0x652   :  { %v4770_v18 = vadd.f32 %v13010_v50, %v4731_v8  ;;  %v4700_v46 = vadd.f32 %v4634_v5, %v4346_v24  ;;  %v4801_v52 = vmax.f32 %v4785_v20, 0.0  ;;  %v9219_v1 = vld [vmem:[%s14928_s3 + $0x210] ss:$8 sps:$4 sm:$0xff]   ;;  %v9225_v16 = vld [vmem:[%s14928_s3 + $0x200] ss:$8 sps:$4 sm:$0xff]  }
 0x653   :  { %v9230_v5 = vld [vmem:[%s14928_s3 + $0x1f4] ss:$8 sps:$4 sm:$0xff]   ;;  %v9228_v24 = vld [vmem:[%s14928_s3 + $0x1f0] ss:$8 sps:$4 sm:$0xff]  }
 0x654   :  { %v4732_v56 = vmax.f32 %v4699_v7, %v4700_v46  ;;  %v4827_v55 = vpack.c.bf16 %v4801_v52, %v4800_v44  ;;  %8308 = vst [vmem:[%s14927_s13 + $0x168] sm:$0xff] %v4801_v52  ;;  %v4786_v41 = vmax.f32 %v4766_v32, %v4770_v18  ;;  %v9233_v32 = vld [vmem:[%s14928_s3 + $0x1e4] ss:$8 sps:$4 sm:$0xff]   ;;  %v9236_v18 = vld [vmem:[%s14928_s3 + $0x274] ss:$8 sps:$4 sm:$0xff]  }
 0x655   :  { %v9234_v7 = vld [vmem:[%s14928_s3 + $0x270] ss:$8 sps:$4 sm:$0xff]   ;;  %v9239_v46 = vld [vmem:[%s14928_s3 + $0x264] ss:$8 sps:$4 sm:$0xff]   ;;  %v9237_v52 = vld [vmem:[%s14928_s3 + $0x260] ss:$8 sps:$4 sm:$0xff]  }
 0x656   :  { %v4771_v27 = vadd.f32 %v13010_v50, %v4732_v56  ;;  %4849 = vrot.lane.b32.xlu0 %v4827_v55, %s9485_s0  ;;  %v4802_v4 = vmax.f32 %v4786_v41, 0.0  ;;  %v9177_v50 = vld [vmem:[%s14928_s3 + $0x2f0] ss:$8 sps:$4 sm:$0xff]  }
 0x658   :  { %v4787_v29 = vmax.f32 %v4767_v26, %v4771_v27  ;;  %8309 = vst [vmem:[%s14927_s13 + $0x170] sm:$0xff] %v4802_v4 }
 0x65a   :  { %v4803_v61 = vmax.f32 %v4787_v29, 0.0 }
 0x65c   :  { %v4828_v59 = vpack.c.bf16 %v4803_v61, %v4802_v4  ;;  %8310 = vst [vmem:[%s14927_s13 + $0x178] sm:$0xff] %v4803_v61 }
 0x65e   :  { %4851 = vrot.lane.b32.xlu1 %v4828_v59, %s9485_s0 }
 0x668   :  { %v4838_v58 = vpop.permute.xlu0 %4837 }
 0x669   :  { %v13475_v10 = vsel %vm4853_vm7, 0, %v4838_v58 }
 0x66a   :  { %8351 = vmatmul.mubr.msk.bf16.gmra.mxu1 %vm3130_vm6, %v13475_v10  ;;  %8421 = vmatmul.mubr.msk.bf16.vlgmr.msra.gmra.mxu0 %vm3130_vm6, %v13475_v10 }
 0x66b   :  { %5092 = vmatprep.mubr.bf16.mxu1 %v14958_v47  ;;  %5519 = vmatprep.mubr.bf16.mxu0 %v14958_v47 }
 0x66c   :  { %6010 = vmatpush1.bf16.msra.mxu0 %v9177_v50 }
 0x66d   :  { %6011 = vmatprep.subr.bf16.mxu0 %v9185_v15 }
 0x670   :  { %v4840_v33 = vpop.permute.xlu1 %4839  ;;  %6012 = vmatpush1.bf16.msra.mxu0 %v9183_v0 }
 0x671   :  { %v13496_v63 = vsel %vm4853_vm7, 0, %v4840_v33  ;;  %6013 = vmatprep.subr.bf16.mxu0 %v9191_v57 }
 0x672   :  { %8352 = vmatmul.mubr.msk.bf16.gmra.mxu1 %vm3130_vm6, %v13496_v63  ;;  %8422 = vmatmul.mubr.msk.bf16.gmra.mxu0 %vm3130_vm6, %v13496_v63 }
 0x673   :  { %5102 = vmatprep.mubr.bf16.mxu1 %v14958_v47  ;;  %5529 = vmatprep.mubr.bf16.mxu0 %v14958_v47 }
 0x674   :  { %6014 = vmatpush1.bf16.msra.mxu0 %v9189_v21 }
 0x675   :  { %6015 = vmatprep.subr.bf16.mxu0 %v9194_v2 }
 0x678   :  { %6016 = vmatpush1.bf16.msra.mxu0 %v9192_v3 }
 0x679   :  { %6017 = vmatprep.subr.bf16.mxu0 %v9200_v39 }
 0x67c   :  { %6018 = vmatpush1.bf16.msra.mxu0 %v9198_v6 }
 0x67d   :  { %6019 = vmatprep.subr.bf16.mxu0 %v9206_v14 }
 0x680   :  { %6020 = vmatpush1.bf16.msra.mxu0 %v9204_v53 }
 0x681   :  { %6021 = vmatprep.subr.bf16.mxu0 %v9209_v54 }
 0x684   :  { %6022 = vmatpush1.bf16.msra.mxu0 %v9207_v45 }
 0x685   :  { %6023 = vmatprep.subr.bf16.mxu0 %v9215_v30 }
 0x688   :  { %v4842_v11 = vpop.permute.xlu0 %4841  ;;  %6024 = vmatpush1.bf16.msra.mxu0 %v9213_v42 }
 0x689   :  { %v13541_v38 = vsel %vm4853_vm7, 0, %v4842_v11  ;;  %6037 = vmatprep.subr.bf16.mxu0 %v9218_v19 }
 0x68a   :  { %8353 = vmatmul.mubr.msk.bf16.gmra.mxu1 %vm3130_vm6, %v13541_v38  ;;  %8423 = vmatmul.mubr.msk.bf16.gmra.mxu0 %vm3130_vm6, %v13541_v38 }
 0x68b   :  { %5112 = vmatprep.mubr.bf16.mxu1 %v14958_v47  ;;  %5539 = vmatprep.mubr.bf16.mxu0 %v14958_v47 }
 0x68c   :  { %6038 = vmatpush2.bf16.msra.mxu0 %v9216_v35 }
 0x68d   :  { %6039 = vmatprep.subr.bf16.mxu0 %v9224_v62 }
 0x690   :  { %v4844_v49 = vpop.permute.xlu1 %4843  ;;  %6040 = vmatpush2.bf16.msra.mxu0 %v9222_v36 }
 0x691   :  { %v13556_v25 = vsel %vm4853_vm7, 0, %v4844_v49 }
 0x692   :  { %8354 = vmatmul.mubr.msk.bf16.gmra.mxu1 %vm3130_vm6, %v13556_v25  ;;  %8424 = vmatmul.mubr.msk.bf16.gmra.mxu0 %vm3130_vm6, %v13556_v25 }
 0x693   :  { %5122 = vmatprep.mubr.bf16.mxu1 %v14958_v47  ;;  %5549 = vmatprep.mubr.bf16.mxu0 %v14958_v47 }
 0x697   :  { %v13694_v56 = vpop.f32.mrf.mxu1 }
 0x699   :  { %v13698_v55 = vpop.f32.mrf.mxu1 }
 0x69b   :  { %v13702_v41 = vpop.f32.mrf.mxu1 }
 0x69d   :  { %v13706_v26 = vpop.f32.mrf.mxu1 }
 0x69f   :  { %v13709_v27 = vpop.f32.mrf.mxu1 }
 0x6a1   :  { %v13712_v4 = vpop.f32.mrf.mxu1 }
 0x6a3   :  { %v13715_v29 = vpop.f32.mrf.mxu1 }
 0x6a5   :  { %v13717_v61 = vpop.f32.mrf.mxu1 }
 0x6a8   :  { %v4846_v51 = vpop.permute.xlu0 %4845 }
 0x6a9   :  { %v13565_v40 = vsel %vm4853_vm7, 0, %v4846_v51 }
 0x6aa   :  { %8355 = vmatmul.mubr.msk.bf16.gmra.mxu1 %vm3130_vm6, %v13565_v40  ;;  %8425 = vmatmul.mubr.msk.bf16.gmra.mxu0 %vm3130_vm6, %v13565_v40 }
 0x6ab   :  { %5132 = vmatprep.mubr.bf16.mxu1 %v14958_v47  ;;  %5559 = vmatprep.mubr.bf16.mxu0 %v14958_v47 }
 0x6b0   :  { %v4848_v23 = vpop.permute.xlu1 %4847 }
 0x6b1   :  { %v13574_v17 = vsel %vm4853_vm7, 0, %v4848_v23 }
 0x6b2   :  { %8356 = vmatmul.mubr.msk.bf16.gmra.mxu1 %vm3130_vm6, %v13574_v17  ;;  %8426 = vmatmul.mubr.msk.bf16.gmra.mxu0 %vm3130_vm6, %v13574_v17 }
 0x6b3   :  { %5275 = vmatprep.mubr.bf16.mxu1 %v14958_v47  ;;  %5569 = vmatprep.mubr.bf16.mxu0 %v14958_v47 }
 0x6ba   :  { %5276 = vmatmul.mubr.bf16.vlgmr.msra.gmra.mxu1 %v14958_v47 }
 0x6bb   :  { %5744 = vmatpush1.bf16.msra.mxu1 %v9186_v37  ;;  %5285 = vmatprep.mubr.bf16.mxu1 %v14958_v47 }
 0x6bc   :  { %5745 = vmatprep.subr.bf16.mxu1 %v9197_v43  ;;  %v9245_v43 = vld [vmem:[%s14930_s4 + $0x154] ss:$8 sps:$4 sm:$0xff]  }
 0x6bf   :  { %5746 = vmatpush1.bf16.msra.mxu1 %v9195_v48 }
 0x6c0   :  { %5747 = vmatprep.subr.bf16.mxu1 %v9203_v31 }
 0x6c2   :  { %5286 = vmatmul.mubr.bf16.gmra.mxu1 %v14958_v47 }
 0x6c3   :  { %5748 = vmatpush1.bf16.msra.mxu1 %v9201_v60  ;;  %5295 = vmatprep.mubr.bf16.mxu1 %v14958_v47  ;;  %v9243_v60 = vld [vmem:[%s14930_s4 + $0x150] ss:$8 sps:$4 sm:$0xff]  }
 0x6c4   :  { %5749 = vmatprep.subr.bf16.mxu1 %v9212_v22 }
 0x6c7   :  { %5750 = vmatpush1.bf16.msra.mxu1 %v9210_v13 }
 0x6c8   :  { %v4850_v28 = vpop.permute.xlu0 %4849  ;;  %5751 = vmatprep.subr.bf16.mxu1 %v9221_v34  ;;  %v9248_v34 = vld [vmem:[%s14930_s4 + $0x144] ss:$8 sps:$4 sm:$0xff]  }
 0x6c9   :  { %v13614_v44 = vsel %vm4853_vm7, 0, %v4850_v28 }
 0x6ca   :  { %5296 = vmatmul.mubr.bf16.gmra.mxu1 %v14958_v47  ;;  %8427 = vmatmul.mubr.msk.bf16.gmra.mxu0 %vm3130_vm6, %v13614_v44 }
 0x6cb   :  { %5305 = vmatprep.mubr.bf16.mxu1 %v14958_v47  ;;  %5579 = vmatprep.mubr.bf16.mxu0 %v14958_v47 }
 0x6cc   :  { %5752 = vmatpush1.bf16.msra.mxu1 %v9219_v1  ;;  %v9246_v1 = vld [vmem:[%s14930_s4 + $0x140] ss:$8 sps:$4 sm:$0xff]  }
 0x6cd   :  { %5753 = vmatprep.subr.bf16.mxu1 %v9227_v12 }
 0x6d0   :  { %v4852_v8 = vpop.permute.xlu1 %4851  ;;  %5754 = vmatpush1.bf16.msra.mxu1 %v9225_v16  ;;  %v9251_v16 = vld [vmem:[%s14930_s4 + $0x134] ss:$8 sps:$4 sm:$0xff]  }
 0x6d1   :  { %v4869_v20 = vsel %vm4853_vm7, 0, %v4852_v8  ;;  %5755 = vmatprep.subr.bf16.mxu1 %v9230_v5  ;;  %v9249_v8 = vld [vmem:[%s14930_s4 + $0x130] ss:$8 sps:$4 sm:$0xff]  }
 0x6d2   :  { %5306 = vmatmul.mubr.bf16.gmra.mxu1 %v14958_v47  ;;  %8428 = vmatmul.mubr.msk.bf16.gmra.mxu0 %vm3130_vm6, %v4869_v20 }
 0x6d3   :  { %5315 = vmatprep.mubr.bf16.mxu1 %v14958_v47  ;;  %6041 = vmatprep.mubr.bf16.mxu0 %v14958_v47 }
 0x6d4   :  { %5756 = vmatpush1.bf16.msra.mxu1 %v9228_v24 }
 0x6d5   :  { %5757 = vmatprep.subr.bf16.mxu1 %v9233_v32  ;;  %v9254_v32 = vld [vmem:[%s14930_s4 + $0x124] ss:$8 sps:$4 sm:$0xff]  }
 0x6d8   :  { %5758 = vmatpush1.bf16.msra.mxu1 %v9231_v9 }
 0x6d9   :  { %5771 = vmatprep.subr.bf16.mxu1 %v9236_v18  ;;  %v9252_v18 = vld [vmem:[%s14930_s4 + $0x120] ss:$8 sps:$4 sm:$0xff]  }
 0x6da   :  { %8377 = vmatmul.mubr.msk.bf16.gmra.mxu1 %vm3130_vm6, %v13475_v10  ;;  %8515 = vmatmul.mubr.msk.bf16.vlgmr.msra.gmra.mxu0 %vm3130_vm6, %v13565_v40 }
 0x6db   :  { %5325 = vmatprep.mubr.bf16.mxu1 %v14958_v47  ;;  %6051 = vmatprep.mubr.bf16.mxu0 %v14958_v47 }
 0x6dc   :  { %5772 = vmatpush2.bf16.msra.mxu1 %v9234_v7 }
 0x6dd   :  { %5773 = vmatprep.subr.bf16.mxu1 %v9239_v46 }
 0x6e0   :  { %5774 = vmatpush2.bf16.msra.mxu1 %v9237_v52  ;;  %v9257_v52 = vld [vmem:[%s14930_s4 + $0x114] ss:$8 sps:$4 sm:$0xff]  }
 0x6e2   :  { %8378 = vmatmul.mubr.msk.bf16.gmra.mxu1 %vm3130_vm6, %v13496_v63  ;;  %8516 = vmatmul.mubr.msk.bf16.gmra.mxu0 %vm3130_vm6, %v13574_v17 }
 0x6e3   :  { %5335 = vmatprep.mubr.bf16.mxu1 %v14958_v47  ;;  %6061 = vmatprep.mubr.bf16.mxu0 %v14958_v47 }
 0x6ea   :  { %8379 = vmatmul.mubr.msk.bf16.gmra.mxu1 %vm3130_vm6, %v13541_v38  ;;  %8517 = vmatmul.mubr.msk.bf16.gmra.mxu0 %vm3130_vm6, %v13614_v44 }
 0x6eb   :  { %5345 = vmatprep.mubr.bf16.mxu1 %v14958_v47  ;;  %6071 = vmatprep.mubr.bf16.mxu0 %v14958_v47 }
 0x6f2   :  { %8380 = vmatmul.mubr.msk.bf16.gmra.mxu1 %vm3130_vm6, %v13556_v25  ;;  %8518 = vmatmul.mubr.msk.bf16.gmra.mxu0 %vm3130_vm6, %v4869_v20 }
 0x6f3   :  { %5775 = vmatprep.mubr.bf16.mxu1 %v14958_v47  ;;  %6081 = vmatprep.mubr.bf16.mxu0 %v14958_v47 }
 0x6fa   :  { %8469 = vmatmul.mubr.msk.bf16.vlgmr.msra.gmra.mxu1 %vm3130_vm6, %v13541_v38  ;;  %6082 = vmatmul.mubr.bf16.gmra.mxu0 %v14958_v47 }
 0x6fb   :  { %5785 = vmatprep.mubr.bf16.mxu1 %v14958_v47  ;;  %6091 = vmatprep.mubr.bf16.mxu0 %v14958_v47 }
 0x702   :  { %8470 = vmatmul.mubr.msk.bf16.gmra.mxu1 %vm3130_vm6, %v13556_v25  ;;  %6092 = vmatmul.mubr.bf16.gmra.mxu0 %v14958_v47 }
 0x703   :  { %5795 = vmatprep.mubr.bf16.mxu1 %v14958_v47  ;;  %6101 = vmatprep.mubr.bf16.mxu0 %v14958_v47 }
 0x70a   :  { %8471 = vmatmul.mubr.msk.bf16.gmra.mxu1 %vm3130_vm6, %v13565_v40  ;;  %6102 = vmatmul.mubr.bf16.gmra.mxu0 %v14958_v47  ;;  %v9242_v40 = vld [vmem:[%s14930_s4 + $0x164] ss:$8 sps:$4 sm:$0xff]  }
 0x70b   :  { %5805 = vmatprep.mubr.bf16.mxu1 %v14958_v47  ;;  %6111 = vmatprep.mubr.bf16.mxu0 %v14958_v47 }
 0x70c   :  { %6469 = vmatprep.subr.bf16.mxu1 %v9242_v40 }
 0x712   :  { %8472 = vmatmul.mubr.msk.bf16.gmra.mxu1 %vm3130_vm6, %v13574_v17  ;;  %6112 = vmatmul.mubr.bf16.gmra.mxu0 %v14958_v47  ;;  %v9240_v17 = vld [vmem:[%s14930_s4 + $0x160] ss:$8 sps:$4 sm:$0xff]  }
 0x713   :  { %5815 = vmatprep.mubr.bf16.mxu1 %v14958_v47  ;;  %6470 = vmatpush1.bf16.msra.mxu1 %v9240_v17  ;;  %v9255_v17 = vld [vmem:[%s14930_s4 + $0x110] ss:$8 sps:$4 sm:$0xff]  }
 0x714   :  { %6471 = vmatprep.subr.bf16.mxu1 %v9245_v43 }
 0x717   :  { %6472 = vmatpush1.bf16.msra.mxu1 %v9243_v60 }
 0x718   :  { %6473 = vmatprep.subr.bf16.mxu1 %v9248_v34  ;;  %v9260_v34 = vld [vmem:[%s14930_s4 + $0x104] ss:$8 sps:$4 sm:$0xff]  }
 0x71a   :  { %8473 = vmatmul.mubr.msk.bf16.gmra.mxu1 %vm3130_vm6, %v13614_v44 }
 0x71b   :  { %5825 = vmatprep.mubr.bf16.mxu1 %v14958_v47  ;;  %6474 = vmatpush1.bf16.msra.mxu1 %v9246_v1 }
 0x71c   :  { %6475 = vmatprep.subr.bf16.mxu1 %v9251_v16  ;;  %v9258_v16 = vld [vmem:[%s14930_s4 + $0x100] ss:$8 sps:$4 sm:$0xff]  }
 0x71f   :  { %6476 = vmatpush1.bf16.msra.mxu1 %v9249_v8  ;;  %v9261_v8 = vld [vmem:[%s14930_s4 + $0xf0] ss:$8 sps:$4 sm:$0xff]  }
 0x720   :  { %6477 = vmatprep.subr.bf16.mxu1 %v9254_v32  ;;  %v9263_v32 = vld [vmem:[%s14930_s4 + $0xf4] ss:$8 sps:$4 sm:$0xff]  }
 0x722   :  { %8474 = vmatmul.mubr.msk.bf16.gmra.mxu1 %vm3130_vm6, %v4869_v20 }
 0x723   :  { %5835 = vmatprep.mubr.bf16.mxu1 %v14958_v47  ;;  %6478 = vmatpush1.bf16.msra.mxu1 %v9252_v18 }
 0x724   :  { %6479 = vmatprep.subr.bf16.mxu1 %v9257_v52 }
 0x727   :  { %6480 = vmatpush1.bf16.msra.mxu1 %v9255_v17  ;;  %v9266_v17 = vld [vmem:[%s14930_s4 + $0x1d4] ss:$8 sps:$4 sm:$0xff]  }
 0x728   :  { %6481 = vmatprep.subr.bf16.mxu1 %v9260_v34  ;;  %v9264_v34 = vld [vmem:[%s14930_s4 + $0x1d0] ss:$8 sps:$4 sm:$0xff]  }
 0x72a   :  { %5836 = vmatmul.mubr.bf16.gmra.mxu1 %v14958_v47  ;;  %v13721_v59 = vpop.f32.mrf.mxu1  ;;  %v13723_v58 = vpop.f32.mrf.mxu0 }
 0x72b   :  { %5845 = vmatprep.mubr.bf16.mxu1 %v14958_v47  ;;  %6482 = vmatpush1.bf16.msra.mxu1 %v9258_v16  ;;  %v9269_v16 = vld [vmem:[%s14930_s4 + $0x1c4] ss:$8 sps:$4 sm:$0xff]  }
 0x72c   :  { %v13725_v50 = vpop.f32.mrf.mxu1  ;;  %v13729_v10 = vpop.f32.mrf.mxu0  ;;  %6483 = vmatprep.subr.bf16.mxu1 %v9263_v32 }
 0x72e   :  { %v13731_v15 = vpop.f32.mrf.mxu1  ;;  %v13733_v0 = vpop.f32.mrf.mxu0 }
 0x72f   :  { %6484 = vmatpush1.bf16.msra.mxu1 %v9261_v8  ;;  %v9272_v8 = vld [vmem:[%s14930_s4 + $0x1b4] ss:$8 sps:$4 sm:$0xff]  }
 0x730   :  { %v13735_v57 = vpop.f32.mrf.mxu1  ;;  %v13737_v33 = vpop.f32.mrf.mxu0  ;;  %6487 = vmatprep.subr.bf16.mxu1 %v9266_v17  ;;  %v9279_v17 = vld [vmem:[%s14930_s4 + $0x250] ss:$8 sps:$4 sm:$0xff]  }
 0x731   :  { %15789 = vst [vmem:[#allocation93_spill] sm:$0xff] %v13735_v57  ;;  %v9297_v57 = vld [vmem:[%s14930_s4 + $0x70] ss:$8 sps:$4 sm:$0xff]  }
 0x732   :  { %5846 = vmatmul.mubr.bf16.gmra.mxu1 %v14958_v47  ;;  %v13739_v21 = vpop.f32.mrf.mxu1  ;;  %v13741_v63 = vpop.f32.mrf.mxu0 }
 0x733   :  { %6501 = vmatprep.mubr.bf16.mxu1 %v14958_v47  ;;  %15790 = vst [vmem:[#allocation34_spill] sm:$0xff] %v13739_v21  ;;  %6488 = vmatpush2.bf16.msra.mxu1 %v9264_v34  ;;  %v9281_v34 = vld [vmem:[%s14930_s4 + $0x254] ss:$8 sps:$4 sm:$0xff]  }
 0x734   :  { %v13743_v2 = vpop.f32.mrf.mxu1  ;;  %v13745_v3 = vpop.f32.mrf.mxu0  ;;  %6489 = vmatprep.subr.bf16.mxu1 %v9269_v16  ;;  %v9287_v16 = vld [vmem:[%s14930_s4 + $0x244] ss:$8 sps:$4 sm:$0xff]   ;;  %6950 = vmatprep.subr.bf16.mxu0 %v9281_v34 }
 0x735   :  { %15791 = vst [vmem:[#allocation10_spill] sm:$0xff] %v13743_v2  ;;  %6951 = vmatpush1.bf16.msra.mxu0 %v9279_v17  ;;  %v9273_v17 = vld [vmem:[%s14930_s4 + $0x1a0] ss:$8 sps:$4 sm:$0xff]   ;;  %v9284_v2 = vld [vmem:[%s14930_s4 + $0x184] ss:$8 sps:$4 sm:$0xff]  }
 0x736   :  { %v13747_v39 = vpop.f32.mrf.mxu1  ;;  %v13749_v6 = vpop.f32.mrf.mxu0  ;;  %6952 = vmatprep.subr.bf16.mxu0 %v9287_v16  ;;  %v9291_v16 = vld [vmem:[%s14930_s4 + $0x230] ss:$8 sps:$4 sm:$0xff]  }
 0x737   :  { %15792 = vst [vmem:[#allocation95_spill] sm:$0xff] %v13747_v39 }
 0x738   :  { %v13751_v14 = vpop.f32.mrf.mxu1  ;;  %v13753_v53 = vpop.f32.mrf.mxu0 }
 0x739   :  { %15793 = vst [vmem:[#allocation37_spill] sm:$0xff] %v13751_v14  ;;  %v9285_v14 = vld [vmem:[%s14930_s4 + $0x240] ss:$8 sps:$4 sm:$0xff]  }
 0x73a   :  { %6953 = vmatpush1.bf16.msra.mxu0 %v9285_v14  ;;  %v9276_v14 = vld [vmem:[%s14930_s4 + $0x190] ss:$8 sps:$4 sm:$0xff]  }
 0x74a   :  { %v13755_v54 = vpop.f32.mrf.mxu1  ;;  %v13757_v45 = vpop.f32.mrf.mxu0 }
 0x74c   :  { %v13759_v30 = vpop.f32.mrf.mxu1  ;;  %v13761_v42 = vpop.f32.mrf.mxu0 }
 0x74d   :  { %15794 = vst [vmem:[#allocation108_spill] sm:$0xff] %v13761_v42 }
 0x74e   :  { %v13763_v19 = vpop.f32.mrf.mxu1  ;;  %v13765_v11 = vpop.f32.mrf.mxu0 }
 0x74f   :  { %15795 = vst [vmem:[#allocation110_spill] sm:$0xff] %v13765_v11 }
 0x750   :  { %v13767_v35 = vpop.f32.mrf.mxu1  ;;  %v13769_v38 = vpop.f32.mrf.mxu0 }
 0x751   :  { %15796 = vst [vmem:[#allocation14_spill] sm:$0xff] %v13769_v38 }
 0x752   :  { %v13771_v62 = vpop.f32.mrf.mxu1  ;;  %v13773_v36 = vpop.f32.mrf.mxu0 }
 0x753   :  { %15797 = vst [vmem:[#allocation3_spill] sm:$0xff] %v13773_v36 }
 0x754   :  { %v13775_v49 = vpop.f32.mrf.mxu1  ;;  %v13777_v25 = vpop.f32.mrf.mxu0 }
 0x755   :  { %15798 = vst [vmem:[#allocation97_spill] sm:$0xff] %v13777_v25  ;;  %v9270_v25 = vld [vmem:[%s14930_s4 + $0x1b0] ss:$8 sps:$4 sm:$0xff]  }
 0x756   :  { %v13779_v51 = vpop.f32.mrf.mxu1  ;;  %v13784_v23 = vpop.f32.mrf.mxu0 }
 0x757   :  { %15799 = vst [vmem:[#allocation11_spill] sm:$0xff] %v13784_v23 }
 0x758   :  { %v13789_v37 = vpop.f32.mrf.mxu1  ;;  %v13794_v48 = vpop.f32.mrf.mxu0 }
 0x759   :  { %15800 = vst [vmem:[#allocation98_spill] sm:$0xff] %v13794_v48 }
 0x76a   :  { %v13796_v31 = vpop.f32.mrf.mxu1  ;;  %v13801_v22 = vpop.f32.mrf.mxu0 }
 0x76b   :  { %15801 = vst [vmem:[#allocation112_spill] sm:$0xff] %v13796_v31 }
 0x76c   :  { %v13803_v13 = vpop.f32.mrf.mxu1  ;;  %v13813_v44 = vpop.f32.mrf.mxu0 }
 0x76d   :  { %15802 = vst [vmem:[#allocation15_spill] sm:$0xff] %v13803_v13 }
 0x76e   :  { %v13808_v28 = vpop.f32.mrf.mxu1  ;;  %v13825_v24 = vpop.f32.mrf.mxu0 }
 0x76f   :  { %15803 = vst [vmem:[#allocation8_spill] sm:$0xff] %v13808_v28  ;;  %v9267_v28 = vld [vmem:[%s14930_s4 + $0x1c0] ss:$8 sps:$4 sm:$0xff]  }
 0x770   :  { %v13815_v12 = vpop.f32.mrf.mxu1  ;;  %v13837_v7 = vpop.f32.mrf.mxu0  ;;  %6490 = vmatpush2.bf16.msra.mxu1 %v9267_v28  ;;  %v9293_v28 = vld [vmem:[%s14930_s4 + $0x234] ss:$8 sps:$4 sm:$0xff]  }
 0x771   :  { %15804 = vst [vmem:[#allocation115_spill] sm:$0xff] %v13815_v12  ;;  %6491 = vmatprep.subr.bf16.mxu1 %v9272_v8  ;;  %6954 = vmatprep.subr.bf16.mxu0 %v9293_v28  ;;  %v9294_v28 = vld [vmem:[%s14930_s4 + $0x220] ss:$8 sps:$4 sm:$0xff]  }
 0x772   :  { %v13820_v5 = vpop.f32.mrf.mxu1  ;;  %v13849_v43 = vpop.f32.mrf.mxu0  ;;  %6955 = vmatpush1.bf16.msra.mxu0 %v9291_v16  ;;  %v9282_v16 = vld [vmem:[%s14930_s4 + $0x180] ss:$8 sps:$4 sm:$0xff]  }
 0x773   :  { %15805 = vst [vmem:[#allocation51_spill] sm:$0xff] %v13820_v5 }
 0x774   :  { %v13827_v20 = vpop.f32.mrf.mxu1  ;;  %v13867_v18 = vpop.f32.mrf.mxu0  ;;  %6492 = vmatpush2.bf16.msra.mxu1 %v9270_v25  ;;  %v9296_v25 = vld [vmem:[%s14930_s4 + $0x224] ss:$8 sps:$4 sm:$0xff]  }
 0x775   :  { %15806 = vst [vmem:[#allocation117_spill] sm:$0xff] %v13827_v20  ;;  %6956 = vmatprep.subr.bf16.mxu0 %v9296_v25  ;;  %v9300_v25 = vld [vmem:[%s14930_s4 + $0x210] ss:$8 sps:$4 sm:$0xff]  }
 0x776   :  { %v13832_v9 = vpop.f32.mrf.mxu1  ;;  %6957 = vmatpush1.bf16.msra.mxu0 %v9294_v28  ;;  %v9299_v28 = vld [vmem:[%s14930_s4 + $0x74] ss:$8 sps:$4 sm:$0xff]  }
 0x777   :  { %15807 = vst [vmem:[#allocation5_spill] sm:$0xff] %v13832_v9  ;;  %v13879_v9 = vpop.f32.mrf.mxu0 }
 0x778   :  { %v13839_v46 = vpop.f32.mrf.mxu1 }
 0x779   :  { %15808 = vst [vmem:[#allocation101_spill] sm:$0xff] %v13839_v46  ;;  %v13888_v12 = vpop.f32.mrf.mxu0 }
 0x77a   :  { %v13844_v40 = vpop.f32.mrf.mxu1 }
 0x77c   :  { %v13851_v60 = vpop.f32.mrf.mxu1 }
 0x77e   :  { %v13856_v1 = vpop.f32.mrf.mxu1 }
 0x780   :  { %v13869_v52 = vpop.f32.mrf.mxu1 }
 0x782   :  { %v13874_v46 = vpop.f32.mrf.mxu1 }
 0x784   :  { %v13881_v20 = vpop.f32.mrf.mxu1 }
 0x786   :  { %v13883_v5 = vpop.f32.mrf.mxu1 }
 0x788   :  { %v13890_v32 = vpop.f32.mrf.mxu1 }
 0x78a   :  { %v13901_v13 = vpop.f32.mrf.mxu1  ;;  %v13903_v31 = vpop.f32.mrf.mxu0 }
 0x78b   :  { %15809 = vst [vmem:[#allocation13_spill] sm:$0xff] %v13903_v31  ;;  %v9275_v31 = vld [vmem:[%s14930_s4 + $0x1a4] ss:$8 sps:$4 sm:$0xff]  }
 0x78c   :  { %v13911_v48 = vpop.f32.mrf.mxu1  ;;  %v13913_v23 = vpop.f32.mrf.mxu0  ;;  %6493 = vmatprep.subr.bf16.mxu1 %v9275_v31 }
 0x78d   :  { %15810 = vst [vmem:[#allocation102_spill] sm:$0xff] %v13913_v23  ;;  %v9278_v23 = vld [vmem:[%s14930_s4 + $0x194] ss:$8 sps:$4 sm:$0xff]   ;;  %6494 = vmatpush2.bf16.msra.mxu1 %v9273_v17 }
 0x78e   :  { %v13924_v36 = vpop.f32.mrf.mxu1  ;;  %v13926_v39 = vpop.f32.mrf.mxu0  ;;  %6495 = vmatprep.subr.bf16.mxu1 %v9278_v23  ;;  %v9302_v17 = vld [vmem:[%s14930_s4 + $0x214] ss:$8 sps:$4 sm:$0xff]  }
 0x78f   :  { %15811 = vst [vmem:[#allocation120_spill] sm:$0xff] %v13926_v39  ;;  %6958 = vmatprep.subr.bf16.mxu0 %v9302_v17 }
 0x790   :  { %v13931_v34 = vpop.f32.mrf.mxu1  ;;  %v13933_v8 = vpop.f32.mrf.mxu0  ;;  %6959 = vmatpush1.bf16.msra.mxu0 %v9300_v25 }
 0x791   :  { %15812 = vst [vmem:[#allocation123_spill] sm:$0xff] %v13931_v34  ;;  %15813 = vst [vmem:[#allocation61_spill] sm:$0xff] %v13933_v8  ;;  %6496 = vmatpush2.bf16.msra.mxu1 %v9276_v14  ;;  %v9308_v14 = vld [vmem:[%s14930_s4 + $0x204] ss:$8 sps:$4 sm:$0xff]  }
 0x792   :  { %v13944_v39 = vpop.f32.mrf.mxu1  ;;  %v13946_v38 = vpop.f32.mrf.mxu0  ;;  %6497 = vmatprep.subr.bf16.mxu1 %v9284_v2  ;;  %v9288_v2 = vld [vmem:[%s14930_s4 + $0x170] ss:$8 sps:$4 sm:$0xff]   ;;  %6960 = vmatprep.subr.bf16.mxu0 %v9308_v14  ;;  %v9303_v14 = vld [vmem:[%s14930_s4 + $0x60] ss:$8 sps:$4 sm:$0xff]  }
 0x793   :  { %15814 = vst [vmem:[#allocation22_spill] sm:$0xff] %v13944_v39  ;;  %15815 = vst [vmem:[#allocation12_spill] sm:$0xff] %v13946_v38 }
 0x794   :  { %v13951_v8 = vpop.f32.mrf.mxu1  ;;  %v13953_v31 = vpop.f32.mrf.mxu0 }
 0x795   :  { %15816 = vst [vmem:[#allocation100_spill] sm:$0xff] %v13951_v8  ;;  %15817 = vst [vmem:[#allocation46_spill] sm:$0xff] %v13953_v31  ;;  %6498 = vmatpush2.bf16.msra.mxu1 %v9282_v16 }
 0x796   :  { %v13964_v38 = vpop.f32.mrf.mxu1  ;;  %v13966_v8 = vpop.f32.mrf.mxu0 }
 0x797   :  { %15818 = vst [vmem:[#allocation105_spill] sm:$0xff] %v13964_v38  ;;  %15819 = vst [vmem:[#allocation4_spill] sm:$0xff] %v13966_v8  ;;  %v9290_v38 = vld [vmem:[%s14930_s4 + $0x174] ss:$8 sps:$4 sm:$0xff]  }
 0x798   :  { %v13971_v31 = vpop.f32.mrf.mxu1  ;;  %v13973_v23 = vpop.f32.mrf.mxu0  ;;  %6499 = vmatprep.subr.bf16.mxu1 %v9290_v38 }
 0x799   :  { %15820 = vst [vmem:[#allocation99_spill] sm:$0xff] %v13971_v31  ;;  %15821 = vst [vmem:[#allocation16_spill] sm:$0xff] %v13973_v23  ;;  %v9306_v31 = vld [vmem:[%s14930_s4 + $0x200] ss:$8 sps:$4 sm:$0xff]   ;;  %6500 = vmatpush2.bf16.msra.mxu1 %v9288_v2 }
 0x79a   :  { %v5317_v8 = vpop.f32.mrf.mxu1  ;;  %v13984_v11 = vpop.f32.mrf.mxu0  ;;  %6692 = vmatprep.subr.bf16.mxu1 %v9299_v28  ;;  %6961 = vmatpush1.bf16.msra.mxu0 %v9306_v31 }
 0x79b   :  { %15822 = vst [vmem:[#allocation106_spill] sm:$0xff] %v13984_v11  ;;  %v5318_v23 = vadd.f32 %v5317_v8, %v13755_v54  ;;  %v9314_v54 = vld [vmem:[%s14930_s4 + $0x1f4] ss:$8 sps:$4 sm:$0xff]  }
 0x79c   :  { %v5319_v39 = vpop.f32.mrf.mxu1  ;;  %v13999_v17 = vpop.f32.mrf.mxu0  ;;  %6962 = vmatprep.subr.bf16.mxu0 %v9314_v54  ;;  %6502 = vmatmul.mubr.bf16.vlgmr.msra.gmra.mxu1 %v14958_v47 }
 0x79d   :  { %v5320_v8 = vadd.f32 %v5319_v39, %v13759_v30  ;;  %v14006_v21 = vadd.f32 %v13801_v22, %v5318_v23  ;;  %v9305_v39 = vld [vmem:[%s14930_s4 + $0x64] ss:$8 sps:$4 sm:$0xff]   ;;  %v9312_v30 = vld [vmem:[%s14930_s4 + $0x1f0] ss:$8 sps:$4 sm:$0xff]   ;;  %6693 = vmatpush1.bf16.msra.mxu1 %v9297_v57  ;;  %6511 = vmatprep.mubr.bf16.mxu1 %v14958_v47 }
 0x79e   :  { %v5321_v11 = vpop.f32.mrf.mxu1  ;;  %v14008_v34 = vpop.f32.mrf.mxu0  ;;  %v9320_v23 = vld [vmem:[%s14930_s4 + $0x1e4] ss:$8 sps:$4 sm:$0xff]   ;;  %6694 = vmatprep.subr.bf16.mxu1 %v9305_v39  ;;  %6963 = vmatpush1.bf16.msra.mxu0 %v9312_v30  ;;  %v9309_v57 = vld [vmem:[%s14930_s4 + $0x50] ss:$8 sps:$4 sm:$0xff]  }
 0x79f   :  { %v5322_v16 = vadd.f32 %v5321_v11, %v13763_v19  ;;  %v14015_v42 = vadd.f32 %v13813_v44, %v5320_v8  ;;  %6964 = vmatprep.subr.bf16.mxu0 %v9320_v23  ;;  %v9332_v23 = vld [vmem:[%s14930_s4 + $0x2b4] ss:$8 sps:$4 sm:$0xff]  }
 0x7a0   :  { %v5323_v38 = vpop.f32.mrf.mxu1  ;;  %v14023_v22 = vpop.f32.mrf.mxu0 }
 0x7a1   :  { %v5324_v19 = vadd.f32 %v5323_v38, %v13767_v35  ;;  %v14030_v11 = vadd.f32 %v13825_v24, %v5322_v16  ;;  %v9311_v35 = vld [vmem:[%s14930_s4 + $0x54] ss:$8 sps:$4 sm:$0xff]   ;;  %v9318_v24 = vld [vmem:[%s14930_s4 + $0x1e0] ss:$8 sps:$4 sm:$0xff]   ;;  %6695 = vmatpush1.bf16.msra.mxu1 %v9303_v14 }
 0x7a2   :  { %v5327_v44 = vpop.f32.mrf.mxu1  ;;  %v14032_v25 = vpop.f32.mrf.mxu0  ;;  %6696 = vmatprep.subr.bf16.mxu1 %v9311_v35  ;;  %6965 = vmatpush1.bf16.msra.mxu0 %v9318_v24 }
 0x7a3   :  { %v5328_v2 = vadd.f32 %v5327_v44, %v13771_v62  ;;  %v14039_v8 = vadd.f32 %v13837_v7, %v5324_v19  ;;  %v9326_v62 = vld [vmem:[%s14930_s4 + $0x2c4] ss:$8 sps:$4 sm:$0xff]  }
 0x7a4   :  { %v5329_v31 = vpop.f32.mrf.mxu1  ;;  %v14048_v28 = vpop.f32.mrf.mxu0  ;;  %6968 = vmatprep.subr.bf16.mxu0 %v9326_v62  ;;  %6512 = vmatmul.mubr.bf16.gmra.mxu1 %v14958_v47 }
 0x7a5   :  { %v5330_v7 = vadd.f32 %v5329_v31, %v13775_v49  ;;  %v14056_v54 = vadd.f32 %v13849_v43, %v5328_v2  ;;  %v9317_v49 = vld [vmem:[%s14930_s4 + $0x44] ss:$8 sps:$4 sm:$0xff]   ;;  %v9324_v43 = vld [vmem:[%s14930_s4 + $0x2c0] ss:$8 sps:$4 sm:$0xff]   ;;  %6697 = vmatpush1.bf16.msra.mxu1 %v9309_v57 }
 0x7a6   :  { %v5331_v16 = vpop.f32.mrf.mxu1  ;;  %v14058_v38 = vpop.f32.mrf.mxu0  ;;  %6698 = vmatprep.subr.bf16.mxu1 %v9317_v49  ;;  %6969 = vmatpush2.bf16.msra.mxu0 %v9324_v43  ;;  %v9336_v57 = vld [vmem:[%s14930_s4 + $0x2a0] ss:$8 sps:$4 sm:$0xff]  }
 0x7a7   :  { %15823 = vst [vmem:[#allocation140_spill] sm:$0xff] %v14056_v54  ;;  %v5332_v19 = vadd.f32 %v5331_v16, %v13779_v51  ;;  %v14065_v44 = vadd.f32 %v13867_v18, %v5330_v7  ;;  %v9315_v7 = vld [vmem:[%s14930_s4 + $0x40] ss:$8 sps:$4 sm:$0xff]   ;;  %6970 = vmatprep.subr.bf16.mxu0 %v9332_v23  ;;  %v9344_v23 = vld [vmem:[%s14930_s4 + $0x294] ss:$8 sps:$4 sm:$0xff]  }
 0x7a8   :  { %v5333_v39 = vpop.f32.mrf.mxu1  ;;  %v14073_v30 = vpop.f32.mrf.mxu0 }
 0x7a9   :  { %15824 = vst [vmem:[#allocation143_spill] sm:$0xff] %v14065_v44  ;;  %v5334_v51 = vadd.f32 %v5333_v39, %v13789_v37  ;;  %v14080_v18 = vadd.f32 %v13879_v9, %v5332_v19  ;;  %v9323_v37 = vld [vmem:[%s14930_s4 + $0x34] ss:$8 sps:$4 sm:$0xff]   ;;  %v9330_v9 = vld [vmem:[%s14930_s4 + $0x2b0] ss:$8 sps:$4 sm:$0xff]   ;;  %6699 = vmatpush1.bf16.msra.mxu1 %v9315_v7 }
 0x7aa   :  { %v14082_v2 = vpop.f32.mrf.mxu1  ;;  %v14084_v31 = vpop.f32.mrf.mxu0  ;;  %v9321_v19 = vld [vmem:[%s14930_s4 + $0x30] ss:$8 sps:$4 sm:$0xff]   ;;  %v9329_v39 = vld [vmem:[%s14930_s4 + $0x24] ss:$8 sps:$4 sm:$0xff]   ;;  %6700 = vmatprep.subr.bf16.mxu1 %v9323_v37  ;;  %6971 = vmatpush2.bf16.msra.mxu0 %v9330_v9  ;;  %v9327_v7 = vld [vmem:[%s14930_s4 + $0x20] ss:$8 sps:$4 sm:$0xff]  }
 0x7ab   :  { %15825 = vst [vmem:[#allocation58_spill] sm:$0xff] %v14080_v18  ;;  %15826 = vst [vmem:[#allocation17_spill] sm:$0xff] %v14082_v2  ;;  %v14090_v14 = vadd.f32 %v13888_v12, %v5334_v51  ;;  %v9338_v12 = vld [vmem:[%s14930_s4 + $0x2a4] ss:$8 sps:$4 sm:$0xff]   ;;  %v9335_v37 = vld [vmem:[%s14930_s4 + $0x14] ss:$8 sps:$4 sm:$0xff]  }
 0x7ac   :  { %v14099_v35 = vpop.f32.mrf.mxu1  ;;  %v14101_v24 = vpop.f32.mrf.mxu0  ;;  %6972 = vmatprep.subr.bf16.mxu0 %v9338_v12  ;;  %v9342_v9 = vld [vmem:[%s14930_s4 + $0x290] ss:$8 sps:$4 sm:$0xff]  }
 0x7ad   :  { %15827 = vst [vmem:[#allocation107_spill] sm:$0xff] %v14090_v14  ;;  %15828 = vst [vmem:[#allocation26_spill] sm:$0xff] %v14099_v35  ;;  %6701 = vmatpush1.bf16.msra.mxu1 %v9321_v19  ;;  %v9350_v19 = vld [vmem:[%s14930_s4 + $0x284] ss:$8 sps:$4 sm:$0xff]   ;;  %v9354_v35 = vld [vmem:[%s14930_s4 + $0x270] ss:$8 sps:$4 sm:$0xff]  }
 0x7ae   :  { %v14106_v62 = vpop.f32.mrf.mxu1  ;;  %v14108_v16 = vpop.f32.mrf.mxu0  ;;  %6702 = vmatprep.subr.bf16.mxu1 %v9329_v39  ;;  %6973 = vmatpush2.bf16.msra.mxu0 %v9336_v57  ;;  %v9333_v39 = vld [vmem:[%s14930_s4 + $0x10] ss:$8 sps:$4 sm:$0xff]   ;;  %v9341_v57 = vld [vmem:[%s14930_s4 + $0x4] ss:$8 sps:$4 sm:$0xff]  }
 0x7af   :  { %15829 = vst [vmem:[#allocation18_spill] sm:$0xff] %v14106_v62  ;;  %6974 = vmatprep.subr.bf16.mxu0 %v9344_v23  ;;  %v9348_v23 = vld [vmem:[%s14930_s4 + $0x280] ss:$8 sps:$4 sm:$0xff]  }
 0x7b0   :  { %v14119_v51 = vpop.f32.mrf.mxu1  ;;  %v14121_v49 = vpop.f32.mrf.mxu0 }
 0x7b1   :  { %15830 = vst [vmem:[#allocation19_spill] sm:$0xff] %v14119_v51  ;;  %6703 = vmatpush1.bf16.msra.mxu1 %v9327_v7  ;;  %v9356_v7 = vld [vmem:[%s14930_s4 + $0x274] ss:$8 sps:$4 sm:$0xff]  }
 0x7b2   :  { %v14123_v43 = vpop.f32.mrf.mxu1  ;;  %v14125_v47 = vpop.f32.mrf.mxu0  ;;  %6704 = vmatprep.subr.bf16.mxu1 %v9335_v37  ;;  %6975 = vmatpush2.bf16.msra.mxu0 %v9342_v9  ;;  %v9339_v37 = vld [vmem:[%s14930_s4] ss:$8 sps:$4 sm:$0xff]   ;;  %v5288_v9 = vadd.f32 %v13874_v46, %v13709_v27  ;;  %v5290_v27 = vadd.f32 %v13881_v20, %v13712_v4  ;;  %v5280_v46 = vadd.f32 %v13851_v60, %v13698_v55  ;;  %v9353_v4 = vld [vmem:[%s14930_s4 + $0xd4] ss:$8 sps:$4 sm:$0xff]  }
 0x7b3   :  { %15831 = vst [vmem:[#allocation109_spill] sm:$0xff] %v14123_v43  ;;  %6976 = vmatprep.subr.bf16.mxu0 %v9350_v19  ;;  %v9347_v19 = vld [vmem:[%s14930_s4 + $0xe4] ss:$8 sps:$4 sm:$0xff]   ;;  %v9360_v55 = vld [vmem:[%s14930_s4 + $0x260] ss:$8 sps:$4 sm:$0xff]   ;;  %v5278_v20 = vadd.f32 %v13844_v40, %v13694_v56  ;;  %v5298_v40 = vadd.f32 %v13901_v13, %v13721_v59 }
 0x7b4   :  { %v14130_v14 = vpop.f32.mrf.mxu1  ;;  %v14132_v62 = vpop.f32.mrf.mxu0  ;;  %v5594_v54 = vadd.f32 %v13741_v63, %v5288_v9  ;;  %v5595_v63 = vadd.f32 %v13745_v3, %v5290_v27  ;;  %v9351_v56 = vld [vmem:[%s14930_s4 + $0xd0] ss:$8 sps:$4 sm:$0xff]   ;;  %v5300_v3 = vadd.f32 %v13911_v48, %v13725_v50  ;;  %v5302_v50 = vadd.f32 %v13924_v36, %v13731_v15 }
 0x7b5   :  { %15832 = vst [vmem:[#allocation78_spill] sm:$0xff] %v14130_v14  ;;  %6705 = vmatpush1.bf16.msra.mxu1 %v9333_v39  ;;  %v9362_v39 = vld [vmem:[%s14930_s4 + $0x264] ss:$8 sps:$4 sm:$0xff]  }
 0x7b6   :  { %v14143_v12 = vpop.f32.mrf.mxu1  ;;  %v14145_v14 = vpop.f32.mrf.mxu0  ;;  %6706 = vmatprep.subr.bf16.mxu1 %v9341_v57  ;;  %6977 = vmatpush2.bf16.msra.mxu0 %v9348_v23  ;;  %v9345_v23 = vld [vmem:[%s14930_s4 + $0xe0] ss:$8 sps:$4 sm:$0xff]  }
 0x7b7   :  { %15833 = vst [vmem:[#allocation6_spill] sm:$0xff] %v14143_v12  ;;  %6978 = vmatprep.subr.bf16.mxu0 %v9356_v7  ;;  %v5292_v7 = vadd.f32 %v13883_v5, %v13715_v29  ;;  %v5294_v29 = vadd.f32 %v13890_v32, %v13717_v61 }
 0x7b8   :  { %v14150_v43 = vpop.f32.mrf.mxu1  ;;  %v14161_v12 = vpop.f32.mrf.mxu0 }
 0x7b9   :  { %15834 = vst [vmem:[#allocation103_spill] sm:$0xff] %v14150_v43  ;;  %6707 = vmatpush1.bf16.msra.mxu1 %v9339_v37  ;;  %v5284_v37 = vadd.f32 %v13869_v52, %v13706_v26  ;;  %v5596_v32 = vadd.f32 %v13749_v6, %v5292_v7  ;;  %v9359_v26 = vld [vmem:[%s14930_s4 + $0xc4] ss:$8 sps:$4 sm:$0xff]   ;;  %v5590_v52 = vadd.f32 %v13723_v58, %v5278_v20  ;;  %v9357_v58 = vld [vmem:[%s14930_s4 + $0xc0] ss:$8 sps:$4 sm:$0xff]   ;;  %v15835_v7 = vld [vmem:[#allocation108_spill] sm:$0xff] }
 0x7ba   :  { %v5777_v51 = vpop.f32.mrf.mxu1  ;;  %v14166_v18 = vpop.f32.mrf.mxu0  ;;  %6710 = vmatprep.subr.bf16.mxu1 %v9347_v19  ;;  %6979 = vmatpush2.bf16.msra.mxu0 %v9354_v35  ;;  %v5591_v35 = vadd.f32 %v13729_v10, %v5280_v46  ;;  %v5282_v10 = vadd.f32 %v13856_v1, %v13702_v41  ;;  %v5597_v27 = vadd.f32 %v13753_v53, %v5294_v29  ;;  %v15837_v20 = vld [vmem:[#allocation123_spill] sm:$0xff] }
 0x7bb   :  { %6980 = vmatprep.subr.bf16.mxu0 %v9362_v39  ;;  %v5856_v46 = vadd.f32 %v5777_v51, %v5590_v52  ;;  %v5598_v53 = vadd.f32 %v13757_v45, %v5298_v40  ;;  %v15838_v45 = vld [vmem:[#allocation106_spill] sm:$0xff] }
 0x7bc   :  { %v5779_v43 = vpop.f32.mrf.mxu1  ;;  %v14188_v2 = vpop.f32.mrf.mxu0 }
 0x7bd   :  { %6711 = vmatpush2.bf16.msra.mxu1 %v9345_v23  ;;  %v5593_v23 = vadd.f32 %v13737_v33, %v5284_v37  ;;  %v15840_v37 = vld [vmem:[#allocation22_spill] sm:$0xff] }
 0x7be   :  { %v14179_v44 = vpop.f32.mrf.mxu1  ;;  %v14210_v19 = vpop.f32.mrf.mxu0  ;;  %6712 = vmatprep.subr.bf16.mxu1 %v9353_v4  ;;  %6981 = vmatpush2.bf16.msra.mxu0 %v9360_v55  ;;  %v5599_v4 = vadd.f32 %v15835_v7, %v5300_v3  ;;  %v15836_v55 = vld [vmem:[#allocation93_spill] sm:$0xff]  ;;  %v14270_v3 = vld [vmem:[%s14931_s7] ss:$0 sm:$0xff] }
 0x7c0   :  { %v5783_v57 = vpop.f32.mrf.mxu1  ;;  %v14234_v1 = vpop.f32.mrf.mxu0 }
 0x7c1   :  { %6713 = vmatpush2.bf16.msra.mxu1 %v9351_v56  ;;  %v5859_v51 = vadd.f32 %v5783_v57, %v5593_v23  ;;  %v15839_v57 = vld [vmem:[#allocation34_spill] sm:$0xff] }
 0x7c2   :  { %v5787_v60 = vpop.f32.mrf.mxu1  ;;  %6714 = vmatprep.subr.bf16.mxu1 %v9359_v26  ;;  %v15841_v56 = vld [vmem:[#allocation110_spill] sm:$0xff] }
 0x7c3   :  { %v5860_v5 = vadd.f32 %v5787_v60, %v5594_v54  ;;  %v5857_v54 = vadd.f32 %v5779_v43, %v5591_v35  ;;  %v5304_v60 = vadd.f32 %v15837_v20, %v15836_v55  ;;  %v5308_v35 = vadd.f32 %v15840_v37, %v15839_v57  ;;  %v15850_v55 = vld [vmem:[#allocation97_spill] sm:$0xff]  ;;  %v9368_v37 = vld [vmem:[%s14930_s4 + $0xa4] ss:$8 sps:$4 sm:$0xff]  }
 0x7c4   :  { %v5789_v9 = vpop.f32.mrf.mxu1  ;;  %v5600_v40 = vadd.f32 %v15841_v56, %v5302_v50  ;;  %v15851_v56 = vld [vmem:[#allocation11_spill] sm:$0xff] }
 0x7c5   :  { %v5861_v61 = vadd.f32 %v5789_v9, %v5595_v63  ;;  %v14227_v59 = vadd.f32 %v14032_v25, %v5860_v5  ;;  %v6123_v33 = vadd.f32 %v13999_v17, %v5857_v54  ;;  %v6122_v5 = vadd.f32 %v15838_v45, %v5856_v46  ;;  %6715 = vmatpush2.bf16.msra.mxu1 %v9357_v58  ;;  %v15845_v58 = vld [vmem:[#allocation95_spill] sm:$0xff] }
 0x7c6   :  { %v5791_v39 = vpop.f32.mrf.mxu1 }
 0x7c7   :  { %v14230_v6 = vadd.f32 %v14048_v28, %v5861_v61  ;;  %v5862_v13 = vadd.f32 %v5791_v39, %v5596_v32  ;;  %v5592_v28 = vadd.f32 %v13733_v0, %v5282_v10  ;;  %v14257_v0 = vpop.f32.mrf.mxu0  ;;  %v15843_v61 = vld [vmem:[#allocation100_spill] sm:$0xff]  ;;  %v6154_v26 = vmax.f32 %v6122_v5, %v6123_v33  ;;  %v15847_v33 = vld [vmem:[#allocation3_spill] sm:$0xff] }
 0x7c8   :  { %v5793_v41 = vpop.f32.mrf.mxu1  ;;  %v6125_v10 = vadd.f32 %v14023_v22, %v5859_v51  ;;  %v15846_v22 = vld [vmem:[#allocation105_spill] sm:$0xff] }
 0x7c9   :  { %v6156_v48 = vmax.f32 %v14227_v59, %v14230_v6  ;;  %v5863_v25 = vadd.f32 %v5793_v41, %v5597_v27  ;;  %v14250_v15 = vadd.f32 %v14058_v38, %v5862_v13  ;;  %v5858_v17 = vadd.f32 %v14179_v44, %v5592_v28  ;;  %v15844_v13 = vld [vmem:[#allocation14_spill] sm:$0xff]  ;;  %v14276_v41 = vpop.f32.mrf.mxu0  ;;  %v15848_v51 = vld [vmem:[#allocation37_spill] sm:$0xff] }
 0x7ca   :  { %v5797_v43 = vpop.f32.mrf.mxu1  ;;  %v5601_v27 = vadd.f32 %v15844_v13, %v5304_v60  ;;  %v5312_v50 = vadd.f32 %v15846_v22, %v15845_v58  ;;  %v5602_v28 = vadd.f32 %v15847_v33, %v5308_v35  ;;  %v9372_v59 = vld [vmem:[%s14930_s4 + $0x80] ss:$8 sps:$4 sm:$0xff]   ;;  %v9377_v6 = vld [vmem:[%s14930_s4 + $0x434] ss:$8 sps:$4 sm:$0xff]  }
 0x7cb   :  { %v14253_v36 = vadd.f32 %v14073_v30, %v5863_v25  ;;  %v5864_v29 = vadd.f32 %v5797_v43, %v5598_v53  ;;  %v15842_v30 = vld [vmem:[#allocation10_spill] sm:$0xff]  ;;  %v6124_v46 = vadd.f32 %v14008_v34, %v5858_v17  ;;  %v15849_v43 = vld [vmem:[#allocation99_spill] sm:$0xff]  ;;  %v9365_v34 = vld [vmem:[%s14930_s4 + $0xb4] ss:$8 sps:$4 sm:$0xff]   ;;  %v14294_v57 = vpop.f32.mrf.mxu0  ;;  %7490 = vmatprep.subr.bf16.mxu0 %v9377_v6 }
 0x7cc   :  { %v5799_v63 = vpop.f32.mrf.mxu1  ;;  %v5310_v32 = vadd.f32 %v15843_v61, %v15842_v30  ;;  %v9363_v17 = vld [vmem:[%s14930_s4 + $0xb0] ss:$8 sps:$4 sm:$0xff]   ;;  %6716 = vmatprep.subr.bf16.mxu1 %v9365_v34 }
 0x7cd   :  { %v6157_v9 = vmax.f32 %v14250_v15, %v14253_v36  ;;  %v5865_v38 = vadd.f32 %v5799_v63, %v5599_v4  ;;  %v6130_v52 = vadd.f32 %v14084_v31, %v5864_v29  ;;  %v5314_v31 = vadd.f32 %v15849_v43, %v15848_v51  ;;  %6717 = vmatpush2.bf16.msra.mxu1 %v9363_v17  ;;  %v15868_v6 = vld [vmem:[#allocation109_spill] sm:$0xff] }
 0x7ce   :  { %v5801_v44 = vpop.f32.mrf.mxu1  ;;  %v6155_v7 = vmax.f32 %v6124_v46, %v6125_v10  ;;  %v5603_v20 = vadd.f32 %v15850_v55, %v5310_v32  ;;  %6718 = vmatprep.subr.bf16.mxu1 %v9368_v37  ;;  %v9380_v55 = vld [vmem:[%s14930_s4 + $0x344] ss:$8 sps:$4 sm:$0xff]  }
 0x7cf   :  { %v6131_v54 = vadd.f32 %v14101_v24, %v5865_v38  ;;  %v5866_v39 = vadd.f32 %v5801_v44, %v5600_v40  ;;  %v6177_v24 = vadd.f32 %v14270_v3, %v6154_v26  ;;  %v5604_v40 = vadd.f32 %v15851_v56, %v5312_v50  ;;  %v15852_v26 = vld [vmem:[#allocation98_spill] sm:$0xff]  ;;  %v15854_v56 = vld [vmem:[#allocation112_spill] sm:$0xff] }
 0x7d0   :  { %v5803_v23 = vpop.f32.mrf.mxu1  ;;  %v6178_v30 = vadd.f32 %v14270_v3, %v6155_v7  ;;  %v5605_v10 = vadd.f32 %v15852_v26, %v5314_v31 }
 0x7d1   :  { %v6158_v25 = vmax.f32 %v6130_v52, %v6131_v54  ;;  %v5867_v53 = vadd.f32 %v5803_v23, %v5601_v27  ;;  %v6132_v29 = vadd.f32 %v14108_v16, %v5866_v39  ;;  %v14308_v27 = vpop.f32.mrf.mxu0 }
 0x7d2   :  { %v5807_v4 = vpop.f32.mrf.mxu1 }
 0x7d3   :  { %v6181_v60 = vadd.f32 %v14270_v3, %v6158_v25  ;;  %v6133_v45 = vadd.f32 %v14121_v49, %v5867_v53  ;;  %v5868_v5 = vadd.f32 %v5807_v4, %v5602_v28  ;;  %v9366_v49 = vld [vmem:[%s14930_s4 + $0xa0] ss:$8 sps:$4 sm:$0xff]   ;;  %v9369_v28 = vld [vmem:[%s14930_s4 + $0x90] ss:$8 sps:$4 sm:$0xff]   ;;  %v14327_v43 = vpop.f32.mrf.mxu0 }
 0x7d4   :  { %v5809_v63 = vpop.f32.mrf.mxu1  ;;  %6719 = vmatpush2.bf16.msra.mxu1 %v9366_v49  ;;  %v15856_v49 = vld [vmem:[#allocation143_spill] sm:$0xff] }
 0x7d5   :  { %v6159_v35 = vmax.f32 %v6132_v29, %v6133_v45  ;;  %v5869_v38 = vadd.f32 %v5809_v63, %v5603_v20  ;;  %v6193_v16 = vmax.f32 %v6177_v24, %v6181_v60  ;;  %v6134_v61 = vadd.f32 %v14125_v47, %v5868_v5  ;;  %v6105_v36 = vpop.f32.mrf.mxu0 }
 0x7d6   :  { %v5811_v32 = vpop.f32.mrf.mxu1 }
 0x7d7   :  { %v6182_v44 = vadd.f32 %v14270_v3, %v6159_v35  ;;  %v6135_v52 = vadd.f32 %v14132_v62, %v5869_v38  ;;  %v5870_v54 = vadd.f32 %v5811_v32, %v5604_v40  ;;  %v6201_v39 = vmax.f32 %v6193_v16, 0.0  ;;  %v9371_v62 = vld [vmem:[%s14930_s4 + $0x94] ss:$8 sps:$4 sm:$0xff]   ;;  %v6107_v38 = vpop.f32.mrf.mxu0  ;;  %v15857_v32 = vld [vmem:[#allocation15_spill] sm:$0xff] }
 0x7d8   :  { %v5813_v13 = vpop.f32.mrf.mxu1  ;;  %6720 = vmatprep.subr.bf16.mxu1 %v9371_v62  ;;  %v15855_v40 = vld [vmem:[#allocation17_spill] sm:$0xff] }
 0x7d9   :  { %v6160_v46 = vmax.f32 %v6134_v61, %v6135_v52  ;;  %v5871_v23 = vadd.f32 %v5813_v13, %v5605_v10  ;;  %v6194_v58 = vmax.f32 %v6178_v30, %v6182_v44  ;;  %8520 = vst [vmem:[%s14927_s13 + $0x180] sm:$0xff] %v6201_v39  ;;  %v6136_v47 = vadd.f32 %v14145_v14, %v5870_v54  ;;  %v15859_v44 = vld [vmem:[#allocation58_spill] sm:$0xff]  ;;  %v6109_v13 = vpop.f32.mrf.mxu0 }
 0x7da   :  { %v5817_v22 = vpop.f32.mrf.mxu1  ;;  %v6179_v14 = vadd.f32 %v14270_v3, %v6156_v48  ;;  %6721 = vmatpush2.bf16.msra.mxu1 %v9369_v28  ;;  %v6180_v48 = vadd.f32 %v14270_v3, %v6157_v9  ;;  %v15865_v28 = vld [vmem:[#allocation115_spill] sm:$0xff] }
 0x7db   :  { %v6183_v50 = vadd.f32 %v14270_v3, %v6160_v46  ;;  %v6137_v25 = vadd.f32 %v14161_v12, %v5871_v23  ;;  %v5872_v53 = vadd.f32 %v5817_v22, %v14006_v21  ;;  %v6202_v33 = vmax.f32 %v6194_v58, 0.0  ;;  %v9374_v12 = vld [vmem:[%s14930_s4 + $0x84] ss:$8 sps:$4 sm:$0xff]   ;;  %v15860_v46 = vld [vmem:[#allocation8_spill] sm:$0xff] }
 0x7dc   :  { %v5819_v51 = vpop.f32.mrf.mxu1  ;;  %6722 = vmatprep.subr.bf16.mxu1 %v9374_v12  ;;  %v15861_v23 = vld [vmem:[#allocation18_spill] sm:$0xff]  ;;  %v15862_v22 = vld [vmem:[#allocation107_spill] sm:$0xff] }
 0x7dd   :  { %v6161_v31 = vmax.f32 %v6136_v47, %v6137_v25  ;;  %v5873_v21 = vadd.f32 %v5819_v51, %v14015_v42  ;;  %v6218_v24 = vpack.c.bf16 %v6202_v33, %v6201_v39  ;;  %8521 = vst [vmem:[%s14927_s13 + $0x188] sm:$0xff] %v6202_v33  ;;  %v14347_v42 = vadd.f32 %v14166_v18, %v5872_v53 }
 0x7de   :  { %v5821_v7 = vpop.f32.mrf.mxu1  ;;  %v6195_v4 = vmax.f32 %v6179_v14, %v6183_v50  ;;  %6723 = vmatpush2.bf16.msra.mxu1 %v9372_v59  ;;  %v5342_v58 = vadd.f32 %v15861_v23, %v15860_v46  ;;  %v15863_v50 = vld [vmem:[#allocation13_spill] sm:$0xff]  ;;  %v15866_v14 = vld [vmem:[#allocation19_spill] sm:$0xff]  ;;  %v15879_v46 = vld [vmem:[#allocation4_spill] sm:$0xff] }
 0x7df   :  { %v6184_v20 = vadd.f32 %v14270_v3, %v6161_v31  ;;  %v5874_v34 = vadd.f32 %v5821_v7, %v14030_v11  ;;  %v14355_v60 = vadd.f32 %v14188_v2, %v5873_v21  ;;  %6226 = vrot.lane.b32.xlu0 %v6218_v24, %s9486_s18  ;;  %7220 = vmatprep.subr.bf16.mxu1 %v9380_v55  ;;  %v15853_v2 = vld [vmem:[#allocation140_spill] sm:$0xff]  ;;  %v6113_v24 = vpop.f32.mrf.mxu0  ;;  %v15867_v59 = vld [vmem:[#allocation51_spill] sm:$0xff] }
 0x7e0   :  { %v5823_v18 = vpop.f32.mrf.mxu1  ;;  %v6203_v15 = vmax.f32 %v6195_v4, 0.0  ;;  %v5344_v51 = vadd.f32 %v15866_v14, %v15865_v28  ;;  %v15869_v4 = vld [vmem:[#allocation120_spill] sm:$0xff] }
 0x7e1   :  { %v6162_v9 = vmax.f32 %v14347_v42, %v14355_v60  ;;  %v5875_v29 = vadd.f32 %v5823_v18, %v14039_v8  ;;  %v6196_v45 = vmax.f32 %v6180_v48, %v6184_v20  ;;  %v6140_v11 = vadd.f32 %v14210_v19, %v5874_v34  ;;  %v15858_v19 = vld [vmem:[#allocation26_spill] sm:$0xff]  ;;  %v15870_v20 = vld [vmem:[#allocation117_spill] sm:$0xff] }
 0x7e2   :  { %v5827_v5 = vpop.f32.mrf.mxu1  ;;  %8522 = vst [vmem:[%s14927_s13 + $0x190] sm:$0xff] %v6203_v15  ;;  %v5338_v8 = vadd.f32 %v15855_v40, %v15854_v56  ;;  %v5340_v26 = vadd.f32 %v15858_v19, %v15857_v32  ;;  %v5348_v48 = vadd.f32 %v15868_v6, %v15867_v59  ;;  %v5616_v55 = vadd.f32 %v15869_v4, %v5342_v58  ;;  %v15871_v34 = vld [vmem:[#allocation78_spill] sm:$0xff]  ;;  %v15875_v56 = vld [vmem:[#allocation12_spill] sm:$0xff] }
 0x7e3   :  { %v5876_v17 = vadd.f32 %v5827_v5, %v15853_v2  ;;  %v6141_v63 = vadd.f32 %v14234_v1, %v5875_v29  ;;  %v6204_v37 = vmax.f32 %v6196_v45, 0.0  ;;  %v5350_v60 = vadd.f32 %v15871_v34, %v15870_v20  ;;  %v15872_v45 = vld [vmem:[#allocation61_spill] sm:$0xff] }
 0x7e4   :  { %v5829_v35 = vpop.f32.mrf.mxu1  ;;  %v5614_v25 = vadd.f32 %v15863_v50, %v5338_v8  ;;  %v5617_v5 = vadd.f32 %v15872_v45, %v5344_v51  ;;  %v15873_v2 = vld [vmem:[#allocation5_spill] sm:$0xff]  ;;  %v5618_v40 = vadd.f32 %v15875_v56, %v5348_v48 }
 0x7e5   :  { %v6163_v16 = vmax.f32 %v6140_v11, %v6141_v63  ;;  %v5877_v30 = vadd.f32 %v5829_v35, %v15856_v49  ;;  %v6219_v61 = vpack.c.bf16 %v6204_v37, %v6203_v15  ;;  %8523 = vst [vmem:[%s14927_s13 + $0x198] sm:$0xff] %v6204_v37  ;;  %v14376_v1 = vadd.f32 %v14257_v0, %v5876_v17  ;;  %v15864_v0 = vld [vmem:[#allocation102_spill] sm:$0xff]  ;;  %v6115_v11 = vpop.f32.mrf.mxu0  ;;  %v15876_v8 = vld [vmem:[#allocation101_spill] sm:$0xff]  ;;  %v15877_v49 = vld [vmem:[#allocation103_spill] sm:$0xff] }
 0x7e6   :  { %v5831_v10 = vpop.f32.mrf.mxu1  ;;  %v5615_v33 = vadd.f32 %v15864_v0, %v5340_v26  ;;  %v15874_v17 = vld [vmem:[#allocation6_spill] sm:$0xff]  ;;  %v9399_v56 = vld [vmem:[%s14930_s4 + $0x3f0] ss:$8 sps:$4 sm:$0xff]  }
 0x7e7   :  { %v5878_v52 = vadd.f32 %v5831_v10, %v15859_v44  ;;  %v6143_v54 = vadd.f32 %v14276_v41, %v5877_v30  ;;  %6228 = vrot.lane.b32.xlu1 %v6219_v61, %s9486_s18  ;;  %v5352_v63 = vadd.f32 %v15874_v17, %v15873_v2  ;;  %v5354_v30 = vadd.f32 %v15877_v49, %v15876_v8  ;;  %v9393_v17 = vld [vmem:[%s14930_s4 + $0x400] ss:$8 sps:$4 sm:$0xff]   ;;  %v9384_v8 = vld [vmem:[%s14930_s4 + $0x330] ss:$8 sps:$4 sm:$0xff]   ;;  %v9392_v49 = vld [vmem:[%s14930_s4 + $0x324] ss:$8 sps:$4 sm:$0xff]  }
 0x7e8   :  { %v5833_v39 = vpop.f32.mrf.mxu1  ;;  %v6185_v61 = vadd.f32 %v14270_v3, %v6162_v9  ;;  %v15880_v9 = vld [vmem:[#allocation16_spill] sm:$0xff]  ;;  %v15883_v2 = vmov 0  }
 0x7e9   :  { %v6164_v47 = vmax.f32 %v14376_v1, %v6143_v54  ;;  %v5879_v62 = vadd.f32 %v5833_v39, %v15862_v22  ;;  %v6144_v41 = vadd.f32 %v14294_v57, %v5878_v52  ;;  %v6117_v52 = vpop.f32.mrf.mxu0  ;;  %v5620_v23 = vadd.f32 %v15879_v46, %v5352_v63  ;;  %v9401_v63 = vld [vmem:[%s14930_s4 + $0x3f4] ss:$8 sps:$4 sm:$0xff]  }
 0x7ea   :  { %v5837_v53 = vpop.f32.mrf.mxu1  ;;  %v6186_v22 = vadd.f32 %v14270_v3, %v6163_v16  ;;  %v9410_v46 = vld [vmem:[%s14930_s4 + $0x2f4] ss:$8 sps:$4 sm:$0xff]  }
 0x7eb   :  { %v5880_v12 = vadd.f32 %v5837_v53, %v5614_v25  ;;  %v6145_v31 = vadd.f32 %v14308_v27, %v5879_v62  ;;  %v5621_v25 = vadd.f32 %v15880_v9, %v5354_v30  ;;  %v6187_v16 = vadd.f32 %v14270_v3, %v6164_v47  ;;  %v9405_v30 = vld [vmem:[%s14930_s4 + $0x3e0] ss:$8 sps:$4 sm:$0xff]   ;;  %v9437_v9 = vld [vmem:[%s14930_s4 + $0x484] ss:$8 sps:$4 sm:$0xff]  }
 0x7ec   :  { %v5839_v21 = vpop.f32.mrf.mxu1 }
 0x7ed   :  { %v6165_v42 = vmax.f32 %v6144_v41, %v6145_v31  ;;  %v5881_v7 = vadd.f32 %v5839_v21, %v5615_v33  ;;  %v6146_v15 = vadd.f32 %v14327_v43, %v5880_v12  ;;  %v15878_v43 = vld [vmem:[#allocation46_spill] sm:$0xff] }
 0x7ee   :  { %v5841_v18 = vpop.f32.mrf.mxu1  ;;  %v5619_v19 = vadd.f32 %v15878_v43, %v5350_v60  ;;  %v9375_v60 = vld [vmem:[%s14930_s4 + $0x430] ss:$8 sps:$4 sm:$0xff]   ;;  %v9398_v43 = vld [vmem:[%s14930_s4 + $0x314] ss:$8 sps:$4 sm:$0xff]  }
 0x7ef   :  { %v5882_v29 = vadd.f32 %v5841_v18, %v5616_v55  ;;  %v6147_v57 = vadd.f32 %v6105_v36, %v5881_v7  ;;  %v6188_v7 = vadd.f32 %v14270_v3, %v6165_v42  ;;  %v7629_v42 = vld [vmem:[%s14932_s9 + $0x70] sm:$0xff] }
 0x7f0   :  { %v5843_v27 = vpop.f32.mrf.mxu1 }
 0x7f1   :  { %v6166_v37 = vmax.f32 %v6146_v15, %v6147_v57  ;;  %v5883_v35 = vadd.f32 %v5843_v27, %v5617_v5  ;;  %v6148_v26 = vadd.f32 %v6107_v38, %v5882_v29  ;;  %v9383_v15 = vld [vmem:[%s14930_s4 + $0x424] ss:$8 sps:$4 sm:$0xff]   ;;  %v9381_v29 = vld [vmem:[%s14930_s4 + $0x420] ss:$8 sps:$4 sm:$0xff]   ;;  %v9389_v57 = vld [vmem:[%s14930_s4 + $0x414] ss:$8 sps:$4 sm:$0xff]  }
 0x7f2   :  { %v5847_v32 = vpop.f32.mrf.mxu1  ;;  %v9387_v5 = vld [vmem:[%s14930_s4 + $0x410] ss:$8 sps:$4 sm:$0xff]  }
 0x7f3   :  { %v6189_v36 = vadd.f32 %v14270_v3, %v6166_v37  ;;  %v5884_v10 = vadd.f32 %v5847_v32, %v5618_v40  ;;  %v6149_v1 = vadd.f32 %v6109_v13, %v5883_v35  ;;  %v6119_v13 = vpop.f32.mrf.mxu0  ;;  %v9378_v37 = vld [vmem:[%s14930_s4 + $0x340] ss:$8 sps:$4 sm:$0xff]   ;;  %v9386_v35 = vld [vmem:[%s14930_s4 + $0x334] ss:$8 sps:$4 sm:$0xff]   ;;  %v9407_v40 = vld [vmem:[%s14930_s4 + $0x3e4] ss:$8 sps:$4 sm:$0xff]  }
 0x7f4   :  { %v5849_v44 = vpop.f32.mrf.mxu1  ;;  %v9390_v32 = vld [vmem:[%s14930_s4 + $0x320] ss:$8 sps:$4 sm:$0xff]  }
 0x7f5   :  { %v6167_v54 = vmax.f32 %v6148_v26, %v6149_v1  ;;  %v5885_v39 = vadd.f32 %v5849_v44, %v5619_v19  ;;  %v6197_v58 = vmax.f32 %v6185_v61, %v6189_v36  ;;  %v6150_v62 = vadd.f32 %v6113_v24, %v5884_v10  ;;  %v9413_v61 = vld [vmem:[%s14930_s4 + $0x3d4] ss:$8 sps:$4 sm:$0xff]   ;;  %v9411_v19 = vld [vmem:[%s14930_s4 + $0x3d0] ss:$8 sps:$4 sm:$0xff]   ;;  %v9419_v36 = vld [vmem:[%s14930_s4 + $0x3c4] ss:$8 sps:$4 sm:$0xff]  }
 0x7f6   :  { %v5851_v50 = vpop.f32.mrf.mxu1  ;;  %v9396_v26 = vld [vmem:[%s14930_s4 + $0x310] ss:$8 sps:$4 sm:$0xff]   ;;  %v9404_v10 = vld [vmem:[%s14930_s4 + $0x304] ss:$8 sps:$4 sm:$0xff]   ;;  %v9417_v1 = vld [vmem:[%s14930_s4 + $0x3c0] ss:$8 sps:$4 sm:$0xff]  }
 0x7f7   :  { %v6190_v53 = vadd.f32 %v14270_v3, %v6167_v54  ;;  %v5886_v0 = vadd.f32 %v5851_v50, %v5620_v23  ;;  %v6151_v33 = vadd.f32 %v6115_v11, %v5885_v39  ;;  %v6205_v38 = vmax.f32 %v6197_v58, 0.0  ;;  %v9395_v11 = vld [vmem:[%s14930_s4 + $0x404] ss:$8 sps:$4 sm:$0xff]   ;;  %v9402_v54 = vld [vmem:[%s14930_s4 + $0x300] ss:$8 sps:$4 sm:$0xff]  }
 0x7f8   :  { %v5853_v28 = vpop.f32.mrf.mxu1  ;;  %v9425_v44 = vld [vmem:[%s14930_s4 + $0x4a4] ss:$8 sps:$4 sm:$0xff]   ;;  %v9423_v23 = vld [vmem:[%s14930_s4 + $0x4a0] ss:$8 sps:$4 sm:$0xff]   ;;  %v9431_v58 = vld [vmem:[%s14930_s4 + $0x494] ss:$8 sps:$4 sm:$0xff]  }
 0x7f9   :  { %v6168_v14 = vmax.f32 %v6150_v62, %v6151_v33  ;;  %v5887_v51 = vadd.f32 %v5853_v28, %v5621_v25  ;;  %v6198_v41 = vmax.f32 %v6186_v22, %v6190_v53  ;;  %8524 = vst [vmem:[%s14927_s13 + $0x1a0] sm:$0xff] %v6205_v38  ;;  %v6152_v31 = vadd.f32 %v6117_v52, %v5886_v0  ;;  %v9408_v22 = vld [vmem:[%s14930_s4 + $0x2f0] ss:$8 sps:$4 sm:$0xff]   ;;  %v9416_v62 = vld [vmem:[%s14930_s4 + $0x2e4] ss:$8 sps:$4 sm:$0xff]  }
 0x7fa   :  { %v9429_v50 = vld [vmem:[%s14930_s4 + $0x490] ss:$8 sps:$4 sm:$0xff]   ;;  %v9414_v53 = vld [vmem:[%s14930_s4 + $0x2e0] ss:$8 sps:$4 sm:$0xff]   ;;  %v9422_v33 = vld [vmem:[%s14930_s4 + $0x2d4] ss:$8 sps:$4 sm:$0xff]  }
 0x7fb   :  { %v6191_v12 = vadd.f32 %v14270_v3, %v6168_v14  ;;  %v6153_v21 = vadd.f32 %v6119_v13, %v5887_v51  ;;  %v6206_v24 = vmax.f32 %v6198_v41, 0.0  ;;  %v9443_v28 = vld [vmem:[%s14930_s4 + $0x474] ss:$8 sps:$4 sm:$0xff]   ;;  %v9420_v13 = vld [vmem:[%s14930_s4 + $0x2d0] ss:$8 sps:$4 sm:$0xff]  }
 0x7fc   :  { %v9428_v14 = vld [vmem:[%s14930_s4 + $0x3b4] ss:$8 sps:$4 sm:$0xff]   ;;  %v9441_v51 = vld [vmem:[%s14930_s4 + $0x470] ss:$8 sps:$4 sm:$0xff]   ;;  %v9449_v41 = vld [vmem:[%s14930_s4 + $0x464] ss:$8 sps:$4 sm:$0xff]  }
 0x7fd   :  { %v6169_v59 = vmax.f32 %v6152_v31, %v6153_v21  ;;  %v6220_v6 = vpack.c.bf16 %v6206_v24, %v6205_v38  ;;  %8525 = vst [vmem:[%s14927_s13 + $0x1a8] sm:$0xff] %v6206_v24  ;;  %v6199_v48 = vmax.f32 %v6187_v16, %v6191_v12  ;;  %v9435_v38 = vld [vmem:[%s14930_s4 + $0x480] ss:$8 sps:$4 sm:$0xff]   ;;  %v9426_v16 = vld [vmem:[%s14930_s4 + $0x3b0] ss:$8 sps:$4 sm:$0xff]  }
 0x7fe   :  { %v9434_v12 = vld [vmem:[%s14930_s4 + $0x3a4] ss:$8 sps:$4 sm:$0xff]   ;;  %v9447_v31 = vld [vmem:[%s14930_s4 + $0x460] ss:$8 sps:$4 sm:$0xff]   ;;  %v9455_v21 = vld [vmem:[%s14930_s4 + $0x454] ss:$8 sps:$4 sm:$0xff]  }
 0x7ff   :  { %v6192_v4 = vadd.f32 %v14270_v3, %v6169_v59  ;;  %6230 = vrot.lane.b32.xlu0 %v6220_v6, %s9486_s18  ;;  %v6207_v55 = vmax.f32 %v6199_v48, 0.0  ;;  %v9432_v24 = vld [vmem:[%s14930_s4 + $0x3a0] ss:$8 sps:$4 sm:$0xff]   ;;  %v9440_v59 = vld [vmem:[%s14930_s4 + $0x394] ss:$8 sps:$4 sm:$0xff]  }
 0x800   :  { %v9453_v6 = vld [vmem:[%s14930_s4 + $0x450] ss:$8 sps:$4 sm:$0xff]   ;;  %v9461_v48 = vld [vmem:[%s14930_s4 + $0x444] ss:$8 sps:$4 sm:$0xff]  }
 0x801   :  { %v6200_v47 = vmax.f32 %v6188_v7, %v6192_v4  ;;  %8526 = vst [vmem:[%s14927_s13 + $0x1b0] sm:$0xff] %v6207_v55  ;;  %v9438_v7 = vld [vmem:[%s14930_s4 + $0x390] ss:$8 sps:$4 sm:$0xff]   ;;  %v9446_v4 = vld [vmem:[%s14930_s4 + $0x384] ss:$8 sps:$4 sm:$0xff]  }
 0x803   :  { %v6208_v20 = vmax.f32 %v6200_v47, 0.0  ;;  %v9444_v47 = vld [vmem:[%s14930_s4 + $0x380] ss:$8 sps:$4 sm:$0xff]  }
 0x805   :  { %v6221_v34 = vpack.c.bf16 %v6208_v20, %v6207_v55  ;;  %8527 = vst [vmem:[%s14927_s13 + $0x1b8] sm:$0xff] %v6208_v20  ;;  %v9459_v55 = vld [vmem:[%s14930_s4 + $0x440] ss:$8 sps:$4 sm:$0xff]   ;;  %v9452_v20 = vld [vmem:[%s14930_s4 + $0x374] ss:$8 sps:$4 sm:$0xff]  }
 0x807   :  { %6232 = vrot.lane.b32.xlu1 %v6221_v34, %s9486_s18  ;;  %v9450_v34 = vld [vmem:[%s14930_s4 + $0x370] ss:$8 sps:$4 sm:$0xff]  }
 0x851   :  { %v6227_v3 = vpop.permute.xlu0 %6226 }
 0x852   :  { %v6247_v18 = vsel %vm5027_vm9, %v6227_v3, 0 }
 0x853   :  { %8588 = vmatprep.mubr.msk.bf16.mxu1 %vm6462_vm10, %v6247_v18  ;;  %8684 = vmatprep.mubr.msk.bf16.mxu0 %vm6462_vm10, %v6247_v18  ;;  %v9464_v18 = vld [vmem:[%s14930_s4 + $0x354] ss:$8 sps:$4 sm:$0xff]  }
 0x854   :  { %8590 = vmatmul.mubr.msk.bf16.gmra.mxu1 %vm14428_vm11, %v6227_v3  ;;  %8686 = vmatmul.mubr.msk.bf16.vlgmr.msra.gmra.mxu0 %vm14428_vm11, %v6227_v3  ;;  %v9458_v3 = vld [vmem:[%s14930_s4 + $0x364] ss:$8 sps:$4 sm:$0xff]  }
 0x855   :  { %7491 = vmatpush1.bf16.msra.mxu0 %v9375_v60  ;;  %v9456_v60 = vld [vmem:[%s14930_s4 + $0x360] ss:$8 sps:$4 sm:$0xff]  }
 0x856   :  { %7492 = vmatprep.subr.bf16.mxu0 %v9383_v15  ;;  %v9462_v15 = vld [vmem:[%s14930_s4 + $0x350] ss:$8 sps:$4 sm:$0xff]  }
 0x859   :  { %v6229_v45 = vpop.permute.xlu1 %6228  ;;  %7493 = vmatpush1.bf16.msra.mxu0 %v9381_v29  ;;  %v7630_v29 = vld [vmem:[%s14932_s9 + $0x78] sm:$0xff] }
 0x85a   :  { %v6248_v27 = vsel %vm5027_vm9, %v6229_v45, 0  ;;  %7494 = vmatprep.subr.bf16.mxu0 %v9389_v57  ;;  %v7628_v57 = vld [vmem:[%s14932_s9 + $0x68] sm:$0xff] }
 0x85b   :  { %8591 = vmatprep.mubr.msk.bf16.mxu1 %vm6462_vm10, %v6248_v27  ;;  %8687 = vmatprep.mubr.msk.bf16.mxu0 %vm6462_vm10, %v6248_v27  ;;  %v7625_v27 = vld [vmem:[%s14932_s9 + $0x50] sm:$0xff] }
 0x85c   :  { %8593 = vmatmul.mubr.msk.bf16.gmra.mxu1 %vm14428_vm11, %v6229_v45  ;;  %8689 = vmatmul.mubr.msk.bf16.gmra.mxu0 %vm14428_vm11, %v6229_v45  ;;  %v7627_v45 = vld [vmem:[%s14932_s9 + $0x60] sm:$0xff] }
 0x85d   :  { %6724 = vmatprep.mubr.bf16.mxu1 %v15883_v2  ;;  %7495 = vmatpush1.bf16.msra.mxu0 %v9387_v5  ;;  %v7626_v5 = vld [vmem:[%s14932_s9 + $0x58] sm:$0xff] }
 0x85e   :  { %7496 = vmatprep.subr.bf16.mxu0 %v9395_v11  ;;  %v7624_v11 = vld [vmem:[%s14932_s9 + $0x48] sm:$0xff] }
 0x861   :  { %7497 = vmatpush1.bf16.msra.mxu0 %v9393_v17  ;;  %v7622_v17 = vld [vmem:[%s14932_s9 + $0x38] sm:$0xff] }
 0x862   :  { %7498 = vmatprep.subr.bf16.mxu0 %v9401_v63  ;;  %v7621_v63 = vld [vmem:[%s14932_s9 + $0x30] sm:$0xff] }
 0x864   :  { %6725 = vmatmul.mubr.bf16.vlgmr.msra.gmra.mxu1 %v15883_v2 }
 0x865   :  { %7221 = vmatpush1.bf16.msra.mxu1 %v9378_v37  ;;  %6734 = vmatprep.mubr.bf16.mxu1 %v15883_v2  ;;  %v7620_v37 = vld [vmem:[%s14932_s9 + $0x28] sm:$0xff] }
 0x866   :  { %7222 = vmatprep.subr.bf16.mxu1 %v9386_v35  ;;  %7499 = vmatpush1.bf16.msra.mxu0 %v9399_v56  ;;  %v14701_v35 = vpop.f32.mrf.mxu1  ;;  %v7619_v56 = vld [vmem:[%s14932_s9 + $0x20] sm:$0xff] }
 0x867   :  { %7500 = vmatprep.subr.bf16.mxu0 %v9407_v40  ;;  %v7618_v40 = vld [vmem:[%s14932_s9 + $0x18] sm:$0xff] }
 0x869   :  { %7223 = vmatpush1.bf16.msra.mxu1 %v9384_v8  ;;  %v14709_v8 = vpop.f32.mrf.mxu1 }
 0x86a   :  { %7224 = vmatprep.subr.bf16.mxu1 %v9392_v49  ;;  %7501 = vmatpush1.bf16.msra.mxu0 %v9405_v30  ;;  %v7617_v49 = vld [vmem:[%s14932_s9 + $0x10] sm:$0xff]  ;;  %v7616_v30 = vld [vmem:[%s14932_s9 + $0x8] sm:$0xff] }
 0x86b   :  { %7502 = vmatprep.subr.bf16.mxu0 %v9413_v61  ;;  %v14717_v61 = vpop.f32.mrf.mxu1 }
 0x86c   :  { %6735 = vmatmul.mubr.bf16.gmra.mxu1 %v15883_v2 }
 0x86d   :  { %7225 = vmatpush1.bf16.msra.mxu1 %v9390_v32  ;;  %6744 = vmatprep.mubr.bf16.mxu1 %v15883_v2  ;;  %v7615_v32 = vld [vmem:[%s14932_s9] sm:$0xff] }
 0x86e   :  { %7226 = vmatprep.subr.bf16.mxu1 %v9398_v43  ;;  %7503 = vmatpush1.bf16.msra.mxu0 %v9411_v19  ;;  %v14722_v43 = vpop.f32.mrf.mxu1 }
 0x86f   :  { %7504 = vmatprep.subr.bf16.mxu0 %v9419_v36 }
 0x870   :  { %v14724_v19 = vpop.f32.mrf.mxu1 }
 0x871   :  { %7227 = vmatpush1.bf16.msra.mxu1 %v9396_v26  ;;  %v14523_v52 = vpop.permute.xlu0 %6230  ;;  %v7746_v26 = vld [vmem:[%s14933_s11 + $0x78] sm:$0xff] }
 0x872   :  { %v6249_v39 = vsel %vm5027_vm9, %v14523_v52, 0  ;;  %7228 = vmatprep.subr.bf16.mxu1 %v9404_v10  ;;  %7505 = vmatpush1.bf16.msra.mxu0 %v9417_v1  ;;  %v14726_v36 = vpop.f32.mrf.mxu1  ;;  %v7745_v10 = vld [vmem:[%s14933_s11 + $0x70] sm:$0xff] }
 0x873   :  { %8690 = vmatprep.mubr.msk.bf16.mxu0 %vm6462_vm10, %v6249_v39  ;;  %7508 = vmatprep.subr.bf16.mxu0 %v9425_v44  ;;  %v7744_v44 = vld [vmem:[%s14933_s11 + $0x68] sm:$0xff] }
 0x874   :  { %6745 = vmatmul.mubr.bf16.gmra.mxu1 %v15883_v2  ;;  %8692 = vmatmul.mubr.msk.bf16.gmra.mxu0 %vm14428_vm11, %v14523_v52  ;;  %v14734_v1 = vpop.f32.mrf.mxu1 }
 0x875   :  { %7229 = vmatpush1.bf16.msra.mxu1 %v9402_v54  ;;  %6754 = vmatprep.mubr.bf16.mxu1 %v15883_v2 }
 0x876   :  { %7230 = vmatprep.subr.bf16.mxu1 %v9410_v46  ;;  %7509 = vmatpush2.bf16.msra.mxu0 %v9423_v23  ;;  %v14742_v54 = vpop.f32.mrf.mxu1  ;;  %v7741_v23 = vld [vmem:[%s14933_s11 + $0x50] sm:$0xff] }
 0x877   :  { %7510 = vmatprep.subr.bf16.mxu0 %v9431_v58 }
 0x879   :  { %7231 = vmatpush1.bf16.msra.mxu1 %v9408_v22  ;;  %v14557_v25 = vpop.permute.xlu1 %6232 }
 0x87a   :  { %v14564_v0 = vsel %vm5027_vm9, %v14557_v25, 0  ;;  %7232 = vmatprep.subr.bf16.mxu1 %v9416_v62  ;;  %7511 = vmatpush2.bf16.msra.mxu0 %v9429_v50  ;;  %v7740_v62 = vld [vmem:[%s14933_s11 + $0x48] sm:$0xff] }
 0x87b   :  { %8693 = vmatprep.mubr.msk.bf16.mxu0 %vm6462_vm10, %v14564_v0  ;;  %7512 = vmatprep.subr.bf16.mxu0 %v9437_v9  ;;  %v7739_v9 = vld [vmem:[%s14933_s11 + $0x40] sm:$0xff] }
 0x87c   :  { %6755 = vmatmul.mubr.bf16.gmra.mxu1 %v15883_v2  ;;  %8695 = vmatmul.mubr.msk.bf16.gmra.mxu0 %vm14428_vm11, %v14557_v25 }
 0x87d   :  { %7233 = vmatpush1.bf16.msra.mxu1 %v9414_v53  ;;  %8756 = vmatprep.mubr.msk.bf16.mxu1 %vm6462_vm10, %v6249_v39  ;;  %v7742_v39 = vld [vmem:[%s14933_s11 + $0x58] sm:$0xff] }
 0x87e   :  { %7234 = vmatprep.subr.bf16.mxu1 %v9422_v33  ;;  %7513 = vmatpush2.bf16.msra.mxu0 %v9435_v38  ;;  %v7737_v38 = vld [vmem:[%s14933_s11 + $0x30] sm:$0xff] }
 0x87f   :  { %7514 = vmatprep.subr.bf16.mxu0 %v9443_v28  ;;  %7522 = vmatprep.mubr.bf16.mxu0 %v15883_v2 }
 0x881   :  { %7235 = vmatpush1.bf16.msra.mxu1 %v9420_v13 }
 0x882   :  { %7238 = vmatprep.subr.bf16.mxu1 %v9428_v14  ;;  %7515 = vmatpush2.bf16.msra.mxu0 %v9441_v51  ;;  %v7736_v14 = vld [vmem:[%s14933_s11 + $0x28] sm:$0xff] }
 0x883   :  { %7516 = vmatprep.subr.bf16.mxu0 %v9449_v41  ;;  %v7735_v41 = vld [vmem:[%s14933_s11 + $0x20] sm:$0xff] }
 0x885   :  { %7239 = vmatpush2.bf16.msra.mxu1 %v9426_v16 }
 0x886   :  { %7240 = vmatprep.subr.bf16.mxu1 %v9434_v12  ;;  %7517 = vmatpush2.bf16.msra.mxu0 %v9447_v31 }
 0x887   :  { %7518 = vmatprep.subr.bf16.mxu0 %v9455_v21 }
 0x889   :  { %7241 = vmatpush2.bf16.msra.mxu1 %v9432_v24 }
 0x88a   :  { %7242 = vmatprep.subr.bf16.mxu1 %v9440_v59  ;;  %7519 = vmatpush2.bf16.msra.mxu0 %v9453_v6 }
 0x88b   :  { %7520 = vmatprep.subr.bf16.mxu0 %v9461_v48 }
 0x88d   :  { %7243 = vmatpush2.bf16.msra.mxu1 %v9438_v7 }
 0x88e   :  { %7244 = vmatprep.subr.bf16.mxu1 %v9446_v4  ;;  %7521 = vmatpush2.bf16.msra.mxu0 %v9459_v55 }
 0x88f   :  { %8907 = vmatprep.subr.mxu0 %v7746_v26 }
 0x891   :  { %7245 = vmatpush2.bf16.msra.mxu1 %v9444_v47  ;;  %7523 = vmatmul.mubr.bf16.vlgmr.msra.gmra.mxu0 %v15883_v2 }
 0x892   :  { %7246 = vmatprep.subr.bf16.mxu1 %v9452_v20  ;;  %7532 = vmatprep.mubr.bf16.mxu0 %v15883_v2 }
 0x893   :  { %8908 = vmatpush3.msra.mxu0 %v7746_v26 }
 0x894   :  { %8909 = vmatprep.subr.mxu0 %v7745_v10 }
 0x895   :  { %7247 = vmatpush2.bf16.msra.mxu1 %v9450_v34  ;;  %8910 = vmatpush3.msra.mxu0 %v7745_v10 }
 0x896   :  { %7248 = vmatprep.subr.bf16.mxu1 %v9458_v3  ;;  %8911 = vmatprep.subr.mxu0 %v7744_v44 }
 0x897   :  { %8912 = vmatpush3.msra.mxu0 %v7744_v44 }
 0x899   :  { %7249 = vmatpush2.bf16.msra.mxu1 %v9456_v60  ;;  %7533 = vmatmul.mubr.bf16.gmra.mxu0 %v15883_v2 }
 0x89a   :  { %7250 = vmatprep.subr.bf16.mxu1 %v9464_v18  ;;  %7542 = vmatprep.mubr.bf16.mxu0 %v15883_v2 }
 0x89d   :  { %7251 = vmatpush2.bf16.msra.mxu1 %v9462_v15 }
 0x89e   :  { %8869 = vmatprep.subr.mxu1 %v7630_v29 }
 0x8a0   :  { %8758 = vmatmul.mubr.msk.bf16.vlgmr.msra.gmra.mxu1 %vm14428_vm11, %v14523_v52  ;;  %v7743_v52 = vld [vmem:[%s14933_s11 + $0x60] sm:$0xff] }
 0x8a1   :  { %8759 = vmatprep.mubr.msk.bf16.mxu1 %vm6462_vm10, %v14564_v0  ;;  %7543 = vmatmul.mubr.bf16.gmra.mxu0 %v15883_v2  ;;  %v7738_v0 = vld [vmem:[%s14933_s11 + $0x38] sm:$0xff] }
 0x8a2   :  { %7552 = vmatprep.mubr.bf16.mxu0 %v15883_v2  ;;  %8870 = vmatpush3.msra.mxu1 %v7630_v29 }
 0x8a3   :  { %8871 = vmatprep.subr.mxu1 %v7629_v42  ;;  %8913 = vmatprep.subr.mxu0 %v7743_v52 }
 0x8a4   :  { %8872 = vmatpush3.msra.mxu1 %v7629_v42  ;;  %8914 = vmatpush3.msra.mxu0 %v7743_v52 }
 0x8a5   :  { %8873 = vmatprep.subr.mxu1 %v7628_v57  ;;  %8915 = vmatprep.subr.mxu0 %v7742_v39 }
 0x8a6   :  { %8874 = vmatpush3.msra.mxu1 %v7628_v57  ;;  %8916 = vmatpush3.msra.mxu0 %v7742_v39 }
 0x8a7   :  { %8875 = vmatprep.subr.mxu1 %v7627_v45  ;;  %8917 = vmatprep.subr.mxu0 %v7741_v23 }
 0x8a8   :  { %8761 = vmatmul.mubr.msk.bf16.gmra.mxu1 %vm14428_vm11, %v14557_v25  ;;  %8918 = vmatpush3.msra.mxu0 %v7741_v23 }
 0x8a9   :  { %7272 = vmatprep.mubr.bf16.mxu1 %v15883_v2  ;;  %7553 = vmatmul.mubr.bf16.gmra.mxu0 %v15883_v2 }
 0x8aa   :  { %8876 = vmatpush3.msra.mxu1 %v7627_v45  ;;  %8919 = vmatprep.subr.mxu0 %v7740_v62 }
 0x8ab   :  { %8877 = vmatprep.subr.mxu1 %v7626_v5  ;;  %8920 = vmatpush3.msra.mxu0 %v7740_v62 }
 0x8ac   :  { %8878 = vmatpush3.msra.mxu1 %v7626_v5  ;;  %8921 = vmatprep.subr.mxu0 %v7739_v9 }
 0x8ad   :  { %8879 = vmatprep.subr.mxu1 %v7625_v27  ;;  %8922 = vmatpush3.msra.mxu0 %v7739_v9 }
 0x8ae   :  { %8880 = vmatpush3.msra.mxu1 %v7625_v27  ;;  %8923 = vmatprep.subr.mxu0 %v7738_v0 }
 0x8af   :  { %8881 = vmatprep.subr.mxu1 %v7624_v11  ;;  %8924 = vmatpush3.msra.mxu0 %v7738_v0 }
 0x8b0   :  { %7273 = vmatmul.mubr.bf16.gmra.mxu1 %v15883_v2  ;;  %8925 = vmatprep.subr.mxu0 %v7737_v38 }
 0x8b1   :  { %7282 = vmatprep.mubr.bf16.mxu1 %v15883_v2  ;;  %8882 = vmatpush3.msra.mxu1 %v7624_v11 }
 0x8b2   :  { %8926 = vmatpush3.msra.mxu0 %v7737_v38 }
 0x8b3   :  { %8927 = vmatprep.subr.mxu0 %v7736_v14 }
 0x8b4   :  { %8928 = vmatpush3.msra.mxu0 %v7736_v14 }
 0x8b5   :  { %8929 = vmatprep.subr.mxu0 %v7735_v41 }
 0x8b6   :  { %8930 = vmatpush3.msra.mxu0 %v7735_v41 }
 0x8b8   :  { %7283 = vmatmul.mubr.bf16.gmra.mxu1 %v15883_v2  ;;  %v7623_v2 = vld [vmem:[%s14932_s9 + $0x40] sm:$0xff] }
 0x8b9   :  { %8883 = vmatprep.subr.mxu1 %v7623_v2 }
 0x8ba   :  { %8884 = vmatpush3.msra.mxu1 %v7623_v2 }
 0x8bb   :  { %8885 = vmatprep.subr.mxu1 %v7622_v17 }
 0x8bc   :  { %8886 = vmatpush3.msra.mxu1 %v7622_v17 }
 0x8bd   :  { %8887 = vmatprep.subr.mxu1 %v7621_v63 }
 0x8be   :  { %8888 = vmatpush3.msra.mxu1 %v7621_v63 }
 0x8bf   :  { %8889 = vmatprep.subr.mxu1 %v7620_v37 }
 0x8c0   :  { %8890 = vmatpush3.msra.mxu1 %v7620_v37 }
 0x8c1   :  { %8891 = vmatprep.subr.mxu1 %v7619_v56 }
 0x8c2   :  { %8892 = vmatpush3.msra.mxu1 %v7619_v56 }
 0x8c3   :  { %8893 = vmatprep.subr.mxu1 %v7618_v40 }
 0x8c4   :  { %8894 = vmatpush3.msra.mxu1 %v7618_v40 }
 0x8c5   :  { %8895 = vmatprep.subr.mxu1 %v7617_v49 }
 0x8c6   :  { %8896 = vmatpush3.msra.mxu1 %v7617_v49 }
 0x8c7   :  { %8897 = vmatprep.subr.mxu1 %v7616_v30 }
 0x8c8   :  { %8898 = vmatpush3.msra.mxu1 %v7616_v30 }
 0x8c9   :  { %8899 = vmatprep.subr.mxu1 %v7615_v32 }
 0x8ca   :  { %8900 = vmatpush3.msra.mxu1 %v7615_v32 }
 0x914   :  { %v14747_v46 = vpop.f32.mrf.mxu1  ;;  %v14752_v58 = vpop.f32.mrf.mxu0 }
 0x916   :  { %v14754_v22 = vpop.f32.mrf.mxu1  ;;  %v14764_v25 = vpop.f32.mrf.mxu0 }
 0x918   :  { %v14759_v50 = vpop.f32.mrf.mxu1  ;;  %v14776_v28 = vpop.f32.mrf.mxu0 }
 0x91a   :  { %v14766_v53 = vpop.f32.mrf.mxu1  ;;  %v14788_v16 = vpop.f32.mrf.mxu0 }
 0x91c   :  { %v14771_v33 = vpop.f32.mrf.mxu1  ;;  %v14792_v21 = vpop.f32.mrf.mxu0 }
 0x91e   :  { %v14778_v13 = vpop.f32.mrf.mxu1  ;;  %v14794_v59 = vpop.f32.mrf.mxu0 }
 0x920   :  { %v14783_v51 = vpop.f32.mrf.mxu1  ;;  %v14796_v48 = vpop.f32.mrf.mxu0 }
 0x922   :  { %v14790_v12 = vpop.f32.mrf.mxu1  ;;  %v14798_v4 = vpop.f32.mrf.mxu0 }
 0x923   :  { %15884 = vst [vmem:[#allocation7_spill] sm:$0xff] %v14790_v12 }
 0x924   :  { %v6726_v31 = vpop.f32.mrf.mxu1 }
 0x925   :  { %v6727_v14 = vadd.f32 %v6726_v31, %v14701_v35 }
 0x926   :  { %v6728_v24 = vpop.f32.mrf.mxu1 }
 0x927   :  { %v6729_v0 = vadd.f32 %v6728_v24, %v14709_v8 }
 0x928   :  { %v6730_v6 = vpop.f32.mrf.mxu1 }
 0x92a   :  { %v6732_v7 = vpop.f32.mrf.mxu1 }
 0x92c   :  { %v6736_v55 = vpop.f32.mrf.mxu1 }
 0x92d   :  { %v6737_v24 = vadd.f32 %v6736_v55, %v14724_v19 }
 0x92e   :  { %v6738_v20 = vpop.f32.mrf.mxu1 }
 0x92f   :  { %v6739_v31 = vadd.f32 %v6738_v20, %v14726_v36  ;;  %v7027_v20 = vadd.f32 %v14792_v21, %v6737_v24 }
 0x930   :  { %v6740_v3 = vpop.f32.mrf.mxu1 }
 0x932   :  { %v6742_v18 = vpop.f32.mrf.mxu1 }
 0x934   :  { %v7004_v47 = vpop.f32.mrf.mxu0  ;;  %v6746_v29 = vpop.f32.mrf.mxu1 }
 0x936   :  { %v7006_v34 = vpop.f32.mrf.mxu0  ;;  %v6748_v57 = vpop.f32.mrf.mxu1 }
 0x937   :  { %v6749_v35 = vadd.f32 %v6748_v57, %v14754_v22 }
 0x938   :  { %v14800_v60 = vpop.f32.mrf.mxu0  ;;  %v6750_v5 = vpop.f32.mrf.mxu1 }
 0x939   :  { %v7032_v22 = vadd.f32 %v7006_v34, %v6749_v35 }
 0x93a   :  { %v14802_v15 = vpop.f32.mrf.mxu0  ;;  %v6752_v11 = vpop.f32.mrf.mxu1 }
 0x93b   :  { %v6753_v36 = vadd.f32 %v6752_v11, %v14766_v53 }
 0x93c   :  { %v14804_v42 = vpop.f32.mrf.mxu0  ;;  %v6756_v63 = vpop.f32.mrf.mxu1 }
 0x93d   :  { %v6757_v57 = vadd.f32 %v6756_v63, %v14771_v33  ;;  %v7034_v33 = vadd.f32 %v14802_v15, %v6753_v36 }
 0x93e   :  { %v14806_v45 = vpop.f32.mrf.mxu0  ;;  %v6758_v40 = vpop.f32.mrf.mxu1 }
 0x93f   :  { %15885 = vst [vmem:[#allocation104_spill] sm:$0xff] %v14806_v45 }
 0x940   :  { %v14808_v27 = vpop.f32.mrf.mxu0  ;;  %v14816_v32 = vpop.f32.mrf.mxu1 }
 0x941   :  { %15886 = vst [vmem:[#allocation20_spill] sm:$0xff] %v14808_v27  ;;  %v7024_v27 = vadd.f32 %v14764_v25, %v6729_v0 }
 0x942   :  { %v14810_v2 = vpop.f32.mrf.mxu0  ;;  %v14822_v44 = vpop.f32.mrf.mxu1 }
 0x943   :  { %15887 = vst [vmem:[#allocation111_spill] sm:$0xff] %v14810_v2  ;;  %15891 = vst [vmem:[#allocation137_spill] sm:$0xff] %v14822_v44  ;;  %v6731_v44 = vadd.f32 %v6730_v6, %v14717_v61  ;;  %v6751_v61 = vadd.f32 %v6750_v5, %v14759_v50  ;;  %v7028_v50 = vadd.f32 %v14794_v59, %v6739_v31  ;;  %v8822_v59 = vld [vmem:[%s14934_s8] ss:$0 sm:$0xff] }
 0x94a   :  { %v15895_v15 = vld [vmem:[#allocation137_spill] sm:$0xff] }
 0x951   :  { %v7524_v17 = vpop.f32.mrf.mxu0 }
 0x953   :  { %v7526_v37 = vpop.f32.mrf.mxu0 }
 0x955   :  { %v14812_v56 = vpop.f32.mrf.mxu0 }
 0x957   :  { %v7530_v49 = vpop.f32.mrf.mxu0 }
 0x959   :  { %v14814_v30 = vpop.f32.mrf.mxu0 }
 0x95a   :  { %15888 = vst [vmem:[#allocation81_spill] sm:$0xff] %v14814_v30  ;;  %v6733_v30 = vadd.f32 %v6732_v7, %v14722_v43 }
 0x95b   :  { %v14818_v26 = vpop.f32.mrf.mxu0 }
 0x95c   :  { %15889 = vst [vmem:[#allocation21_spill] sm:$0xff] %v14818_v26  ;;  %v6747_v26 = vadd.f32 %v6746_v29, %v14747_v46  ;;  %v7026_v25 = vadd.f32 %v14788_v16, %v6733_v30  ;;  %v6741_v46 = vadd.f32 %v6740_v3, %v14734_v1  ;;  %v15893_v30 = vld [vmem:[#allocation104_spill] sm:$0xff] }
 0x95d   :  { %v14820_v10 = vpop.f32.mrf.mxu0 }
 0x95e   :  { %15890 = vst [vmem:[#allocation113_spill] sm:$0xff] %v14820_v10  ;;  %v7031_v29 = vadd.f32 %v7004_v47, %v6747_v26 }
 0x95f   :  { %v14824_v39 = vpop.f32.mrf.mxu0 }
 0x960   :  { %v7254_v52 = vpop.f32.mrf.mxu1  ;;  %15892 = vst [vmem:[#allocation154_spill] sm:$0xff] %v14824_v39  ;;  %v7023_v39 = vadd.f32 %v14752_v58, %v6727_v14  ;;  %v6743_v58 = vadd.f32 %v6742_v18, %v14742_v54  ;;  %v7033_v54 = vadd.f32 %v14800_v60, %v6751_v61 }
 0x961   :  { %v7544_v9 = vpop.f32.mrf.mxu0  ;;  %v15898_v31 = vld [vmem:[#allocation81_spill] sm:$0xff] }
 0x962   :  { %v7256_v23 = vpop.f32.mrf.mxu1  ;;  %v7293_v43 = vadd.f32 %v7254_v52, %v7023_v39  ;;  %v7030_v21 = vadd.f32 %v14798_v4, %v6743_v58 }
 0x963   :  { %v7546_v2 = vpop.f32.mrf.mxu0  ;;  %v7294_v12 = vadd.f32 %v7256_v23, %v7024_v27  ;;  %v7025_v27 = vadd.f32 %v14776_v28, %v6731_v44  ;;  %v6759_v28 = vadd.f32 %v6758_v40, %v14778_v13  ;;  %v7035_v13 = vadd.f32 %v14804_v42, %v6757_v57 }
 0x964   :  { %v7258_v62 = vpop.f32.mrf.mxu1  ;;  %v7563_v1 = vadd.f32 %v7524_v17, %v7293_v43 }
 0x965   :  { %v7548_v8 = vpop.f32.mrf.mxu0  ;;  %v7564_v6 = vadd.f32 %v7526_v37, %v7294_v12  ;;  %v7295_v47 = vadd.f32 %v7258_v62, %v7025_v27  ;;  %v7029_v12 = vadd.f32 %v14796_v48, %v6741_v46  ;;  %v6761_v48 = vadd.f32 %v14816_v32, %v14783_v51 }
 0x966   :  { %v7260_v38 = vpop.f32.mrf.mxu1  ;;  %v7036_v26 = vadd.f32 %v15893_v30, %v6759_v28  ;;  %v8827_v30 = vld [vmem:[%s14935_s10] ss:$0 sm:$0xff] }
 0x967   :  { %v7296_v23 = vadd.f32 %v7260_v38, %v7026_v25  ;;  %v7550_v55 = vpop.f32.mrf.mxu0  ;;  %v7579_v34 = vmax.f32 %v7563_v1, %v7564_v6  ;;  %v7565_v40 = vadd.f32 %v14812_v56, %v7295_v47  ;;  %v15901_v47 = vld [vmem:[#allocation113_spill] sm:$0xff] }
 0x968   :  { %v7264_v41 = vpop.f32.mrf.mxu1 }
 0x969   :  { %v7566_v5 = vadd.f32 %v7530_v49, %v7296_v23  ;;  %v7554_v37 = vpop.f32.mrf.mxu0  ;;  %v7297_v49 = vadd.f32 %v7264_v41, %v7027_v20  ;;  %v7594_v14 = vadd.f32 %v8822_v59, %v7579_v34  ;;  %v15897_v41 = vld [vmem:[#allocation20_spill] sm:$0xff] }
 0x96a   :  { %v7266_v10 = vpop.f32.mrf.mxu1  ;;  %v7037_v35 = vadd.f32 %v15897_v41, %v6761_v48 }
 0x96b   :  { %v7298_v53 = vadd.f32 %v7266_v10, %v7028_v50  ;;  %v15894_v10 = vld [vmem:[#allocation7_spill] sm:$0xff]  ;;  %v7580_v62 = vmax.f32 %v7565_v40, %v7566_v5  ;;  %v7556_v38 = vpop.f32.mrf.mxu0  ;;  %v7567_v43 = vadd.f32 %v15898_v31, %v7297_v49  ;;  %v7734_v40 = vld [vmem:[%s14933_s11 + $0x18] sm:$0xff] }
 0x96c   :  { %v14833_v45 = vpop.f32.mrf.mxu1  ;;  %v6763_v44 = vadd.f32 %v15895_v15, %v15894_v10  ;;  %8931 = vmatprep.subr.mxu0 %v7734_v40  ;;  %v7732_v49 = vld [vmem:[%s14933_s11 + $0x8] sm:$0xff] }
 0x96d   :  { %v7299_v25 = vadd.f32 %v14833_v45, %v7029_v12  ;;  %8932 = vmatpush3.msra.mxu0 %v7734_v40 }
 0x96e   :  { %v7270_v7 = vpop.f32.mrf.mxu1 }
 0x96f   :  { %v7300_v0 = vadd.f32 %v7270_v7, %v7030_v21  ;;  %v7595_v7 = vadd.f32 %v8822_v59, %v7580_v62  ;;  %v7569_v50 = vadd.f32 %v15901_v47, %v7299_v25 }
 0x970   :  { %v7274_v19 = vpop.f32.mrf.mxu1 }
 0x971   :  { %v7301_v16 = vadd.f32 %v7274_v19, %v7031_v29  ;;  %v15899_v29 = vld [vmem:[#allocation111_spill] sm:$0xff]  ;;  %v15900_v19 = vld [vmem:[#allocation154_spill] sm:$0xff] }
 0x972   :  { %v7276_v3 = vpop.f32.mrf.mxu1  ;;  %v7038_v61 = vadd.f32 %v15899_v29, %v6763_v44 }
 0x973   :  { %v7302_v18 = vadd.f32 %v7276_v3, %v7032_v22  ;;  %v7571_v17 = vadd.f32 %v7544_v9, %v7301_v16  ;;  %v15896_v9 = vld [vmem:[#allocation21_spill] sm:$0xff]  ;;  %v7570_v22 = vadd.f32 %v15900_v19, %v7300_v0 }
 0x974   :  { %v7278_v11 = vpop.f32.mrf.mxu1 }
 0x975   :  { %v7572_v60 = vadd.f32 %v7546_v2, %v7302_v18  ;;  %v7303_v63 = vadd.f32 %v7278_v11, %v7033_v54  ;;  %v7568_v2 = vadd.f32 %v15896_v9, %v7298_v53  ;;  %v7582_v12 = vmax.f32 %v7569_v50, %v7570_v22 }
 0x976   :  { %v7280_v4 = vpop.f32.mrf.mxu1 }
 0x977   :  { %v7583_v52 = vmax.f32 %v7571_v17, %v7572_v60  ;;  %v7304_v39 = vadd.f32 %v7280_v4, %v7034_v33  ;;  %v7573_v24 = vadd.f32 %v7548_v8, %v7303_v63  ;;  %v7581_v23 = vmax.f32 %v7567_v43, %v7568_v2  ;;  %v7731_v4 = vld [vmem:[%s14933_s11] sm:$0xff] }
 0x978   :  { %v7284_v42 = vpop.f32.mrf.mxu1  ;;  %v7597_v17 = vadd.f32 %v8822_v59, %v7582_v12 }
 0x979   :  { %v7574_v51 = vadd.f32 %v7550_v55, %v7304_v39  ;;  %v7305_v32 = vadd.f32 %v7284_v42, %v7035_v13  ;;  %v7598_v56 = vadd.f32 %v8822_v59, %v7583_v52  ;;  %v7558_v55 = vpop.f32.mrf.mxu0  ;;  %v7596_v34 = vadd.f32 %v8822_v59, %v7581_v23 }
 0x97a   :  { %v7286_v46 = vpop.f32.mrf.mxu1 }
 0x97b   :  { %v7584_v58 = vmax.f32 %v7573_v24, %v7574_v51  ;;  %v7306_v6 = vadd.f32 %v7286_v46, %v7036_v26  ;;  %v7602_v27 = vmax.f32 %v7594_v14, %v7598_v56  ;;  %v7575_v8 = vadd.f32 %v7554_v37, %v7305_v32  ;;  %v7560_v18 = vpop.f32.mrf.mxu0  ;;  %v8828_v14 = vld [vmem:[%s14937_s12] ss:$0 sm:$0xff] }
 0x97c   :  { %v7288_v36 = vpop.f32.mrf.mxu1 }
 0x97d   :  { %v7599_v20 = vadd.f32 %v8822_v59, %v7584_v58  ;;  %v7576_v16 = vadd.f32 %v7556_v38, %v7306_v6  ;;  %v7307_v57 = vadd.f32 %v7288_v36, %v7037_v35  ;;  %v7606_v1 = vmax.f32 %v7602_v27, 0.0 }
 0x97e   :  { %v7290_v45 = vpop.f32.mrf.mxu1 }
 0x97f   :  { %v7603_v3 = vmax.f32 %v7595_v7, %v7599_v20  ;;  %v7585_v54 = vmax.f32 %v7575_v8, %v7576_v16  ;;  %v7308_v28 = vadd.f32 %v7290_v45, %v7038_v61  ;;  %8823 = vst [vmem:[%s14927_s13 + $0x1c0] sm:$0xff] %v7606_v1  ;;  %8901 = vmatprep.mubr.f32.mxu1 %v7606_v1 }
 0x980   :  { %v7577_v53 = vadd.f32 %v7558_v55, %v7307_v57 }
 0x981   :  { %v7607_v5 = vmax.f32 %v7603_v3, 0.0  ;;  %v7578_v21 = vadd.f32 %v7560_v18, %v7308_v28  ;;  %v7600_v11 = vadd.f32 %v8822_v59, %v7585_v54 }
 0x983   :  { %8824 = vst [vmem:[%s14927_s13 + $0x1c8] sm:$0xff] %v7607_v5  ;;  %v7586_v37 = vmax.f32 %v7577_v53, %v7578_v21  ;;  %8902 = vmatmul.mubr.f32.vlgmr.msra.gmra.mxu1 %v7607_v5  ;;  %v7604_v33 = vmax.f32 %v7596_v34, %v7600_v11 }
 0x985   :  { %v7601_v60 = vadd.f32 %v8822_v59, %v7586_v37  ;;  %v7608_v63 = vmax.f32 %v7604_v33, 0.0  ;;  %v7733_v59 = vld [vmem:[%s14933_s11 + $0x10] sm:$0xff] }
 0x986   :  { %8933 = vmatprep.subr.mxu0 %v7733_v59 }
 0x987   :  { %8825 = vst [vmem:[%s14927_s13 + $0x1d0] sm:$0xff] %v7608_v63  ;;  %8904 = vmatprep.mubr.f32.mxu1 %v7608_v63  ;;  %v7605_v13 = vmax.f32 %v7597_v17, %v7601_v60  ;;  %8934 = vmatpush3.msra.mxu0 %v7733_v59 }
 0x988   :  { %8935 = vmatprep.subr.mxu0 %v7732_v49 }
 0x989   :  { %v7609_v48 = vmax.f32 %v7605_v13, 0.0  ;;  %8936 = vmatpush3.msra.mxu0 %v7732_v49 }
 0x98a   :  { %8937 = vmatprep.subr.mxu0 %v7731_v4 }
 0x98b   :  { %8826 = vst [vmem:[%s14927_s13 + $0x1d8] sm:$0xff] %v7609_v48  ;;  %8905 = vmatmul.mubr.f32.gmra.mxu1 %v7609_v48  ;;  %8938 = vmatpush3.msra.mxu0 %v7731_v4 }
 0xa43   :  { %v8903_v26 = vpop.f32.mrf.mxu1 }
 0xa44   :  { %v7710_v10 = vadd.f32 %v8903_v26, %v8827_v30 }
 0xa45   :  { %v7704_v15 = vpop.f32.mrf.mxu1 }
 0xa46   :  { %v7724_v44 = vmax.f32 %v7710_v10, 0.0  ;;  %v7705_v52 = vadd.f32 %v8827_v30, %v7704_v15 }
 0xa48   :  { %7728 = vst [vmem:[%s14936_s14 + $0x8] sm:$0xff] %v7724_v44  ;;  %v7723_v39 = vmax.f32 %v7705_v52, 0.0 }
 0xa4a   :  { %7727 = vst [vmem:[%s14936_s14] sm:$0xff] %v7723_v39  ;;  %8939 = vmatprep.mubr.f32.mxu0 %v7723_v39 }
 0xa4b   :  { %v8906_v62 = vpop.f32.mrf.mxu1  ;;  %8940 = vmatmul.mubr.f32.vlgmr.msra.gmra.mxu0 %v7724_v44 }
 0xa4c   :  { %v7720_v9 = vadd.f32 %v8906_v62, %v8827_v30 }
 0xa4d   :  { %v7714_v2 = vpop.f32.mrf.mxu1 }
 0xa4e   :  { %v7726_v0 = vmax.f32 %v7720_v9, 0.0  ;;  %v7715_v38 = vadd.f32 %v8827_v30, %v7714_v2 }
 0xa50   :  { %7730 = vst [vmem:[%s14936_s14 + $0x18] sm:$0xff] %v7726_v0  ;;  %v7725_v42 = vmax.f32 %v7715_v38, 0.0 }
 0xa52   :  { %7729 = vst [vmem:[%s14936_s14 + $0x10] sm:$0xff] %v7725_v42  ;;  %8942 = vmatprep.mubr.f32.mxu0 %v7725_v42 }
 0xa53   :  { %8943 = vmatmul.mubr.f32.gmra.mxu0 %v7726_v0 }
 0xb0b   :  { %v8941_v24 = vpop.f32.mrf.mxu0 }
 0xb0c   :  { %v7826_v51 = vadd.f32 %v8941_v24, %v8828_v14 }
 0xb0d   :  { %v7820_v32 = vpop.f32.mrf.mxu0 }
 0xb0e   :  { %v7821_v56 = vadd.f32 %v8828_v14, %v7820_v32  ;;  %7841 = vmax.xlane.f32.xlu1 %v7826_v51 }
 0xb10   :  { %7839 = vmax.xlane.f32.xlu0 %v7821_v56 }
 0xb13   :  { %v8944_v41 = vpop.f32.mrf.mxu0 }
 0xb14   :  { %v7836_v43 = vadd.f32 %v8944_v41, %v8828_v14 }
 0xb15   :  { %v7830_v35 = vpop.f32.mrf.mxu0 }
 0xb16   :  { %v7831_v31 = vadd.f32 %v8828_v14, %v7830_v35 }
 0xb18   :  { %7843 = vmax.xlane.f32.xlu0 %v7831_v31 }
 0xb1c   :  { %7845 = vmax.xlane.f32.xlu0 %v7836_v43 }
 0xb97   :  { %v7842_v25 = vpop.xlane.xlu1 %7841 }
 0xb98   :  { %v7848_v46 = vsub.f32 %v7826_v51, %v7842_v25 }
 0xb99   :  { %v7840_v29 = vpop.xlane.xlu0 %7839 }
 0xb9a   :  { %v7853_v61 = vmul.f32 1.442695, %v7848_v46  ;;  %v7847_v58 = vsub.f32 %v7821_v56, %v7840_v29 }
 0xb9c   :  { %9465 = vpow2.f32 %v7853_v61  ;;  %v7851_v6 = vmul.f32 1.442695, %v7847_v58 }
 0xb9e   :  { %9467 = vpow2.f32 %v7851_v6 }
 0xba1   :  { %v7844_v27 = vpop.xlane.xlu0 %7843 }
 0xba2   :  { %v7849_v7 = vsub.f32 %v7831_v31, %v7844_v27 }
 0xba4   :  { %v7855_v23 = vmul.f32 1.442695, %v7849_v7 }
 0xba5   :  { %v7846_v19 = vpop.xlane.xlu0 %7845 }
 0xba6   :  { %9469 = vpow2.f32 %v7855_v23  ;;  %v7850_v22 = vsub.f32 %v7836_v43, %v7846_v19 }
 0xba8   :  { %v7857_v8 = vmul.f32 1.442695, %v7850_v22 }
 0xba9   :  { %v9466_v55 = vpop.eup %9465 }
 0xbaa   :  { %9471 = vpow2.f32 %v7857_v8  ;;  %7861 = vadd.xlane.f32.xlu0 %v9466_v55 }
 0xbab   :  { %v9468_v36 = vpop.eup %9467 }
 0xbac   :  { %7859 = vadd.xlane.f32.xlu1 %v9468_v36 }
 0xbb3   :  { %v9470_v20 = vpop.eup %9469 }
 0xbb4   :  { %7863 = vadd.xlane.f32.xlu1 %v9470_v20 }
 0xbb7   :  { %v9472_v16 = vpop.eup %9471 }
 0xbb8   :  { %7865 = vadd.xlane.f32.xlu0 %v9472_v16 }
 0xc33   :  { %v7862_v57 = vpop.xlane.xlu0 %7861 }
 0xc34   :  { %9473 = vlog2.f32 %v7862_v57 }
 0xc35   :  { %v7860_v1 = vpop.xlane.xlu1 %7859 }
 0xc36   :  { %9475 = vlog2.f32 %v7860_v1 }
 0xc3d   :  { %v7864_v47 = vpop.xlane.xlu1 %7863 }
 0xc3e   :  { %9477 = vlog2.f32 %v7864_v47 }
 0xc41   :  { %v9474_v50 = vpop.eup %9473  ;;  %v7866_v45 = vpop.xlane.xlu0 %7865 }
 0xc42   :  { %v7870_v3 = vmul.f32 0.6931472, %v9474_v50  ;;  %9479 = vlog2.f32 %v7866_v45 }
 0xc43   :  { %v9476_v54 = vpop.eup %9475 }
 0xc44   :  { %v7876_v28 = vsub.f32 %v7848_v46, %v7870_v3  ;;  %v7868_v12 = vmul.f32 0.6931472, %v9476_v54 }
 0xc46   :  { %7880 = vst [vmem:[%s14938_s15 + $0x8] sm:$0xff] %v7876_v28  ;;  %v7875_v18 = vsub.f32 %v7847_v58, %v7868_v12 }
 0xc48   :  { %7879 = vst [vmem:[%s14938_s15] sm:$0xff] %v7875_v18 }
 0xc4b   :  { %v9478_v34 = vpop.eup %9477 }
 0xc4c   :  { %v7872_v5 = vmul.f32 0.6931472, %v9478_v34 }
 0xc4e   :  { %v7877_v53 = vsub.f32 %v7849_v7, %v7872_v5 }
 0xc4f   :  { %v9480_v21 = vpop.eup %9479 }
 0xc50   :  { %7881 = vst [vmem:[%s14938_s15 + $0x10] sm:$0xff] %v7877_v53  ;;  %v7874_v11 = vmul.f32 0.6931472, %v9480_v21 }
 0xc52   :  { %v7878_v37 = vsub.f32 %v7850_v22, %v7874_v11 }
 0xc54   :  { %7882 = vst [vmem:[%s14938_s15 + $0x18] sm:$0xff] %v7878_v37 }

</bundles_post_ra>
